<compile_context>
chip_gen: v6e
topology: v6e:2x2x1
jax: 0.10.0
libtpu: 0.0.40
codegen_flags: <defaults>
</compile_context>

<pallas_src>
import functools

import jax
import jax.numpy as jnp
from jax import lax
from jax.experimental import pallas as pl
from jax.experimental.pallas import tpu as pltpu


def _round_up(a, m):
    return (a + m - 1) // m * m


# ----------------------------------------------------------------------------
# Generic full-K matmul + fused epilogue Pallas kernel
# ----------------------------------------------------------------------------

def _mm_kernel(*refs, n_act, n_aux, epilogue, gate_cols):
    """refs = [act_0..act_{n_act-1}, w_0..w_{n_act-1}, bias, aux_0.., out]."""
    act_refs = refs[:n_act]
    w_refs = refs[n_act:2 * n_act]
    b_ref = refs[2 * n_act]
    aux_refs = refs[2 * n_act + 1:2 * n_act + 1 + n_aux]
    o_ref = refs[2 * n_act + 1 + n_aux]

    # Full-K reduction for this M tile: sum of one MXU dot per activation
    # stream (x-patches, h-patches) against its resident weight block.
    acc = jnp.dot(act_refs[0][...], w_refs[0][...],
                  preferred_element_type=jnp.float32)
    for a_ref, w_ref in zip(act_refs[1:], w_refs[1:]):
        acc += jnp.dot(a_ref[...], w_ref[...],
                       preferred_element_type=jnp.float32)
    pre = acc + b_ref[...]                       # f32 epilogue

    if epilogue == "relu":
        out = jnp.maximum(pre, 0.0)
    elif epilogue == "gates":
        # columns = [z_pre | r_pre]; aux[0] holds h in columns [Ch, 2Ch).
        # z columns pass through (mask), r columns are multiplied by h.
        s = pl.reciprocal(1.0 + jnp.exp(-pre), approx=True)   # sigmoid on EUP
        h = aux_refs[0][...].astype(jnp.float32)
        col = lax.broadcasted_iota(jnp.int32, pre.shape, 1)
        out = s * jnp.where(col < gate_cols, 1.0, h)
    elif epilogue == "update":
        z = aux_refs[0][...].astype(jnp.float32)
        h = aux_refs[1][...].astype(jnp.float32)
        out = (1.0 - z) * h + z * jnp.tanh(pre)
    else:
        raise ValueError(f"unknown epilogue {epilogue}")
    o_ref[...] = out.astype(o_ref.dtype)


def matmul_fused(acts, weights, b, epilogue, aux=(), gate_cols=0,
                 out_dtype=jnp.float32, tm_max=512):
    """out = epilogue(sum_i acts[i] @ weights[i] + b).

    acts   : list of (M, K_i) arrays (cast to bf16; K_i padded to 128 lanes)
    weights: list of (K_i, N)  arrays (bf16, resident full-K blocks)
    b      : (N,) bias / shift
    aux    : tuple of (M, N) arrays, DMA'd bf16, upcast in the epilogue
    Output is lane-dense (N padded to 128); accumulation + epilogue in f32.
    Grid is 1-D over M (each step does the whole K reduction).
    tm_max=512 fits v7x's 64 MiB VMEM at the real problem size; v5e/v6e may
    sweep 1024.
    """
    M = acts[0].shape[0]
    N = weights[0].shape[1]
    assert b.shape == (N,)
    Np = _round_up(N, 128)

    # M tile: multiple of 16 (bf16 sublane packing); keep the tile count even
    # when >1 so the "parallel" M axis balances across 2 TensorCores (v7x).
    tm = min(tm_max, _round_up(M, 16))
    n_tiles = -(-M // tm)
    if n_tiles > 1 and n_tiles % 2 == 1:
        n_tiles += 1
        tm = max(16, _round_up(-(-M // n_tiles), 16))
    Mp = _round_up(M, tm)

    acts_p, w_p = [], []
    for a, w in zip(acts, weights):
        K = a.shape[1]
        assert w.shape[0] == K
        Kp = _round_up(K, 128)
        acts_p.append(jnp.pad(a.astype(jnp.bfloat16),
                              ((0, Mp - M), (0, Kp - K))))
        w_p.append(jnp.pad(w.astype(jnp.bfloat16),
                           ((0, Kp - K), (0, Np - N))))
    bb = jnp.pad(b.reshape(1, N).astype(jnp.float32), ((0, 0), (0, Np - N)))
    aux_p = tuple(
        jnp.pad(a.astype(jnp.bfloat16), ((0, Mp - M), (0, Np - a.shape[1])))
        for a in aux)

    in_specs = (
        [pl.BlockSpec((tm, ap.shape[1]), lambda i: (i, 0)) for ap in acts_p]
        + [pl.BlockSpec(wp.shape, lambda i: (0, 0)) for wp in w_p]   # resident
        + [pl.BlockSpec((1, Np), lambda i: (0, 0))]
        + [pl.BlockSpec((tm, Np), lambda i: (i, 0)) for _ in aux_p]
    )

    out = pl.pallas_call(
        functools.partial(_mm_kernel, n_act=len(acts_p), n_aux=len(aux_p),
                          epilogue=epilogue, gate_cols=gate_cols),
        out_shape=jax.ShapeDtypeStruct((Mp, Np), out_dtype),
        grid=(Mp // tm,),
        in_specs=in_specs,
        out_specs=pl.BlockSpec((tm, Np), lambda i: (i, 0)),
        compiler_params=pltpu.CompilerParams(
            dimension_semantics=("parallel",),
            vmem_limit_bytes=48 * 1024 * 1024),
    )(*acts_p, *w_p, bb, *aux_p)
    return out[:M, :N]


# ----------------------------------------------------------------------------
# JAX glue: im2col (data movement only; all matmuls run in the Pallas kernel)
# ----------------------------------------------------------------------------

def _im2col(x, kh, kw):
    """x:(B,C,H,W) -> patches (B*Ho*Wo, C*kh*kw), rows ordered (b, y, x),
    K ordered channel-outermost (matches w.reshape(Cout, C*kh*kw))."""
    B, C, H, W = x.shape
    Ho, Wo = H - kh + 1, W - kw + 1
    cols = []
    for dy in range(kh):
        for dx in range(kw):
            cols.append(x[:, :, dy:dy + Ho, dx:dx + Wo])
    p = jnp.stack(cols, axis=0).reshape(kh, kw, B, C, Ho, Wo)
    p = p.transpose(2, 4, 5, 3, 0, 1).reshape(B * Ho * Wo, C * kh * kw)
    return p, Ho, Wo


def _split_weight_xh(w, cx):
    """(Cout, Cx+Ch, k, k) -> ((Cx*k*k, Cout), (Ch*k*k, Cout)) matmul weights."""
    cout = w.shape[0]
    wx = w[:, :cx].reshape(cout, -1).T
    wh = w[:, cx:].reshape(cout, -1).T
    return wx, wh


def _nchw_to_flat(a):
    B, C, H, W = a.shape
    return a.transpose(0, 2, 3, 1).reshape(B * H * W, C)


def _flat_to_nchw(a, B, H, W):
    return a.reshape(B, H, W, -1).transpose(0, 3, 1, 2)


def conv_gru_cell(p, x, h, ksize):
    """ConvGRU cell; returns (ReLU(valid output conv) [bf16], new hidden [f32])."""
    B, Cx, H, W = x.shape
    Ch = h.shape[1]
    k = ksize
    pad = k // 2

    x16 = x.astype(jnp.bfloat16)
    h16 = h.astype(jnp.bfloat16)

    # 'same'-padding patches built ONCE in bf16; the x part is shared by the
    # gate conv and the candidate conv, and x/h stay separate kernel inputs
    # (two dots summed in-kernel) so no patch concat is materialized in HBM.
    xp = jnp.pad(x16, ((0, 0), (0, 0), (pad, pad), (pad, pad)))
    hp = jnp.pad(h16, ((0, 0), (0, 0), (pad, pad), (pad, pad)))
    px, _, _ = _im2col(xp, k, k)                   # (M, Cx*k*k), M = B*H*W
    ph, _, _ = _im2col(hp, k, k)                   # (M, Ch*k*k)
    h_flat = _nchw_to_flat(h16)                    # (M, Ch)

    # ---- combined z/r gate conv + fused sigmoid / r*h epilogue
    w_zr = jnp.concatenate([p["w_z"], p["w_r"]], axis=0)   # (2Ch, Cx+Ch, k, k)
    b_zr = jnp.concatenate([p["b_z"], p["b_r"]], axis=0)
    wzr_x, wzr_h = _split_weight_xh(w_zr, Cx)
    aux_g = jnp.pad(h_flat, ((0, 0), (Ch, 0)))     # h sits in columns [Ch, 2Ch)
    zr = matmul_fused([px, ph], [wzr_x, wzr_h], b_zr, "gates",
                      aux=(aux_g,), gate_cols=Ch,
                      out_dtype=jnp.bfloat16)      # (M, 2Ch) = [z | r*h]
    z_flat = zr[:, :Ch]
    rh = _flat_to_nchw(zr[:, Ch:], B, H, W)

    # ---- candidate conv + fused GRU blend (reuses px)
    rhp = jnp.pad(rh, ((0, 0), (0, 0), (pad, pad), (pad, pad)))
    prh, _, _ = _im2col(rhp, k, k)
    wc_x, wc_h = _split_weight_xh(p["w_c"], Cx)
    h_new_flat = matmul_fused([px, prh], [wc_x, wc_h], p["b_c"], "update",
                              aux=(z_flat, h_flat),
                              out_dtype=jnp.float32)        # (M, Ch)
    h_new = _flat_to_nchw(h_new_flat, B, H, W)

    # ---- output conv ('valid') + fused ReLU (sequential ReLU, noise = id)
    pxo, Ho, Wo = _im2col(x16, k, k)
    pho, _, _ = _im2col(h_new.astype(jnp.bfloat16), k, k)
    wo_x, wo_h = _split_weight_xh(p["w_o"], Cx)
    out_flat = matmul_fused([pxo, pho], [wo_x, wo_h], p["b_o"], "relu",
                            out_dtype=jnp.bfloat16)
    out = _flat_to_nchw(out_flat, B, Ho, Wo)
    return out, h_new


def rnncnn_forward(params, x, hs, ksizes, n_units):
    # rnn[0] + sequential1 (Flatten/Noise(id)/ReLU/Reshape -> ReLU fused above)
    fx, h1 = conv_gru_cell(params["rnn0"], x, hs[0], ksizes[0])
    # rnn[1] + sequential2's Flatten/Noise(id)/ReLU (fused above)
    fx, h2 = conv_gru_cell(params["rnn1"], fx, hs[1], ksizes[1])
    B = fx.shape[0]
    flat = fx.reshape(B, -1).astype(jnp.float32)   # NCHW flatten == torch Flatten
    # Tiny head (M=B, N=n_units): Linear (no bias) + ScaleShift + Softplus in
    # plain XLA -- a dedicated pallas_call here is pure fixed overhead.
    y = flat @ params["linear_w"].astype(jnp.float32).T
    y = y * params["scale"][None, :] + params["shift"][None, :]
    out = jax.nn.softplus(y)
    return out, [h1, h2]


# ----------------------------------------------------------------------------
# Deterministic parameter init
# ----------------------------------------------------------------------------

def _init_cell(key, in_ch, out_ch, rnn_ch, k):
    ks = jax.random.split(key, 8)
    ci = in_ch + rnn_ch
    f = lambda kk, co: 0.1 * jax.random.normal(kk, (co, ci, k, k), jnp.float32)
    g = lambda kk, co: 0.05 * jax.random.normal(kk, (co,), jnp.float32)
    return {
        "w_z": f(ks[0], rnn_ch), "b_z": g(ks[1], rnn_ch),
        "w_r": f(ks[2], rnn_ch), "b_r": g(ks[3], rnn_ch),
        "w_c": f(ks[4], rnn_ch), "b_c": g(ks[5], rnn_ch),
        "w_o": f(ks[6], out_ch), "b_o": g(ks[7], out_ch),
    }


def init_params(key, img_chan, chans, rnn_chans, ksizes, n_units, lin_in):
    k0, k1, k2, k3, k4 = jax.random.split(key, 5)
    return {
        "rnn0": _init_cell(k0, img_chan, chans[0], rnn_chans[0], ksizes[0]),
        "rnn1": _init_cell(k1, chans[0], chans[1], rnn_chans[1], ksizes[1]),
        "linear_w": 0.05 * jax.random.normal(k2, (n_units, lin_in), jnp.float32),
        "scale": 1.0 + 0.1 * jax.random.normal(k3, (n_units,), jnp.float32),
        "shift": 0.1 * jax.random.normal(k4, (n_units,), jnp.float32),
    }


# ----------------------------------------------------------------------------

if __name__ == "__main__":
    B = 2
    img_shape = (4, 16, 16)          # (C, H, W)  -- small stand-in for (40, 50, 50)
    chans = [8, 8]
    rnn_chans = [2, 2]
    ksizes = (7, 5)                  # odd, small stand-in for (15, 11)
    n_units = 5

    H, W = img_shape[1:]
    H1, W1 = H - ksizes[0] + 1, W - ksizes[0] + 1     # update_shape after rnn0
    H2, W2 = H1 - ksizes[1] + 1, W1 - ksizes[1] + 1   # update_shape after rnn1
    lin_in = chans[1] * H2 * W2

    key = jax.random.PRNGKey(0)
    k_x, k_h0, k_h1, k_p = jax.random.split(key, 4)
    x = jax.random.normal(k_x, (B, img_shape[0], H, W), jnp.float32)
    h0 = jax.random.normal(k_h0, (B, rnn_chans[0], H, W), jnp.float32)
    h1 = jax.random.normal(k_h1, (B, rnn_chans[1], H1, W1), jnp.float32)

    params = init_params(k_p, img_shape[0], chans, rnn_chans, ksizes, n_units,
                         lin_in)

    fwd = jax.jit(functools.partial(rnncnn_forward, ksizes=ksizes,
                                    n_units=n_units))
    fx, (h1_new, h2_new) = fwd(params, x, [h0, h1])
    jax.block_until_ready((fx, h1_new, h2_new))

    assert fx.shape == (B, n_units), fx.shape
    assert h1_new.shape == (B, rnn_chans[0], H, W), h1_new.shape
    assert h2_new.shape == (B, rnn_chans[1], H1, W1), h2_new.shape
    assert bool(jnp.all(jnp.isfinite(fx)))
    assert bool(jnp.all(fx >= 0.0))   # softplus output is non-negative

    print("KERNEL_OK")
</pallas_src>

<mosaic_0001>
module attributes {stable_mosaic.version = 11 : i64} {
  func.func @_mm_kernel(%arg0: i32, %arg1: memref<512x256xbf16, #tpu.memory_space<vmem>>, %arg2: memref<512x128xbf16, #tpu.memory_space<vmem>>, %arg3: memref<256x128xbf16, #tpu.memory_space<vmem>>, %arg4: memref<128x128xbf16, #tpu.memory_space<vmem>>, %arg5: memref<1x128xf32, #tpu.memory_space<vmem>>, %arg6: memref<512x128xbf16, #tpu.memory_space<vmem>>, %arg7: memref<512x128xbf16, #tpu.memory_space<vmem>>) attributes {dimension_semantics = [#tpu.dimension_semantics<parallel>], iteration_bounds = array<i64: 1>, scalar_prefetch = 0 : i64, scratch_operands = 0 : i64, tpu.core_type = #tpu.core_type<tc>, window_params = [{transform_indices = @transform_0, window_bounds = array<i64: 512, 256>}, {transform_indices = @transform_1, window_bounds = array<i64: 512, 128>}, {pipeline_mode = #tpu.pipeline_mode<synchronous>, transform_indices = @transform_2, window_bounds = array<i64: 256, 128>}, {pipeline_mode = #tpu.pipeline_mode<synchronous>, transform_indices = @transform_3, window_bounds = array<i64: 128, 128>}, {pipeline_mode = #tpu.pipeline_mode<synchronous>, transform_indices = @transform_4, window_bounds = array<i64: 1, 128>}, {transform_indices = @transform_5, window_bounds = array<i64: 512, 128>}, {transform_indices = @transform_6, window_bounds = array<i64: 512, 128>}]} {
    %c0 = arith.constant 0 : index
    %c0_0 = arith.constant 0 : index
    %0 = vector.load %arg1[%c0, %c0_0] : memref<512x256xbf16, #tpu.memory_space<vmem>>, vector<512x256xbf16>
    %c0_1 = arith.constant 0 : index
    %c0_2 = arith.constant 0 : index
    %1 = vector.load %arg3[%c0_1, %c0_2] : memref<256x128xbf16, #tpu.memory_space<vmem>>, vector<256x128xbf16>
    %cst = arith.constant dense<0.000000e+00> : vector<512x128xf32>
    %2 = tpu.matmul %0, %1, %cst {dimension_numbers = #tpu.dot_dimension_numbers<[1], [0], [0], [1], [0, 0, 1, 1], [], []>} : vector<512x256xbf16>, vector<256x128xbf16>, vector<512x128xf32> -> vector<512x128xf32>
    %c0_3 = arith.constant 0 : index
    %c0_4 = arith.constant 0 : index
    %3 = vector.load %arg2[%c0_3, %c0_4] : memref<512x128xbf16, #tpu.memory_space<vmem>>, vector<512x128xbf16>
    %c0_5 = arith.constant 0 : index
    %c0_6 = arith.constant 0 : index
    %4 = vector.load %arg4[%c0_5, %c0_6] : memref<128x128xbf16, #tpu.memory_space<vmem>>, vector<128x128xbf16>
    %cst_7 = arith.constant dense<0.000000e+00> : vector<512x128xf32>
    %5 = tpu.matmul %3, %4, %cst_7 {dimension_numbers = #tpu.dot_dimension_numbers<[1], [0], [0], [1], [0, 0, 1, 1], [], []>} : vector<512x128xbf16>, vector<128x128xbf16>, vector<512x128xf32> -> vector<512x128xf32>
    %6 = arith.addf %2, %5 : vector<512x128xf32>
    %c0_8 = arith.constant 0 : index
    %c0_9 = arith.constant 0 : index
    %7 = vector.load %arg5[%c0_8, %c0_9] : memref<1x128xf32, #tpu.memory_space<vmem>>, vector<1x128xf32>
    %8 = vector.broadcast %7 : vector<1x128xf32> to vector<512x128xf32>
    %9 = arith.addf %6, %8 : vector<512x128xf32>
    %cst_10 = arith.constant 0.000000e+00 : f32
    %10 = vector.broadcast %cst_10 : f32 to vector<512x128xf32>
    %11 = arith.subf %10, %9 : vector<512x128xf32>
    %12 = math.exp %11 : vector<512x128xf32>
    %cst_11 = arith.constant 1.000000e+00 : f32
    %13 = vector.broadcast %cst_11 : f32 to vector<512x128xf32>
    %14 = arith.addf %13, %12 : vector<512x128xf32>
    %15 = tpu.reciprocal %14 {approx = true} : vector<512x128xf32> -> vector<512x128xf32>
    %c0_12 = arith.constant 0 : index
    %c0_13 = arith.constant 0 : index
    %16 = vector.load %arg6[%c0_12, %c0_13] : memref<512x128xbf16, #tpu.memory_space<vmem>>, vector<512x128xbf16>
    %17 = arith.extf %16 : vector<512x128xbf16> to vector<512x128xf32>
    %18 = tpu.iota {dimensions = array<i32: 1>} : vector<512x128xi32>
    %c2_i32 = arith.constant 2 : i32
    %19 = vector.broadcast %c2_i32 : i32 to vector<512x128xi32>
    %20 = arith.cmpi slt, %18, %19 : vector<512x128xi32>
    %cst_14 = arith.constant 1.000000e+00 : f32
    %21 = vector.broadcast %cst_14 : f32 to vector<512x128xf32>
    %22 = arith.select %20, %21, %17 : vector<512x128xi1>, vector<512x128xf32>
    %23 = arith.mulf %15, %22 : vector<512x128xf32>
    %24 = arith.truncf %23 : vector<512x128xf32> to vector<512x128xbf16>
    %c0_15 = arith.constant 0 : index
    %c0_16 = arith.constant 0 : index
    %25 = vector.load %arg7[%c0_15, %c0_16] : memref<512x128xbf16, #tpu.memory_space<vmem>>, vector<512x128xbf16>
    tpu.vector_store %arg7[%c0_15, %c0_16], %24 {strides = array<i32>} : memref<512x128xbf16, #tpu.memory_space<vmem>>, vector<512x128xbf16>,
    return
  }
  func.func @transform_0(%arg0: i32) -> (i32, i32) {
    %c0_i32 = arith.constant 0 : i32
    %c0_i32_0 = arith.constant 0 : i32
    return %arg0, %c0_i32 : i32, i32
  }
  func.func @transform_1(%arg0: i32) -> (i32, i32) {
    %c0_i32 = arith.constant 0 : i32
    %c0_i32_0 = arith.constant 0 : i32
    return %arg0, %c0_i32 : i32, i32
  }
  func.func @transform_2(%arg0: i32) -> (i32, i32) {
    %c0_i32 = arith.constant 0 : i32
    %c0_i32_0 = arith.constant 0 : i32
    %c0_i32_1 = arith.constant 0 : i32
    return %c0_i32, %c0_i32_0 : i32, i32
  }
  func.func @transform_3(%arg0: i32) -> (i32, i32) {
    %c0_i32 = arith.constant 0 : i32
    %c0_i32_0 = arith.constant 0 : i32
    %c0_i32_1 = arith.constant 0 : i32
    return %c0_i32, %c0_i32_0 : i32, i32
  }
  func.func @transform_4(%arg0: i32) -> (i32, i32) {
    %c0_i32 = arith.constant 0 : i32
    %c0_i32_0 = arith.constant 0 : i32
    %c0_i32_1 = arith.constant 0 : i32
    return %c0_i32, %c0_i32_0 : i32, i32
  }
  func.func @transform_5(%arg0: i32) -> (i32, i32) {
    %c0_i32 = arith.constant 0 : i32
    %c0_i32_0 = arith.constant 0 : i32
    return %arg0, %c0_i32 : i32, i32
  }
  func.func @transform_6(%arg0: i32) -> (i32, i32) {
    %c0_i32 = arith.constant 0 : i32
    %c0_i32_0 = arith.constant 0 : i32
    return %arg0, %c0_i32 : i32, i32
  }
}

module attributes {stable_mosaic.version = 11 : i64} {
  func.func @_mm_kernel(%arg0: i32, %arg1: memref<512x256xbf16, #tpu.memory_space<vmem>>, %arg2: memref<512x128xbf16, #tpu.memory_space<vmem>>, %arg3: memref<256x128xbf16, #tpu.memory_space<vmem>>, %arg4: memref<128x128xbf16, #tpu.memory_space<vmem>>, %arg5: memref<1x128xf32, #tpu.memory_space<vmem>>, %arg6: memref<512x128xbf16, #tpu.memory_space<vmem>>, %arg7: memref<512x128xbf16, #tpu.memory_space<vmem>>, %arg8: memref<512x128xf32, #tpu.memory_space<vmem>>) attributes {dimension_semantics = [#tpu.dimension_semantics<parallel>], iteration_bounds = array<i64: 1>, scalar_prefetch = 0 : i64, scratch_operands = 0 : i64, tpu.core_type = #tpu.core_type<tc>, window_params = [{transform_indices = @transform_0, window_bounds = array<i64: 512, 256>}, {transform_indices = @transform_1, window_bounds = array<i64: 512, 128>}, {pipeline_mode = #tpu.pipeline_mode<synchronous>, transform_indices = @transform_2, window_bounds = array<i64: 256, 128>}, {pipeline_mode = #tpu.pipeline_mode<synchronous>, transform_indices = @transform_3, window_bounds = array<i64: 128, 128>}, {pipeline_mode = #tpu.pipeline_mode<synchronous>, transform_indices = @transform_4, window_bounds = array<i64: 1, 128>}, {transform_indices = @transform_5, window_bounds = array<i64: 512, 128>}, {transform_indices = @transform_6, window_bounds = array<i64: 512, 128>}, {transform_indices = @transform_7, window_bounds = array<i64: 512, 128>}]} {
    %c0 = arith.constant 0 : index
    %c0_0 = arith.constant 0 : index
    %0 = vector.load %arg1[%c0, %c0_0] : memref<512x256xbf16, #tpu.memory_space<vmem>>, vector<512x256xbf16>
    %c0_1 = arith.constant 0 : index
    %c0_2 = arith.constant 0 : index
    %1 = vector.load %arg3[%c0_1, %c0_2] : memref<256x128xbf16, #tpu.memory_space<vmem>>, vector<256x128xbf16>
    %cst = arith.constant dense<0.000000e+00> : vector<512x128xf32>
    %2 = tpu.matmul %0, %1, %cst {dimension_numbers = #tpu.dot_dimension_numbers<[1], [0], [0], [1], [0, 0, 1, 1], [], []>} : vector<512x256xbf16>, vector<256x128xbf16>, vector<512x128xf32> -> vector<512x128xf32>
    %c0_3 = arith.constant 0 : index
    %c0_4 = arith.constant 0 : index
    %3 = vector.load %arg2[%c0_3, %c0_4] : memref<512x128xbf16, #tpu.memory_space<vmem>>, vector<512x128xbf16>
    %c0_5 = arith.constant 0 : index
    %c0_6 = arith.constant 0 : index
    %4 = vector.load %arg4[%c0_5, %c0_6] : memref<128x128xbf16, #tpu.memory_space<vmem>>, vector<128x128xbf16>
    %cst_7 = arith.constant dense<0.000000e+00> : vector<512x128xf32>
    %5 = tpu.matmul %3, %4, %cst_7 {dimension_numbers = #tpu.dot_dimension_numbers<[1], [0], [0], [1], [0, 0, 1, 1], [], []>} : vector<512x128xbf16>, vector<128x128xbf16>, vector<512x128xf32> -> vector<512x128xf32>
    %6 = arith.addf %2, %5 : vector<512x128xf32>
    %c0_8 = arith.constant 0 : index
    %c0_9 = arith.constant 0 : index
    %7 = vector.load %arg5[%c0_8, %c0_9] : memref<1x128xf32, #tpu.memory_space<vmem>>, vector<1x128xf32>
    %8 = vector.broadcast %7 : vector<1x128xf32> to vector<512x128xf32>
    %9 = arith.addf %6, %8 : vector<512x128xf32>
    %c0_10 = arith.constant 0 : index
    %c0_11 = arith.constant 0 : index
    %10 = vector.load %arg6[%c0_10, %c0_11] : memref<512x128xbf16, #tpu.memory_space<vmem>>, vector<512x128xbf16>
    %11 = arith.extf %10 : vector<512x128xbf16> to vector<512x128xf32>
    %c0_12 = arith.constant 0 : index
    %c0_13 = arith.constant 0 : index
    %12 = vector.load %arg7[%c0_12, %c0_13] : memref<512x128xbf16, #tpu.memory_space<vmem>>, vector<512x128xbf16>
    %13 = arith.extf %12 : vector<512x128xbf16> to vector<512x128xf32>
    %cst_14 = arith.constant 1.000000e+00 : f32
    %14 = vector.broadcast %cst_14 : f32 to vector<512x128xf32>
    %15 = arith.subf %14, %11 : vector<512x128xf32>
    %16 = arith.mulf %15, %13 : vector<512x128xf32>
    %17 = math.tanh %9 : vector<512x128xf32>
    %18 = arith.mulf %11, %17 : vector<512x128xf32>
    %19 = arith.addf %16, %18 : vector<512x128xf32>
    %c0_15 = arith.constant 0 : index
    %c0_16 = arith.constant 0 : index
    %20 = vector.load %arg8[%c0_15, %c0_16] : memref<512x128xf32, #tpu.memory_space<vmem>>, vector<512x128xf32>
    tpu.vector_store %arg8[%c0_15, %c0_16], %19 {strides = array<i32>} : memref<512x128xf32, #tpu.memory_space<vmem>>, vector<512x128xf32>,
    return
  }
  func.func @transform_0(%arg0: i32) -> (i32, i32) {
    %c0_i32 = arith.constant 0 : i32
    %c0_i32_0 = arith.constant 0 : i32
    return %arg0, %c0_i32 : i32, i32
  }
  func.func @transform_1(%arg0: i32) -> (i32, i32) {
    %c0_i32 = arith.constant 0 : i32
    %c0_i32_0 = arith.constant 0 : i32
    return %arg0, %c0_i32 : i32, i32
  }
  func.func @transform_2(%arg0: i32) -> (i32, i32) {
    %c0_i32 = arith.constant 0 : i32
    %c0_i32_0 = arith.constant 0 : i32
    %c0_i32_1 = arith.constant 0 : i32
    return %c0_i32, %c0_i32_0 : i32, i32
  }
  func.func @transform_3(%arg0: i32) -> (i32, i32) {
    %c0_i32 = arith.constant 0 : i32
    %c0_i32_0 = arith.constant 0 : i32
    %c0_i32_1 = arith.constant 0 : i32
    return %c0_i32, %c0_i32_0 : i32, i32
  }
  func.func @transform_4(%arg0: i32) -> (i32, i32) {
    %c0_i32 = arith.constant 0 : i32
    %c0_i32_0 = arith.constant 0 : i32
    %c0_i32_1 = arith.constant 0 : i32
    return %c0_i32, %c0_i32_0 : i32, i32
  }
  func.func @transform_5(%arg0: i32) -> (i32, i32) {
    %c0_i32 = arith.constant 0 : i32
    %c0_i32_0 = arith.constant 0 : i32
    return %arg0, %c0_i32 : i32, i32
  }
  func.func @transform_6(%arg0: i32) -> (i32, i32) {
    %c0_i32 = arith.constant 0 : i32
    %c0_i32_0 = arith.constant 0 : i32
    return %arg0, %c0_i32 : i32, i32
  }
  func.func @transform_7(%arg0: i32) -> (i32, i32) {
    %c0_i32 = arith.constant 0 : i32
    %c0_i32_0 = arith.constant 0 : i32
    return %arg0, %c0_i32 : i32, i32
  }
}

module attributes {stable_mosaic.version = 11 : i64} {
  func.func @_mm_kernel(%arg0: i32, %arg1: memref<208x256xbf16, #tpu.memory_space<vmem>>, %arg2: memref<208x128xbf16, #tpu.memory_space<vmem>>, %arg3: memref<256x128xbf16, #tpu.memory_space<vmem>>, %arg4: memref<128x128xbf16, #tpu.memory_space<vmem>>, %arg5: memref<1x128xf32, #tpu.memory_space<vmem>>, %arg6: memref<208x128xbf16, #tpu.memory_space<vmem>>) attributes {dimension_semantics = [#tpu.dimension_semantics<parallel>], iteration_bounds = array<i64: 1>, scalar_prefetch = 0 : i64, scratch_operands = 0 : i64, tpu.core_type = #tpu.core_type<tc>, window_params = [{transform_indices = @transform_0, window_bounds = array<i64: 208, 256>}, {transform_indices = @transform_1, window_bounds = array<i64: 208, 128>}, {pipeline_mode = #tpu.pipeline_mode<synchronous>, transform_indices = @transform_2, window_bounds = array<i64: 256, 128>}, {pipeline_mode = #tpu.pipeline_mode<synchronous>, transform_indices = @transform_3, window_bounds = array<i64: 128, 128>}, {pipeline_mode = #tpu.pipeline_mode<synchronous>, transform_indices = @transform_4, window_bounds = array<i64: 1, 128>}, {transform_indices = @transform_5, window_bounds = array<i64: 208, 128>}]} {
    %c0 = arith.constant 0 : index
    %c0_0 = arith.constant 0 : index
    %0 = vector.load %arg1[%c0, %c0_0] : memref<208x256xbf16, #tpu.memory_space<vmem>>, vector<208x256xbf16>
    %c0_1 = arith.constant 0 : index
    %c0_2 = arith.constant 0 : index
    %1 = vector.load %arg3[%c0_1, %c0_2] : memref<256x128xbf16, #tpu.memory_space<vmem>>, vector<256x128xbf16>
    %cst = arith.constant dense<0.000000e+00> : vector<208x128xf32>
    %2 = tpu.matmul %0, %1, %cst {dimension_numbers = #tpu.dot_dimension_numbers<[1], [0], [0], [1], [0, 0, 1, 1], [], []>} : vector<208x256xbf16>, vector<256x128xbf16>, vector<208x128xf32> -> vector<208x128xf32>
    %c0_3 = arith.constant 0 : index
    %c0_4 = arith.constant 0 : index
    %3 = vector.load %arg2[%c0_3, %c0_4] : memref<208x128xbf16, #tpu.memory_space<vmem>>, vector<208x128xbf16>
    %c0_5 = arith.constant 0 : index
    %c0_6 = arith.constant 0 : index
    %4 = vector.load %arg4[%c0_5, %c0_6] : memref<128x128xbf16, #tpu.memory_space<vmem>>, vector<128x128xbf16>
    %cst_7 = arith.constant dense<0.000000e+00> : vector<208x128xf32>
    %5 = tpu.matmul %3, %4, %cst_7 {dimension_numbers = #tpu.dot_dimension_numbers<[1], [0], [0], [1], [0, 0, 1, 1], [], []>} : vector<208x128xbf16>, vector<128x128xbf16>, vector<208x128xf32> -> vector<208x128xf32>
    %6 = arith.addf %2, %5 : vector<208x128xf32>
    %c0_8 = arith.constant 0 : index
    %c0_9 = arith.constant 0 : index
    %7 = vector.load %arg5[%c0_8, %c0_9] : memref<1x128xf32, #tpu.memory_space<vmem>>, vector<1x128xf32>
    %8 = vector.broadcast %7 : vector<1x128xf32> to vector<208x128xf32>
    %9 = arith.addf %6, %8 : vector<208x128xf32>
    %cst_10 = arith.constant 0.000000e+00 : f32
    %10 = vector.broadcast %cst_10 : f32 to vector<208x128xf32>
    %11 = arith.maximumf %9, %10 : vector<208x128xf32>
    %12 = arith.truncf %11 : vector<208x128xf32> to vector<208x128xbf16>
    %c0_11 = arith.constant 0 : index
    %c0_12 = arith.constant 0 : index
    %13 = vector.load %arg6[%c0_11, %c0_12] : memref<208x128xbf16, #tpu.memory_space<vmem>>, vector<208x128xbf16>
    tpu.vector_store %arg6[%c0_11, %c0_12], %12 {strides = array<i32>} : memref<208x128xbf16, #tpu.memory_space<vmem>>, vector<208x128xbf16>,
    return
  }
  func.func @transform_0(%arg0: i32) -> (i32, i32) {
    %c0_i32 = arith.constant 0 : i32
    %c0_i32_0 = arith.constant 0 : i32
    return %arg0, %c0_i32 : i32, i32
  }
  func.func @transform_1(%arg0: i32) -> (i32, i32) {
    %c0_i32 = arith.constant 0 : i32
    %c0_i32_0 = arith.constant 0 : i32
    return %arg0, %c0_i32 : i32, i32
  }
  func.func @transform_2(%arg0: i32) -> (i32, i32) {
    %c0_i32 = arith.constant 0 : i32
    %c0_i32_0 = arith.constant 0 : i32
    %c0_i32_1 = arith.constant 0 : i32
    return %c0_i32, %c0_i32_0 : i32, i32
  }
  func.func @transform_3(%arg0: i32) -> (i32, i32) {
    %c0_i32 = arith.constant 0 : i32
    %c0_i32_0 = arith.constant 0 : i32
    %c0_i32_1 = arith.constant 0 : i32
    return %c0_i32, %c0_i32_0 : i32, i32
  }
  func.func @transform_4(%arg0: i32) -> (i32, i32) {
    %c0_i32 = arith.constant 0 : i32
    %c0_i32_0 = arith.constant 0 : i32
    %c0_i32_1 = arith.constant 0 : i32
    return %c0_i32, %c0_i32_0 : i32, i32
  }
  func.func @transform_5(%arg0: i32) -> (i32, i32) {
    %c0_i32 = arith.constant 0 : i32
    %c0_i32_0 = arith.constant 0 : i32
    return %arg0, %c0_i32 : i32, i32
  }
}

module attributes {stable_mosaic.version = 11 : i64} {
  func.func @_mm_kernel(%arg0: i32, %arg1: memref<208x256xbf16, #tpu.memory_space<vmem>>, %arg2: memref<208x128xbf16, #tpu.memory_space<vmem>>, %arg3: memref<256x128xbf16, #tpu.memory_space<vmem>>, %arg4: memref<128x128xbf16, #tpu.memory_space<vmem>>, %arg5: memref<1x128xf32, #tpu.memory_space<vmem>>, %arg6: memref<208x128xbf16, #tpu.memory_space<vmem>>, %arg7: memref<208x128xbf16, #tpu.memory_space<vmem>>) attributes {dimension_semantics = [#tpu.dimension_semantics<parallel>], iteration_bounds = array<i64: 1>, scalar_prefetch = 0 : i64, scratch_operands = 0 : i64, tpu.core_type = #tpu.core_type<tc>, window_params = [{transform_indices = @transform_0, window_bounds = array<i64: 208, 256>}, {transform_indices = @transform_1, window_bounds = array<i64: 208, 128>}, {pipeline_mode = #tpu.pipeline_mode<synchronous>, transform_indices = @transform_2, window_bounds = array<i64: 256, 128>}, {pipeline_mode = #tpu.pipeline_mode<synchronous>, transform_indices = @transform_3, window_bounds = array<i64: 128, 128>}, {pipeline_mode = #tpu.pipeline_mode<synchronous>, transform_indices = @transform_4, window_bounds = array<i64: 1, 128>}, {transform_indices = @transform_5, window_bounds = array<i64: 208, 128>}, {transform_indices = @transform_6, window_bounds = array<i64: 208, 128>}]} {
    %c0 = arith.constant 0 : index
    %c0_0 = arith.constant 0 : index
    %0 = vector.load %arg1[%c0, %c0_0] : memref<208x256xbf16, #tpu.memory_space<vmem>>, vector<208x256xbf16>
    %c0_1 = arith.constant 0 : index
    %c0_2 = arith.constant 0 : index
    %1 = vector.load %arg3[%c0_1, %c0_2] : memref<256x128xbf16, #tpu.memory_space<vmem>>, vector<256x128xbf16>
    %cst = arith.constant dense<0.000000e+00> : vector<208x128xf32>
    %2 = tpu.matmul %0, %1, %cst {dimension_numbers = #tpu.dot_dimension_numbers<[1], [0], [0], [1], [0, 0, 1, 1], [], []>} : vector<208x256xbf16>, vector<256x128xbf16>, vector<208x128xf32> -> vector<208x128xf32>
    %c0_3 = arith.constant 0 : index
    %c0_4 = arith.constant 0 : index
    %3 = vector.load %arg2[%c0_3, %c0_4] : memref<208x128xbf16, #tpu.memory_space<vmem>>, vector<208x128xbf16>
    %c0_5 = arith.constant 0 : index
    %c0_6 = arith.constant 0 : index
    %4 = vector.load %arg4[%c0_5, %c0_6] : memref<128x128xbf16, #tpu.memory_space<vmem>>, vector<128x128xbf16>
    %cst_7 = arith.constant dense<0.000000e+00> : vector<208x128xf32>
    %5 = tpu.matmul %3, %4, %cst_7 {dimension_numbers = #tpu.dot_dimension_numbers<[1], [0], [0], [1], [0, 0, 1, 1], [], []>} : vector<208x128xbf16>, vector<128x128xbf16>, vector<208x128xf32> -> vector<208x128xf32>
    %6 = arith.addf %2, %5 : vector<208x128xf32>
    %c0_8 = arith.constant 0 : index
    %c0_9 = arith.constant 0 : index
    %7 = vector.load %arg5[%c0_8, %c0_9] : memref<1x128xf32, #tpu.memory_space<vmem>>, vector<1x128xf32>
    %8 = vector.broadcast %7 : vector<1x128xf32> to vector<208x128xf32>
    %9 = arith.addf %6, %8 : vector<208x128xf32>
    %cst_10 = arith.constant 0.000000e+00 : f32
    %10 = vector.broadcast %cst_10 : f32 to vector<208x128xf32>
    %11 = arith.subf %10, %9 : vector<208x128xf32>
    %12 = math.exp %11 : vector<208x128xf32>
    %cst_11 = arith.constant 1.000000e+00 : f32
    %13 = vector.broadcast %cst_11 : f32 to vector<208x128xf32>
    %14 = arith.addf %13, %12 : vector<208x128xf32>
    %15 = tpu.reciprocal %14 {approx = true} : vector<208x128xf32> -> vector<208x128xf32>
    %c0_12 = arith.constant 0 : index
    %c0_13 = arith.constant 0 : index
    %16 = vector.load %arg6[%c0_12, %c0_13] : memref<208x128xbf16, #tpu.memory_space<vmem>>, vector<208x128xbf16>
    %17 = arith.extf %16 : vector<208x128xbf16> to vector<208x128xf32>
    %18 = tpu.iota {dimensions = array<i32: 1>} : vector<208x128xi32>
    %c2_i32 = arith.constant 2 : i32
    %19 = vector.broadcast %c2_i32 : i32 to vector<208x128xi32>
    %20 = arith.cmpi slt, %18, %19 : vector<208x128xi32>
    %cst_14 = arith.constant 1.000000e+00 : f32
    %21 = vector.broadcast %cst_14 : f32 to vector<208x128xf32>
    %22 = arith.select %20, %21, %17 : vector<208x128xi1>, vector<208x128xf32>
    %23 = arith.mulf %15, %22 : vector<208x128xf32>
    %24 = arith.truncf %23 : vector<208x128xf32> to vector<208x128xbf16>
    %c0_15 = arith.constant 0 : index
    %c0_16 = arith.constant 0 : index
    %25 = vector.load %arg7[%c0_15, %c0_16] : memref<208x128xbf16, #tpu.memory_space<vmem>>, vector<208x128xbf16>
    tpu.vector_store %arg7[%c0_15, %c0_16], %24 {strides = array<i32>} : memref<208x128xbf16, #tpu.memory_space<vmem>>, vector<208x128xbf16>,
    return
  }
  func.func @transform_0(%arg0: i32) -> (i32, i32) {
    %c0_i32 = arith.constant 0 : i32
    %c0_i32_0 = arith.constant 0 : i32
    return %arg0, %c0_i32 : i32, i32
  }
  func.func @transform_1(%arg0: i32) -> (i32, i32) {
    %c0_i32 = arith.constant 0 : i32
    %c0_i32_0 = arith.constant 0 : i32
    return %arg0, %c0_i32 : i32, i32
  }
  func.func @transform_2(%arg0: i32) -> (i32, i32) {
    %c0_i32 = arith.constant 0 : i32
    %c0_i32_0 = arith.constant 0 : i32
    %c0_i32_1 = arith.constant 0 : i32
    return %c0_i32, %c0_i32_0 : i32, i32
  }
  func.func @transform_3(%arg0: i32) -> (i32, i32) {
    %c0_i32 = arith.constant 0 : i32
    %c0_i32_0 = arith.constant 0 : i32
    %c0_i32_1 = arith.constant 0 : i32
    return %c0_i32, %c0_i32_0 : i32, i32
  }
  func.func @transform_4(%arg0: i32) -> (i32, i32) {
    %c0_i32 = arith.constant 0 : i32
    %c0_i32_0 = arith.constant 0 : i32
    %c0_i32_1 = arith.constant 0 : i32
    return %c0_i32, %c0_i32_0 : i32, i32
  }
  func.func @transform_5(%arg0: i32) -> (i32, i32) {
    %c0_i32 = arith.constant 0 : i32
    %c0_i32_0 = arith.constant 0 : i32
    return %arg0, %c0_i32 : i32, i32
  }
  func.func @transform_6(%arg0: i32) -> (i32, i32) {
    %c0_i32 = arith.constant 0 : i32
    %c0_i32_0 = arith.constant 0 : i32
    return %arg0, %c0_i32 : i32, i32
  }
}

module attributes {stable_mosaic.version = 11 : i64} {
  func.func @_mm_kernel(%arg0: i32, %arg1: memref<208x256xbf16, #tpu.memory_space<vmem>>, %arg2: memref<208x128xbf16, #tpu.memory_space<vmem>>, %arg3: memref<256x128xbf16, #tpu.memory_space<vmem>>, %arg4: memref<128x128xbf16, #tpu.memory_space<vmem>>, %arg5: memref<1x128xf32, #tpu.memory_space<vmem>>, %arg6: memref<208x128xbf16, #tpu.memory_space<vmem>>, %arg7: memref<208x128xbf16, #tpu.memory_space<vmem>>, %arg8: memref<208x128xf32, #tpu.memory_space<vmem>>) attributes {dimension_semantics = [#tpu.dimension_semantics<parallel>], iteration_bounds = array<i64: 1>, scalar_prefetch = 0 : i64, scratch_operands = 0 : i64, tpu.core_type = #tpu.core_type<tc>, window_params = [{transform_indices = @transform_0, window_bounds = array<i64: 208, 256>}, {transform_indices = @transform_1, window_bounds = array<i64: 208, 128>}, {pipeline_mode = #tpu.pipeline_mode<synchronous>, transform_indices = @transform_2, window_bounds = array<i64: 256, 128>}, {pipeline_mode = #tpu.pipeline_mode<synchronous>, transform_indices = @transform_3, window_bounds = array<i64: 128, 128>}, {pipeline_mode = #tpu.pipeline_mode<synchronous>, transform_indices = @transform_4, window_bounds = array<i64: 1, 128>}, {transform_indices = @transform_5, window_bounds = array<i64: 208, 128>}, {transform_indices = @transform_6, window_bounds = array<i64: 208, 128>}, {transform_indices = @transform_7, window_bounds = array<i64: 208, 128>}]} {
    %c0 = arith.constant 0 : index
    %c0_0 = arith.constant 0 : index
    %0 = vector.load %arg1[%c0, %c0_0] : memref<208x256xbf16, #tpu.memory_space<vmem>>, vector<208x256xbf16>
    %c0_1 = arith.constant 0 : index
    %c0_2 = arith.constant 0 : index
    %1 = vector.load %arg3[%c0_1, %c0_2] : memref<256x128xbf16, #tpu.memory_space<vmem>>, vector<256x128xbf16>
    %cst = arith.constant dense<0.000000e+00> : vector<208x128xf32>
    %2 = tpu.matmul %0, %1, %cst {dimension_numbers = #tpu.dot_dimension_numbers<[1], [0], [0], [1], [0, 0, 1, 1], [], []>} : vector<208x256xbf16>, vector<256x128xbf16>, vector<208x128xf32> -> vector<208x128xf32>
    %c0_3 = arith.constant 0 : index
    %c0_4 = arith.constant 0 : index
    %3 = vector.load %arg2[%c0_3, %c0_4] : memref<208x128xbf16, #tpu.memory_space<vmem>>, vector<208x128xbf16>
    %c0_5 = arith.constant 0 : index
    %c0_6 = arith.constant 0 : index
    %4 = vector.load %arg4[%c0_5, %c0_6] : memref<128x128xbf16, #tpu.memory_space<vmem>>, vector<128x128xbf16>
    %cst_7 = arith.constant dense<0.000000e+00> : vector<208x128xf32>
    %5 = tpu.matmul %3, %4, %cst_7 {dimension_numbers = #tpu.dot_dimension_numbers<[1], [0], [0], [1], [0, 0, 1, 1], [], []>} : vector<208x128xbf16>, vector<128x128xbf16>, vector<208x128xf32> -> vector<208x128xf32>
    %6 = arith.addf %2, %5 : vector<208x128xf32>
    %c0_8 = arith.constant 0 : index
    %c0_9 = arith.constant 0 : index
    %7 = vector.load %arg5[%c0_8, %c0_9] : memref<1x128xf32, #tpu.memory_space<vmem>>, vector<1x128xf32>
    %8 = vector.broadcast %7 : vector<1x128xf32> to vector<208x128xf32>
    %9 = arith.addf %6, %8 : vector<208x128xf32>
    %c0_10 = arith.constant 0 : index
    %c0_11 = arith.constant 0 : index
    %10 = vector.load %arg6[%c0_10, %c0_11] : memref<208x128xbf16, #tpu.memory_space<vmem>>, vector<208x128xbf16>
    %11 = arith.extf %10 : vector<208x128xbf16> to vector<208x128xf32>
    %c0_12 = arith.constant 0 : index
    %c0_13 = arith.constant 0 : index
    %12 = vector.load %arg7[%c0_12, %c0_13] : memref<208x128xbf16, #tpu.memory_space<vmem>>, vector<208x128xbf16>
    %13 = arith.extf %12 : vector<208x128xbf16> to vector<208x128xf32>
    %cst_14 = arith.constant 1.000000e+00 : f32
    %14 = vector.broadcast %cst_14 : f32 to vector<208x128xf32>
    %15 = arith.subf %14, %11 : vector<208x128xf32>
    %16 = arith.mulf %15, %13 : vector<208x128xf32>
    %17 = math.tanh %9 : vector<208x128xf32>
    %18 = arith.mulf %11, %17 : vector<208x128xf32>
    %19 = arith.addf %16, %18 : vector<208x128xf32>
    %c0_15 = arith.constant 0 : index
    %c0_16 = arith.constant 0 : index
    %20 = vector.load %arg8[%c0_15, %c0_16] : memref<208x128xf32, #tpu.memory_space<vmem>>, vector<208x128xf32>
    tpu.vector_store %arg8[%c0_15, %c0_16], %19 {strides = array<i32>} : memref<208x128xf32, #tpu.memory_space<vmem>>, vector<208x128xf32>,
    return
  }
  func.func @transform_0(%arg0: i32) -> (i32, i32) {
    %c0_i32 = arith.constant 0 : i32
    %c0_i32_0 = arith.constant 0 : i32
    return %arg0, %c0_i32 : i32, i32
  }
  func.func @transform_1(%arg0: i32) -> (i32, i32) {
    %c0_i32 = arith.constant 0 : i32
    %c0_i32_0 = arith.constant 0 : i32
    return %arg0, %c0_i32 : i32, i32
  }
  func.func @transform_2(%arg0: i32) -> (i32, i32) {
    %c0_i32 = arith.constant 0 : i32
    %c0_i32_0 = arith.constant 0 : i32
    %c0_i32_1 = arith.constant 0 : i32
    return %c0_i32, %c0_i32_0 : i32, i32
  }
  func.func @transform_3(%arg0: i32) -> (i32, i32) {
    %c0_i32 = arith.constant 0 : i32
    %c0_i32_0 = arith.constant 0 : i32
    %c0_i32_1 = arith.constant 0 : i32
    return %c0_i32, %c0_i32_0 : i32, i32
  }
  func.func @transform_4(%arg0: i32) -> (i32, i32) {
    %c0_i32 = arith.constant 0 : i32
    %c0_i32_0 = arith.constant 0 : i32
    %c0_i32_1 = arith.constant 0 : i32
    return %c0_i32, %c0_i32_0 : i32, i32
  }
  func.func @transform_5(%arg0: i32) -> (i32, i32) {
    %c0_i32 = arith.constant 0 : i32
    %c0_i32_0 = arith.constant 0 : i32
    return %arg0, %c0_i32 : i32, i32
  }
  func.func @transform_6(%arg0: i32) -> (i32, i32) {
    %c0_i32 = arith.constant 0 : i32
    %c0_i32_0 = arith.constant 0 : i32
    return %arg0, %c0_i32 : i32, i32
  }
  func.func @transform_7(%arg0: i32) -> (i32, i32) {
    %c0_i32 = arith.constant 0 : i32
    %c0_i32_0 = arith.constant 0 : i32
    return %arg0, %c0_i32 : i32, i32
  }
}

module attributes {stable_mosaic.version = 11 : i64} {
  func.func @_mm_kernel(%arg0: i32, %arg1: memref<80x256xbf16, #tpu.memory_space<vmem>>, %arg2: memref<80x128xbf16, #tpu.memory_space<vmem>>, %arg3: memref<256x128xbf16, #tpu.memory_space<vmem>>, %arg4: memref<128x128xbf16, #tpu.memory_space<vmem>>, %arg5: memref<1x128xf32, #tpu.memory_space<vmem>>, %arg6: memref<80x128xbf16, #tpu.memory_space<vmem>>) attributes {dimension_semantics = [#tpu.dimension_semantics<parallel>], iteration_bounds = array<i64: 1>, scalar_prefetch = 0 : i64, scratch_operands = 0 : i64, tpu.core_type = #tpu.core_type<tc>, window_params = [{transform_indices = @transform_0, window_bounds = array<i64: 80, 256>}, {transform_indices = @transform_1, window_bounds = array<i64: 80, 128>}, {pipeline_mode = #tpu.pipeline_mode<synchronous>, transform_indices = @transform_2, window_bounds = array<i64: 256, 128>}, {pipeline_mode = #tpu.pipeline_mode<synchronous>, transform_indices = @transform_3, window_bounds = array<i64: 128, 128>}, {pipeline_mode = #tpu.pipeline_mode<synchronous>, transform_indices = @transform_4, window_bounds = array<i64: 1, 128>}, {transform_indices = @transform_5, window_bounds = array<i64: 80, 128>}]} {
    %c0 = arith.constant 0 : index
    %c0_0 = arith.constant 0 : index
    %0 = vector.load %arg1[%c0, %c0_0] : memref<80x256xbf16, #tpu.memory_space<vmem>>, vector<80x256xbf16>
    %c0_1 = arith.constant 0 : index
    %c0_2 = arith.constant 0 : index
    %1 = vector.load %arg3[%c0_1, %c0_2] : memref<256x128xbf16, #tpu.memory_space<vmem>>, vector<256x128xbf16>
    %cst = arith.constant dense<0.000000e+00> : vector<80x128xf32>
    %2 = tpu.matmul %0, %1, %cst {dimension_numbers = #tpu.dot_dimension_numbers<[1], [0], [0], [1], [0, 0, 1, 1], [], []>} : vector<80x256xbf16>, vector<256x128xbf16>, vector<80x128xf32> -> vector<80x128xf32>
    %c0_3 = arith.constant 0 : index
    %c0_4 = arith.constant 0 : index
    %3 = vector.load %arg2[%c0_3, %c0_4] : memref<80x128xbf16, #tpu.memory_space<vmem>>, vector<80x128xbf16>
    %c0_5 = arith.constant 0 : index
    %c0_6 = arith.constant 0 : index
    %4 = vector.load %arg4[%c0_5, %c0_6] : memref<128x128xbf16, #tpu.memory_space<vmem>>, vector<128x128xbf16>
    %cst_7 = arith.constant dense<0.000000e+00> : vector<80x128xf32>
    %5 = tpu.matmul %3, %4, %cst_7 {dimension_numbers = #tpu.dot_dimension_numbers<[1], [0], [0], [1], [0, 0, 1, 1], [], []>} : vector<80x128xbf16>, vector<128x128xbf16>, vector<80x128xf32> -> vector<80x128xf32>
    %6 = arith.addf %2, %5 : vector<80x128xf32>
    %c0_8 = arith.constant 0 : index
    %c0_9 = arith.constant 0 : index
    %7 = vector.load %arg5[%c0_8, %c0_9] : memref<1x128xf32, #tpu.memory_space<vmem>>, vector<1x128xf32>
    %8 = vector.broadcast %7 : vector<1x128xf32> to vector<80x128xf32>
    %9 = arith.addf %6, %8 : vector<80x128xf32>
    %cst_10 = arith.constant 0.000000e+00 : f32
    %10 = vector.broadcast %cst_10 : f32 to vector<80x128xf32>
    %11 = arith.maximumf %9, %10 : vector<80x128xf32>
    %12 = arith.truncf %11 : vector<80x128xf32> to vector<80x128xbf16>
    %c0_11 = arith.constant 0 : index
    %c0_12 = arith.constant 0 : index
    %13 = vector.load %arg6[%c0_11, %c0_12] : memref<80x128xbf16, #tpu.memory_space<vmem>>, vector<80x128xbf16>
    tpu.vector_store %arg6[%c0_11, %c0_12], %12 {strides = array<i32>} : memref<80x128xbf16, #tpu.memory_space<vmem>>, vector<80x128xbf16>,
    return
  }
  func.func @transform_0(%arg0: i32) -> (i32, i32) {
    %c0_i32 = arith.constant 0 : i32
    %c0_i32_0 = arith.constant 0 : i32
    return %arg0, %c0_i32 : i32, i32
  }
  func.func @transform_1(%arg0: i32) -> (i32, i32) {
    %c0_i32 = arith.constant 0 : i32
    %c0_i32_0 = arith.constant 0 : i32
    return %arg0, %c0_i32 : i32, i32
  }
  func.func @transform_2(%arg0: i32) -> (i32, i32) {
    %c0_i32 = arith.constant 0 : i32
    %c0_i32_0 = arith.constant 0 : i32
    %c0_i32_1 = arith.constant 0 : i32
    return %c0_i32, %c0_i32_0 : i32, i32
  }
  func.func @transform_3(%arg0: i32) -> (i32, i32) {
    %c0_i32 = arith.constant 0 : i32
    %c0_i32_0 = arith.constant 0 : i32
    %c0_i32_1 = arith.constant 0 : i32
    return %c0_i32, %c0_i32_0 : i32, i32
  }
  func.func @transform_4(%arg0: i32) -> (i32, i32) {
    %c0_i32 = arith.constant 0 : i32
    %c0_i32_0 = arith.constant 0 : i32
    %c0_i32_1 = arith.constant 0 : i32
    return %c0_i32, %c0_i32_0 : i32, i32
  }
  func.func @transform_5(%arg0: i32) -> (i32, i32) {
    %c0_i32 = arith.constant 0 : i32
    %c0_i32_0 = arith.constant 0 : i32
    return %arg0, %c0_i32 : i32, i32
  }
}

</mosaic_0001>

<bundles_post_ra>
// kernel: rnncnn_forward.6
= control target key start
LH: loop header
LB: loop body
LE: loop exit
PB: predicated region body
PF: predicated region fallthrough
CT: control target
= control target key end

     0   :  { %v3569_v0 = vmov 0   ;;  %s4716_s3 = inlined_call_operand.vmem [shape: bf16[128,128], index: 3, kind: input, shape index: {}]   ;;  %s4717_s2 = inlined_call_operand.vmem [shape: bf16[256,128], index: 2, kind: input, shape index: {}]   ;;  %s4718_s1 = inlined_call_operand.vmem [shape: bf16[512,128], index: 1, kind: input, shape index: {}]   ;;  %s4719_s0 = inlined_call_operand.vmem [shape: bf16[512,256], index: 0, kind: input, shape index: {}]   ;;  %s4720_s4 = inlined_call_operand.vmem [shape: f32[1,128], index: 4, kind: input, shape index: {}]   ;;  %s4721_s5 = inlined_call_operand.vmem [shape: bf16[512,128], index: 5, kind: input, shape index: {}]   ;;  %s4722_s6 = inlined_call_operand.vmem [shape: bf16[512,128], index: 6, kind: output, shape index: {}]  }
   0x1   :  { %3127 = vmatprep.subr.bf16.mxu1 %v3569_v0  ;;  %v3160_v1 = vld [vmem:[%s4716_s3 + $0x38] sm:$0xff]   ;;  %v3162_v3 = vld [vmem:[%s4716_s3 + $0x30] sm:$0xff]   ;;  %v3164_v5 = vld [vmem:[%s4716_s3 + $0x28] sm:$0xff]  }
   0x2   :  { %v3161_v2 = vld [vmem:[%s4717_s2 + $0x38] sm:$0xff]   ;;  %3047 = vmatprep.subr.bf16.mxu0 %v3160_v1  ;;  %v3163_v4 = vld [vmem:[%s4717_s2 + $0x30] sm:$0xff]   ;;  %v3625_v6 = vld [vmem:[%s4717_s2 + $0x28] sm:$0xff]  }
   0x3   :  { %3143 = vmatpush1.bf16.msra.mxu1 %v3161_v2  ;;  %3048 = vmatpush3.bf16.msra.mxu0 %v3160_v1  ;;  %v3166_v7 = vld [vmem:[%s4716_s3 + $0x20] sm:$0xff]   ;;  %v3168_v9 = vld [vmem:[%s4716_s3 + $0x18] sm:$0xff]   ;;  %v3170_v11 = vld [vmem:[%s4716_s3 + $0x10] sm:$0xff]  }
   0x4   :  { %3128 = vmatprep.subr.bf16.mxu1 %v3569_v0  ;;  %3049 = vmatprep.subr.bf16.mxu0 %v3162_v3  ;;  %v3635_v8 = vld [vmem:[%s4717_s2 + $0x20] sm:$0xff]   ;;  %v3644_v10 = vld [vmem:[%s4717_s2 + $0x18] sm:$0xff]   ;;  %v3658_v13 = vld [vmem:[%s4717_s2 + $0x10] sm:$0xff]  }
   0x5   :  { %v3176_v12 = vld [vmem:[%s4718_s1] sm:$0xff]   ;;  %v3172_v14 = vld [vmem:[%s4716_s3 + $0x8] sm:$0xff]   ;;  %v3688_v19 = vld [vmem:[%s4717_s2 + $0x78] sm:$0xff]  }
   0x6   :  { %3063 = vmatprep.mubr.bf16.mxu0 %v3176_v12  ;;  %v3668_v15 = vld [vmem:[%s4717_s2 + $0x8] sm:$0xff]   ;;  %v3174_v16 = vld [vmem:[%s4716_s3] sm:$0xff]   ;;  %v3180_v20 = vld [vmem:[%s4718_s1 + $0x10] sm:$0xff]  }
   0x7   :  { %3144 = vmatpush1.bf16.msra.mxu1 %v3163_v4  ;;  %3050 = vmatpush3.bf16.msra.mxu0 %v3162_v3  ;;  %v3678_v17 = vld [vmem:[%s4717_s2] sm:$0xff]   ;;  %v3177_v18 = vld [vmem:[%s4718_s1 + $0x8] sm:$0xff]   ;;  %v3702_v22 = vld [vmem:[%s4717_s2 + $0x70] sm:$0xff]  }
   0x8   :  { %3129 = vmatprep.subr.bf16.mxu1 %v3569_v0  ;;  %3051 = vmatprep.subr.bf16.mxu0 %v3164_v5  ;;  %v3194_v21 = vld [vmem:[%s4719_s0 + $0xa4] ss:$8 sps:$4 sm:$0xff]   ;;  %v3181_v23 = vld [vmem:[%s4718_s1 + $0x18] sm:$0xff]   ;;  %v3188_v29 = vld [vmem:[%s4718_s1 + $0x30] sm:$0xff]  }
   0x9   :  { %1257 = vmatprep.mubr.bf16.mxu1 %v3194_v21  ;;  %v3712_v24 = vld [vmem:[%s4717_s2 + $0x68] sm:$0xff]   ;;  %v3184_v25 = vld [vmem:[%s4718_s1 + $0x20] sm:$0xff]   ;;  %v3186_v28 = vld [vmem:[%s4717_s2 + $0x58] sm:$0xff]  }
   0xa   :  { %v3183_v26 = vld [vmem:[%s4717_s2 + $0x60] sm:$0xff]   ;;  %v3185_v27 = vld [vmem:[%s4718_s1 + $0x28] sm:$0xff]   ;;  %v3187_v30 = vld [vmem:[%s4717_s2 + $0x50] sm:$0xff]  }
   0xb   :  { %3145 = vmatpush1.bf16.msra.mxu1 %v3625_v6  ;;  %3052 = vmatpush3.bf16.msra.mxu0 %v3164_v5  ;;  %v3189_v31 = vld [vmem:[%s4718_s1 + $0x38] sm:$0xff]   ;;  %v3190_v32 = vld [vmem:[%s4717_s2 + $0x48] sm:$0xff]   ;;  %v3195_v33 = vld [vmem:[%s4718_s1 + $0x40] sm:$0xff]  }
   0xc   :  { %3130 = vmatprep.subr.bf16.mxu1 %v3569_v0  ;;  %3053 = vmatprep.subr.bf16.mxu0 %v3166_v7  ;;  %v3191_v34 = vld [vmem:[%s4717_s2 + $0x40] sm:$0xff]   ;;  %v3196_v36 = vld [vmem:[%s4718_s1 + $0x48] sm:$0xff]   ;;  %v3197_v37 = vld [vmem:[%s4719_s0 + $0xb4] ss:$8 sps:$4 sm:$0xff]  }
   0xd   :  { %v3192_v35 = vld [vmem:[%s4719_s0 + $0xa0] ss:$8 sps:$4 sm:$0xff]   ;;  %v3199_v38 = vld [vmem:[%s4718_s1 + $0x50] sm:$0xff]   ;;  %v3201_v40 = vld [vmem:[%s4718_s1 + $0x58] sm:$0xff]  }
   0xe   :  { %v3200_v39 = vld [vmem:[%s4719_s0 + $0xb0] ss:$8 sps:$4 sm:$0xff]   ;;  %v3202_v41 = vld [vmem:[%s4719_s0 + $0xc4] ss:$8 sps:$4 sm:$0xff]   ;;  %v3205_v43 = vld [vmem:[%s4719_s0 + $0xc0] ss:$8 sps:$4 sm:$0xff]  }
   0xf   :  { %3146 = vmatpush1.bf16.msra.mxu1 %v3635_v8  ;;  %3054 = vmatpush3.bf16.msra.mxu0 %v3166_v7  ;;  %v3204_v42 = vld [vmem:[%s4718_s1 + $0x60] sm:$0xff]   ;;  %v3206_v44 = vld [vmem:[%s4718_s1 + $0x68] sm:$0xff]   ;;  %v3207_v45 = vld [vmem:[%s4719_s0 + $0xd4] ss:$8 sps:$4 sm:$0xff]  }
  0x10   :  { %3131 = vmatprep.subr.bf16.mxu1 %v3569_v0  ;;  %3055 = vmatprep.subr.bf16.mxu0 %v3168_v9  ;;  %v3209_v46 = vld [vmem:[%s4718_s1 + $0x70] sm:$0xff]   ;;  %v3211_v48 = vld [vmem:[%s4718_s1 + $0x78] sm:$0xff]   ;;  %v3212_v49 = vld [vmem:[%s4719_s0 + $0xe4] ss:$8 sps:$4 sm:$0xff]  }
  0x11   :  { %v3210_v47 = vld [vmem:[%s4719_s0 + $0xd0] ss:$8 sps:$4 sm:$0xff]   ;;  %v3214_v50 = vld [vmem:[%s4718_s1 + $0x80] sm:$0xff]   ;;  %v3216_v52 = vld [vmem:[%s4718_s1 + $0x88] sm:$0xff]  }
  0x12   :  { %v3215_v51 = vld [vmem:[%s4719_s0 + $0xe0] ss:$8 sps:$4 sm:$0xff]   ;;  %v3217_v53 = vld [vmem:[%s4719_s0 + $0xf4] ss:$8 sps:$4 sm:$0xff]   ;;  %v3220_v55 = vld [vmem:[%s4719_s0 + $0xf0] ss:$8 sps:$4 sm:$0xff]  }
  0x13   :  { %3147 = vmatpush1.bf16.msra.mxu1 %v3644_v10  ;;  %3056 = vmatpush3.bf16.msra.mxu0 %v3168_v9  ;;  %v3219_v54 = vld [vmem:[%s4718_s1 + $0x90] sm:$0xff]   ;;  %v3221_v56 = vld [vmem:[%s4718_s1 + $0x98] sm:$0xff]   ;;  %v3222_v57 = vld [vmem:[%s4719_s0 + $0x104] ss:$8 sps:$4 sm:$0xff]  }
  0x14   :  { %3132 = vmatprep.subr.bf16.mxu1 %v3569_v0  ;;  %3057 = vmatprep.subr.bf16.mxu0 %v3170_v11  ;;  %v3224_v58 = vld [vmem:[%s4718_s1 + $0xa0] sm:$0xff]   ;;  %v3226_v60 = vld [vmem:[%s4718_s1 + $0xa8] sm:$0xff]   ;;  %v3227_v61 = vld [vmem:[%s4719_s0 + $0x114] ss:$8 sps:$4 sm:$0xff]  }
  0x15   :  { %v3225_v59 = vld [vmem:[%s4719_s0 + $0x100] ss:$8 sps:$4 sm:$0xff]   ;;  %v3229_v62 = vld [vmem:[%s4718_s1 + $0xb0] sm:$0xff]   ;;  %v3232_v1 = vld [vmem:[%s4719_s0 + $0x124] ss:$8 sps:$4 sm:$0xff]  }
  0x16   :  { %v3230_v63 = vld [vmem:[%s4719_s0 + $0x110] ss:$8 sps:$4 sm:$0xff]   ;;  %v3235_v3 = vld [vmem:[%s4719_s0 + $0x120] ss:$8 sps:$4 sm:$0xff]   ;;  %v3237_v5 = vld [vmem:[%s4719_s0 + $0x134] ss:$8 sps:$4 sm:$0xff]  }
  0x17   :  { %3148 = vmatpush1.bf16.msra.mxu1 %v3658_v13  ;;  %3058 = vmatpush3.bf16.msra.mxu0 %v3170_v11  ;;  %v3240_v7 = vld [vmem:[%s4719_s0 + $0x130] ss:$8 sps:$4 sm:$0xff]   ;;  %v3242_v9 = vld [vmem:[%s4719_s0 + $0x144] ss:$8 sps:$4 sm:$0xff]   ;;  %v3245_v11 = vld [vmem:[%s4719_s0 + $0x140] ss:$8 sps:$4 sm:$0xff]  }
  0x18   :  { %3133 = vmatprep.subr.bf16.mxu1 %v3569_v0  ;;  %3059 = vmatprep.subr.bf16.mxu0 %v3172_v14  ;;  %v3246_v12 = vld [vmem:[%s4718_s1 + $0xe8] sm:$0xff]   ;;  %v3258_v21 = vld [vmem:[%s4719_s0 + $0x174] ss:$8 sps:$4 sm:$0xff]  }
  0x1b   :  { %3149 = vmatpush1.bf16.msra.mxu1 %v3668_v15  ;;  %3060 = vmatpush3.bf16.msra.mxu0 %v3172_v14  ;;  %v3249_v14 = vld [vmem:[%s4718_s1 + $0xf0] sm:$0xff]  }
  0x1c   :  { %3134 = vmatprep.subr.bf16.mxu1 %v3569_v0  ;;  %3061 = vmatprep.subr.bf16.mxu0 %v3174_v16 }
  0x1f   :  { %3150 = vmatpush1.bf16.msra.mxu1 %v3678_v17  ;;  %3062 = vmatpush3.bf16.msra.mxu0 %v3174_v16  ;;  %v3251_v16 = vld [vmem:[%s4718_s1 + $0xf8] sm:$0xff]  }
  0x20   :  { %3135 = vmatprep.subr.bf16.mxu1 %v3569_v0  ;;  %1145 = vmatprep.subr.bf16.mxu0 %v3569_v0 }
  0x22   :  { %3064 = vmatmul.mubr.bf16.vlgmr.msra.gmra.mxu0 %v3177_v18  ;;  %v3256_v18 = vld [vmem:[%s4719_s0 + $0x4] ss:$8 sps:$4 sm:$0xff]  }
  0x23   :  { %3151 = vmatpush2.bf16.msra.mxu1 %v3688_v19  ;;  %1146 = vmatpush1.bf16.msra.mxu0 %v3161_v2  ;;  %v3234_v2 = vld [vmem:[%s4718_s1 + $0xc0] sm:$0xff]  }
  0x24   :  { %3136 = vmatprep.subr.bf16.mxu1 %v3569_v0  ;;  %3067 = vmatprep.mubr.bf16.mxu0 %v3180_v20  ;;  %v3257_v20 = vld [vmem:[%s4719_s0 + $0x160] ss:$8 sps:$4 sm:$0xff]  }
  0x25   :  { %1147 = vmatprep.subr.bf16.mxu0 %v3569_v0 }
  0x27   :  { %3152 = vmatpush2.bf16.msra.mxu1 %v3702_v22  ;;  %1148 = vmatpush1.bf16.msra.mxu0 %v3163_v4  ;;  %v3236_v4 = vld [vmem:[%s4718_s1 + $0xc8] sm:$0xff]  }
  0x28   :  { %3137 = vmatprep.subr.bf16.mxu1 %v3569_v0  ;;  %1149 = vmatprep.subr.bf16.mxu0 %v3569_v0 }
  0x2a   :  { %3068 = vmatmul.mubr.bf16.gmra.mxu0 %v3181_v23  ;;  %v3262_v23 = vld [vmem:[%s4719_s0 + $0x170] ss:$8 sps:$4 sm:$0xff]  }
  0x2b   :  { %3153 = vmatpush2.bf16.msra.mxu1 %v3712_v24  ;;  %3071 = vmatprep.mubr.bf16.mxu0 %v3184_v25  ;;  %v3264_v25 = vld [vmem:[%s4719_s0 + $0x184] ss:$8 sps:$4 sm:$0xff]  }
  0x2c   :  { %3138 = vmatprep.subr.bf16.mxu1 %v3569_v0  ;;  %1150 = vmatpush1.bf16.msra.mxu0 %v3625_v6  ;;  %v3239_v6 = vld [vmem:[%s4718_s1 + $0xd0] sm:$0xff]  }
  0x2d   :  { %1151 = vmatprep.subr.bf16.mxu0 %v3569_v0 }
  0x2f   :  { %3154 = vmatpush2.bf16.msra.mxu1 %v3183_v26 }
  0x30   :  { %3139 = vmatprep.subr.bf16.mxu1 %v3569_v0  ;;  %1152 = vmatpush1.bf16.msra.mxu0 %v3635_v8  ;;  %v3241_v8 = vld [vmem:[%s4718_s1 + $0xd8] sm:$0xff]  }
  0x31   :  { %1153 = vmatprep.subr.bf16.mxu0 %v3569_v0 }
  0x32   :  { %3072 = vmatmul.mubr.bf16.gmra.mxu0 %v3185_v27  ;;  %v3268_v27 = vld [vmem:[%s4719_s0 + $0x180] ss:$8 sps:$4 sm:$0xff]  }
  0x33   :  { %3155 = vmatpush2.bf16.msra.mxu1 %v3186_v28  ;;  %3075 = vmatprep.mubr.bf16.mxu0 %v3188_v29  ;;  %v3270_v29 = vld [vmem:[%s4719_s0 + $0x194] ss:$8 sps:$4 sm:$0xff]  }
  0x34   :  { %3140 = vmatprep.subr.bf16.mxu1 %v3569_v0  ;;  %1154 = vmatpush1.bf16.msra.mxu0 %v3644_v10  ;;  %v3244_v10 = vld [vmem:[%s4718_s1 + $0xe0] sm:$0xff]  }
  0x35   :  { %1155 = vmatprep.subr.bf16.mxu0 %v3569_v0 }
  0x37   :  { %3156 = vmatpush2.bf16.msra.mxu1 %v3187_v30 }
  0x38   :  { %3141 = vmatprep.subr.bf16.mxu1 %v3569_v0  ;;  %1156 = vmatpush1.bf16.msra.mxu0 %v3658_v13  ;;  %v3247_v13 = vld [vmem:[%s4719_s0 + $0x154] ss:$8 sps:$4 sm:$0xff]  }
  0x39   :  { %1157 = vmatprep.subr.bf16.mxu0 %v3569_v0 }
  0x3a   :  { %3076 = vmatmul.mubr.bf16.gmra.mxu0 %v3189_v31  ;;  %v3274_v31 = vld [vmem:[%s4719_s0 + $0x190] ss:$8 sps:$4 sm:$0xff]  }
  0x3b   :  { %3157 = vmatpush2.bf16.msra.mxu1 %v3190_v32  ;;  %3079 = vmatprep.mubr.bf16.mxu0 %v3195_v33  ;;  %v3276_v33 = vld [vmem:[%s4719_s0 + $0x1a4] ss:$8 sps:$4 sm:$0xff]  }
  0x3c   :  { %3142 = vmatprep.subr.bf16.mxu1 %v3569_v0  ;;  %1158 = vmatpush1.bf16.msra.mxu0 %v3668_v15  ;;  %v3250_v15 = vld [vmem:[%s4719_s0 + $0x150] ss:$8 sps:$4 sm:$0xff]  }
  0x3d   :  { %1159 = vmatprep.subr.bf16.mxu0 %v3569_v0 }
  0x3f   :  { %3158 = vmatpush2.bf16.msra.mxu1 %v3191_v34 }
  0x40   :  { %1160 = vmatpush1.bf16.msra.mxu0 %v3678_v17  ;;  %v3252_v17 = vld [vmem:[%s4719_s0 + $0x164] ss:$8 sps:$4 sm:$0xff]  }
  0x41   :  { %1161 = vmatprep.subr.bf16.mxu0 %v3569_v0 }
  0x42   :  { %1258 = vmatmul.mubr.bf16.vlgmr.msra.gmra.mxu1 %v3192_v35  ;;  %3080 = vmatmul.mubr.bf16.gmra.mxu0 %v3196_v36  ;;  %v3280_v35 = vld [vmem:[%s4719_s0 + $0x1a0] ss:$8 sps:$4 sm:$0xff]  }
  0x43   :  { %1265 = vmatprep.mubr.bf16.mxu1 %v3197_v37  ;;  %3083 = vmatprep.mubr.bf16.mxu0 %v3199_v38  ;;  %v3281_v36 = vld [vmem:[%s4719_s0 + $0x40] ss:$8 sps:$4 sm:$0xff]   ;;  %v3282_v37 = vld [vmem:[%s4719_s0 + $0x1b4] ss:$8 sps:$4 sm:$0xff]  }
  0x44   :  { %1162 = vmatpush2.bf16.msra.mxu0 %v3688_v19  ;;  %v3254_v19 = vld [vmem:[%s4719_s0] ss:$8 sps:$4 sm:$0xff]   ;;  %v3284_v38 = vld [vmem:[%s4719_s0 + $0x54] ss:$8 sps:$4 sm:$0xff]  }
  0x45   :  { %1163 = vmatprep.subr.bf16.mxu0 %v3569_v0 }
  0x48   :  { %1164 = vmatpush2.bf16.msra.mxu0 %v3702_v22  ;;  %v3260_v22 = vld [vmem:[%s4719_s0 + $0x14] ss:$8 sps:$4 sm:$0xff]  }
  0x49   :  { %1165 = vmatprep.subr.bf16.mxu0 %v3569_v0 }
  0x4a   :  { %1266 = vmatmul.mubr.bf16.gmra.mxu1 %v3200_v39  ;;  %3084 = vmatmul.mubr.bf16.gmra.mxu0 %v3201_v40  ;;  %v3286_v39 = vld [vmem:[%s4719_s0 + $0x1b0] ss:$8 sps:$4 sm:$0xff]  }
  0x4b   :  { %1273 = vmatprep.mubr.bf16.mxu1 %v3202_v41  ;;  %3087 = vmatprep.mubr.bf16.mxu0 %v3204_v42  ;;  %v3287_v40 = vld [vmem:[%s4719_s0 + $0x50] ss:$8 sps:$4 sm:$0xff]   ;;  %v3288_v41 = vld [vmem:[%s4719_s0 + $0x1c4] ss:$8 sps:$4 sm:$0xff]  }
  0x4c   :  { %1166 = vmatpush2.bf16.msra.mxu0 %v3712_v24  ;;  %v3263_v24 = vld [vmem:[%s4719_s0 + $0x10] ss:$8 sps:$4 sm:$0xff]   ;;  %v3290_v42 = vld [vmem:[%s4719_s0 + $0x64] ss:$8 sps:$4 sm:$0xff]  }
  0x4d   :  { %1167 = vmatprep.subr.bf16.mxu0 %v3569_v0 }
  0x50   :  { %1168 = vmatpush2.bf16.msra.mxu0 %v3183_v26  ;;  %v3266_v26 = vld [vmem:[%s4719_s0 + $0x24] ss:$8 sps:$4 sm:$0xff]  }
  0x51   :  { %1169 = vmatprep.subr.bf16.mxu0 %v3569_v0 }
  0x52   :  { %1274 = vmatmul.mubr.bf16.gmra.mxu1 %v3205_v43  ;;  %3088 = vmatmul.mubr.bf16.gmra.mxu0 %v3206_v44  ;;  %v3292_v43 = vld [vmem:[%s4719_s0 + $0x1c0] ss:$8 sps:$4 sm:$0xff]  }
  0x53   :  { %1281 = vmatprep.mubr.bf16.mxu1 %v3207_v45  ;;  %3091 = vmatprep.mubr.bf16.mxu0 %v3209_v46  ;;  %v3293_v44 = vld [vmem:[%s4719_s0 + $0x60] ss:$8 sps:$4 sm:$0xff]   ;;  %v3294_v45 = vld [vmem:[%s4719_s0 + $0x1d4] ss:$8 sps:$4 sm:$0xff]  }
  0x54   :  { %1170 = vmatpush2.bf16.msra.mxu0 %v3186_v28  ;;  %v3269_v28 = vld [vmem:[%s4719_s0 + $0x20] ss:$8 sps:$4 sm:$0xff]   ;;  %v3296_v46 = vld [vmem:[%s4719_s0 + $0x74] ss:$8 sps:$4 sm:$0xff]  }
  0x55   :  { %1171 = vmatprep.subr.bf16.mxu0 %v3569_v0 }
  0x58   :  { %1172 = vmatpush2.bf16.msra.mxu0 %v3187_v30  ;;  %v3272_v30 = vld [vmem:[%s4719_s0 + $0x34] ss:$8 sps:$4 sm:$0xff]  }
  0x59   :  { %1173 = vmatprep.subr.bf16.mxu0 %v3569_v0 }
  0x5a   :  { %1282 = vmatmul.mubr.bf16.gmra.mxu1 %v3210_v47  ;;  %3092 = vmatmul.mubr.bf16.gmra.mxu0 %v3211_v48  ;;  %v3298_v47 = vld [vmem:[%s4719_s0 + $0x1d0] ss:$8 sps:$4 sm:$0xff]  }
  0x5b   :  { %1289 = vmatprep.mubr.bf16.mxu1 %v3212_v49  ;;  %3095 = vmatprep.mubr.bf16.mxu0 %v3214_v50  ;;  %v3299_v48 = vld [vmem:[%s4719_s0 + $0x70] ss:$8 sps:$4 sm:$0xff]   ;;  %v3300_v49 = vld [vmem:[%s4719_s0 + $0x1e4] ss:$8 sps:$4 sm:$0xff]  }
  0x5c   :  { %1174 = vmatpush2.bf16.msra.mxu0 %v3190_v32  ;;  %v3275_v32 = vld [vmem:[%s4719_s0 + $0x30] ss:$8 sps:$4 sm:$0xff]   ;;  %v3302_v50 = vld [vmem:[%s4719_s0 + $0x84] ss:$8 sps:$4 sm:$0xff]  }
  0x5d   :  { %1175 = vmatprep.subr.bf16.mxu0 %v3569_v0  ;;  %v3231_v0 = vld [vmem:[%s4718_s1 + $0xb8] sm:$0xff]  }
  0x60   :  { %1176 = vmatpush2.bf16.msra.mxu0 %v3191_v34  ;;  %v3278_v34 = vld [vmem:[%s4719_s0 + $0x44] ss:$8 sps:$4 sm:$0xff]  }
  0x62   :  { %1290 = vmatmul.mubr.bf16.gmra.mxu1 %v3215_v51  ;;  %3096 = vmatmul.mubr.bf16.gmra.mxu0 %v3216_v52  ;;  %v3304_v51 = vld [vmem:[%s4719_s0 + $0x1e0] ss:$8 sps:$4 sm:$0xff]  }
  0x63   :  { %1297 = vmatprep.mubr.bf16.mxu1 %v3217_v53  ;;  %3099 = vmatprep.mubr.bf16.mxu0 %v3219_v54  ;;  %v3305_v52 = vld [vmem:[%s4719_s0 + $0x80] ss:$8 sps:$4 sm:$0xff]   ;;  %v3306_v53 = vld [vmem:[%s4719_s0 + $0x1f4] ss:$8 sps:$4 sm:$0xff]  }
  0x64   :  { %v3308_v54 = vld [vmem:[%s4719_s0 + $0x94] ss:$8 sps:$4 sm:$0xff]  }
  0x6a   :  { %1298 = vmatmul.mubr.bf16.gmra.mxu1 %v3220_v55  ;;  %3100 = vmatmul.mubr.bf16.gmra.mxu0 %v3221_v56 }
  0x6b   :  { %1305 = vmatprep.mubr.bf16.mxu1 %v3222_v57  ;;  %3103 = vmatprep.mubr.bf16.mxu0 %v3224_v58  ;;  %v3310_v58 = vld [vmem:[%s4719_s0 + $0x1f0] ss:$8 sps:$4 sm:$0xff]  }
  0x72   :  { %1306 = vmatmul.mubr.bf16.gmra.mxu1 %v3225_v59  ;;  %3104 = vmatmul.mubr.bf16.gmra.mxu0 %v3226_v60  ;;  %v3311_v59 = vld [vmem:[%s4719_s0 + $0x90] ss:$8 sps:$4 sm:$0xff]  }
  0x73   :  { %1313 = vmatprep.mubr.bf16.mxu1 %v3227_v61  ;;  %3107 = vmatprep.mubr.bf16.mxu0 %v3229_v62 }
  0x7a   :  { %1314 = vmatmul.mubr.bf16.gmra.mxu1 %v3230_v63  ;;  %3108 = vmatmul.mubr.bf16.gmra.mxu0 %v3231_v0 }
  0x7b   :  { %1321 = vmatprep.mubr.bf16.mxu1 %v3232_v1  ;;  %3111 = vmatprep.mubr.bf16.mxu0 %v3234_v2 }
  0x82   :  { %1322 = vmatmul.mubr.bf16.gmra.mxu1 %v3235_v3  ;;  %3112 = vmatmul.mubr.bf16.gmra.mxu0 %v3236_v4 }
  0x83   :  { %1329 = vmatprep.mubr.bf16.mxu1 %v3237_v5  ;;  %3115 = vmatprep.mubr.bf16.mxu0 %v3239_v6 }
  0x8a   :  { %1330 = vmatmul.mubr.bf16.gmra.mxu1 %v3240_v7  ;;  %3116 = vmatmul.mubr.bf16.gmra.mxu0 %v3241_v8 }
  0x8b   :  { %1337 = vmatprep.mubr.bf16.mxu1 %v3242_v9  ;;  %3119 = vmatprep.mubr.bf16.mxu0 %v3244_v10 }
  0x92   :  { %1338 = vmatmul.mubr.bf16.gmra.mxu1 %v3245_v11  ;;  %3120 = vmatmul.mubr.bf16.gmra.mxu0 %v3246_v12 }
  0x93   :  { %1345 = vmatprep.mubr.bf16.mxu1 %v3247_v13  ;;  %3123 = vmatprep.mubr.bf16.mxu0 %v3249_v14 }
  0x9a   :  { %1346 = vmatmul.mubr.bf16.gmra.mxu1 %v3250_v15  ;;  %3124 = vmatmul.mubr.bf16.gmra.mxu0 %v3251_v16 }
  0x9b   :  { %1353 = vmatprep.mubr.bf16.mxu1 %v3252_v17  ;;  %1177 = vmatprep.mubr.bf16.mxu0 %v3256_v18 }
  0xa2   :  { %1354 = vmatmul.mubr.bf16.gmra.mxu1 %v3257_v20  ;;  %1178 = vmatmul.mubr.bf16.vlgmr.msra.gmra.mxu0 %v3254_v19  ;;  %v4076_v19 = vld [vmem:[%s4720_s4] ss:$0 sm:$0xff] }
  0xa3   :  { %1361 = vmatprep.mubr.bf16.mxu1 %v3258_v21  ;;  %1185 = vmatprep.mubr.bf16.mxu0 %v3260_v22 }
  0xaa   :  { %1362 = vmatmul.mubr.bf16.gmra.mxu1 %v3262_v23  ;;  %1186 = vmatmul.mubr.bf16.gmra.mxu0 %v3263_v24 }
  0xab   :  { %1369 = vmatprep.mubr.bf16.mxu1 %v3264_v25  ;;  %1193 = vmatprep.mubr.bf16.mxu0 %v3266_v26 }
  0xb2   :  { %1370 = vmatmul.mubr.bf16.gmra.mxu1 %v3268_v27  ;;  %1194 = vmatmul.mubr.bf16.gmra.mxu0 %v3269_v28 }
  0xb3   :  { %1377 = vmatprep.mubr.bf16.mxu1 %v3270_v29  ;;  %1201 = vmatprep.mubr.bf16.mxu0 %v3272_v30 }
  0xba   :  { %1378 = vmatmul.mubr.bf16.gmra.mxu1 %v3274_v31  ;;  %1202 = vmatmul.mubr.bf16.gmra.mxu0 %v3275_v32 }
  0xbb   :  { %1385 = vmatprep.mubr.bf16.mxu1 %v3276_v33  ;;  %1209 = vmatprep.mubr.bf16.mxu0 %v3278_v34 }
  0xc2   :  { %1386 = vmatmul.mubr.bf16.gmra.mxu1 %v3280_v35  ;;  %1210 = vmatmul.mubr.bf16.gmra.mxu0 %v3281_v36 }
  0xc3   :  { %1393 = vmatprep.mubr.bf16.mxu1 %v3282_v37  ;;  %1217 = vmatprep.mubr.bf16.mxu0 %v3284_v38 }
  0xca   :  { %1394 = vmatmul.mubr.bf16.gmra.mxu1 %v3286_v39  ;;  %1218 = vmatmul.mubr.bf16.gmra.mxu0 %v3287_v40 }
  0xcb   :  { %1401 = vmatprep.mubr.bf16.mxu1 %v3288_v41  ;;  %1225 = vmatprep.mubr.bf16.mxu0 %v3290_v42 }
  0xd2   :  { %1402 = vmatmul.mubr.bf16.gmra.mxu1 %v3292_v43  ;;  %1226 = vmatmul.mubr.bf16.gmra.mxu0 %v3293_v44 }
  0xd3   :  { %1409 = vmatprep.mubr.bf16.mxu1 %v3294_v45  ;;  %1233 = vmatprep.mubr.bf16.mxu0 %v3296_v46 }
  0xda   :  { %1410 = vmatmul.mubr.bf16.gmra.mxu1 %v3298_v47  ;;  %1234 = vmatmul.mubr.bf16.gmra.mxu0 %v3299_v48 }
  0xdb   :  { %1417 = vmatprep.mubr.bf16.mxu1 %v3300_v49  ;;  %1241 = vmatprep.mubr.bf16.mxu0 %v3302_v50 }
  0xe2   :  { %1418 = vmatmul.mubr.bf16.gmra.mxu1 %v3304_v51  ;;  %v4027_v55 = vpop.f32.mrf.mxu0  ;;  %1242 = vmatmul.mubr.bf16.gmra.mxu0 %v3305_v52 }
  0xe3   :  { %1425 = vmatprep.mubr.bf16.mxu1 %v3306_v53  ;;  %1249 = vmatprep.mubr.bf16.mxu0 %v3308_v54 }
  0xe4   :  { %v4029_v56 = vpop.f32.mrf.mxu0 }
  0xe6   :  { %v4031_v57 = vpop.f32.mrf.mxu0 }
  0xe8   :  { %v4039_v60 = vpop.f32.mrf.mxu0 }
  0xea   :  { %1426 = vmatmul.mubr.bf16.gmra.mxu1 %v3310_v58  ;;  %v4041_v61 = vpop.f32.mrf.mxu0  ;;  %1250 = vmatmul.mubr.bf16.gmra.mxu0 %v3311_v59 }
  0xec   :  { %v4043_v62 = vpop.f32.mrf.mxu0 }
  0xee   :  { %v4045_v63 = vpop.f32.mrf.mxu0 }
  0xf0   :  { %v4047_v0 = vpop.f32.mrf.mxu0 }
  0xf2   :  { %v4049_v1 = vpop.f32.mrf.mxu0 }
  0xf4   :  { %v4051_v2 = vpop.f32.mrf.mxu0 }
  0xf6   :  { %v4053_v3 = vpop.f32.mrf.mxu0 }
  0xf7   :  { %4723 = vst [vmem:[#allocation2_spill] sm:$0xff] %v4053_v3 }
  0xf8   :  { %v4055_v4 = vpop.f32.mrf.mxu0 }
  0xfa   :  { %v4057_v5 = vpop.f32.mrf.mxu0 }
  0xfb   :  { %4724 = vst [vmem:[#allocation3_spill] sm:$0xff] %v4057_v5 }
  0xfc   :  { %v4059_v6 = vpop.f32.mrf.mxu0 }
  0xfd   :  { %4725 = vst [vmem:[#allocation4_spill] sm:$0xff] %v4059_v6 }
  0xfe   :  { %v4061_v7 = vpop.f32.mrf.mxu0 }
  0xff   :  { %4726 = vst [vmem:[#allocation5_spill] sm:$0xff] %v4061_v7 }
 0x100   :  { %v4063_v8 = vpop.f32.mrf.mxu0 }
 0x101   :  { %4727 = vst [vmem:[#allocation6_spill] sm:$0xff] %v4063_v8 }
 0x102   :  { %v1259_v9 = vpop.f32.mrf.mxu1  ;;  %v4065_v10 = vpop.f32.mrf.mxu0 }
 0x103   :  { %4728 = vst [vmem:[#allocation7_spill] sm:$0xff] %v4065_v10 }
 0x104   :  { %v1261_v11 = vpop.f32.mrf.mxu1  ;;  %v4067_v12 = vpop.f32.mrf.mxu0 }
 0x105   :  { %4729 = vst [vmem:[#allocation8_spill] sm:$0xff] %v4067_v12 }
 0x106   :  { %v1262_v13 = vpop.f32.mrf.mxu1  ;;  %v4069_v14 = vpop.f32.mrf.mxu0 }
 0x107   :  { %4730 = vst [vmem:[#allocation9_spill] sm:$0xff] %v4069_v14 }
 0x108   :  { %v1264_v15 = vpop.f32.mrf.mxu1  ;;  %v4071_v16 = vpop.f32.mrf.mxu0 }
 0x109   :  { %4731 = vst [vmem:[#allocation10_spill] sm:$0xff] %v4071_v16 }
 0x10a   :  { %v1267_v17 = vpop.f32.mrf.mxu1  ;;  %v3085_v18 = vpop.f32.mrf.mxu0 }
 0x10b   :  { %v1268_v20 = vadd.f32 %v3085_v18, %v1267_v17 }
 0x10c   :  { %v1269_v21 = vpop.f32.mrf.mxu1  ;;  %v554_v22 = vpop.f32.mrf.mxu0 }
 0x10d   :  { %v1463_v23 = vadd.f32 %v4076_v19, %v1268_v20  ;;  %v1260_v24 = vadd.f32 %v1259_v9, %v554_v22 }
 0x10e   :  { %v1270_v25 = vpop.f32.mrf.mxu1  ;;  %v3086_v26 = vpop.f32.mrf.mxu0 }
 0x10f   :  { %v1527_v27 = vsub.f32 0.0, %v1463_v23  ;;  %v1461_v28 = vadd.f32 %v4076_v19, %v1260_v24  ;;  %v1271_v29 = vadd.f32 %v3086_v26, %v1270_v25 }
 0x110   :  { %v1272_v30 = vpop.f32.mrf.mxu1  ;;  %v557_v31 = vpop.f32.mrf.mxu0 }
 0x111   :  { %v1613_v32 = vmul.f32 1.442695, %v1527_v27  ;;  %v1525_v33 = vsub.f32 0.0, %v1461_v28  ;;  %v1464_v34 = vadd.f32 %v4076_v19, %v1271_v29  ;;  %v1263_v35 = vadd.f32 %v1262_v13, %v557_v31 }
 0x112   :  { %v1275_v36 = vpop.f32.mrf.mxu1  ;;  %v3089_v37 = vpop.f32.mrf.mxu0 }
 0x113   :  { %3312 = vpow2.f32 %v1613_v32  ;;  %v1609_v38 = vmul.f32 1.442695, %v1525_v33  ;;  %v1528_v39 = vsub.f32 0.0, %v1464_v34  ;;  %v1462_v40 = vadd.f32 %v4076_v19, %v1263_v35 }
 0x114   :  { %v1277_v41 = vpop.f32.mrf.mxu1  ;;  %v570_v42 = vpop.f32.mrf.mxu0 }
 0x115   :  { %3314 = vpow2.f32 %v1609_v38  ;;  %v1615_v43 = vmul.f32 1.442695, %v1528_v39  ;;  %v1526_v44 = vsub.f32 0.0, %v1462_v40  ;;  %v1276_v45 = vadd.f32 %v1275_v36, %v570_v42 }
 0x116   :  { %v1278_v46 = vpop.f32.mrf.mxu1  ;;  %v3090_v47 = vpop.f32.mrf.mxu0 }
 0x117   :  { %3316 = vpow2.f32 %v1615_v43  ;;  %v1611_v48 = vmul.f32 1.442695, %v1526_v44  ;;  %v1465_v49 = vadd.f32 %v4076_v19, %v1276_v45  ;;  %v1953_v44 = vlaneseq }
 0x118   :  { %v1280_v50 = vpop.f32.mrf.mxu1  ;;  %v573_v51 = vpop.f32.mrf.mxu0 }
 0x119   :  { %3318 = vpow2.f32 %v1611_v48  ;;  %v1529_v52 = vsub.f32 0.0, %v1465_v49  ;;  %v1279_v53 = vadd.f32 %v1278_v46, %v573_v51 }
 0x11a   :  { %v1283_v54 = vpop.f32.mrf.mxu1  ;;  %v3093_v58 = vpop.f32.mrf.mxu0 }
 0x11b   :  { %v1617_v59 = vmul.f32 1.442695, %v1529_v52  ;;  %v1466_v9 = vadd.f32 %v4076_v19, %v1279_v53  ;;  %v1284_v11 = vadd.f32 %v3089_v37, %v1283_v54 }
 0x11c   :  { %v1285_v13 = vpop.f32.mrf.mxu1  ;;  %v586_v15 = vpop.f32.mrf.mxu0 }
 0x11d   :  { %3320 = vpow2.f32 %v1617_v59  ;;  %v1530_v17 = vsub.f32 0.0, %v1466_v9  ;;  %v1467_v18 = vadd.f32 %v4076_v19, %v1284_v11  ;;  %v2955_v59 = vld [vmem:[%s4721_s5 + $0x58] sm:$0xff]   ;;  %v4101_v9 = vand.u32 127, %v1953_v44 }
 0x11e   :  { %v1286_v20 = vpop.f32.mrf.mxu1  ;;  %v4085_v21 = vpop.f32.mrf.mxu0 }
 0x11f   :  { %v1619_v22 = vmul.f32 1.442695, %v1530_v17  ;;  %v1531_v23 = vsub.f32 0.0, %v1467_v18  ;;  %v1287_v24 = vadd.f32 %v3090_v47, %v1286_v20  ;;  %vm1955_vm0 = vcmp.lt.s32.totalorder %v4101_v9, 2 }
 0x120   :  { %v3313_v25 = vpop.eup %3312  ;;  %v1288_v26 = vpop.f32.mrf.mxu1 }
 0x121   :  { %v589_v27 = vpop.f32.mrf.mxu0  ;;  %v1719_v28 = vadd.f32 1.0, %v3313_v25  ;;  %3322 = vpow2.f32 %v1619_v22  ;;  %v1621_v29 = vmul.f32 1.442695, %v1531_v23  ;;  %v1468_v30 = vadd.f32 %v4076_v19, %v1287_v24 }
 0x122   :  { %v3315_v31 = vpop.eup %3314  ;;  %v1291_v32 = vpop.f32.mrf.mxu1  ;;  %v2703_v24 = vunpack.c.l.bf16 %v2955_v59 }
 0x123   :  { %v4088_v33 = vpop.f32.mrf.mxu0  ;;  %v1717_v34 = vadd.f32 1.0, %v3315_v31  ;;  %v1532_v35 = vsub.f32 0.0, %v1468_v30  ;;  %v1292_v36 = vadd.f32 %v1291_v32, %v586_v15  ;;  %3324 = vpow2.f32 %v1621_v29  ;;  %v2954_v15 = vld [vmem:[%s4721_s5 + $0x50] sm:$0xff]  }
 0x124   :  { %v3317_v37 = vpop.eup %3316  ;;  %v1293_v38 = vpop.f32.mrf.mxu1  ;;  %3326 = vrcp.f32 %v1719_v28  ;;  %v2699_v28 = vunpack.c.l.bf16 %v2954_v15  ;;  %v2704_v29 = vunpack.c.h.bf16 %v2955_v59 }
 0x125   :  { %v4090_v39 = vpop.f32.mrf.mxu0  ;;  %v1720_v40 = vadd.f32 1.0, %v3317_v37  ;;  %v1623_v41 = vmul.f32 1.442695, %v1532_v35  ;;  %v1469_v42 = vadd.f32 %v4076_v19, %v1292_v36  ;;  %3328 = vrcp.f32 %v1717_v34 }
 0x126   :  { %v3319_v43 = vpop.eup %3318  ;;  %v1294_v45 = vpop.f32.mrf.mxu1  ;;  %v2700_v35 = vunpack.c.h.bf16 %v2954_v15  ;;  %v1979_v44 = vsel %vm1955_vm0, 1.0, %v2704_v29 }
 0x127   :  { %v4093_v46 = vpop.f32.mrf.mxu0  ;;  %3330 = vrcp.f32 %v1720_v40  ;;  %v1718_v47 = vadd.f32 1.0, %v3319_v43  ;;  %v1533_v48 = vsub.f32 0.0, %v1469_v42  ;;  %v1295_v49 = vadd.f32 %v1294_v45, %v589_v27 }
 0x128   :  { %3332 = vpow2.f32 %v1623_v41  ;;  %v1296_v50 = vpop.f32.mrf.mxu1  ;;  %v1978_v43 = vsel %vm1955_vm0, 1.0, %v2703_v24  ;;  %v1977_v59 = vsel %vm1955_vm0, 1.0, %v2700_v35 }
 0x129   :  { %v4095_v51 = vpop.f32.mrf.mxu0  ;;  %3334 = vrcp.f32 %v1718_v47  ;;  %v1625_v52 = vmul.f32 1.442695, %v1533_v48  ;;  %v1470_v53 = vadd.f32 %v4076_v19, %v1295_v49  ;;  %v1976_v49 = vsel %vm1955_vm0, 1.0, %v2699_v28  ;;  %v2956_v50 = vld [vmem:[%s4721_s5 + $0x60] sm:$0xff]  }
 0x12a   :  { %v3321_v54 = vpop.eup %3320  ;;  %v1299_v11 = vpop.f32.mrf.mxu1  ;;  %v2708_v35 = vunpack.c.h.bf16 %v2956_v50 }
 0x12b   :  { %v4103_v13 = vpop.f32.mrf.mxu0  ;;  %v1721_v17 = vadd.f32 1.0, %v3321_v54  ;;  %3336 = vpow2.f32 %v1625_v52  ;;  %v1534_v18 = vsub.f32 0.0, %v1470_v53  ;;  %v1300_v20 = vadd.f32 %v3093_v58, %v1299_v11 }
 0x12c   :  { %v1301_v22 = vpop.f32.mrf.mxu1 }
 0x12d   :  { %v4108_v23 = vpop.f32.mrf.mxu0  ;;  %v1627_v25 = vmul.f32 1.442695, %v1534_v18  ;;  %v1471_v26 = vadd.f32 %v4076_v19, %v1300_v20  ;;  %3338 = vrcp.f32 %v1721_v17 }
 0x12e   :  { %v3323_v27 = vpop.eup %3322  ;;  %v1302_v30 = vpop.f32.mrf.mxu1 }
 0x12f   :  { %v4112_v31 = vpop.f32.mrf.mxu0  ;;  %v1722_v32 = vadd.f32 1.0, %v3323_v27  ;;  %3340 = vpow2.f32 %v1627_v25  ;;  %v1535_v34 = vsub.f32 0.0, %v1471_v26  ;;  %v1303_v58 = vadd.f32 %v4085_v21, %v1302_v30 }
 0x130   :  { %v1304_v36 = vpop.f32.mrf.mxu1  ;;  %v3325_v38 = vpop.eup %3324  ;;  %v2707_v27 = vunpack.c.l.bf16 %v2956_v50 }
 0x131   :  { %v4115_v37 = vpop.f32.mrf.mxu0  ;;  %3342 = vrcp.f32 %v1722_v32  ;;  %v1629_v40 = vmul.f32 1.442695, %v1535_v34  ;;  %v1472_v41 = vadd.f32 %v4076_v19, %v1303_v58  ;;  %v3327_v42 = vpop.eup %3326  ;;  %v1723_v45 = vadd.f32 1.0, %v3325_v38 }
 0x132   :  { %v1307_v47 = vpop.f32.mrf.mxu1  ;;  %v3329_v21 = vpop.eup %3328  ;;  %v2042_v18 = vmul.f32 %v3327_v42, %v1978_v43 }
 0x133   :  { %v4122_v48 = vpop.f32.mrf.mxu0  ;;  %3344 = vpow2.f32 %v1629_v40  ;;  %v1536_v52 = vsub.f32 0.0, %v1472_v41  ;;  %v1308_v53 = vadd.f32 %v1307_v47, %v4090_v39  ;;  %v2040_v26 = vmul.f32 %v3329_v21, %v1976_v49  ;;  %v2957_v49 = vld [vmem:[%s4721_s5 + $0x68] sm:$0xff]  }
 0x134   :  { %v3331_v54 = vpop.eup %3330  ;;  %v1309_v11 = vpop.f32.mrf.mxu1  ;;  %3346 = vrcp.f32 %v1723_v45 }
 0x135   :  { %v4132_v15 = vpop.f32.mrf.mxu0  ;;  %v3333_v17 = vpop.eup %3332  ;;  %v2043_v20 = vmul.f32 %v3331_v54, %v1979_v44  ;;  %v1631_v22 = vmul.f32 1.442695, %v1536_v52  ;;  %v1473_v24 = vadd.f32 %v4076_v19, %v1308_v53  ;;  %v1981_v53 = vsel %vm1955_vm0, 1.0, %v2708_v35 }
 0x136   :  { %v3335_v25 = vpop.eup %3334  ;;  %v1724_v28 = vadd.f32 1.0, %v3333_v17  ;;  %v1310_v29 = vpop.f32.mrf.mxu1 }
 0x137   :  { %v4135_v39 = vpop.f32.mrf.mxu0  ;;  %v2843_v30 = vpack.c.bf16 %v2043_v20, %v2042_v18  ;;  %v2041_v32 = vmul.f32 %v3335_v25, %v1977_v59  ;;  %3348 = vpow2.f32 %v1631_v22  ;;  %v1537_v34 = vsub.f32 0.0, %v1473_v24 }
 0x138   :  { %v3337_v58 = vpop.eup %3336  ;;  %3350 = vrcp.f32 %v1724_v28  ;;  %v1311_v36 = vadd.f32 %v1310_v29, %v4095_v51  ;;  %v1312_v38 = vpop.f32.mrf.mxu1  ;;  %v1980_v51 = vsel %vm1955_vm0, 1.0, %v2707_v27  ;;  %v2711_v24 = vunpack.c.l.bf16 %v2957_v49 }
 0x139   :  { %v4138_v40 = vpop.f32.mrf.mxu0  ;;  %2986 = vst [vmem:[%s4722_s6 + $0x58] sm:$0xff] %v2843_v30   ;;  %v2838_v41 = vpack.c.bf16 %v2041_v32, %v2040_v26  ;;  %v1725_v42 = vadd.f32 1.0, %v3337_v58  ;;  %v1633_v43 = vmul.f32 1.442695, %v1537_v34  ;;  %v2712_v25 = vunpack.c.h.bf16 %v2957_v49 }
 0x13a   :  { %v1474_v44 = vadd.f32 %v4076_v19, %v1311_v36  ;;  %v1315_v45 = vpop.f32.mrf.mxu1  ;;  %v3339_v21 = vpop.eup %3338  ;;  %v2958_v36 = vld [vmem:[%s4721_s5 + $0x70] sm:$0xff]  }
 0x13b   :  { %v4144_v47 = vpop.f32.mrf.mxu0  ;;  %2985 = vst [vmem:[%s4722_s6 + $0x50] sm:$0xff] %v2838_v41   ;;  %v1316_v50 = vadd.f32 %v4088_v33, %v1315_v45  ;;  %3352 = vpow2.f32 %v1633_v43  ;;  %v2044_v22 = vmul.f32 %v3339_v21, %v1980_v51  ;;  %v1983_v21 = vsel %vm1955_vm0, 1.0, %v2712_v25  ;;  %v2959_v51 = vld [vmem:[%s4721_s5 + $0x78] sm:$0xff]  }
 0x13c   :  { %v3341_v52 = vpop.eup %3340  ;;  %v1538_v54 = vsub.f32 0.0, %v1474_v44  ;;  %v1317_v59 = vpop.f32.mrf.mxu1  ;;  %3354 = vrcp.f32 %v1725_v42 }
 0x13d   :  { %v4157_v11 = vpop.f32.mrf.mxu0  ;;  %v1726_v17 = vadd.f32 1.0, %v3341_v52  ;;  %v1475_v18 = vadd.f32 %v4076_v19, %v1316_v50 }
 0x13e   :  { %v3343_v20 = vpop.eup %3342  ;;  %v1635_v26 = vmul.f32 1.442695, %v1538_v54  ;;  %v1318_v27 = vpop.f32.mrf.mxu1  ;;  %v2716_v54 = vunpack.c.h.bf16 %v2958_v36 }
 0x13f   :  { %v4160_v33 = vpop.f32.mrf.mxu0  ;;  %v2045_v28 = vmul.f32 %v3343_v20, %v1981_v53  ;;  %3356 = vrcp.f32 %v1726_v17  ;;  %v1539_v29 = vsub.f32 0.0, %v1475_v18  ;;  %v1319_v30 = vadd.f32 %v4093_v46, %v1318_v27 }
 0x140   :  { %v3345_v32 = vpop.eup %3344  ;;  %3358 = vpow2.f32 %v1635_v26  ;;  %v1320_v34 = vpop.f32.mrf.mxu1  ;;  %v1982_v46 = vsel %vm1955_vm0, 1.0, %v2711_v24  ;;  %v2715_v53 = vunpack.c.l.bf16 %v2958_v36  ;;  %v2719_v27 = vunpack.c.l.bf16 %v2959_v51 }
 0x141   :  { %v4163_v58 = vpop.f32.mrf.mxu0  ;;  %v2848_v35 = vpack.c.bf16 %v2045_v28, %v2044_v22  ;;  %v1727_v38 = vadd.f32 1.0, %v3345_v32  ;;  %v1637_v41 = vmul.f32 1.442695, %v1539_v29  ;;  %v1476_v42 = vadd.f32 %v4076_v19, %v1319_v30  ;;  %v3347_v45 = vpop.eup %3346 }
 0x142   :  { %v1323_v43 = vpop.f32.mrf.mxu1  ;;  %v2046_v25 = vmul.f32 %v3347_v45, %v1982_v46  ;;  %v2720_v28 = vunpack.c.h.bf16 %v2959_v51  ;;  %v2961_v45 = vld [vmem:[%s4721_s5 + $0x88] sm:$0xff]  }
 0x143   :  { %v4169_v44 = vpop.f32.mrf.mxu0  ;;  %2987 = vst [vmem:[%s4722_s6 + $0x60] sm:$0xff] %v2848_v35   ;;  %v1540_v49 = vsub.f32 0.0, %v1476_v42  ;;  %v1324_v50 = vadd.f32 %v1323_v43, %v4108_v23  ;;  %3360 = vpow2.f32 %v1637_v41  ;;  %v2960_v23 = vld [vmem:[%s4721_s5 + $0x80] sm:$0xff]   ;;  %v1984_v42 = vsel %vm1955_vm0, 1.0, %v2715_v53 }
 0x144   :  { %v3349_v52 = vpop.eup %3348  ;;  %v1325_v59 = vpop.f32.mrf.mxu1  ;;  %3362 = vrcp.f32 %v1727_v38  ;;  %v1985_v43 = vsel %vm1955_vm0, 1.0, %v2716_v54  ;;  %v2723_v53 = vunpack.c.l.bf16 %v2960_v23 }
 0x145   :  { %v4182_v17 = vpop.f32.mrf.mxu0  ;;  %v3351_v18 = vpop.eup %3350  ;;  %v1728_v20 = vadd.f32 1.0, %v3349_v52  ;;  %v1639_v22 = vmul.f32 1.442695, %v1540_v49  ;;  %v1477_v24 = vadd.f32 %v4076_v19, %v1324_v50  ;;  %v4209_v49 = vsel %vm1955_vm0, 1.0, %v2719_v27 }
 0x146   :  { %v2047_v26 = vmul.f32 %v3351_v18, %v1983_v21  ;;  %v1326_v29 = vpop.f32.mrf.mxu1  ;;  %v4213_v50 = vsel %vm1955_vm0, 1.0, %v2720_v28  ;;  %v2724_v18 = vunpack.c.h.bf16 %v2960_v23  ;;  %v2728_v27 = vunpack.c.h.bf16 %v2961_v45 }
 0x147   :  { %v4185_v30 = vpop.f32.mrf.mxu0  ;;  %3364 = vrcp.f32 %v1728_v20  ;;  %v1541_v32 = vsub.f32 0.0, %v1477_v24  ;;  %v1327_v34 = vadd.f32 %v1326_v29, %v4115_v37  ;;  %v2962_v37 = vld [vmem:[%s4721_s5 + $0x90] sm:$0xff]   ;;  %v2963_v24 = vld [vmem:[%s4721_s5 + $0x98] sm:$0xff]  }
 0x148   :  { %v2853_v35 = vpack.c.bf16 %v2047_v26, %v2046_v25  ;;  %3366 = vpow2.f32 %v1639_v22  ;;  %v1328_v36 = vpop.f32.mrf.mxu1  ;;  %v3353_v41 = vpop.eup %3352  ;;  %v2727_v26 = vunpack.c.l.bf16 %v2961_v45  ;;  %v2731_v29 = vunpack.c.l.bf16 %v2962_v37 }
 0x149   :  { %v4191_v38 = vpop.f32.mrf.mxu0  ;;  %v1641_v46 = vmul.f32 1.442695, %v1541_v32  ;;  %v1478_v21 = vadd.f32 %v4076_v19, %v1327_v34  ;;  %v3355_v51 = vpop.eup %3354  ;;  %v1729_v52 = vadd.f32 1.0, %v3353_v41  ;;  %v2732_v28 = vunpack.c.h.bf16 %v2962_v37 }
 0x14a   :  { %2988 = vst [vmem:[%s4722_s6 + $0x68] sm:$0xff] %v2853_v35   ;;  %v1331_v54 = vpop.f32.mrf.mxu1  ;;  %v2048_v36 = vmul.f32 %v3355_v51, %v1984_v42  ;;  %v2736_v14 = vunpack.c.h.bf16 %v2963_v24  ;;  %v4233_v42 = vsel %vm1955_vm0, 1.0, %v2724_v18  ;;  %v4253_v18 = vsel %vm1955_vm0, 1.0, %v2731_v29 }
 0x14b   :  { %v4215_v59 = vpop.f32.mrf.mxu0  ;;  %3368 = vpow2.f32 %v1641_v46  ;;  %v1542_v20 = vsub.f32 0.0, %v1478_v21  ;;  %v1332_v22 = vadd.f32 %v4103_v13, %v1331_v54  ;;  %v2735_v21 = vunpack.c.l.bf16 %v2963_v24 }
 0x14c   :  { %v3357_v25 = vpop.eup %3356  ;;  %v1333_v32 = vpop.f32.mrf.mxu1  ;;  %3370 = vrcp.f32 %v1729_v52 }
 0x14d   :  { %v4221_v34 = vpop.f32.mrf.mxu0  ;;  %v3359_v35 = vpop.eup %3358  ;;  %v2049_v41 = vmul.f32 %v3357_v25, %v1985_v43  ;;  %v1643_v23 = vmul.f32 1.442695, %v1542_v20  ;;  %v1479_v46 = vadd.f32 %v4076_v19, %v1332_v22  ;;  %v4229_v32 = vsel %vm1955_vm0, 1.0, %v2723_v53  ;;  %v2965_v25 = vld [vmem:[%s4721_s5 + $0xa8] sm:$0xff]  }
 0x14e   :  { %v1730_v13 = vadd.f32 1.0, %v3359_v35  ;;  %v1334_v54 = vpop.f32.mrf.mxu1  ;;  %v4237_v43 = vsel %vm1955_vm0, 1.0, %v2727_v26  ;;  %v4249_v53 = vsel %vm1955_vm0, 1.0, %v2728_v27  ;;  %v2966_v26 = vld [vmem:[%s4721_s5 + $0xb0] sm:$0xff]   ;;  %v4264_v27 = vsel %vm1955_vm0, 1.0, %v2732_v28  ;;  %v2658_v28 = vld [vmem:[%s4721_s5] sm:$0xff]  }
 0x14f   :  { %v4224_v10 = vpop.f32.mrf.mxu0  ;;  %v2858_v16 = vpack.c.bf16 %v2049_v41, %v2048_v36  ;;  %3372 = vpow2.f32 %v1643_v23  ;;  %v1543_v45 = vsub.f32 0.0, %v1479_v46  ;;  %v1335_v37 = vadd.f32 %v4112_v31, %v1334_v54  ;;  %v2964_v31 = vld [vmem:[%s4721_s5 + $0xa0] sm:$0xff]  }
 0x150   :  { %4732 = vst [vmem:[#allocation11_spill] sm:$0xff] %v4224_v10  ;;  %3374 = vrcp.f32 %v1730_v13  ;;  %v1336_v51 = vpop.f32.mrf.mxu1  ;;  %v3361_v20 = vpop.eup %3360  ;;  %v4268_v29 = vsel %vm1955_vm0, 1.0, %v2735_v21  ;;  %v4272_v36 = vsel %vm1955_vm0, 1.0, %v2736_v14  ;;  %v2739_v54 = vunpack.c.l.bf16 %v2964_v31 }
 0x151   :  { %v4239_v52 = vpop.f32.mrf.mxu0  ;;  %2989 = vst [vmem:[%s4722_s6 + $0x70] sm:$0xff] %v2858_v16   ;;  %v1645_v22 = vmul.f32 1.442695, %v1543_v45  ;;  %v1480_v24 = vadd.f32 %v4076_v19, %v1335_v37  ;;  %v3363_v16 = vpop.eup %3362  ;;  %v1731_v35 = vadd.f32 1.0, %v3361_v20  ;;  %v2740_v51 = vunpack.c.h.bf16 %v2964_v31 }
 0x152   :  { %v1339_v41 = vpop.f32.mrf.mxu1  ;;  %v2743_v20 = vunpack.c.l.bf16 %v2965_v25  ;;  %v2744_v14 = vunpack.c.h.bf16 %v2965_v25  ;;  %v2747_v12 = vunpack.c.l.bf16 %v2966_v26  ;;  %v2050_v5 = vmul.f32 %v3363_v16, %v4209_v49 }
 0x153   :  { %v4274_v23 = vpop.f32.mrf.mxu0  ;;  %3376 = vpow2.f32 %v1645_v22  ;;  %v1544_v46 = vsub.f32 0.0, %v1480_v24  ;;  %v1340_v13 = vadd.f32 %v1339_v41, %v4132_v15  ;;  %v2748_v6 = vunpack.c.h.bf16 %v2966_v26 }
 0x154   :  { %4733 = vst [vmem:[#allocation12_spill] sm:$0xff] %v4274_v23  ;;  %v3365_v45 = vpop.eup %3364  ;;  %v1341_v37 = vpop.f32.mrf.mxu1  ;;  %3378 = vrcp.f32 %v1731_v35  ;;  %v4290_v49 = vsel %vm1955_vm0, 1.0, %v2739_v54  ;;  %v2660_v35 = vunpack.c.h.bf16 %v2658_v28 }
 0x155   :  { %v4280_v21 = vpop.f32.mrf.mxu0  ;;  %v3367_v7 = vpop.eup %3366  ;;  %v2051_v22 = vmul.f32 %v3365_v45, %v4213_v50  ;;  %v1647_v24 = vmul.f32 1.442695, %v1544_v46  ;;  %v1481_v15 = vadd.f32 %v4076_v19, %v1340_v13  ;;  %v2659_v37 = vunpack.c.l.bf16 %v2658_v28  ;;  %v2945_v13 = vld [vmem:[%s4721_s5 + $0x8] sm:$0xff]  }
 0x156   :  { %4734 = vst [vmem:[#allocation13_spill] sm:$0xff] %v4280_v21  ;;  %v1732_v41 = vadd.f32 1.0, %v3367_v7  ;;  %v1342_v23 = vpop.f32.mrf.mxu1  ;;  %v4294_v50 = vsel %vm1955_vm0, 1.0, %v2740_v51  ;;  %v4307_v46 = vsel %vm1955_vm0, 1.0, %v2743_v20  ;;  %v4316_v45 = vsel %vm1955_vm0, 1.0, %v2744_v14  ;;  %v2968_v14 = vld [vmem:[%s4721_s5 + $0xc0] sm:$0xff]  }
 0x157   :  { %v4285_v8 = vpop.f32.mrf.mxu0  ;;  %v2863_v21 = vpack.c.bf16 %v2051_v22, %v2050_v5  ;;  %3380 = vpow2.f32 %v1647_v24  ;;  %v1545_v31 = vsub.f32 0.0, %v1481_v15  ;;  %v1343_v25 = vadd.f32 %v1342_v23, %v4138_v40  ;;  %v2967_v5 = vld [vmem:[%s4721_s5 + $0xb8] sm:$0xff]  }
 0x158   :  { %4735 = vst [vmem:[#allocation14_spill] sm:$0xff] %v4285_v8  ;;  %v3369_v3 = vpop.eup %3368  ;;  %3382 = vrcp.f32 %v1732_v41  ;;  %v1344_v7 = vpop.f32.mrf.mxu1  ;;  %v4328_v51 = vsel %vm1955_vm0, 1.0, %v2748_v6  ;;  %v2751_v15 = vunpack.c.l.bf16 %v2967_v5 }
 0x159   :  { %v4296_v16 = vpop.f32.mrf.mxu0  ;;  %2990 = vst [vmem:[%s4722_s6 + $0x78] sm:$0xff] %v2863_v21   ;;  %v1733_v40 = vadd.f32 1.0, %v3369_v3  ;;  %v1649_v26 = vmul.f32 1.442695, %v1545_v31  ;;  %v1482_v23 = vadd.f32 %v4076_v19, %v1343_v25  ;;  %v4320_v3 = vsel %vm1955_vm0, 1.0, %v2747_v12  ;;  %v3371_v20 = vpop.eup %3370  ;;  %v4337_v12 = vld [vmem:[%s4721_s5 + $0x10] sm:$0xff]  }
 0x15a   :  { %4736 = vst [vmem:[#allocation15_spill] sm:$0xff] %v4296_v16  ;;  %v1347_v54 = vpop.f32.mrf.mxu1  ;;  %v4324_v21 = vsel %vm1955_vm0, 1.0, %v2659_v37  ;;  %v4343_v31 = vsel %vm1955_vm0, 1.0, %v2660_v35  ;;  %v2752_v25 = vunpack.c.h.bf16 %v2967_v5  ;;  %v2052_v8 = vmul.f32 %v3371_v20, %v4229_v32 }
 0x15b   :  { %v4312_v28 = vpop.f32.mrf.mxu0  ;;  %3384 = vrcp.f32 %v1733_v40  ;;  %v1546_v22 = vsub.f32 0.0, %v1482_v23  ;;  %v1348_v24 = vadd.f32 %v4122_v48, %v1347_v54  ;;  %v2663_v48 = vunpack.c.l.bf16 %v2945_v13 }
 0x15c   :  { %4737 = vst [vmem:[#allocation16_spill] sm:$0xff] %v4312_v28  ;;  %v3373_v41 = vpop.eup %3372  ;;  %3386 = vpow2.f32 %v1649_v26  ;;  %v1349_v37 = vpop.f32.mrf.mxu1  ;;  %v2664_v28 = vunpack.c.h.bf16 %v2945_v13  ;;  %v2667_v10 = vunpack.c.l.bf16 %v4337_v12 }
 0x15d   :  { %v4339_v6 = vpop.f32.mrf.mxu0  ;;  %v3375_v7 = vpop.eup %3374  ;;  %v1734_v40 = vadd.f32 1.0, %v3373_v41  ;;  %v1651_v23 = vmul.f32 1.442695, %v1546_v22  ;;  %v1483_v54 = vadd.f32 %v4076_v19, %v1348_v24  ;;  %v4354_v22 = vsel %vm1955_vm0, 1.0, %v2751_v15 }
 0x15e   :  { %4738 = vst [vmem:[#allocation17_spill] sm:$0xff] %v4339_v6  ;;  %v2053_v16 = vmul.f32 %v3375_v7, %v4233_v42  ;;  %v1350_v26 = vpop.f32.mrf.mxu1  ;;  %v2755_v6 = vunpack.c.l.bf16 %v2968_v14  ;;  %v4360_v42 = vsel %vm1955_vm0, 1.0, %v2663_v48  ;;  %v2756_v41 = vunpack.c.h.bf16 %v2968_v14 }
 0x15f   :  { %v4348_v37 = vpop.f32.mrf.mxu0  ;;  %3388 = vrcp.f32 %v1734_v40  ;;  %v1547_v35 = vsub.f32 0.0, %v1483_v54  ;;  %v1351_v5 = vadd.f32 %v4135_v39, %v1350_v26  ;;  %v4365_v39 = vsel %vm1955_vm0, 1.0, %v2752_v25 }
 0x160   :  { %4739 = vst [vmem:[#allocation18_spill] sm:$0xff] %v4348_v37  ;;  %v3377_v24 = vpop.eup %3376  ;;  %v2868_v13 = vpack.c.bf16 %v2053_v16, %v2052_v8  ;;  %3390 = vpow2.f32 %v1651_v23  ;;  %v1352_v32 = vpop.f32.mrf.mxu1  ;;  %v2969_v8 = vld [vmem:[%s4721_s5 + $0xc8] sm:$0xff]   ;;  %v4373_v16 = vld [vmem:[%s4721_s5 + $0x18] sm:$0xff]   ;;  %v4380_v48 = vsel %vm1955_vm0, 1.0, %v2664_v28  ;;  %v4384_v25 = vsel %vm1955_vm0, 1.0, %v2755_v6 }
 0x161   :  { %v4356_v20 = vpop.f32.mrf.mxu0  ;;  %v1735_v7 = vadd.f32 1.0, %v3377_v24  ;;  %v1653_v40 = vmul.f32 1.442695, %v1547_v35  ;;  %v1484_v54 = vadd.f32 %v4076_v19, %v1351_v5  ;;  %4741 = vst [vmem:[#allocation20_spill] sm:$0xff] %v4384_v25  ;;  %v4388_v23 = vsel %vm1955_vm0, 1.0, %v2667_v10  ;;  %v3379_v35 = vpop.eup %3378 }
 0x162   :  { %4740 = vst [vmem:[#allocation19_spill] sm:$0xff] %v4356_v20  ;;  %2991 = vst [vmem:[%s4722_s6 + $0x80] sm:$0xff] %v2868_v13   ;;  %v1355_v15 = vpop.f32.mrf.mxu1  ;;  %v2668_v26 = vunpack.c.h.bf16 %v4337_v12  ;;  %v4395_v6 = vsel %vm1955_vm0, 1.0, %v2756_v41  ;;  %v2759_v20 = vunpack.c.l.bf16 %v2969_v8  ;;  %v2671_v10 = vunpack.c.l.bf16 %v4373_v16 }
 0x163   :  { %v1179_v14 = vpop.f32.mrf.mxu0  ;;  %4742 = vst [vmem:[#allocation21_spill] sm:$0xff] %v4388_v23  ;;  %3392 = vrcp.f32 %v1735_v7  ;;  %v1548_v5 = vsub.f32 0.0, %v1484_v54  ;;  %v1356_v24 = vadd.f32 %v1355_v15, %v4157_v11  ;;  %v2760_v15 = vunpack.c.h.bf16 %v2969_v8 }
 0x164   :  { %v1180_v13 = vadd.f32 %v1179_v14, %v4029_v56  ;;  %v3381_v32 = vpop.eup %3380  ;;  %3394 = vpow2.f32 %v1653_v40  ;;  %v1357_v28 = vpop.f32.mrf.mxu1  ;;  %v2054_v56 = vmul.f32 %v3379_v35, %v4237_v43  ;;  %v4404_v41 = vsel %vm1955_vm0, 1.0, %v2668_v26 }
 0x165   :  { %v1181_v37 = vpop.f32.mrf.mxu0  ;;  %v3383_v23 = vpop.eup %3382  ;;  %v1736_v12 = vadd.f32 1.0, %v3381_v32  ;;  %v1655_v25 = vmul.f32 1.442695, %v1548_v5  ;;  %v1485_v7 = vadd.f32 %v4076_v19, %v1356_v24  ;;  %4743 = vst [vmem:[#allocation22_spill] sm:$0xff] %v4404_v41 }
 0x166   :  { %v1441_v11 = vadd.f32 %v4076_v19, %v1180_v13  ;;  %v2055_v40 = vmul.f32 %v3383_v23, %v4249_v53  ;;  %v1358_v54 = vpop.f32.mrf.mxu1  ;;  %v4410_v53 = vsel %vm1955_vm0, 1.0, %v2759_v20 }
 0x167   :  { %v1182_v37 = vpop.f32.mrf.mxu0  ;;  %3396 = vrcp.f32 %v1736_v12  ;;  %v1549_v14 = vsub.f32 0.0, %v1485_v7  ;;  %v1359_v5 = vadd.f32 %v1358_v54, %v4163_v58  ;;  %v4415_v12 = vsel %vm1955_vm0, 1.0, %v2671_v10  ;;  %v4420_v58 = vld [vmem:[%s4721_s5 + $0xd0] sm:$0xff]  }
 0x168   :  { %v1505_v28 = vsub.f32 0.0, %v1441_v11  ;;  %v3385_v32 = vpop.eup %3384  ;;  %v2873_v24 = vpack.c.bf16 %v2055_v40, %v2054_v56  ;;  %3398 = vpow2.f32 %v1655_v25  ;;  %v1183_v13 = vadd.f32 %v1182_v37, %v4039_v60  ;;  %v1360_v43 = vpop.f32.mrf.mxu1  ;;  %v4436_v37 = vld [vmem:[%s4721_s5 + $0x20] sm:$0xff]  }
 0x169   :  { %v1184_v35 = vpop.f32.mrf.mxu0  ;;  %v3387_v23 = vpop.eup %3386  ;;  %v1657_v26 = vmul.f32 1.442695, %v1549_v14  ;;  %v1486_v8 = vadd.f32 %v4076_v19, %v1359_v5  ;;  %v4428_v11 = vsel %vm1955_vm0, 1.0, %v2760_v15  ;;  %v2672_v10 = vunpack.c.h.bf16 %v4373_v16 }
 0x16a   :  { %v1569_v41 = vmul.f32 1.442695, %v1505_v28  ;;  %2992 = vst [vmem:[%s4722_s6 + $0x88] sm:$0xff] %v2873_v24   ;;  %v1737_v60 = vadd.f32 1.0, %v3387_v23  ;;  %v1442_v20 = vadd.f32 %v4076_v19, %v1183_v13  ;;  %v1363_v25 = vpop.f32.mrf.mxu1  ;;  %v2056_v28 = vmul.f32 %v3385_v32, %v4253_v18 }
 0x16b   :  { %v1187_v7 = vpop.f32.mrf.mxu0  ;;  %3400 = vpow2.f32 %v1657_v26  ;;  %v1550_v56 = vsub.f32 0.0, %v1486_v8  ;;  %v1364_v40 = vadd.f32 %v4144_v47, %v1363_v25  ;;  %v2763_v16 = vunpack.c.l.bf16 %v4420_v58 }
 0x16c   :  { %v1188_v54 = vadd.f32 %v4027_v55, %v1187_v7  ;;  %v3389_v14 = vpop.eup %3388  ;;  %3402 = vrcp.f32 %v1737_v60  ;;  %v1506_v5 = vsub.f32 0.0, %v1442_v20  ;;  %v1365_v15 = vpop.f32.mrf.mxu1  ;;  %v2675_v18 = vunpack.c.l.bf16 %v4436_v37 }
 0x16d   :  { %v1189_v24 = vpop.f32.mrf.mxu0  ;;  %v3391_v13 = vpop.eup %3390  ;;  %v2057_v43 = vmul.f32 %v3389_v14, %v4264_v27  ;;  %3404 = vpow2.f32 %v1569_v41  ;;  %v1659_v47 = vmul.f32 1.442695, %v1550_v56  ;;  %v1487_v55 = vadd.f32 %v4076_v19, %v1364_v40 }
 0x16e   :  { %v1738_v35 = vadd.f32 1.0, %v3391_v13  ;;  %v1571_v23 = vmul.f32 1.442695, %v1506_v5  ;;  %v1443_v26 = vadd.f32 %v4076_v19, %v1188_v54  ;;  %v1366_v8 = vpop.f32.mrf.mxu1  ;;  %v4448_v14 = vsel %vm1955_vm0, 1.0, %v2672_v10 }
 0x16f   :  { %v1190_v25 = vpop.f32.mrf.mxu0  ;;  %v2878_v32 = vpack.c.bf16 %v2057_v43, %v2056_v28  ;;  %3406 = vpow2.f32 %v1659_v47  ;;  %v1551_v60 = vsub.f32 0.0, %v1487_v55  ;;  %v1367_v20 = vadd.f32 %v4160_v33, %v1366_v8 }
 0x170   :  { %v3393_v7 = vpop.eup %3392  ;;  %3408 = vrcp.f32 %v1738_v35  ;;  %v1507_v27 = vsub.f32 0.0, %v1443_v26  ;;  %v1191_v41 = vadd.f32 %v4031_v57, %v1190_v25  ;;  %v1368_v56 = vpop.f32.mrf.mxu1  ;;  %v4456_v5 = vsel %vm1955_vm0, 1.0, %v2763_v16 }
 0x171   :  { %v1192_v40 = vpop.f32.mrf.mxu0  ;;  %v3395_v54 = vpop.eup %3394  ;;  %2993 = vst [vmem:[%s4722_s6 + $0x90] sm:$0xff] %v2878_v32   ;;  %3410 = vpow2.f32 %v1571_v23  ;;  %v1661_v28 = vmul.f32 1.442695, %v1551_v60  ;;  %v1488_v33 = vadd.f32 %v4076_v19, %v1367_v20  ;;  %v4461_v43 = vsel %vm1955_vm0, 1.0, %v2675_v18 }
 0x172   :  { %v1739_v57 = vadd.f32 1.0, %v3395_v54  ;;  %v1573_v15 = vmul.f32 1.442695, %v1507_v27  ;;  %v1444_v24 = vadd.f32 %v4076_v19, %v1191_v41  ;;  %v1371_v13 = vpop.f32.mrf.mxu1  ;;  %v2058_v16 = vmul.f32 %v3393_v7, %v4268_v29 }
 0x173   :  { %v1195_v10 = vpop.f32.mrf.mxu0  ;;  %3412 = vpow2.f32 %v1661_v28  ;;  %v1552_v47 = vsub.f32 0.0, %v1488_v33  ;;  %v1372_v55 = vadd.f32 %v1371_v13, %v4182_v17  ;;  %v2764_v32 = vunpack.c.h.bf16 %v4420_v58 }
 0x174   :  { %v1196_v35 = vadd.f32 %v1195_v10, %v4043_v62  ;;  %v3397_v23 = vpop.eup %3396  ;;  %3414 = vrcp.f32 %v1739_v57  ;;  %v1508_v26 = vsub.f32 0.0, %v1444_v24  ;;  %v1373_v8 = vpop.f32.mrf.mxu1  ;;  %v2676_v29 = vunpack.c.h.bf16 %v4436_v37  ;;  %v4488_v10 = vld [vmem:[%s4720_s4] ss:$0 sm:$0xff] }
 0x175   :  { %v1197_v25 = vpop.f32.mrf.mxu0  ;;  %v3399_v60 = vpop.eup %3398  ;;  %v2059_v20 = vmul.f32 %v3397_v23, %v4272_v36  ;;  %3416 = vpow2.f32 %v1573_v15  ;;  %v1663_v18 = vmul.f32 1.442695, %v1552_v47  ;;  %v1489_v27 = vadd.f32 %v4076_v19, %v1372_v55  ;;  %v4475_v36 = vld [vmem:[%s4721_s5 + $0xd8] sm:$0xff]  }
 0x176   :  { %v1740_v41 = vadd.f32 1.0, %v3399_v60  ;;  %v1575_v17 = vmul.f32 1.442695, %v1508_v26  ;;  %v1445_v62 = vadd.f32 %v4076_v19, %v1196_v35  ;;  %v1374_v56 = vpop.f32.mrf.mxu1  ;;  %v4480_v37 = vsel %vm1955_vm0, 1.0, %v2764_v32 }
 0x177   :  { %v1198_v40 = vpop.f32.mrf.mxu0  ;;  %v2883_v7 = vpack.c.bf16 %v2059_v20, %v2058_v16  ;;  %3418 = vpow2.f32 %v1663_v18  ;;  %v1553_v54 = vsub.f32 0.0, %v1489_v27  ;;  %v1375_v58 = vadd.f32 %v1374_v56, %v4191_v38 }
 0x178   :  { %v3401_v28 = vpop.eup %3400  ;;  %3420 = vrcp.f32 %v1740_v41  ;;  %v1509_v33 = vsub.f32 0.0, %v1445_v62  ;;  %v1199_v57 = vadd.f32 %v1198_v40, %v4047_v0  ;;  %v1376_v19 = vpop.f32.mrf.mxu1  ;;  %v4494_v26 = vsel %vm1955_vm0, 1.0, %v2676_v29 }
 0x179   :  { %v1200_v15 = vpop.f32.mrf.mxu0  ;;  %v3403_v24 = vpop.eup %3402  ;;  %2994 = vst [vmem:[%s4722_s6 + $0x98] sm:$0xff] %v2883_v7   ;;  %v1741_v38 = vadd.f32 1.0, %v3401_v28  ;;  %3422 = vpow2.f32 %v1575_v17  ;;  %v1665_v13 = vmul.f32 1.442695, %v1553_v54  ;;  %v1490_v0 = vadd.f32 %v4488_v10, %v1375_v58 }
 0x17a   :  { %v3405_v47 = vpop.eup %3404  ;;  %v1577_v55 = vmul.f32 1.442695, %v1509_v33  ;;  %v1446_v35 = vadd.f32 %v4488_v10, %v1199_v57  ;;  %v1379_v23 = vpop.f32.mrf.mxu1  ;;  %v2767_v8 = vunpack.c.l.bf16 %v4475_v36  ;;  %v2060_v18 = vmul.f32 %v3403_v24, %v4290_v49 }
 0x17b   :  { %v1203_v16 = vpop.f32.mrf.mxu0  ;;  %3424 = vrcp.f32 %v1741_v38  ;;  %v1697_v25 = vadd.f32 1.0, %v3405_v47  ;;  %v1554_v32 = vsub.f32 0.0, %v1490_v0  ;;  %v1380_v60 = vadd.f32 %v4169_v44, %v1379_v23 }
 0x17c   :  { %v3407_v20 = vpop.eup %3406  ;;  %3426 = vpow2.f32 %v1665_v13  ;;  %v1510_v27 = vsub.f32 0.0, %v1446_v35  ;;  %v1204_v41 = vadd.f32 %v4041_v61, %v1203_v16  ;;  %v1381_v17 = vpop.f32.mrf.mxu1 }
 0x17d   :  { %v1205_v62 = vpop.f32.mrf.mxu0  ;;  %v3409_v56 = vpop.eup %3408  ;;  %3428 = vrcp.f32 %v1697_v25  ;;  %v1742_v40 = vadd.f32 1.0, %v3407_v20  ;;  %v1667_v29 = vmul.f32 1.442695, %v1554_v32  ;;  %v1491_v7 = vadd.f32 %v4488_v10, %v1380_v60 }
 0x17e   :  { %v3411_v54 = vpop.eup %3410  ;;  %v2061_v58 = vmul.f32 %v3409_v56, %v4294_v50  ;;  %3430 = vpow2.f32 %v1577_v55  ;;  %v1579_v44 = vmul.f32 1.442695, %v1510_v27  ;;  %v1447_v28 = vadd.f32 %v4488_v10, %v1204_v41  ;;  %v1382_v49 = vpop.f32.mrf.mxu1 }
 0x17f   :  { %v1206_v33 = vpop.f32.mrf.mxu0  ;;  %3432 = vrcp.f32 %v1742_v40  ;;  %v1698_v57 = vadd.f32 1.0, %v3411_v54  ;;  %v1555_v61 = vsub.f32 0.0, %v1491_v7  ;;  %v1383_v19 = vadd.f32 %v4185_v30, %v1382_v49 }
 0x180   :  { %v3413_v15 = vpop.eup %3412  ;;  %v2888_v24 = vpack.c.bf16 %v2061_v58, %v2060_v18  ;;  %3434 = vpow2.f32 %v1667_v29  ;;  %v1511_v38 = vsub.f32 0.0, %v1447_v28  ;;  %v1207_v13 = vadd.f32 %v4045_v63, %v1206_v33  ;;  %v1384_v0 = vpop.f32.mrf.mxu1 }
 0x181   :  { %v1208_v47 = vpop.f32.mrf.mxu0  ;;  %v3415_v50 = vpop.eup %3414  ;;  %3436 = vrcp.f32 %v1698_v57  ;;  %v1743_v55 = vadd.f32 1.0, %v3413_v15  ;;  %v1669_v35 = vmul.f32 1.442695, %v1555_v61  ;;  %v1492_v23 = vadd.f32 %v4488_v10, %v1383_v19 }
 0x182   :  { %v3417_v16 = vpop.eup %3416  ;;  %2995 = vst [vmem:[%s4722_s6 + $0xa0] sm:$0xff] %v2888_v24   ;;  %3438 = vpow2.f32 %v1579_v44  ;;  %v1581_v30 = vmul.f32 1.442695, %v1511_v38  ;;  %v1448_v25 = vadd.f32 %v4488_v10, %v1207_v13  ;;  %v1387_v32 = vpop.f32.mrf.mxu1  ;;  %v4512_v63 = vsel %vm1955_vm0, 1.0, %v2767_v8 }
 0x183   :  { %v1211_v60 = vpop.f32.mrf.mxu0  ;;  %3440 = vrcp.f32 %v1743_v55  ;;  %v1699_v20 = vadd.f32 1.0, %v3417_v16  ;;  %v1556_v18 = vsub.f32 0.0, %v1492_v23  ;;  %v1388_v27 = vadd.f32 %v1387_v32, %v4221_v34 }
 0x184   :  { %v3419_v41 = vpop.eup %3418  ;;  %v2062_v17 = vmul.f32 %v3415_v50, %v4307_v46  ;;  %3442 = vpow2.f32 %v1669_v35  ;;  %v1512_v62 = vsub.f32 0.0, %v1448_v25  ;;  %v1212_v56 = vadd.f32 %v1211_v60, %v4051_v2  ;;  %v1389_v40 = vpop.f32.mrf.mxu1 }
 0x185   :  { %v1213_v29 = vpop.f32.mrf.mxu0  ;;  %v3421_v7 = vpop.eup %3420  ;;  %3444 = vrcp.f32 %v1699_v20  ;;  %v1744_v54 = vadd.f32 1.0, %v3419_v41  ;;  %v1671_v58 = vmul.f32 1.442695, %v1556_v18  ;;  %v1493_v8 = vadd.f32 %v4488_v10, %v1388_v27 }
 0x186   :  { %v3423_v44 = vpop.eup %3422  ;;  %v2063_v28 = vmul.f32 %v3421_v7, %v4316_v45  ;;  %3446 = vpow2.f32 %v1581_v30  ;;  %v1583_v34 = vmul.f32 1.442695, %v1512_v62  ;;  %v1449_v49 = vadd.f32 %v4488_v10, %v1212_v56  ;;  %v1390_v46 = vpop.f32.mrf.mxu1 }
 0x187   :  { %v1214_v33 = vpop.f32.mrf.mxu0  ;;  %3448 = vrcp.f32 %v1744_v54  ;;  %v1700_v57 = vadd.f32 1.0, %v3423_v44  ;;  %v1557_v2 = vsub.f32 0.0, %v1493_v8  ;;  %v1391_v61 = vadd.f32 %v1390_v46, %v4239_v52 }
 0x188   :  { %v3425_v19 = vpop.eup %3424  ;;  %v2893_v15 = vpack.c.bf16 %v2063_v28, %v2062_v17  ;;  %3450 = vpow2.f32 %v1671_v58  ;;  %v1513_v24 = vsub.f32 0.0, %v1449_v49  ;;  %v1215_v38 = vadd.f32 %v1214_v33, %v4055_v4  ;;  %v1392_v13 = vpop.f32.mrf.mxu1 }
 0x189   :  { %v1216_v0 = vpop.f32.mrf.mxu0  ;;  %v3427_v45 = vpop.eup %3426  ;;  %v2064_v47 = vmul.f32 %v3425_v19, %v4320_v3  ;;  %3452 = vrcp.f32 %v1700_v57  ;;  %v1673_v50 = vmul.f32 1.442695, %v1557_v2  ;;  %v1494_v55 = vadd.f32 %v4488_v10, %v1391_v61  ;;  %v4744_v57 = vld [vmem:[#allocation11_spill] sm:$0xff] }
 0x18a   :  { %v3429_v35 = vpop.eup %3428  ;;  %2996 = vst [vmem:[%s4722_s6 + $0xa8] sm:$0xff] %v2893_v15   ;;  %v1745_v52 = vadd.f32 1.0, %v3427_v45  ;;  %3454 = vpow2.f32 %v1583_v34  ;;  %v1585_v23 = vmul.f32 1.442695, %v1513_v24  ;;  %v1450_v16 = vadd.f32 %v4488_v10, %v1215_v38  ;;  %v1395_v4 = vpop.f32.mrf.mxu1 }
 0x18b   :  { %v1219_v30 = vpop.f32.mrf.mxu0  ;;  %v3431_v25 = vpop.eup %3430  ;;  %v2020_v32 = vmul.f32 %v3429_v35, %v4324_v21  ;;  %3456 = vpow2.f32 %v1673_v50  ;;  %v1558_v3 = vsub.f32 0.0, %v1494_v55  ;;  %v1396_v60 = vadd.f32 %v4215_v59, %v1395_v4 }
 0x18c   :  { %v3433_v20 = vpop.eup %3432  ;;  %3458 = vrcp.f32 %v1745_v52  ;;  %v1701_v18 = vadd.f32 1.0, %v3431_v25  ;;  %v1514_v27 = vsub.f32 0.0, %v1450_v16  ;;  %v1220_v41 = vadd.f32 %v4049_v1, %v1219_v30  ;;  %v1397_v17 = vpop.f32.mrf.mxu1  ;;  %v4746_v16 = vld [vmem:[#allocation13_spill] sm:$0xff] }
 0x18d   :  { %v1221_v62 = vpop.f32.mrf.mxu0  ;;  %v3435_v56 = vpop.eup %3434  ;;  %v2065_v40 = vmul.f32 %v3433_v20, %v4328_v51  ;;  %3460 = vpow2.f32 %v1585_v23  ;;  %v1675_v29 = vmul.f32 1.442695, %v1558_v3  ;;  %v1495_v7 = vadd.f32 %v4488_v10, %v1396_v60  ;;  %v4745_v23 = vld [vmem:[#allocation2_spill] sm:$0xff]  ;;  %v4747_v3 = vld [vmem:[#allocation4_spill] sm:$0xff] }
 0x18e   :  { %v3437_v21 = vpop.eup %3436  ;;  %3462 = vrcp.f32 %v1701_v18  ;;  %v1746_v54 = vadd.f32 1.0, %v3435_v56  ;;  %v1587_v58 = vmul.f32 1.442695, %v1514_v27  ;;  %v1451_v59 = vadd.f32 %v4488_v10, %v1220_v41  ;;  %v1398_v8 = vpop.f32.mrf.mxu1 }
 0x18f   :  { %v1222_v44 = vpop.f32.mrf.mxu0  ;;  %v3439_v28 = vpop.eup %3438  ;;  %v2898_v34 = vpack.c.bf16 %v2065_v40, %v2064_v47  ;;  %v2021_v1 = vmul.f32 %v3437_v21, %v4343_v31  ;;  %3464 = vpow2.f32 %v1675_v29  ;;  %v1559_v49 = vsub.f32 0.0, %v1495_v7 }
 0x190   :  { %v3441_v46 = vpop.eup %3440  ;;  %3466 = vrcp.f32 %v1746_v54  ;;  %v1702_v51 = vadd.f32 1.0, %v3439_v28  ;;  %v1515_v33 = vsub.f32 0.0, %v1451_v59  ;;  %v1399_v2 = vadd.f32 %v4744_v57, %v1398_v8  ;;  %v1400_v61 = vpop.f32.mrf.mxu1 }
 0x191   :  { %v1224_v19 = vpop.f32.mrf.mxu0  ;;  %v3443_v15 = vpop.eup %3442  ;;  %2997 = vst [vmem:[%s4722_s6 + $0xb0] sm:$0xff] %v2898_v34   ;;  %v2788_v24 = vpack.c.bf16 %v2021_v1, %v2020_v32  ;;  %v2066_v38 = vmul.f32 %v3441_v46, %v4354_v22  ;;  %3468 = vpow2.f32 %v1587_v58  ;;  %v1677_v31 = vmul.f32 1.442695, %v1559_v49  ;;  %v4748_v1 = vld [vmem:[#allocation15_spill] sm:$0xff] }
 0x192   :  { %v3445_v13 = vpop.eup %3444  ;;  %3470 = vrcp.f32 %v1702_v51  ;;  %v1747_v0 = vadd.f32 1.0, %v3443_v15  ;;  %v1589_v45 = vmul.f32 1.442695, %v1515_v33  ;;  %v1496_v47 = vadd.f32 %v4488_v10, %v1399_v2  ;;  %v1403_v50 = vpop.f32.mrf.mxu1  ;;  %v4749_v19 = vld [vmem:[#allocation20_spill] sm:$0xff] }
 0x193   :  { %v1227_v55 = vpop.f32.mrf.mxu0  ;;  %v3447_v35 = vpop.eup %3446  ;;  %2789 = vst [vmem:[%s4722_s6] sm:$0xff] %v2788_v24   ;;  %v2022_v52 = vmul.f32 %v3445_v13, %v4360_v42  ;;  %3472 = vpow2.f32 %v1677_v31  ;;  %v1223_v22 = vadd.f32 %v4745_v23, %v1222_v44  ;;  %v1404_v4 = vadd.f32 %v1403_v50, %v4746_v16  ;;  %v4750_v50 = vld [vmem:[#allocation6_spill] sm:$0xff] }
 0x194   :  { %v3449_v30 = vpop.eup %3448  ;;  %3474 = vrcp.f32 %v1747_v0  ;;  %v1703_v25 = vadd.f32 1.0, %v3447_v35  ;;  %v1560_v32 = vsub.f32 0.0, %v1496_v47  ;;  %v1228_v60 = vadd.f32 %v1227_v55, %v4747_v3  ;;  %v1405_v20 = vpop.f32.mrf.mxu1 }
 0x195   :  { %v1229_v18 = vpop.f32.mrf.mxu0  ;;  %v3451_v27 = vpop.eup %3450  ;;  %v2067_v41 = vmul.f32 %v3449_v30, %v4365_v39  ;;  %3476 = vpow2.f32 %v1589_v45  ;;  %v1452_v17 = vadd.f32 %v4488_v10, %v1223_v22  ;;  %v1497_v42 = vadd.f32 %v4488_v10, %v1404_v4  ;;  %v4752_v22 = vld [vmem:[#allocation12_spill] sm:$0xff]  ;;  %v4753_v4 = vld [vmem:[#allocation3_spill] sm:$0xff] }
 0x196   :  { %v3453_v62 = vpop.eup %3452  ;;  %3478 = vrcp.f32 %v1703_v25  ;;  %v1748_v56 = vadd.f32 1.0, %v3451_v27  ;;  %v1679_v40 = vmul.f32 1.442695, %v1560_v32  ;;  %v1453_v29 = vadd.f32 %v4488_v10, %v1228_v60  ;;  %v1406_v7 = vpop.f32.mrf.mxu1 }
 0x197   :  { %v1230_v21 = vpop.f32.mrf.mxu0  ;;  %v3455_v54 = vpop.eup %3454  ;;  %v2903_v58 = vpack.c.bf16 %v2067_v41, %v2066_v38  ;;  %v2023_v59 = vmul.f32 %v3453_v62, %v4380_v48  ;;  %v1516_v8 = vsub.f32 0.0, %v1452_v17  ;;  %v1561_v44 = vsub.f32 0.0, %v1497_v42 }
 0x198   :  { %v3457_v39 = vpop.eup %3456  ;;  %3480 = vrcp.f32 %v1748_v56  ;;  %v1704_v28 = vadd.f32 1.0, %v3455_v54  ;;  %v1517_v34 = vsub.f32 0.0, %v1453_v29  ;;  %v1407_v49 = vadd.f32 %v1406_v7, %v4748_v1  ;;  %v1408_v46 = vpop.f32.mrf.mxu1 }
 0x199   :  { %v1232_v51 = vpop.f32.mrf.mxu0  ;;  %v3459_v33 = vpop.eup %3458  ;;  %2998 = vst [vmem:[%s4722_s6 + $0xb8] sm:$0xff] %v2903_v58   ;;  %v2793_v57 = vpack.c.bf16 %v2023_v59, %v2022_v52  ;;  %v1749_v2 = vadd.f32 1.0, %v3457_v39  ;;  %3482 = vpow2.f32 %v1679_v40  ;;  %v1591_v61 = vmul.f32 1.442695, %v1516_v8  ;;  %v4751_v52 = vld [vmem:[#allocation21_spill] sm:$0xff]  ;;  %v4754_v59 = vld [vmem:[#allocation22_spill] sm:$0xff] }
 0x19a   :  { %v3461_v48 = vpop.eup %3460  ;;  %v2068_v15 = vmul.f32 %v3459_v33, %v4749_v19  ;;  %3484 = vrcp.f32 %v1704_v28  ;;  %v1681_v24 = vmul.f32 1.442695, %v1561_v44  ;;  %v1593_v38 = vmul.f32 1.442695, %v1517_v34  ;;  %v1411_v31 = vpop.f32.mrf.mxu1 }
 0x19b   :  { %v1235_v13 = vpop.f32.mrf.mxu0  ;;  %v3463_v0 = vpop.eup %3462  ;;  %2976 = vst [vmem:[%s4722_s6 + $0x8] sm:$0xff] %v2793_v57   ;;  %3486 = vrcp.f32 %v1749_v2  ;;  %v1705_v45 = vadd.f32 1.0, %v3461_v48  ;;  %v1498_v47 = vadd.f32 %v4488_v10, %v1407_v49  ;;  %v1231_v55 = vadd.f32 %v1230_v21, %v4750_v50 }
 0x19c   :  { %v3465_v35 = vpop.eup %3464  ;;  %v2024_v23 = vmul.f32 %v3463_v0, %v4751_v52  ;;  %3488 = vpow2.f32 %v1591_v61  ;;  %v1412_v16 = vadd.f32 %v4752_v22, %v1411_v31  ;;  %v1236_v30 = vadd.f32 %v4753_v4, %v1235_v13  ;;  %v1413_v25 = vpop.f32.mrf.mxu1  ;;  %v4756_v13 = vld [vmem:[#allocation5_spill] sm:$0xff]  ;;  %v4758_v22 = vld [vmem:[#allocation8_spill] sm:$0xff] }
 0x19d   :  { %v1237_v32 = vpop.f32.mrf.mxu0  ;;  %v3467_v3 = vpop.eup %3466  ;;  %3490 = vrcp.f32 %v1705_v45  ;;  %v1750_v60 = vadd.f32 1.0, %v3465_v35  ;;  %v1562_v20 = vsub.f32 0.0, %v1498_v47  ;;  %v1454_v18 = vadd.f32 %v4488_v10, %v1231_v55  ;;  %v4757_v45 = vld [vmem:[#allocation17_spill] sm:$0xff] }
 0x19e   :  { %v3469_v27 = vpop.eup %3468  ;;  %v2069_v41 = vmul.f32 %v3467_v3, %v4395_v6  ;;  %3492 = vpow2.f32 %v1681_v24  ;;  %v1499_v17 = vadd.f32 %v4488_v10, %v1412_v16  ;;  %v1455_v42 = vadd.f32 %v4488_v10, %v1236_v30  ;;  %v1414_v62 = vpop.f32.mrf.mxu1  ;;  %v4755_v24 = vld [vmem:[#allocation14_spill] sm:$0xff] }
 0x19f   :  { %v1238_v56 = vpop.f32.mrf.mxu0  ;;  %v3471_v40 = vpop.eup %3470  ;;  %3494 = vrcp.f32 %v1750_v60  ;;  %v1706_v29 = vadd.f32 1.0, %v3469_v27  ;;  %v1683_v7 = vmul.f32 1.442695, %v1562_v20  ;;  %v1518_v21 = vsub.f32 0.0, %v1454_v18 }
 0x1a0   :  { %v3473_v54 = vpop.eup %3472  ;;  %v2908_v58 = vpack.c.bf16 %v2069_v41, %v2068_v15  ;;  %v2025_v8 = vmul.f32 %v3471_v40, %v4754_v59  ;;  %3496 = vpow2.f32 %v1593_v38  ;;  %v1563_v44 = vsub.f32 0.0, %v1499_v17  ;;  %v1416_v39 = vpop.f32.mrf.mxu1 }
 0x1a1   :  { %v1240_v6 = vpop.f32.mrf.mxu0  ;;  %v3475_v28 = vpop.eup %3474  ;;  %3498 = vrcp.f32 %v1706_v29  ;;  %v1751_v34 = vadd.f32 1.0, %v3473_v54  ;;  %v1595_v1 = vmul.f32 1.442695, %v1518_v21  ;;  %v1519_v49 = vsub.f32 0.0, %v1455_v42 }
 0x1a2   :  { %v3477_v46 = vpop.eup %3476  ;;  %2999 = vst [vmem:[%s4722_s6 + $0xc0] sm:$0xff] %v2908_v58   ;;  %v2798_v51 = vpack.c.bf16 %v2025_v8, %v2024_v23  ;;  %v2768_v33 = vunpack.c.h.bf16 %v4475_v36  ;;  %3500 = vpow2.f32 %v1683_v7  ;;  %v1685_v57 = vmul.f32 1.442695, %v1563_v44  ;;  %v1419_v2 = vpop.f32.mrf.mxu1  ;;  %v2972_v36 = vld [vmem:[%s4721_s5 + $0xe0] sm:$0xff]  }
 0x1a3   :  { %v1243_v61 = vpop.f32.mrf.mxu0  ;;  %v3479_v48 = vpop.eup %3478  ;;  %3502 = vrcp.f32 %v1751_v34  ;;  %v1707_v19 = vadd.f32 1.0, %v3477_v46  ;;  %v1597_v15 = vmul.f32 1.442695, %v1519_v49  ;;  %v1415_v38 = vadd.f32 %v4755_v24, %v1414_v62 }
 0x1a4   :  { %2977 = vst [vmem:[%s4722_s6 + $0x10] sm:$0xff] %v2798_v51   ;;  %v2070_v31 = vmul.f32 %v3475_v28, %v4410_v53  ;;  %3504 = vpow2.f32 %v1595_v1  ;;  %v1239_v0 = vadd.f32 %v4756_v13, %v1238_v56  ;;  %v1420_v47 = vadd.f32 %v1419_v2, %v4757_v45  ;;  %v1421_v50 = vpop.f32.mrf.mxu1  ;;  %v4760_v51 = vld [vmem:[#allocation10_spill] sm:$0xff]  ;;  %v4761_v2 = vld [vmem:[#allocation16_spill] sm:$0xff] }
 0x1a5   :  { %v1245_v55 = vpop.f32.mrf.mxu0  ;;  %v3481_v35 = vpop.eup %3480  ;;  %v2026_v52 = vmul.f32 %v3479_v48, %v4415_v12  ;;  %3506 = vrcp.f32 %v1707_v19  ;;  %v1500_v23 = vadd.f32 %v4488_v10, %v1415_v38  ;;  %v1244_v16 = vadd.f32 %v1243_v61, %v4758_v22  ;;  %v4762_v38 = vld [vmem:[#allocation7_spill] sm:$0xff] }
 0x1a6   :  { %v3483_v4 = vpop.eup %3482  ;;  %v2071_v30 = vmul.f32 %v3481_v35, %v4428_v11  ;;  %3508 = vpow2.f32 %v1685_v57  ;;  %v1456_v53 = vadd.f32 %v4488_v10, %v1239_v0  ;;  %v1501_v25 = vadd.f32 %v4488_v10, %v1420_v47  ;;  %v1422_v32 = vpop.f32.mrf.mxu1  ;;  %v2949_v0 = vld [vmem:[%s4721_s5 + $0x28] sm:$0xff]  }
 0x1a7   :  { %v1246_v3 = vpop.f32.mrf.mxu0  ;;  %v3485_v60 = vpop.eup %3484  ;;  %v1752_v20 = vadd.f32 1.0, %v3483_v4  ;;  %3510 = vpow2.f32 %v1597_v15  ;;  %v1564_v18 = vsub.f32 0.0, %v1500_v23  ;;  %v1457_v12 = vadd.f32 %v4488_v10, %v1244_v16 }
 0x1a8   :  { %v3487_v27 = vpop.eup %3486  ;;  %v2913_v41 = vpack.c.bf16 %v2071_v30, %v2070_v31  ;;  %v2027_v17 = vmul.f32 %v3485_v60, %v4448_v14  ;;  %v1520_v42 = vsub.f32 0.0, %v1456_v53  ;;  %v1565_v62 = vsub.f32 0.0, %v1501_v25  ;;  %v1424_v11 = vpop.f32.mrf.mxu1 }
 0x1a9   :  { %v1248_v56 = vpop.f32.mrf.mxu0  ;;  %v3489_v40 = vpop.eup %3488  ;;  %v2072_v29 = vmul.f32 %v3487_v27, %v4456_v5  ;;  %3512 = vrcp.f32 %v1752_v20  ;;  %v1687_v7 = vmul.f32 1.442695, %v1564_v18  ;;  %v1521_v21 = vsub.f32 0.0, %v1457_v12  ;;  %v4759_v5 = vld [vmem:[#allocation19_spill] sm:$0xff]  ;;  %v4763_v11 = vld [vmem:[#allocation18_spill] sm:$0xff] }
 0x1aa   :  { %v3491_v54 = vpop.eup %3490  ;;  %3000 = vst [vmem:[%s4722_s6 + $0xc8] sm:$0xff] %v2913_v41   ;;  %v2803_v58 = vpack.c.bf16 %v2027_v17, %v2026_v52  ;;  %v1708_v59 = vadd.f32 1.0, %v3489_v40  ;;  %v1599_v8 = vmul.f32 1.442695, %v1520_v42  ;;  %v1689_v44 = vmul.f32 1.442695, %v1565_v62  ;;  %v1427_v14 = vpop.f32.mrf.mxu1 }
 0x1ab   :  { %v1251_v39 = vpop.f32.mrf.mxu0  ;;  %v3493_v6 = vpop.eup %3492  ;;  %v2028_v28 = vmul.f32 %v3491_v54, %v4461_v43  ;;  %3514 = vpow2.f32 %v1687_v7  ;;  %v1601_v34 = vmul.f32 1.442695, %v1521_v21  ;;  %v1423_v1 = vadd.f32 %v1422_v32, %v4759_v5  ;;  %v4764_v21 = vld [vmem:[#allocation9_spill] sm:$0xff] }
 0x1ac   :  { %v3495_v49 = vpop.eup %3494  ;;  %2978 = vst [vmem:[%s4722_s6 + $0x18] sm:$0xff] %v2803_v58   ;;  %3516 = vrcp.f32 %v1708_v59  ;;  %v1753_v46 = vadd.f32 1.0, %v3493_v6  ;;  %v1247_v57 = vadd.f32 %v1246_v3, %v4760_v51  ;;  %v1428_v61 = vadd.f32 %v4761_v2, %v1427_v14  ;;  %v1429_v48 = vpop.f32.mrf.mxu1 }
 0x1ad   :  { %v1253_v19 = vpop.f32.mrf.mxu0  ;;  %v3497_v15 = vpop.eup %3496  ;;  %v2073_v43 = vmul.f32 %v3495_v49, %v4480_v37  ;;  %3518 = vpow2.f32 %v1599_v8  ;;  %v1502_v24 = vadd.f32 %v4488_v10, %v1423_v1  ;;  %v1252_v31 = vadd.f32 %v4762_v38, %v1251_v39 }
 0x1ae   :  { %v3499_v13 = vpop.eup %3498  ;;  %3520 = vrcp.f32 %v1753_v46  ;;  %v1709_v45 = vadd.f32 1.0, %v3497_v15  ;;  %v1458_v47 = vadd.f32 %v4488_v10, %v1247_v57  ;;  %v1503_v50 = vadd.f32 %v4488_v10, %v1428_v61  ;;  %v1430_v55 = vpop.f32.mrf.mxu1  ;;  %v2950_v46 = vld [vmem:[%s4721_s5 + $0x30] sm:$0xff]  }
 0x1af   :  { %v1254_v35 = vpop.f32.mrf.mxu0  ;;  %v3501_v52 = vpop.eup %3500  ;;  %v2918_v37 = vpack.c.bf16 %v2073_v43, %v2072_v29  ;;  %v2029_v23 = vmul.f32 %v3499_v13, %v4494_v26  ;;  %3522 = vpow2.f32 %v1689_v44  ;;  %v1566_v22 = vsub.f32 0.0, %v1502_v24 }
 0x1b0   :  { %v3503_v16 = vpop.eup %3502  ;;  %3524 = vrcp.f32 %v1709_v45  ;;  %v1754_v4 = vadd.f32 1.0, %v3501_v52  ;;  %v1522_v30 = vsub.f32 0.0, %v1458_v47  ;;  %v1567_v53 = vsub.f32 0.0, %v1503_v50  ;;  %v1432_v25 = vpop.f32.mrf.mxu1 }
 0x1b1   :  { %v1256_v32 = vpop.f32.mrf.mxu0  ;;  %v3505_v3 = vpop.eup %3504  ;;  %3001 = vst [vmem:[%s4722_s6 + $0xd0] sm:$0xff] %v2918_v37   ;;  %v2808_v60 = vpack.c.bf16 %v2029_v23, %v2028_v28  ;;  %v2679_v20 = vunpack.c.l.bf16 %v2949_v0  ;;  %3526 = vpow2.f32 %v1601_v34  ;;  %v1691_v18 = vmul.f32 1.442695, %v1566_v22  ;;  %v2973_v37 = vld [vmem:[%s4721_s5 + $0xe8] sm:$0xff]  }
 0x1b2   :  { %v3507_v12 = vpop.eup %3506  ;;  %v2680_v26 = vunpack.c.h.bf16 %v2949_v0  ;;  %3528 = vrcp.f32 %v1754_v4  ;;  %v1710_v27 = vadd.f32 1.0, %v3505_v3  ;;  %v1603_v41 = vmul.f32 1.442695, %v1522_v30 }
 0x1b3   :  { %v3509_v17 = vpop.eup %3508  ;;  %2979 = vst [vmem:[%s4722_s6 + $0x20] sm:$0xff] %v2808_v60   ;;  %v2011_v42 = vsel %vm1955_vm0, 1.0, %v2768_v33  ;;  %3530 = vpow2.f32 %v1691_v18  ;;  %v1459_v62 = vadd.f32 %v4488_v10, %v1252_v31  ;;  %v1431_v56 = vadd.f32 %v4763_v11, %v1430_v55  ;;  %v2951_v60 = vld [vmem:[%s4721_s5 + $0x38] sm:$0xff]  }
 0x1b4   :  { %v3511_v40 = vpop.eup %3510  ;;  %3532 = vrcp.f32 %v1710_v27  ;;  %v1755_v29 = vadd.f32 1.0, %v3509_v17  ;;  %v1693_v7 = vmul.f32 1.442695, %v1567_v53  ;;  %v1255_v54 = vadd.f32 %v4764_v21, %v1254_v35 }
 0x1b5   :  { %v1966_v58 = vsel %vm1955_vm0, 1.0, %v2679_v20  ;;  %3534 = vpow2.f32 %v1603_v41  ;;  %v1523_v33 = vsub.f32 0.0, %v1459_v62  ;;  %v1504_v59 = vadd.f32 %v4488_v10, %v1431_v56 }
 0x1b6   :  { %v3513_v8 = vpop.eup %3512  ;;  %v2074_v44 = vmul.f32 %v3503_v16, %v4512_v63  ;;  %v1967_v14 = vsel %vm1955_vm0, 1.0, %v2680_v26  ;;  %v1711_v39 = vadd.f32 1.0, %v3511_v40  ;;  %v1460_v6 = vadd.f32 %v4488_v10, %v1255_v54 }
 0x1b7   :  { %v2075_v28 = vmul.f32 %v3513_v8, %v2011_v42  ;;  %3536 = vrcp.f32 %v1755_v29  ;;  %v1605_v34 = vmul.f32 1.442695, %v1523_v33  ;;  %v1568_v5 = vsub.f32 0.0, %v1504_v59 }
 0x1b8   :  { %v3515_v1 = vpop.eup %3514  ;;  %v2771_v49 = vunpack.c.l.bf16 %v2972_v36  ;;  %v2772_v51 = vunpack.c.h.bf16 %v2972_v36  ;;  %3538 = vpow2.f32 %v1693_v7  ;;  %v1524_v57 = vsub.f32 0.0, %v1460_v6  ;;  %v2974_v36 = vld [vmem:[%s4721_s5 + $0xf0] sm:$0xff]  }
 0x1b9   :  { %v3517_v63 = vpop.eup %3516  ;;  %v2923_v2 = vpack.c.bf16 %v2075_v28, %v2074_v44  ;;  %v1756_v61 = vadd.f32 1.0, %v3515_v1  ;;  %3540 = vpow2.f32 %v1605_v34  ;;  %v1695_v48 = vmul.f32 1.442695, %v1568_v5  ;;  %v2952_v28 = vld [vmem:[%s4721_s5 + $0x40] sm:$0xff]  }
 0x1ba   :  { %v3519_v19 = vpop.eup %3518  ;;  %v2030_v10 = vmul.f32 %v3507_v12, %v1966_v58  ;;  %v2031_v15 = vmul.f32 %v3517_v63, %v1967_v14  ;;  %3542 = vrcp.f32 %v1711_v39  ;;  %v1607_v43 = vmul.f32 1.442695, %v1524_v57 }
 0x1bb   :  { %v3521_v24 = vpop.eup %3520  ;;  %3002 = vst [vmem:[%s4722_s6 + $0xd8] sm:$0xff] %v2923_v2   ;;  %v2683_v38 = vunpack.c.l.bf16 %v2950_v46  ;;  %v2684_v31 = vunpack.c.h.bf16 %v2950_v46  ;;  %3544 = vrcp.f32 %v1756_v61  ;;  %v1712_v13 = vadd.f32 1.0, %v3519_v19 }
 0x1bc   :  { %v3523_v0 = vpop.eup %3522  ;;  %v2813_v45 = vpack.c.bf16 %v2031_v15, %v2030_v10  ;;  %3546 = vpow2.f32 %v1695_v48  ;;  %v2012_v50 = vsel %vm1955_vm0, 1.0, %v2771_v49  ;;  %v2013_v55 = vsel %vm1955_vm0, 1.0, %v2772_v51 }
 0x1bd   :  { %v3525_v47 = vpop.eup %3524  ;;  %3548 = vrcp.f32 %v1712_v13  ;;  %v1757_v35 = vadd.f32 1.0, %v3523_v0  ;;  %v1968_v22 = vsel %vm1955_vm0, 1.0, %v2683_v38  ;;  %v1969_v16 = vsel %vm1955_vm0, 1.0, %v2684_v31  ;;  %v2975_v38 = vld [vmem:[%s4721_s5 + $0xf8] sm:$0xff]  }
 0x1be   :  { %v3527_v52 = vpop.eup %3526  ;;  %2980 = vst [vmem:[%s4722_s6 + $0x28] sm:$0xff] %v2813_v45   ;;  %3550 = vpow2.f32 %v1607_v43  ;;  %v2076_v53 = vmul.f32 %v3521_v24, %v2012_v50  ;;  %v2775_v3 = vunpack.c.l.bf16 %v2973_v37  ;;  %v2776_v20 = vunpack.c.h.bf16 %v2973_v37 }
 0x1bf   :  { %v3529_v23 = vpop.eup %3528  ;;  %v1713_v4 = vadd.f32 1.0, %v3527_v52  ;;  %3552 = vrcp.f32 %v1757_v35  ;;  %v2032_v26 = vmul.f32 %v3525_v47, %v1968_v22  ;;  %v2687_v11 = vunpack.c.l.bf16 %v2951_v60  ;;  %v2953_v35 = vld [vmem:[%s4721_s5 + $0x48] sm:$0xff]  }
 0x1c0   :  { %v3531_v30 = vpop.eup %3530  ;;  %v2077_v25 = vmul.f32 %v3529_v23, %v2013_v55  ;;  %v2688_v56 = vunpack.c.h.bf16 %v2951_v60  ;;  %v2014_v7 = vsel %vm1955_vm0, 1.0, %v2775_v3  ;;  %v2015_v21 = vsel %vm1955_vm0, 1.0, %v2776_v20 }
 0x1c1   :  { %v3533_v32 = vpop.eup %3532  ;;  %v1758_v18 = vadd.f32 1.0, %v3531_v30  ;;  %3554 = vrcp.f32 %v1713_v4  ;;  %v1970_v8 = vsel %vm1955_vm0, 1.0, %v2687_v11  ;;  %v2779_v5 = vunpack.c.l.bf16 %v2974_v36 }
 0x1c2   :  { %v3535_v12 = vpop.eup %3534  ;;  %v2928_v27 = vpack.c.bf16 %v2077_v25, %v2076_v53  ;;  %v2033_v41 = vmul.f32 %v3533_v32, %v1969_v16  ;;  %v1971_v44 = vsel %vm1955_vm0, 1.0, %v2688_v56  ;;  %v2780_v1 = vunpack.c.h.bf16 %v2974_v36 }
 0x1c3   :  { %3556 = vrcp.f32 %v1758_v18  ;;  %v1714_v17 = vadd.f32 1.0, %v3535_v12  ;;  %v2691_v2 = vunpack.c.l.bf16 %v2952_v28  ;;  %v2692_v61 = vunpack.c.h.bf16 %v2952_v28 }
 0x1c4   :  { %v3537_v42 = vpop.eup %3536  ;;  %3003 = vst [vmem:[%s4722_s6 + $0xe0] sm:$0xff] %v2928_v27   ;;  %v2818_v62 = vpack.c.bf16 %v2033_v41, %v2032_v26  ;;  %v2016_v15 = vsel %vm1955_vm0, 1.0, %v2779_v5  ;;  %v2017_v43 = vsel %vm1955_vm0, 1.0, %v2780_v1  ;;  %v2783_v55 = vunpack.c.l.bf16 %v2975_v38 }
 0x1c5   :  { %v3539_v40 = vpop.eup %3538  ;;  %3558 = vrcp.f32 %v1714_v17  ;;  %v2078_v39 = vmul.f32 %v3537_v42, %v2014_v7  ;;  %v1972_v13 = vsel %vm1955_vm0, 1.0, %v2691_v2  ;;  %v1973_v0 = vsel %vm1955_vm0, 1.0, %v2692_v61 }
 0x1c6   :  { %v3541_v29 = vpop.eup %3540  ;;  %2981 = vst [vmem:[%s4722_s6 + $0x30] sm:$0xff] %v2818_v62   ;;  %v1759_v54 = vadd.f32 1.0, %v3539_v40  ;;  %v2784_v22 = vunpack.c.h.bf16 %v2975_v38  ;;  %v2695_v4 = vunpack.c.l.bf16 %v2953_v35  ;;  %v2696_v30 = vunpack.c.h.bf16 %v2953_v35 }
 0x1c7   :  { %v3543_v58 = vpop.eup %3542  ;;  %v1715_v33 = vadd.f32 1.0, %v3541_v29  ;;  %v2018_v25 = vsel %vm1955_vm0, 1.0, %v2783_v55 }
 0x1c8   :  { %v3545_v59 = vpop.eup %3544  ;;  %3560 = vrcp.f32 %v1759_v54  ;;  %v2034_v51 = vmul.f32 %v3543_v58, %v1970_v8  ;;  %v2019_v32 = vsel %vm1955_vm0, 1.0, %v2784_v22  ;;  %v1974_v20 = vsel %vm1955_vm0, 1.0, %v2695_v4 }
 0x1c9   :  { %v3547_v14 = vpop.eup %3546  ;;  %v2079_v6 = vmul.f32 %v3545_v59, %v2015_v21  ;;  %3562 = vrcp.f32 %v1715_v33  ;;  %v1975_v18 = vsel %vm1955_vm0, 1.0, %v2696_v30 }
 0x1ca   :  { %v3549_v34 = vpop.eup %3548  ;;  %v1760_v49 = vadd.f32 1.0, %v3547_v14 }
 0x1cb   :  { %v3551_v46 = vpop.eup %3550  ;;  %v2933_v57 = vpack.c.bf16 %v2079_v6, %v2078_v39  ;;  %v2035_v63 = vmul.f32 %v3549_v34, %v1971_v44 }
 0x1cc   :  { %3564 = vrcp.f32 %v1760_v49  ;;  %v1716_v48 = vadd.f32 1.0, %v3551_v46  ;;  %v3553_v10 = vpop.eup %3552 }
 0x1cd   :  { %3004 = vst [vmem:[%s4722_s6 + $0xe8] sm:$0xff] %v2933_v57   ;;  %v2823_v19 = vpack.c.bf16 %v2035_v63, %v2034_v51  ;;  %v2080_v45 = vmul.f32 %v3553_v10, %v2016_v15 }
 0x1ce   :  { %3566 = vrcp.f32 %v1716_v48  ;;  %v3555_v24 = vpop.eup %3554 }
 0x1cf   :  { %2982 = vst [vmem:[%s4722_s6 + $0x38] sm:$0xff] %v2823_v19   ;;  %v2036_v52 = vmul.f32 %v3555_v24, %v1972_v13 }
 0x1d0   :  { %v3557_v31 = vpop.eup %3556 }
 0x1d1   :  { %v2081_v47 = vmul.f32 %v3557_v31, %v2017_v43 }
 0x1d2   :  { %v3559_v50 = vpop.eup %3558 }
 0x1d3   :  { %v2938_v37 = vpack.c.bf16 %v2081_v47, %v2080_v45  ;;  %v2037_v23 = vmul.f32 %v3559_v50, %v1973_v0 }
 0x1d5   :  { %3005 = vst [vmem:[%s4722_s6 + $0xf0] sm:$0xff] %v2938_v37   ;;  %v2828_v16 = vpack.c.bf16 %v2037_v23, %v2036_v52  ;;  %v3561_v53 = vpop.eup %3560 }
 0x1d6   :  { %v3563_v3 = vpop.eup %3562  ;;  %v2082_v12 = vmul.f32 %v3561_v53, %v2018_v25 }
 0x1d7   :  { %2983 = vst [vmem:[%s4722_s6 + $0x40] sm:$0xff] %v2828_v16   ;;  %v2038_v41 = vmul.f32 %v3563_v3, %v1974_v20 }
 0x1d9   :  { %v3565_v60 = vpop.eup %3564 }
 0x1da   :  { %v2083_v26 = vmul.f32 %v3565_v60, %v2019_v32 }
 0x1db   :  { %v3567_v27 = vpop.eup %3566 }
 0x1dc   :  { %v2943_v17 = vpack.c.bf16 %v2083_v26, %v2082_v12  ;;  %v2039_v42 = vmul.f32 %v3567_v27, %v1975_v18 }
 0x1de   :  { %3006 = vst [vmem:[%s4722_s6 + $0xf8] sm:$0xff] %v2943_v17   ;;  %v2833_v62 = vpack.c.bf16 %v2039_v42, %v2038_v41 }
 0x1e0   :  { %2984 = vst [vmem:[%s4722_s6 + $0x48] sm:$0xff] %v2833_v62  }

// kernel: rnncnn_forward.7
= control target key start
LH: loop header
LB: loop body
LE: loop exit
PB: predicated region body
PF: predicated region fallthrough
CT: control target
= control target key end

     0   :  { %v3025_v0 = vmov 0   ;;  %s4536_s3 = inlined_call_operand.vmem [shape: bf16[128,128], index: 3, kind: input, shape index: {}]   ;;  %s4537_s2 = inlined_call_operand.vmem [shape: bf16[256,128], index: 2, kind: input, shape index: {}]   ;;  %s4538_s1 = inlined_call_operand.vmem [shape: bf16[512,128], index: 1, kind: input, shape index: {}]   ;;  %s4539_s0 = inlined_call_operand.vmem [shape: bf16[512,256], index: 0, kind: input, shape index: {}]   ;;  %s4540_s4 = inlined_call_operand.vmem [shape: f32[1,128], index: 4, kind: input, shape index: {}]   ;;  %s4541_s5 = inlined_call_operand.vmem [shape: bf16[512,128], index: 5, kind: input, shape index: {}]   ;;  %s4542_s6 = inlined_call_operand.vmem [shape: bf16[512,128], index: 6, kind: input, shape index: {}]   ;;  %s4543_s7 = inlined_call_operand.vmem [shape: f32[512,128], index: 7, kind: output, shape index: {}]  }
   0x1   :  { %2711 = vmatprep.subr.bf16.mxu1 %v3025_v0  ;;  %v2744_v1 = vld [vmem:[%s4536_s3 + $0x38] sm:$0xff]   ;;  %v2746_v3 = vld [vmem:[%s4536_s3 + $0x30] sm:$0xff]   ;;  %v2748_v5 = vld [vmem:[%s4536_s3 + $0x28] sm:$0xff]  }
   0x2   :  { %v2745_v2 = vld [vmem:[%s4537_s2 + $0x38] sm:$0xff]   ;;  %2631 = vmatprep.subr.bf16.mxu0 %v2744_v1  ;;  %v2747_v4 = vld [vmem:[%s4537_s2 + $0x30] sm:$0xff]   ;;  %v3086_v6 = vld [vmem:[%s4537_s2 + $0x28] sm:$0xff]  }
   0x3   :  { %2727 = vmatpush1.bf16.msra.mxu1 %v2745_v2  ;;  %2632 = vmatpush3.bf16.msra.mxu0 %v2744_v1  ;;  %v2750_v7 = vld [vmem:[%s4536_s3 + $0x20] sm:$0xff]   ;;  %v2752_v9 = vld [vmem:[%s4536_s3 + $0x18] sm:$0xff]   ;;  %v2754_v11 = vld [vmem:[%s4536_s3 + $0x10] sm:$0xff]  }
   0x4   :  { %2712 = vmatprep.subr.bf16.mxu1 %v3025_v0  ;;  %2633 = vmatprep.subr.bf16.mxu0 %v2746_v3  ;;  %v3096_v8 = vld [vmem:[%s4537_s2 + $0x20] sm:$0xff]   ;;  %v3105_v10 = vld [vmem:[%s4537_s2 + $0x18] sm:$0xff]   ;;  %v3119_v13 = vld [vmem:[%s4537_s2 + $0x10] sm:$0xff]  }
   0x5   :  { %v2760_v12 = vld [vmem:[%s4538_s1] sm:$0xff]   ;;  %v2756_v14 = vld [vmem:[%s4536_s3 + $0x8] sm:$0xff]   ;;  %v3149_v19 = vld [vmem:[%s4537_s2 + $0x78] sm:$0xff]  }
   0x6   :  { %2647 = vmatprep.mubr.bf16.mxu0 %v2760_v12  ;;  %v3129_v15 = vld [vmem:[%s4537_s2 + $0x8] sm:$0xff]   ;;  %v2758_v16 = vld [vmem:[%s4536_s3] sm:$0xff]   ;;  %v2764_v20 = vld [vmem:[%s4538_s1 + $0x10] sm:$0xff]  }
   0x7   :  { %2728 = vmatpush1.bf16.msra.mxu1 %v2747_v4  ;;  %2634 = vmatpush3.bf16.msra.mxu0 %v2746_v3  ;;  %v3139_v17 = vld [vmem:[%s4537_s2] sm:$0xff]   ;;  %v2761_v18 = vld [vmem:[%s4538_s1 + $0x8] sm:$0xff]   ;;  %v3163_v22 = vld [vmem:[%s4537_s2 + $0x70] sm:$0xff]  }
   0x8   :  { %2713 = vmatprep.subr.bf16.mxu1 %v3025_v0  ;;  %2635 = vmatprep.subr.bf16.mxu0 %v2748_v5  ;;  %v2778_v21 = vld [vmem:[%s4539_s0 + $0xa4] ss:$8 sps:$4 sm:$0xff]   ;;  %v2765_v23 = vld [vmem:[%s4538_s1 + $0x18] sm:$0xff]   ;;  %v2772_v29 = vld [vmem:[%s4538_s1 + $0x30] sm:$0xff]  }
   0x9   :  { %1260 = vmatprep.mubr.bf16.mxu1 %v2778_v21  ;;  %v3173_v24 = vld [vmem:[%s4537_s2 + $0x68] sm:$0xff]   ;;  %v2768_v25 = vld [vmem:[%s4538_s1 + $0x20] sm:$0xff]   ;;  %v2770_v28 = vld [vmem:[%s4537_s2 + $0x58] sm:$0xff]  }
   0xa   :  { %v2767_v26 = vld [vmem:[%s4537_s2 + $0x60] sm:$0xff]   ;;  %v2769_v27 = vld [vmem:[%s4538_s1 + $0x28] sm:$0xff]   ;;  %v2771_v30 = vld [vmem:[%s4537_s2 + $0x50] sm:$0xff]  }
   0xb   :  { %2729 = vmatpush1.bf16.msra.mxu1 %v3086_v6  ;;  %2636 = vmatpush3.bf16.msra.mxu0 %v2748_v5  ;;  %v2773_v31 = vld [vmem:[%s4538_s1 + $0x38] sm:$0xff]   ;;  %v2774_v32 = vld [vmem:[%s4537_s2 + $0x48] sm:$0xff]   ;;  %v2779_v33 = vld [vmem:[%s4538_s1 + $0x40] sm:$0xff]  }
   0xc   :  { %2714 = vmatprep.subr.bf16.mxu1 %v3025_v0  ;;  %2637 = vmatprep.subr.bf16.mxu0 %v2750_v7  ;;  %v2775_v34 = vld [vmem:[%s4537_s2 + $0x40] sm:$0xff]   ;;  %v2780_v36 = vld [vmem:[%s4538_s1 + $0x48] sm:$0xff]   ;;  %v2781_v37 = vld [vmem:[%s4539_s0 + $0xb4] ss:$8 sps:$4 sm:$0xff]  }
   0xd   :  { %v2776_v35 = vld [vmem:[%s4539_s0 + $0xa0] ss:$8 sps:$4 sm:$0xff]   ;;  %v2783_v38 = vld [vmem:[%s4538_s1 + $0x50] sm:$0xff]   ;;  %v2785_v40 = vld [vmem:[%s4538_s1 + $0x58] sm:$0xff]  }
   0xe   :  { %v2784_v39 = vld [vmem:[%s4539_s0 + $0xb0] ss:$8 sps:$4 sm:$0xff]   ;;  %v2786_v41 = vld [vmem:[%s4539_s0 + $0xc4] ss:$8 sps:$4 sm:$0xff]   ;;  %v2789_v43 = vld [vmem:[%s4539_s0 + $0xc0] ss:$8 sps:$4 sm:$0xff]  }
   0xf   :  { %2730 = vmatpush1.bf16.msra.mxu1 %v3096_v8  ;;  %2638 = vmatpush3.bf16.msra.mxu0 %v2750_v7  ;;  %v2788_v42 = vld [vmem:[%s4538_s1 + $0x60] sm:$0xff]   ;;  %v2790_v44 = vld [vmem:[%s4538_s1 + $0x68] sm:$0xff]   ;;  %v2791_v45 = vld [vmem:[%s4539_s0 + $0xd4] ss:$8 sps:$4 sm:$0xff]  }
  0x10   :  { %2715 = vmatprep.subr.bf16.mxu1 %v3025_v0  ;;  %2639 = vmatprep.subr.bf16.mxu0 %v2752_v9  ;;  %v2793_v46 = vld [vmem:[%s4538_s1 + $0x70] sm:$0xff]   ;;  %v2795_v48 = vld [vmem:[%s4538_s1 + $0x78] sm:$0xff]   ;;  %v2796_v49 = vld [vmem:[%s4539_s0 + $0xe4] ss:$8 sps:$4 sm:$0xff]  }
  0x11   :  { %v2794_v47 = vld [vmem:[%s4539_s0 + $0xd0] ss:$8 sps:$4 sm:$0xff]   ;;  %v2798_v50 = vld [vmem:[%s4538_s1 + $0x80] sm:$0xff]   ;;  %v2800_v52 = vld [vmem:[%s4538_s1 + $0x88] sm:$0xff]  }
  0x12   :  { %v2799_v51 = vld [vmem:[%s4539_s0 + $0xe0] ss:$8 sps:$4 sm:$0xff]   ;;  %v2801_v53 = vld [vmem:[%s4539_s0 + $0xf4] ss:$8 sps:$4 sm:$0xff]   ;;  %v2804_v55 = vld [vmem:[%s4539_s0 + $0xf0] ss:$8 sps:$4 sm:$0xff]  }
  0x13   :  { %2731 = vmatpush1.bf16.msra.mxu1 %v3105_v10  ;;  %2640 = vmatpush3.bf16.msra.mxu0 %v2752_v9  ;;  %v2803_v54 = vld [vmem:[%s4538_s1 + $0x90] sm:$0xff]   ;;  %v2805_v56 = vld [vmem:[%s4538_s1 + $0x98] sm:$0xff]   ;;  %v2806_v57 = vld [vmem:[%s4539_s0 + $0x104] ss:$8 sps:$4 sm:$0xff]  }
  0x14   :  { %2716 = vmatprep.subr.bf16.mxu1 %v3025_v0  ;;  %2641 = vmatprep.subr.bf16.mxu0 %v2754_v11  ;;  %v2808_v58 = vld [vmem:[%s4538_s1 + $0xa0] sm:$0xff]   ;;  %v2810_v60 = vld [vmem:[%s4538_s1 + $0xa8] sm:$0xff]   ;;  %v2811_v61 = vld [vmem:[%s4539_s0 + $0x114] ss:$8 sps:$4 sm:$0xff]  }
  0x15   :  { %v2809_v59 = vld [vmem:[%s4539_s0 + $0x100] ss:$8 sps:$4 sm:$0xff]   ;;  %v2813_v62 = vld [vmem:[%s4538_s1 + $0xb0] sm:$0xff]   ;;  %v2816_v1 = vld [vmem:[%s4539_s0 + $0x124] ss:$8 sps:$4 sm:$0xff]  }
  0x16   :  { %v2814_v63 = vld [vmem:[%s4539_s0 + $0x110] ss:$8 sps:$4 sm:$0xff]   ;;  %v2819_v3 = vld [vmem:[%s4539_s0 + $0x120] ss:$8 sps:$4 sm:$0xff]   ;;  %v2821_v5 = vld [vmem:[%s4539_s0 + $0x134] ss:$8 sps:$4 sm:$0xff]  }
  0x17   :  { %2732 = vmatpush1.bf16.msra.mxu1 %v3119_v13  ;;  %2642 = vmatpush3.bf16.msra.mxu0 %v2754_v11  ;;  %v2824_v7 = vld [vmem:[%s4539_s0 + $0x130] ss:$8 sps:$4 sm:$0xff]   ;;  %v2826_v9 = vld [vmem:[%s4539_s0 + $0x144] ss:$8 sps:$4 sm:$0xff]   ;;  %v2829_v11 = vld [vmem:[%s4539_s0 + $0x140] ss:$8 sps:$4 sm:$0xff]  }
  0x18   :  { %2717 = vmatprep.subr.bf16.mxu1 %v3025_v0  ;;  %2643 = vmatprep.subr.bf16.mxu0 %v2756_v14  ;;  %v2830_v12 = vld [vmem:[%s4538_s1 + $0xe8] sm:$0xff]   ;;  %v2842_v21 = vld [vmem:[%s4539_s0 + $0x174] ss:$8 sps:$4 sm:$0xff]  }
  0x1b   :  { %2733 = vmatpush1.bf16.msra.mxu1 %v3129_v15  ;;  %2644 = vmatpush3.bf16.msra.mxu0 %v2756_v14  ;;  %v2833_v14 = vld [vmem:[%s4538_s1 + $0xf0] sm:$0xff]  }
  0x1c   :  { %2718 = vmatprep.subr.bf16.mxu1 %v3025_v0  ;;  %2645 = vmatprep.subr.bf16.mxu0 %v2758_v16 }
  0x1f   :  { %2734 = vmatpush1.bf16.msra.mxu1 %v3139_v17  ;;  %2646 = vmatpush3.bf16.msra.mxu0 %v2758_v16  ;;  %v2835_v16 = vld [vmem:[%s4538_s1 + $0xf8] sm:$0xff]  }
  0x20   :  { %2719 = vmatprep.subr.bf16.mxu1 %v3025_v0  ;;  %1148 = vmatprep.subr.bf16.mxu0 %v3025_v0 }
  0x22   :  { %2648 = vmatmul.mubr.bf16.vlgmr.msra.gmra.mxu0 %v2761_v18  ;;  %v2840_v18 = vld [vmem:[%s4539_s0 + $0x4] ss:$8 sps:$4 sm:$0xff]  }
  0x23   :  { %2735 = vmatpush2.bf16.msra.mxu1 %v3149_v19  ;;  %1149 = vmatpush1.bf16.msra.mxu0 %v2745_v2  ;;  %v2818_v2 = vld [vmem:[%s4538_s1 + $0xc0] sm:$0xff]  }
  0x24   :  { %2720 = vmatprep.subr.bf16.mxu1 %v3025_v0  ;;  %2651 = vmatprep.mubr.bf16.mxu0 %v2764_v20  ;;  %v2841_v20 = vld [vmem:[%s4539_s0 + $0x160] ss:$8 sps:$4 sm:$0xff]  }
  0x25   :  { %1150 = vmatprep.subr.bf16.mxu0 %v3025_v0 }
  0x27   :  { %2736 = vmatpush2.bf16.msra.mxu1 %v3163_v22  ;;  %1151 = vmatpush1.bf16.msra.mxu0 %v2747_v4  ;;  %v2820_v4 = vld [vmem:[%s4538_s1 + $0xc8] sm:$0xff]  }
  0x28   :  { %2721 = vmatprep.subr.bf16.mxu1 %v3025_v0  ;;  %1152 = vmatprep.subr.bf16.mxu0 %v3025_v0 }
  0x2a   :  { %2652 = vmatmul.mubr.bf16.gmra.mxu0 %v2765_v23  ;;  %v2846_v23 = vld [vmem:[%s4539_s0 + $0x170] ss:$8 sps:$4 sm:$0xff]  }
  0x2b   :  { %2737 = vmatpush2.bf16.msra.mxu1 %v3173_v24  ;;  %2655 = vmatprep.mubr.bf16.mxu0 %v2768_v25  ;;  %v2848_v25 = vld [vmem:[%s4539_s0 + $0x184] ss:$8 sps:$4 sm:$0xff]  }
  0x2c   :  { %2722 = vmatprep.subr.bf16.mxu1 %v3025_v0  ;;  %1153 = vmatpush1.bf16.msra.mxu0 %v3086_v6  ;;  %v2823_v6 = vld [vmem:[%s4538_s1 + $0xd0] sm:$0xff]  }
  0x2d   :  { %1154 = vmatprep.subr.bf16.mxu0 %v3025_v0 }
  0x2f   :  { %2738 = vmatpush2.bf16.msra.mxu1 %v2767_v26 }
  0x30   :  { %2723 = vmatprep.subr.bf16.mxu1 %v3025_v0  ;;  %1155 = vmatpush1.bf16.msra.mxu0 %v3096_v8  ;;  %v2825_v8 = vld [vmem:[%s4538_s1 + $0xd8] sm:$0xff]  }
  0x31   :  { %1156 = vmatprep.subr.bf16.mxu0 %v3025_v0 }
  0x32   :  { %2656 = vmatmul.mubr.bf16.gmra.mxu0 %v2769_v27  ;;  %v2852_v27 = vld [vmem:[%s4539_s0 + $0x180] ss:$8 sps:$4 sm:$0xff]  }
  0x33   :  { %2739 = vmatpush2.bf16.msra.mxu1 %v2770_v28  ;;  %2659 = vmatprep.mubr.bf16.mxu0 %v2772_v29  ;;  %v2854_v29 = vld [vmem:[%s4539_s0 + $0x194] ss:$8 sps:$4 sm:$0xff]  }
  0x34   :  { %2724 = vmatprep.subr.bf16.mxu1 %v3025_v0  ;;  %1157 = vmatpush1.bf16.msra.mxu0 %v3105_v10  ;;  %v2828_v10 = vld [vmem:[%s4538_s1 + $0xe0] sm:$0xff]  }
  0x35   :  { %1158 = vmatprep.subr.bf16.mxu0 %v3025_v0 }
  0x37   :  { %2740 = vmatpush2.bf16.msra.mxu1 %v2771_v30 }
  0x38   :  { %2725 = vmatprep.subr.bf16.mxu1 %v3025_v0  ;;  %1159 = vmatpush1.bf16.msra.mxu0 %v3119_v13  ;;  %v2831_v13 = vld [vmem:[%s4539_s0 + $0x154] ss:$8 sps:$4 sm:$0xff]  }
  0x39   :  { %1160 = vmatprep.subr.bf16.mxu0 %v3025_v0 }
  0x3a   :  { %2660 = vmatmul.mubr.bf16.gmra.mxu0 %v2773_v31  ;;  %v2858_v31 = vld [vmem:[%s4539_s0 + $0x190] ss:$8 sps:$4 sm:$0xff]  }
  0x3b   :  { %2741 = vmatpush2.bf16.msra.mxu1 %v2774_v32  ;;  %2663 = vmatprep.mubr.bf16.mxu0 %v2779_v33  ;;  %v2860_v33 = vld [vmem:[%s4539_s0 + $0x1a4] ss:$8 sps:$4 sm:$0xff]  }
  0x3c   :  { %2726 = vmatprep.subr.bf16.mxu1 %v3025_v0  ;;  %1161 = vmatpush1.bf16.msra.mxu0 %v3129_v15  ;;  %v2834_v15 = vld [vmem:[%s4539_s0 + $0x150] ss:$8 sps:$4 sm:$0xff]  }
  0x3d   :  { %1162 = vmatprep.subr.bf16.mxu0 %v3025_v0 }
  0x3f   :  { %2742 = vmatpush2.bf16.msra.mxu1 %v2775_v34 }
  0x40   :  { %1163 = vmatpush1.bf16.msra.mxu0 %v3139_v17  ;;  %v2836_v17 = vld [vmem:[%s4539_s0 + $0x164] ss:$8 sps:$4 sm:$0xff]  }
  0x41   :  { %1164 = vmatprep.subr.bf16.mxu0 %v3025_v0 }
  0x42   :  { %1261 = vmatmul.mubr.bf16.vlgmr.msra.gmra.mxu1 %v2776_v35  ;;  %2664 = vmatmul.mubr.bf16.gmra.mxu0 %v2780_v36  ;;  %v2864_v35 = vld [vmem:[%s4539_s0 + $0x1a0] ss:$8 sps:$4 sm:$0xff]  }
  0x43   :  { %1268 = vmatprep.mubr.bf16.mxu1 %v2781_v37  ;;  %2667 = vmatprep.mubr.bf16.mxu0 %v2783_v38  ;;  %v2865_v36 = vld [vmem:[%s4539_s0 + $0x40] ss:$8 sps:$4 sm:$0xff]   ;;  %v2866_v37 = vld [vmem:[%s4539_s0 + $0x1b4] ss:$8 sps:$4 sm:$0xff]  }
  0x44   :  { %1165 = vmatpush2.bf16.msra.mxu0 %v3149_v19  ;;  %v2838_v19 = vld [vmem:[%s4539_s0] ss:$8 sps:$4 sm:$0xff]   ;;  %v2868_v38 = vld [vmem:[%s4539_s0 + $0x54] ss:$8 sps:$4 sm:$0xff]  }
  0x45   :  { %1166 = vmatprep.subr.bf16.mxu0 %v3025_v0 }
  0x48   :  { %1167 = vmatpush2.bf16.msra.mxu0 %v3163_v22  ;;  %v2844_v22 = vld [vmem:[%s4539_s0 + $0x14] ss:$8 sps:$4 sm:$0xff]  }
  0x49   :  { %1168 = vmatprep.subr.bf16.mxu0 %v3025_v0 }
  0x4a   :  { %1269 = vmatmul.mubr.bf16.gmra.mxu1 %v2784_v39  ;;  %2668 = vmatmul.mubr.bf16.gmra.mxu0 %v2785_v40  ;;  %v2870_v39 = vld [vmem:[%s4539_s0 + $0x1b0] ss:$8 sps:$4 sm:$0xff]  }
  0x4b   :  { %1276 = vmatprep.mubr.bf16.mxu1 %v2786_v41  ;;  %2671 = vmatprep.mubr.bf16.mxu0 %v2788_v42  ;;  %v2871_v40 = vld [vmem:[%s4539_s0 + $0x50] ss:$8 sps:$4 sm:$0xff]   ;;  %v2872_v41 = vld [vmem:[%s4539_s0 + $0x1c4] ss:$8 sps:$4 sm:$0xff]  }
  0x4c   :  { %1169 = vmatpush2.bf16.msra.mxu0 %v3173_v24  ;;  %v2847_v24 = vld [vmem:[%s4539_s0 + $0x10] ss:$8 sps:$4 sm:$0xff]   ;;  %v2874_v42 = vld [vmem:[%s4539_s0 + $0x64] ss:$8 sps:$4 sm:$0xff]  }
  0x4d   :  { %1170 = vmatprep.subr.bf16.mxu0 %v3025_v0 }
  0x50   :  { %1171 = vmatpush2.bf16.msra.mxu0 %v2767_v26  ;;  %v2850_v26 = vld [vmem:[%s4539_s0 + $0x24] ss:$8 sps:$4 sm:$0xff]  }
  0x51   :  { %1172 = vmatprep.subr.bf16.mxu0 %v3025_v0 }
  0x52   :  { %1277 = vmatmul.mubr.bf16.gmra.mxu1 %v2789_v43  ;;  %2672 = vmatmul.mubr.bf16.gmra.mxu0 %v2790_v44  ;;  %v2876_v43 = vld [vmem:[%s4539_s0 + $0x1c0] ss:$8 sps:$4 sm:$0xff]  }
  0x53   :  { %1284 = vmatprep.mubr.bf16.mxu1 %v2791_v45  ;;  %2675 = vmatprep.mubr.bf16.mxu0 %v2793_v46  ;;  %v2877_v44 = vld [vmem:[%s4539_s0 + $0x60] ss:$8 sps:$4 sm:$0xff]   ;;  %v2878_v45 = vld [vmem:[%s4539_s0 + $0x1d4] ss:$8 sps:$4 sm:$0xff]  }
  0x54   :  { %1173 = vmatpush2.bf16.msra.mxu0 %v2770_v28  ;;  %v2853_v28 = vld [vmem:[%s4539_s0 + $0x20] ss:$8 sps:$4 sm:$0xff]   ;;  %v2880_v46 = vld [vmem:[%s4539_s0 + $0x74] ss:$8 sps:$4 sm:$0xff]  }
  0x55   :  { %1174 = vmatprep.subr.bf16.mxu0 %v3025_v0 }
  0x58   :  { %1175 = vmatpush2.bf16.msra.mxu0 %v2771_v30  ;;  %v2856_v30 = vld [vmem:[%s4539_s0 + $0x34] ss:$8 sps:$4 sm:$0xff]  }
  0x59   :  { %1176 = vmatprep.subr.bf16.mxu0 %v3025_v0 }
  0x5a   :  { %1285 = vmatmul.mubr.bf16.gmra.mxu1 %v2794_v47  ;;  %2676 = vmatmul.mubr.bf16.gmra.mxu0 %v2795_v48  ;;  %v2882_v47 = vld [vmem:[%s4539_s0 + $0x1d0] ss:$8 sps:$4 sm:$0xff]  }
  0x5b   :  { %1292 = vmatprep.mubr.bf16.mxu1 %v2796_v49  ;;  %2679 = vmatprep.mubr.bf16.mxu0 %v2798_v50  ;;  %v2883_v48 = vld [vmem:[%s4539_s0 + $0x70] ss:$8 sps:$4 sm:$0xff]   ;;  %v2884_v49 = vld [vmem:[%s4539_s0 + $0x1e4] ss:$8 sps:$4 sm:$0xff]  }
  0x5c   :  { %1177 = vmatpush2.bf16.msra.mxu0 %v2774_v32  ;;  %v2859_v32 = vld [vmem:[%s4539_s0 + $0x30] ss:$8 sps:$4 sm:$0xff]   ;;  %v2886_v50 = vld [vmem:[%s4539_s0 + $0x84] ss:$8 sps:$4 sm:$0xff]  }
  0x5d   :  { %1178 = vmatprep.subr.bf16.mxu0 %v3025_v0  ;;  %v2815_v0 = vld [vmem:[%s4538_s1 + $0xb8] sm:$0xff]  }
  0x60   :  { %1179 = vmatpush2.bf16.msra.mxu0 %v2775_v34  ;;  %v2862_v34 = vld [vmem:[%s4539_s0 + $0x44] ss:$8 sps:$4 sm:$0xff]  }
  0x62   :  { %1293 = vmatmul.mubr.bf16.gmra.mxu1 %v2799_v51  ;;  %2680 = vmatmul.mubr.bf16.gmra.mxu0 %v2800_v52  ;;  %v2888_v51 = vld [vmem:[%s4539_s0 + $0x1e0] ss:$8 sps:$4 sm:$0xff]  }
  0x63   :  { %1300 = vmatprep.mubr.bf16.mxu1 %v2801_v53  ;;  %2683 = vmatprep.mubr.bf16.mxu0 %v2803_v54  ;;  %v2889_v52 = vld [vmem:[%s4539_s0 + $0x80] ss:$8 sps:$4 sm:$0xff]   ;;  %v2890_v53 = vld [vmem:[%s4539_s0 + $0x1f4] ss:$8 sps:$4 sm:$0xff]  }
  0x64   :  { %v2892_v54 = vld [vmem:[%s4539_s0 + $0x94] ss:$8 sps:$4 sm:$0xff]  }
  0x6a   :  { %1301 = vmatmul.mubr.bf16.gmra.mxu1 %v2804_v55  ;;  %2684 = vmatmul.mubr.bf16.gmra.mxu0 %v2805_v56 }
  0x6b   :  { %1308 = vmatprep.mubr.bf16.mxu1 %v2806_v57  ;;  %2687 = vmatprep.mubr.bf16.mxu0 %v2808_v58  ;;  %v2894_v58 = vld [vmem:[%s4539_s0 + $0x1f0] ss:$8 sps:$4 sm:$0xff]  }
  0x72   :  { %1309 = vmatmul.mubr.bf16.gmra.mxu1 %v2809_v59  ;;  %2688 = vmatmul.mubr.bf16.gmra.mxu0 %v2810_v60  ;;  %v2895_v59 = vld [vmem:[%s4539_s0 + $0x90] ss:$8 sps:$4 sm:$0xff]  }
  0x73   :  { %1316 = vmatprep.mubr.bf16.mxu1 %v2811_v61  ;;  %2691 = vmatprep.mubr.bf16.mxu0 %v2813_v62 }
  0x7a   :  { %1317 = vmatmul.mubr.bf16.gmra.mxu1 %v2814_v63  ;;  %2692 = vmatmul.mubr.bf16.gmra.mxu0 %v2815_v0 }
  0x7b   :  { %1324 = vmatprep.mubr.bf16.mxu1 %v2816_v1  ;;  %2695 = vmatprep.mubr.bf16.mxu0 %v2818_v2 }
  0x82   :  { %1325 = vmatmul.mubr.bf16.gmra.mxu1 %v2819_v3  ;;  %2696 = vmatmul.mubr.bf16.gmra.mxu0 %v2820_v4 }
  0x83   :  { %1332 = vmatprep.mubr.bf16.mxu1 %v2821_v5  ;;  %2699 = vmatprep.mubr.bf16.mxu0 %v2823_v6 }
  0x8a   :  { %1333 = vmatmul.mubr.bf16.gmra.mxu1 %v2824_v7  ;;  %2700 = vmatmul.mubr.bf16.gmra.mxu0 %v2825_v8 }
  0x8b   :  { %1340 = vmatprep.mubr.bf16.mxu1 %v2826_v9  ;;  %2703 = vmatprep.mubr.bf16.mxu0 %v2828_v10 }
  0x92   :  { %1341 = vmatmul.mubr.bf16.gmra.mxu1 %v2829_v11  ;;  %2704 = vmatmul.mubr.bf16.gmra.mxu0 %v2830_v12 }
  0x93   :  { %1348 = vmatprep.mubr.bf16.mxu1 %v2831_v13  ;;  %2707 = vmatprep.mubr.bf16.mxu0 %v2833_v14 }
  0x9a   :  { %1349 = vmatmul.mubr.bf16.gmra.mxu1 %v2834_v15  ;;  %2708 = vmatmul.mubr.bf16.gmra.mxu0 %v2835_v16 }
  0x9b   :  { %1356 = vmatprep.mubr.bf16.mxu1 %v2836_v17  ;;  %1180 = vmatprep.mubr.bf16.mxu0 %v2840_v18 }
  0xa2   :  { %1357 = vmatmul.mubr.bf16.gmra.mxu1 %v2841_v20  ;;  %1181 = vmatmul.mubr.bf16.vlgmr.msra.gmra.mxu0 %v2838_v19  ;;  %v3537_v19 = vld [vmem:[%s4540_s4] ss:$0 sm:$0xff] }
  0xa3   :  { %1364 = vmatprep.mubr.bf16.mxu1 %v2842_v21  ;;  %1188 = vmatprep.mubr.bf16.mxu0 %v2844_v22 }
  0xaa   :  { %1365 = vmatmul.mubr.bf16.gmra.mxu1 %v2846_v23  ;;  %1189 = vmatmul.mubr.bf16.gmra.mxu0 %v2847_v24 }
  0xab   :  { %1372 = vmatprep.mubr.bf16.mxu1 %v2848_v25  ;;  %1196 = vmatprep.mubr.bf16.mxu0 %v2850_v26 }
  0xb2   :  { %1373 = vmatmul.mubr.bf16.gmra.mxu1 %v2852_v27  ;;  %1197 = vmatmul.mubr.bf16.gmra.mxu0 %v2853_v28 }
  0xb3   :  { %1380 = vmatprep.mubr.bf16.mxu1 %v2854_v29  ;;  %1204 = vmatprep.mubr.bf16.mxu0 %v2856_v30  ;;  %v3544_v29 = vld [vmem:[%s4541_s5 + $0x58] sm:$0xff]  }
  0xba   :  { %1381 = vmatmul.mubr.bf16.gmra.mxu1 %v2858_v31  ;;  %1205 = vmatmul.mubr.bf16.gmra.mxu0 %v2859_v32 }
  0xbb   :  { %1388 = vmatprep.mubr.bf16.mxu1 %v2860_v33  ;;  %1212 = vmatprep.mubr.bf16.mxu0 %v2862_v34  ;;  %v3550_v34 = vld [vmem:[%s4541_s5 + $0x50] sm:$0xff]  }
  0xc2   :  { %1389 = vmatmul.mubr.bf16.gmra.mxu1 %v2864_v35  ;;  %1213 = vmatmul.mubr.bf16.gmra.mxu0 %v2865_v36 }
  0xc3   :  { %1396 = vmatprep.mubr.bf16.mxu1 %v2866_v37  ;;  %1220 = vmatprep.mubr.bf16.mxu0 %v2868_v38  ;;  %v2319_v37 = vunpack.c.l.bf16 %v3544_v29 }
  0xca   :  { %1397 = vmatmul.mubr.bf16.gmra.mxu1 %v2870_v39  ;;  %1221 = vmatmul.mubr.bf16.gmra.mxu0 %v2871_v40  ;;  %v2570_v39 = vld [vmem:[%s4542_s6 + $0x58] sm:$0xff]  }
  0xcb   :  { %1404 = vmatprep.mubr.bf16.mxu1 %v2872_v41  ;;  %1228 = vmatprep.mubr.bf16.mxu0 %v2874_v42  ;;  %v2315_v42 = vunpack.c.l.bf16 %v3550_v34 }
  0xd2   :  { %1405 = vmatmul.mubr.bf16.gmra.mxu1 %v2876_v43  ;;  %1229 = vmatmul.mubr.bf16.gmra.mxu0 %v2877_v44  ;;  %v2569_v44 = vld [vmem:[%s4542_s6 + $0x50] sm:$0xff]  }
  0xd3   :  { %1412 = vmatprep.mubr.bf16.mxu1 %v2878_v45  ;;  %1236 = vmatprep.mubr.bf16.mxu0 %v2880_v46  ;;  %v2320_v45 = vunpack.c.h.bf16 %v3544_v29 }
  0xda   :  { %1413 = vmatmul.mubr.bf16.gmra.mxu1 %v2882_v47  ;;  %1237 = vmatmul.mubr.bf16.gmra.mxu0 %v2883_v48  ;;  %v2447_v48 = vunpack.c.l.bf16 %v2570_v39 }
  0xdb   :  { %1420 = vmatprep.mubr.bf16.mxu1 %v2884_v49  ;;  %1244 = vmatprep.mubr.bf16.mxu0 %v2886_v50  ;;  %v1786_v49 = vsub.f32 1.0, %v2319_v37 }
  0xe2   :  { %1421 = vmatmul.mubr.bf16.gmra.mxu1 %v2888_v51  ;;  %v3488_v55 = vpop.f32.mrf.mxu0  ;;  %1245 = vmatmul.mubr.bf16.gmra.mxu0 %v2889_v52  ;;  %v2316_v51 = vunpack.c.h.bf16 %v3550_v34 }
  0xe3   :  { %1428 = vmatprep.mubr.bf16.mxu1 %v2890_v53  ;;  %1252 = vmatprep.mubr.bf16.mxu0 %v2892_v54  ;;  %v2443_v54 = vunpack.c.l.bf16 %v2569_v44 }
  0xe4   :  { %v3490_v56 = vpop.f32.mrf.mxu0 }
  0xe6   :  { %v3492_v57 = vpop.f32.mrf.mxu0 }
  0xe8   :  { %v3500_v60 = vpop.f32.mrf.mxu0 }
  0xea   :  { %1429 = vmatmul.mubr.bf16.gmra.mxu1 %v2894_v58  ;;  %v3502_v61 = vpop.f32.mrf.mxu0  ;;  %1253 = vmatmul.mubr.bf16.gmra.mxu0 %v2895_v59  ;;  %v1784_v58 = vsub.f32 1.0, %v2315_v42  ;;  %v3567_v59 = vld [vmem:[%s4541_s5 + $0x60] sm:$0xff]  }
  0xec   :  { %v3504_v62 = vpop.f32.mrf.mxu0  ;;  %v1848_v29 = vmul.f32 %v2443_v54, %v1784_v58 }
  0xee   :  { %v3506_v63 = vpop.f32.mrf.mxu0 }
  0xf0   :  { %v3508_v0 = vpop.f32.mrf.mxu0 }
  0xf2   :  { %v3510_v1 = vpop.f32.mrf.mxu0 }
  0xf4   :  { %v3512_v2 = vpop.f32.mrf.mxu0 }
  0xf6   :  { %v3514_v3 = vpop.f32.mrf.mxu0 }
  0xf8   :  { %v3516_v4 = vpop.f32.mrf.mxu0 }
  0xfa   :  { %v3518_v5 = vpop.f32.mrf.mxu0 }
  0xfb   :  { %4555 = vst [vmem:[#allocation2_spill] sm:$0xff] %v3518_v5 }
  0xfc   :  { %v3520_v6 = vpop.f32.mrf.mxu0 }
  0xfe   :  { %v3522_v7 = vpop.f32.mrf.mxu0 }
  0xff   :  { %4556 = vst [vmem:[#allocation3_spill] sm:$0xff] %v3522_v7 }
 0x100   :  { %v3524_v8 = vpop.f32.mrf.mxu0 }
 0x102   :  { %v1262_v9 = vpop.f32.mrf.mxu1  ;;  %v3526_v10 = vpop.f32.mrf.mxu0 }
 0x103   :  { %4557 = vst [vmem:[#allocation4_spill] sm:$0xff] %v3526_v10 }
 0x104   :  { %v1264_v11 = vpop.f32.mrf.mxu1  ;;  %v3528_v12 = vpop.f32.mrf.mxu0 }
 0x105   :  { %4558 = vst [vmem:[#allocation5_spill] sm:$0xff] %v3528_v12  ;;  %v2448_v11 = vunpack.c.h.bf16 %v2570_v39  ;;  %v3582_v39 = vld [vmem:[%s4541_s5 + $0x68] sm:$0xff]  }
 0x106   :  { %v1265_v13 = vpop.f32.mrf.mxu1  ;;  %v3530_v14 = vpop.f32.mrf.mxu0  ;;  %v2327_v54 = vunpack.c.l.bf16 %v3582_v39 }
 0x107   :  { %4559 = vst [vmem:[#allocation6_spill] sm:$0xff] %v3530_v14 }
 0x108   :  { %v1267_v15 = vpop.f32.mrf.mxu1  ;;  %v3532_v16 = vpop.f32.mrf.mxu0 }
 0x109   :  { %4560 = vst [vmem:[#allocation7_spill] sm:$0xff] %v3532_v16 }
 0x10a   :  { %v1270_v17 = vpop.f32.mrf.mxu1  ;;  %v2669_v18 = vpop.f32.mrf.mxu0 }
 0x10b   :  { %v1271_v20 = vadd.f32 %v2669_v18, %v1270_v17  ;;  %v1850_v18 = vmul.f32 %v2447_v48, %v1786_v49 }
 0x10c   :  { %v1272_v21 = vpop.f32.mrf.mxu1  ;;  %v557_v22 = vpop.f32.mrf.mxu0 }
 0x10d   :  { %v1466_v23 = vadd.f32 %v3537_v19, %v1271_v20  ;;  %v1263_v24 = vadd.f32 %v1262_v9, %v557_v22 }
 0x10e   :  { %v1273_v25 = vpop.f32.mrf.mxu1  ;;  %v2670_v26 = vpop.f32.mrf.mxu0 }
 0x10f   :  { %2896 = vtanh.f32 %v1466_v23  ;;  %v1464_v27 = vadd.f32 %v3537_v19, %v1263_v24  ;;  %v1274_v28 = vadd.f32 %v2670_v26, %v1273_v25  ;;  %v2444_v23 = vunpack.c.h.bf16 %v2569_v44 }
 0x110   :  { %v1275_v30 = vpop.f32.mrf.mxu1  ;;  %v560_v31 = vpop.f32.mrf.mxu0  ;;  %v1785_v24 = vsub.f32 1.0, %v2316_v51  ;;  %v2323_v25 = vunpack.c.l.bf16 %v3567_v59 }
 0x111   :  { %2898 = vtanh.f32 %v1464_v27  ;;  %v1467_v32 = vadd.f32 %v3537_v19, %v1274_v28  ;;  %v1266_v33 = vadd.f32 %v1265_v13, %v560_v31  ;;  %v1787_v13 = vsub.f32 1.0, %v2320_v45  ;;  %v2571_v30 = vld [vmem:[%s4542_s6 + $0x60] sm:$0xff]  }
 0x112   :  { %v1278_v35 = vpop.f32.mrf.mxu1  ;;  %v2673_v36 = vpop.f32.mrf.mxu0  ;;  %v1788_v44 = vsub.f32 1.0, %v2323_v25 }
 0x113   :  { %2900 = vtanh.f32 %v1467_v32  ;;  %v1465_v38 = vadd.f32 %v3537_v19, %v1266_v33  ;;  %v1851_v33 = vmul.f32 %v2448_v11, %v1787_v13 }
 0x114   :  { %v1280_v40 = vpop.f32.mrf.mxu1  ;;  %v573_v41 = vpop.f32.mrf.mxu0 }
 0x115   :  { %2902 = vtanh.f32 %v1465_v38  ;;  %v1279_v43 = vadd.f32 %v1278_v35, %v573_v41  ;;  %v1849_v41 = vmul.f32 %v2444_v23, %v1785_v24 }
 0x116   :  { %v1281_v46 = vpop.f32.mrf.mxu1  ;;  %v2674_v47 = vpop.f32.mrf.mxu0 }
 0x117   :  { %v1468_v50 = vadd.f32 %v3537_v19, %v1279_v43  ;;  %v2451_v43 = vunpack.c.l.bf16 %v2571_v30 }
 0x118   :  { %v1283_v52 = vpop.f32.mrf.mxu1  ;;  %v576_v53 = vpop.f32.mrf.mxu0 }
 0x119   :  { %2904 = vtanh.f32 %v1468_v50  ;;  %v1282_v9 = vadd.f32 %v1281_v46, %v576_v53  ;;  %v1852_v13 = vmul.f32 %v2451_v43, %v1788_v44 }
 0x11a   :  { %v1286_v15 = vpop.f32.mrf.mxu1  ;;  %v3569_v17 = vpop.f32.mrf.mxu0 }
 0x11b   :  { %v1469_v20 = vadd.f32 %v3537_v19, %v1282_v9  ;;  %v1287_v21 = vadd.f32 %v2673_v36, %v1286_v15 }
 0x11c   :  { %v2897_v22 = vpop.eup %2896  ;;  %v1288_v26 = vpop.f32.mrf.mxu1 }
 0x11d   :  { %v589_v27 = vpop.f32.mrf.mxu0  ;;  %v1978_v28 = vmul.f32 %v2897_v22, %v2319_v37  ;;  %2906 = vtanh.f32 %v1469_v20  ;;  %v1470_v31 = vadd.f32 %v3537_v19, %v1287_v21  ;;  %v2452_v21 = vunpack.c.h.bf16 %v2571_v30  ;;  %v3613_v30 = vld [vmem:[%s4541_s5 + $0x70] sm:$0xff]  }
 0x11e   :  { %v2899_v32 = vpop.eup %2898  ;;  %v1289_v34 = vpop.f32.mrf.mxu1  ;;  %v2328_v26 = vunpack.c.h.bf16 %v3582_v39 }
 0x11f   :  { %v3577_v35 = vpop.f32.mrf.mxu0  ;;  %v2042_v36 = vadd.f32 %v1978_v28, %v1850_v18  ;;  %v1976_v38 = vmul.f32 %v2899_v32, %v2315_v42  ;;  %2908 = vtanh.f32 %v1470_v31  ;;  %v1290_v37 = vadd.f32 %v2674_v47, %v1289_v34 }
 0x120   :  { %v2901_v40 = vpop.eup %2900  ;;  %v1291_v46 = vpop.f32.mrf.mxu1  ;;  %v2324_v42 = vunpack.c.h.bf16 %v3567_v59  ;;  %v1790_v31 = vsub.f32 1.0, %v2327_v54 }
 0x121   :  { %v592_v48 = vpop.f32.mrf.mxu0  ;;  %2106 = vst [vmem:[%s4543_s7 + $0xb0] sm:$0xff] %v2042_v36  ;;  %v2040_v49 = vadd.f32 %v1976_v38, %v1848_v29  ;;  %v1979_v50 = vmul.f32 %v2901_v40, %v2320_v45  ;;  %v1471_v52 = vadd.f32 %v3537_v19, %v1290_v37  ;;  %v2572_v45 = vld [vmem:[%s4542_s6 + $0x68] sm:$0xff]  }
 0x122   :  { %v2903_v53 = vpop.eup %2902  ;;  %v1294_v47 = vpop.f32.mrf.mxu1  ;;  %v1789_v22 = vsub.f32 1.0, %v2324_v42  ;;  %v2455_v24 = vunpack.c.l.bf16 %v2572_v45  ;;  %v2456_v40 = vunpack.c.h.bf16 %v2572_v45 }
 0x123   :  { %v3590_v58 = vpop.f32.mrf.mxu0  ;;  %2104 = vst [vmem:[%s4543_s7 + $0xa0] sm:$0xff] %v2040_v49  ;;  %v2043_v9 = vadd.f32 %v1979_v50, %v1851_v33  ;;  %v1977_v11 = vmul.f32 %v2903_v53, %v2316_v51  ;;  %2910 = vtanh.f32 %v1471_v52  ;;  %v1295_v59 = vadd.f32 %v1294_v47, %v589_v27  ;;  %v2573_v49 = vld [vmem:[%s4542_s6 + $0x70] sm:$0xff]  }
 0x124   :  { %v1296_v15 = vpop.f32.mrf.mxu1  ;;  %v1853_v38 = vmul.f32 %v2452_v21, %v1789_v22  ;;  %v3640_v22 = vld [vmem:[%s4541_s5 + $0x78] sm:$0xff]  }
 0x125   :  { %v3598_v18 = vpop.f32.mrf.mxu0  ;;  %2107 = vst [vmem:[%s4543_s7 + $0xb8] sm:$0xff] %v2043_v9  ;;  %v2041_v20 = vadd.f32 %v1977_v11, %v1849_v41  ;;  %v1472_v23 = vadd.f32 %v3537_v19, %v1295_v59  ;;  %v1791_v41 = vsub.f32 1.0, %v2328_v26 }
 0x126   :  { %v2905_v51 = vpop.eup %2904  ;;  %v1297_v28 = vpop.f32.mrf.mxu1 }
 0x127   :  { %v3605_v29 = vpop.f32.mrf.mxu0  ;;  %2105 = vst [vmem:[%s4543_s7 + $0xa8] sm:$0xff] %v2041_v20  ;;  %v1980_v27 = vmul.f32 %v2905_v51, %v2323_v25  ;;  %2912 = vtanh.f32 %v1472_v23  ;;  %v1298_v32 = vadd.f32 %v1297_v28, %v592_v48  ;;  %v2331_v25 = vunpack.c.l.bf16 %v3613_v30 }
 0x128   :  { %v1299_v33 = vpop.f32.mrf.mxu1  ;;  %v1854_v48 = vmul.f32 %v2455_v24, %v1790_v31  ;;  %v1855_v59 = vmul.f32 %v2456_v40, %v1791_v41 }
 0x129   :  { %v3615_v34 = vpop.f32.mrf.mxu0  ;;  %v2044_v36 = vadd.f32 %v1980_v27, %v1852_v13  ;;  %v1473_v39 = vadd.f32 %v3537_v19, %v1298_v32  ;;  %v2459_v13 = vunpack.c.l.bf16 %v2573_v49  ;;  %v1792_v15 = vsub.f32 1.0, %v2331_v25 }
 0x12a   :  { %v2907_v37 = vpop.eup %2906  ;;  %v1302_v43 = vpop.f32.mrf.mxu1  ;;  %v2335_v32 = vunpack.c.l.bf16 %v3640_v22 }
 0x12b   :  { %v3619_v44 = vpop.f32.mrf.mxu0  ;;  %2108 = vst [vmem:[%s4543_s7 + $0xc0] sm:$0xff] %v2044_v36  ;;  %v1981_v46 = vmul.f32 %v2907_v37, %v2324_v42  ;;  %2914 = vtanh.f32 %v1473_v39  ;;  %v1303_v50 = vadd.f32 %v3569_v17, %v1302_v43  ;;  %v2332_v17 = vunpack.c.h.bf16 %v3613_v30  ;;  %v2574_v39 = vld [vmem:[%s4542_s6 + $0x78] sm:$0xff]  }
 0x12c   :  { %v2909_v52 = vpop.eup %2908  ;;  %v1304_v53 = vpop.f32.mrf.mxu1  ;;  %v1856_v31 = vmul.f32 %v2459_v13, %v1792_v15  ;;  %v2460_v30 = vunpack.c.h.bf16 %v2573_v49  ;;  %v1794_v49 = vsub.f32 1.0, %v2335_v32 }
 0x12d   :  { %v3628_v47 = vpop.f32.mrf.mxu0  ;;  %v2045_v9 = vadd.f32 %v1981_v46, %v1853_v38  ;;  %v1982_v11 = vmul.f32 %v2909_v52, %v2327_v54  ;;  %v1474_v45 = vadd.f32 %v3537_v19, %v1303_v50  ;;  %v2336_v50 = vunpack.c.h.bf16 %v3640_v22 }
 0x12e   :  { %v1305_v42 = vpop.f32.mrf.mxu1  ;;  %v2464_v22 = vunpack.c.h.bf16 %v2574_v39 }
 0x12f   :  { %v3631_v20 = vpop.f32.mrf.mxu0  ;;  %2109 = vst [vmem:[%s4543_s7 + $0xc8] sm:$0xff] %v2045_v9  ;;  %v2046_v21 = vadd.f32 %v1982_v11, %v1854_v48  ;;  %2916 = vtanh.f32 %v1474_v45  ;;  %v1306_v54 = vadd.f32 %v3577_v35, %v1305_v42  ;;  %v1793_v35 = vsub.f32 1.0, %v2332_v17 }
 0x130   :  { %v2911_v23 = vpop.eup %2910  ;;  %v1307_v51 = vpop.f32.mrf.mxu1  ;;  %v2463_v48 = vunpack.c.l.bf16 %v2574_v39 }
 0x131   :  { %v3643_v24 = vpop.f32.mrf.mxu0  ;;  %2110 = vst [vmem:[%s4543_s7 + $0xd0] sm:$0xff] %v2046_v21  ;;  %v1983_v28 = vmul.f32 %v2911_v23, %v2328_v26  ;;  %v1475_v27 = vadd.f32 %v3537_v19, %v1306_v54  ;;  %v1795_v54 = vsub.f32 1.0, %v2336_v50 }
 0x132   :  { %v1310_v33 = vpop.f32.mrf.mxu1  ;;  %v1858_v21 = vmul.f32 %v2463_v48, %v1794_v49  ;;  %v3696_v48 = vld [vmem:[%s4541_s5 + $0x88] sm:$0xff]  }
 0x133   :  { %v3650_v36 = vpop.f32.mrf.mxu0  ;;  %v2047_v38 = vadd.f32 %v1983_v28, %v1855_v59  ;;  %2918 = vtanh.f32 %v1475_v27  ;;  %v1311_v37 = vadd.f32 %v1310_v33, %v3598_v18  ;;  %v1857_v18 = vmul.f32 %v2460_v30, %v1793_v35  ;;  %v3669_v59 = vld [vmem:[%s4541_s5 + $0x80] sm:$0xff]  }
 0x134   :  { %v2913_v40 = vpop.eup %2912  ;;  %v1312_v26 = vpop.f32.mrf.mxu1  ;;  %v2339_v28 = vunpack.c.l.bf16 %v3669_v59  ;;  %v2575_v27 = vld [vmem:[%s4542_s6 + $0x80] sm:$0xff]   ;;  %v1859_v39 = vmul.f32 %v2464_v22, %v1795_v54  ;;  %v2576_v22 = vld [vmem:[%s4542_s6 + $0x88] sm:$0xff]  }
 0x135   :  { %v3656_v41 = vpop.f32.mrf.mxu0  ;;  %2111 = vst [vmem:[%s4543_s7 + $0xd8] sm:$0xff] %v2047_v38  ;;  %v1984_v43 = vmul.f32 %v2913_v40, %v2331_v25  ;;  %v1476_v46 = vadd.f32 %v3537_v19, %v1311_v37  ;;  %v2467_v37 = vunpack.c.l.bf16 %v2575_v27  ;;  %v2340_v40 = vunpack.c.h.bf16 %v3669_v59 }
 0x136   :  { %v1313_v52 = vpop.f32.mrf.mxu1 }
 0x137   :  { %v3663_v53 = vpop.f32.mrf.mxu0  ;;  %v2048_v9 = vadd.f32 %v1984_v43, %v1856_v31  ;;  %2920 = vtanh.f32 %v1476_v46  ;;  %v1314_v11 = vadd.f32 %v1313_v52, %v3615_v34  ;;  %v1797_v59 = vsub.f32 1.0, %v2340_v40 }
 0x138   :  { %v2915_v45 = vpop.eup %2914  ;;  %v1315_v25 = vpop.f32.mrf.mxu1 }
 0x139   :  { %v3671_v13 = vpop.f32.mrf.mxu0  ;;  %2112 = vst [vmem:[%s4543_s7 + $0xe0] sm:$0xff] %v2048_v9  ;;  %v1985_v15 = vmul.f32 %v2915_v45, %v2332_v17  ;;  %v1477_v42 = vadd.f32 %v3537_v19, %v1314_v11  ;;  %v2468_v45 = vunpack.c.h.bf16 %v2575_v27  ;;  %v2343_v25 = vunpack.c.l.bf16 %v3696_v48 }
 0x13a   :  { %v1318_v34 = vpop.f32.mrf.mxu1 }
 0x13b   :  { %v3677_v23 = vpop.f32.mrf.mxu0  ;;  %v2049_v51 = vadd.f32 %v1985_v15, %v1857_v18  ;;  %2922 = vtanh.f32 %v1477_v42  ;;  %v1319_v31 = vadd.f32 %v3590_v58, %v1318_v34  ;;  %v1796_v58 = vsub.f32 1.0, %v2339_v28 }
 0x13c   :  { %v2917_v30 = vpop.eup %2916  ;;  %v1320_v17 = vpop.f32.mrf.mxu1 }
 0x13d   :  { %v3684_v33 = vpop.f32.mrf.mxu0  ;;  %2113 = vst [vmem:[%s4543_s7 + $0xe8] sm:$0xff] %v2049_v51  ;;  %v1986_v38 = vmul.f32 %v2917_v30, %v2335_v32  ;;  %v1478_v35 = vadd.f32 %v3537_v19, %v1319_v31  ;;  %v1861_v30 = vmul.f32 %v2468_v45, %v1797_v59  ;;  %v2471_v17 = vunpack.c.l.bf16 %v2576_v22 }
 0x13e   :  { %v1321_v26 = vpop.f32.mrf.mxu1 }
 0x13f   :  { %v3691_v43 = vpop.f32.mrf.mxu0  ;;  %v2050_v46 = vadd.f32 %v1986_v38, %v1858_v21  ;;  %2924 = vtanh.f32 %v1478_v35  ;;  %v1322_v49 = vadd.f32 %v3605_v29, %v1321_v26  ;;  %v1860_v29 = vmul.f32 %v2467_v37, %v1796_v58  ;;  %v3724_v26 = vld [vmem:[%s4541_s5 + $0x90] sm:$0xff]  }
 0x140   :  { %v2919_v32 = vpop.eup %2918  ;;  %v1323_v52 = vpop.f32.mrf.mxu1  ;;  %v1798_v38 = vsub.f32 1.0, %v2343_v25 }
 0x141   :  { %v3699_v9 = vpop.f32.mrf.mxu0  ;;  %2114 = vst [vmem:[%s4543_s7 + $0xf0] sm:$0xff] %v2050_v46  ;;  %v1987_v18 = vmul.f32 %v2919_v32, %v2336_v50  ;;  %v1479_v11 = vadd.f32 %v3537_v19, %v1322_v49 }
 0x142   :  { %v1326_v15 = vpop.f32.mrf.mxu1 }
 0x143   :  { %v3706_v42 = vpop.f32.mrf.mxu0  ;;  %v2051_v21 = vadd.f32 %v1987_v18, %v1859_v39  ;;  %2926 = vtanh.f32 %v1479_v11  ;;  %v1327_v54 = vadd.f32 %v1326_v15, %v3628_v47  ;;  %v2344_v47 = vunpack.c.h.bf16 %v3696_v48 }
 0x144   :  { %v2921_v34 = vpop.eup %2920  ;;  %v1328_v50 = vpop.f32.mrf.mxu1  ;;  %v1862_v48 = vmul.f32 %v2471_v17, %v1798_v38  ;;  %v2472_v18 = vunpack.c.h.bf16 %v2576_v22  ;;  %v2347_v11 = vunpack.c.l.bf16 %v3724_v26 }
 0x145   :  { %v3712_v51 = vpop.f32.mrf.mxu0  ;;  %2115 = vst [vmem:[%s4543_s7 + $0xf8] sm:$0xff] %v2051_v21  ;;  %v1988_v27 = vmul.f32 %v2921_v34, %v2339_v28  ;;  %v1480_v31 = vadd.f32 %v3537_v19, %v1327_v54  ;;  %v2577_v21 = vld [vmem:[%s4542_s6 + $0x90] sm:$0xff]  }
 0x146   :  { %v1329_v35 = vpop.f32.mrf.mxu1 }
 0x147   :  { %v3718_v39 = vpop.f32.mrf.mxu0  ;;  %v2052_v37 = vadd.f32 %v1988_v27, %v1860_v29  ;;  %2928 = vtanh.f32 %v1480_v31  ;;  %v1330_v46 = vadd.f32 %v1329_v35, %v3643_v24  ;;  %v1799_v24 = vsub.f32 1.0, %v2344_v47 }
 0x148   :  { %v2923_v28 = vpop.eup %2922  ;;  %v1331_v58 = vpop.f32.mrf.mxu1  ;;  %v2475_v27 = vunpack.c.l.bf16 %v2577_v21  ;;  %v1800_v31 = vsub.f32 1.0, %v2347_v11 }
 0x149   :  { %v3727_v49 = vpop.f32.mrf.mxu0  ;;  %2116 = vst [vmem:[%s4543_s7 + $0x100] sm:$0xff] %v2052_v37  ;;  %v1989_v32 = vmul.f32 %v2923_v28, %v2340_v40  ;;  %v1481_v52 = vadd.f32 %v3537_v19, %v1330_v46  ;;  %v3753_v28 = vld [vmem:[%s4541_s5 + $0x98] sm:$0xff]  }
 0x14a   :  { %v1334_v45 = vpop.f32.mrf.mxu1 }
 0x14b   :  { %v3734_v59 = vpop.f32.mrf.mxu0  ;;  %v2053_v15 = vadd.f32 %v1989_v32, %v1861_v30  ;;  %2930 = vtanh.f32 %v1481_v52  ;;  %v1335_v29 = vadd.f32 %v3619_v44, %v1334_v45  ;;  %v2348_v30 = vunpack.c.h.bf16 %v3724_v26  ;;  %v3764_v45 = vld [vmem:[%s4541_s5 + $0xa0] sm:$0xff]  }
 0x14c   :  { %v2925_v54 = vpop.eup %2924  ;;  %v1336_v40 = vpop.f32.mrf.mxu1  ;;  %v1863_v44 = vmul.f32 %v2472_v18, %v1799_v24  ;;  %v1864_v52 = vmul.f32 %v2475_v27, %v1800_v31 }
 0x14d   :  { %v3740_v34 = vpop.f32.mrf.mxu0  ;;  %2117 = vst [vmem:[%s4543_s7 + $0x108] sm:$0xff] %v2053_v15  ;;  %v1990_v22 = vmul.f32 %v2925_v54, %v2343_v25  ;;  %v1482_v50 = vadd.f32 %v3537_v19, %v1335_v29  ;;  %v1801_v18 = vsub.f32 1.0, %v2348_v30  ;;  %v2351_v29 = vunpack.c.l.bf16 %v3753_v28 }
 0x14e   :  { %v1337_v17 = vpop.f32.mrf.mxu1  ;;  %v4544_v40 = vunpack.c.h.bf16 %v3753_v28 }
 0x14f   :  { %v3747_v38 = vpop.f32.mrf.mxu0  ;;  %v2054_v35 = vadd.f32 %v1990_v22, %v1862_v48  ;;  %2932 = vtanh.f32 %v1482_v50  ;;  %v1338_v37 = vadd.f32 %v3631_v20, %v1337_v17  ;;  %v2476_v48 = vunpack.c.h.bf16 %v2577_v21 }
 0x150   :  { %v2927_v46 = vpop.eup %2926  ;;  %v1339_v25 = vpop.f32.mrf.mxu1  ;;  %v4545_v17 = vunpack.c.l.bf16 %v3764_v45 }
 0x151   :  { %v3755_v58 = vpop.f32.mrf.mxu0  ;;  %2118 = vst [vmem:[%s4543_s7 + $0x110] sm:$0xff] %v2054_v35  ;;  %v1991_v26 = vmul.f32 %v2927_v46, %v2344_v47  ;;  %v1483_v32 = vadd.f32 %v3537_v19, %v1338_v37  ;;  %v2578_v47 = vld [vmem:[%s4542_s6 + $0x98] sm:$0xff]   ;;  %v1865_v35 = vmul.f32 %v2476_v48, %v1801_v18  ;;  %v4546_v46 = vunpack.c.h.bf16 %v3764_v45 }
 0x152   :  { %v1342_v20 = vpop.f32.mrf.mxu1  ;;  %v2480_v18 = vunpack.c.h.bf16 %v2578_v47 }
 0x153   :  { %v3766_v15 = vpop.f32.mrf.mxu0  ;;  %v2055_v24 = vadd.f32 %v1991_v26, %v1863_v44  ;;  %2934 = vtanh.f32 %v1483_v32  ;;  %v1343_v54 = vadd.f32 %v1342_v20, %v3656_v41  ;;  %v2479_v44 = vunpack.c.l.bf16 %v2578_v47  ;;  %v2579_v41 = vld [vmem:[%s4542_s6 + $0xa0] sm:$0xff]   ;;  %v3791_v20 = vld [vmem:[%s4541_s5 + $0xa8] sm:$0xff]   ;;  %v3806_v47 = vld [vmem:[%s4541_s5 + $0xb0] sm:$0xff]  }
 0x154   :  { %v2929_v21 = vpop.eup %2928  ;;  %v1344_v22 = vpop.f32.mrf.mxu1  ;;  %v1802_v32 = vsub.f32 1.0, %v2351_v29 }
 0x155   :  { %v3774_v50 = vpop.f32.mrf.mxu0  ;;  %2119 = vst [vmem:[%s4543_s7 + $0x118] sm:$0xff] %v2055_v24  ;;  %v1992_v27 = vmul.f32 %v2929_v21, %v2347_v11  ;;  %v1484_v31 = vadd.f32 %v3537_v19, %v1343_v54  ;;  %v1803_v24 = vsub.f32 1.0, %v4544_v40  ;;  %v2483_v22 = vunpack.c.l.bf16 %v2579_v41 }
 0x156   :  { %v1345_v37 = vpop.f32.mrf.mxu1 }
 0x157   :  { %v3785_v25 = vpop.f32.mrf.mxu0  ;;  %v2056_v26 = vadd.f32 %v1992_v27, %v1864_v52  ;;  %2936 = vtanh.f32 %v1484_v31  ;;  %v1346_v11 = vadd.f32 %v1345_v37, %v3671_v13  ;;  %v1804_v13 = vsub.f32 1.0, %v4545_v17 }
 0x158   :  { %4561 = vst [vmem:[#allocation8_spill] sm:$0xff] %v3785_v25  ;;  %v2931_v48 = vpop.eup %2930  ;;  %v1347_v54 = vpop.f32.mrf.mxu1  ;;  %v2484_v31 = vunpack.c.h.bf16 %v2579_v41  ;;  %v1805_v37 = vsub.f32 1.0, %v4546_v46  ;;  %v2580_v41 = vld [vmem:[%s4542_s6 + $0xa8] sm:$0xff]   ;;  %v1867_v14 = vmul.f32 %v2480_v18, %v1803_v24 }
 0x159   :  { %v3795_v21 = vpop.f32.mrf.mxu0  ;;  %2120 = vst [vmem:[%s4543_s7 + $0x120] sm:$0xff] %v2056_v26  ;;  %v1993_v52 = vmul.f32 %v2931_v48, %v2348_v30  ;;  %v1485_v27 = vadd.f32 %v3537_v19, %v1346_v11  ;;  %v3816_v30 = vld [vmem:[%s4541_s5] sm:$0xff]   ;;  %v1866_v48 = vmul.f32 %v2479_v44, %v1802_v32  ;;  %v1868_v44 = vmul.f32 %v2483_v22, %v1804_v13  ;;  %v2581_v32 = vld [vmem:[%s4542_s6 + $0xb0] sm:$0xff]  }
 0x15a   :  { %v1350_v54 = vpop.f32.mrf.mxu1  ;;  %v3834_v18 = vmul.f32 %v2484_v31, %v1805_v37  ;;  %v2487_v24 = vunpack.c.l.bf16 %v2580_v41  ;;  %v2488_v13 = vunpack.c.h.bf16 %v2580_v41  ;;  %v3848_v31 = vld [vmem:[%s4541_s5 + $0xb8] sm:$0xff]  }
 0x15b   :  { %v3811_v26 = vpop.f32.mrf.mxu0  ;;  %v2057_v11 = vadd.f32 %v1993_v52, %v1865_v35  ;;  %2938 = vtanh.f32 %v1485_v27  ;;  %v1351_v17 = vadd.f32 %v3650_v36, %v1350_v54  ;;  %v4564_v52 = vunpack.c.l.bf16 %v3791_v20 }
 0x15c   :  { %4562 = vst [vmem:[#allocation9_spill] sm:$0xff] %v3811_v26  ;;  %v2933_v46 = vpop.eup %2932  ;;  %v1352_v10 = vpop.f32.mrf.mxu1  ;;  %v4547_v26 = vunpack.c.h.bf16 %v3791_v20  ;;  %v4551_v25 = vunpack.c.l.bf16 %v3848_v31 }
 0x15d   :  { %v3822_v40 = vpop.f32.mrf.mxu0  ;;  %2121 = vst [vmem:[%s4543_s7 + $0x128] sm:$0xff] %v2057_v11  ;;  %v1994_v35 = vmul.f32 %v2933_v46, %v2351_v29  ;;  %v1486_v36 = vadd.f32 %v3537_v19, %v1351_v17  ;;  %v1806_v27 = vsub.f32 1.0, %v4564_v52  ;;  %v2402_v29 = vld [vmem:[%s4542_s6] sm:$0xff]   ;;  %v4567_v17 = vunpack.c.l.bf16 %v3806_v47 }
 0x15e   :  { %4563 = vst [vmem:[#allocation10_spill] sm:$0xff] %v3822_v40  ;;  %v1353_v54 = vpop.f32.mrf.mxu1  ;;  %v1807_v11 = vsub.f32 1.0, %v4547_v26 }
 0x15f   :  { %v3838_v16 = vpop.f32.mrf.mxu0  ;;  %v2058_v46 = vadd.f32 %v1994_v35, %v1866_v48  ;;  %2940 = vtanh.f32 %v1486_v36  ;;  %v1354_v22 = vadd.f32 %v3663_v53, %v1353_v54  ;;  %v1808_v48 = vsub.f32 1.0, %v4567_v17 }
 0x160   :  { %4565 = vst [vmem:[#allocation11_spill] sm:$0xff] %v3838_v16  ;;  %v2935_v37 = vpop.eup %2934  ;;  %v1355_v52 = vpop.f32.mrf.mxu1  ;;  %v2491_v16 = vunpack.c.l.bf16 %v2581_v32  ;;  %v4568_v53 = vunpack.c.h.bf16 %v3753_v28  ;;  %v2403_v54 = vunpack.c.l.bf16 %v2402_v29  ;;  %v2492_v17 = vunpack.c.h.bf16 %v2581_v32  ;;  %v3880_v32 = vld [vmem:[%s4541_s5 + $0x8] sm:$0xff]  }
 0x161   :  { %v3852_v10 = vpop.f32.mrf.mxu0  ;;  %2122 = vst [vmem:[%s4543_s7 + $0x130] sm:$0xff] %v2058_v46  ;;  %v1487_v36 = vadd.f32 %v3537_v19, %v1354_v22  ;;  %v4569_v52 = vunpack.c.l.bf16 %v3816_v30  ;;  %v4570_v35 = vunpack.c.h.bf16 %v3806_v47 }
 0x162   :  { %4566 = vst [vmem:[#allocation12_spill] sm:$0xff] %v3852_v10  ;;  %v1995_v41 = vmul.f32 %v2935_v37, %v4568_v53  ;;  %v3865_v10 = vmul.f32 %v2487_v24, %v1806_v27  ;;  %v1358_v12 = vpop.f32.mrf.mxu1  ;;  %v3875_v37 = vld [vmem:[%s4542_s6 + $0xb8] sm:$0xff]   ;;  %v3882_v27 = vmul.f32 %v2488_v13, %v1807_v11 }
 0x163   :  { %v1764_v26 = vsub.f32 1.0, %v4569_v52  ;;  %v1182_v40 = vpop.f32.mrf.mxu0  ;;  %v1809_v7 = vsub.f32 1.0, %v4570_v35  ;;  %2942 = vtanh.f32 %v1487_v36  ;;  %v1359_v28 = vadd.f32 %v1358_v12, %v3684_v33 }
 0x164   :  { %v2059_v46 = vadd.f32 %v1995_v41, %v1867_v14  ;;  %v1183_v22 = vadd.f32 %v1182_v40, %v3490_v56  ;;  %v2937_v24 = vpop.eup %2936  ;;  %v3884_v35 = vmul.f32 %v2491_v16, %v1808_v48  ;;  %v1360_v14 = vpop.f32.mrf.mxu1  ;;  %v2404_v12 = vunpack.c.h.bf16 %v2402_v29  ;;  %v3900_v16 = vld [vmem:[%s4542_s6 + $0x8] sm:$0xff]  }
 0x165   :  { %v1184_v53 = vpop.f32.mrf.mxu0  ;;  %v4571_v56 = vunpack.c.h.bf16 %v3816_v30  ;;  %v4572_v40 = vunpack.c.l.bf16 %v3764_v45  ;;  %v1488_v36 = vadd.f32 %v3537_v19, %v1359_v28  ;;  %v3895_v11 = vmul.f32 %v2403_v54, %v1764_v26 }
 0x166   :  { %2123 = vst [vmem:[%s4543_s7 + $0x138] sm:$0xff] %v2059_v46  ;;  %v1444_v13 = vadd.f32 %v3537_v19, %v1183_v22  ;;  %v1361_v29 = vpop.f32.mrf.mxu1  ;;  %v3902_v48 = vmul.f32 %v2492_v17, %v1809_v7  ;;  %v2495_v46 = vunpack.c.l.bf16 %v3875_v37  ;;  %v4548_v28 = vunpack.c.l.bf16 %v3880_v32  ;;  %v3913_v22 = vld [vmem:[%s4541_s5 + $0xc0] sm:$0xff]   ;;  %v3918_v7 = vld [vmem:[%s4541_s5 + $0x10] sm:$0xff]  }
 0x167   :  { %v1765_v33 = vsub.f32 1.0, %v4571_v56  ;;  %v1996_v41 = vmul.f32 %v2937_v24, %v4572_v40  ;;  %v1185_v52 = vpop.f32.mrf.mxu0  ;;  %v1810_v24 = vsub.f32 1.0, %v4551_v25  ;;  %2944 = vtanh.f32 %v1488_v36 }
 0x168   :  { %v1362_v26 = vadd.f32 %v1361_v29, %v3699_v9  ;;  %v1186_v54 = vadd.f32 %v1185_v52, %v3500_v60  ;;  %v2939_v17 = vpop.eup %2938  ;;  %2946 = vtanh.f32 %v1444_v13  ;;  %v2407_v9 = vunpack.c.l.bf16 %v3900_v16 }
 0x169   :  { %v2060_v14 = vadd.f32 %v1996_v41, %v1868_v44  ;;  %v3920_v53 = vmul.f32 %v2404_v12, %v1765_v33  ;;  %v1363_v44 = vpop.f32.mrf.mxu1  ;;  %v1187_v56 = vpop.f32.mrf.mxu0  ;;  %v4549_v60 = vunpack.c.h.bf16 %v3848_v31  ;;  %v4573_v40 = vunpack.c.h.bf16 %v3764_v45 }
 0x16a   :  { %v1489_v36 = vadd.f32 %v3537_v19, %v1362_v26  ;;  %v1445_v29 = vadd.f32 %v3537_v19, %v1186_v54  ;;  %v4550_v12 = vunpack.c.h.bf16 %v3880_v32  ;;  %v3932_v13 = vmul.f32 %v2495_v46, %v1810_v24  ;;  %v3944_v46 = vld [vmem:[%s4542_s6 + $0xc0] sm:$0xff]   ;;  %v3949_v24 = vld [vmem:[%s4542_s6 + $0x10] sm:$0xff]  }
 0x16b   :  { %2124 = vst [vmem:[%s4543_s7 + $0x140] sm:$0xff] %v2060_v14  ;;  %v1997_v41 = vmul.f32 %v2939_v17, %v4573_v40  ;;  %v1366_v33 = vpop.f32.mrf.mxu1  ;;  %v1190_v52 = vpop.f32.mrf.mxu0  ;;  %v1766_v44 = vsub.f32 1.0, %v4548_v28  ;;  %v4552_v56 = vunpack.c.l.bf16 %v3913_v22  ;;  %v4553_v14 = vunpack.c.l.bf16 %v3918_v7 }
 0x16c   :  { %2948 = vtanh.f32 %v1489_v36  ;;  %v1367_v26 = vadd.f32 %v3677_v23, %v1366_v33  ;;  %v1191_v54 = vadd.f32 %v3488_v55, %v1190_v52  ;;  %v2941_v17 = vpop.eup %2940  ;;  %v1811_v23 = vsub.f32 1.0, %v4549_v60 }
 0x16d   :  { %v2061_v45 = vadd.f32 %v1997_v41, %v3834_v18  ;;  %2950 = vtanh.f32 %v1445_v29  ;;  %v1368_v40 = vpop.f32.mrf.mxu1  ;;  %v1192_v28 = vpop.f32.mrf.mxu0  ;;  %v2496_v18 = vunpack.c.h.bf16 %v3875_v37  ;;  %v2408_v55 = vunpack.c.h.bf16 %v3900_v16 }
 0x16e   :  { %v4574_v41 = vunpack.c.l.bf16 %v3791_v20  ;;  %v1490_v33 = vadd.f32 %v3537_v19, %v1367_v26  ;;  %v1446_v29 = vadd.f32 %v3537_v19, %v1191_v54  ;;  %v1767_v28 = vsub.f32 1.0, %v4550_v12 }
 0x16f   :  { %2125 = vst [vmem:[%s4543_s7 + $0x148] sm:$0xff] %v2061_v45  ;;  %v1369_v37 = vpop.f32.mrf.mxu1  ;;  %v1193_v52 = vpop.f32.mrf.mxu0  ;;  %v2499_v40 = vunpack.c.l.bf16 %v3944_v46  ;;  %v1812_v16 = vsub.f32 1.0, %v4552_v56  ;;  %v2411_v60 = vunpack.c.l.bf16 %v3949_v24  ;;  %v1768_v45 = vsub.f32 1.0, %v4553_v14 }
 0x170   :  { %v1998_v36 = vmul.f32 %v2941_v17, %v4574_v41  ;;  %2952 = vtanh.f32 %v1490_v33  ;;  %v1370_v26 = vadd.f32 %v3691_v43, %v1369_v37  ;;  %v1194_v54 = vadd.f32 %v3492_v57, %v1193_v52  ;;  %v3976_v41 = vld [vmem:[%s4541_s5 + $0xc8] sm:$0xff]   ;;  %v2943_v12 = vpop.eup %2942 }
 0x171   :  { %v3978_v25 = vmul.f32 %v2407_v9, %v1766_v44  ;;  %2954 = vtanh.f32 %v1446_v29  ;;  %v3980_v56 = vmul.f32 %v2496_v18, %v1811_v23  ;;  %v1371_v5 = vpop.f32.mrf.mxu1  ;;  %v1195_v14 = vpop.f32.mrf.mxu0  ;;  %v4575_v57 = vunpack.c.h.bf16 %v3791_v20  ;;  %v4009_v37 = vld [vmem:[%s4542_s6 + $0xc8] sm:$0xff]  }
 0x172   :  { %v2062_v17 = vadd.f32 %v1998_v36, %v3865_v10  ;;  %v2372_v10 = vunpack.c.h.bf16 %v3913_v22  ;;  %v1491_v36 = vadd.f32 %v3537_v19, %v1370_v26  ;;  %v1447_v33 = vadd.f32 %v3537_v19, %v1194_v54  ;;  %v3995_v5 = vld [vmem:[%s4541_s5 + $0x18] sm:$0xff]  }
 0x173   :  { %v1999_v43 = vmul.f32 %v2943_v12, %v4575_v57  ;;  %v3990_v9 = vmul.f32 %v2408_v55, %v1767_v28  ;;  %v1374_v44 = vpop.f32.mrf.mxu1  ;;  %v3997_v14 = vmul.f32 %v2499_v40, %v1812_v16  ;;  %v1198_v18 = vpop.f32.mrf.mxu0  ;;  %v3999_v23 = vmul.f32 %v2411_v60, %v1768_v45 }
 0x174   :  { %2126 = vst [vmem:[%s4543_s7 + $0x150] sm:$0xff] %v2062_v17  ;;  %v4554_v20 = vunpack.c.h.bf16 %v3918_v7  ;;  %v2375_v12 = vunpack.c.l.bf16 %v3976_v41  ;;  %2956 = vtanh.f32 %v1491_v36  ;;  %v1375_v55 = vadd.f32 %v1374_v44, %v3712_v51  ;;  %v2945_v52 = vpop.eup %2944 }
 0x175   :  { %v2063_v29 = vadd.f32 %v1999_v43, %v3882_v27  ;;  %v1199_v28 = vadd.f32 %v1198_v18, %v3504_v62  ;;  %2958 = vtanh.f32 %v1447_v33  ;;  %v1376_v60 = vpop.f32.mrf.mxu1  ;;  %v1200_v40 = vpop.f32.mrf.mxu0  ;;  %v2500_v16 = vunpack.c.h.bf16 %v3944_v46  ;;  %v4026_v46 = vld [vmem:[%s4542_s6 + $0x18] sm:$0xff]  }
 0x176   :  { %v1813_v45 = vsub.f32 1.0, %v2372_v10  ;;  %v2287_v27 = vunpack.c.l.bf16 %v3995_v5  ;;  %v2947_v17 = vpop.eup %2946  ;;  %v4576_v62 = vunpack.c.l.bf16 %v3806_v47  ;;  %v1492_v26 = vadd.f32 %v3537_v19, %v1375_v55 }
 0x177   :  { %2127 = vst [vmem:[%s4543_s7 + $0x158] sm:$0xff] %v2063_v29  ;;  %v1448_v54 = vadd.f32 %v3537_v19, %v1199_v28  ;;  %v2412_v57 = vunpack.c.h.bf16 %v3949_v24  ;;  %v4577_v43 = vunpack.c.l.bf16 %v3816_v30  ;;  %v1377_v33 = vpop.f32.mrf.mxu1  ;;  %v1201_v44 = vpop.f32.mrf.mxu0  ;;  %v1769_v18 = vsub.f32 1.0, %v4554_v20 }
 0x178   :  { %v2000_v51 = vmul.f32 %v2945_v52, %v4576_v62  ;;  %v2503_v29 = vunpack.c.l.bf16 %v4009_v37  ;;  %v1814_v19 = vsub.f32 1.0, %v2375_v12  ;;  %2960 = vtanh.f32 %v1492_v26 }
 0x179   :  { %v1956_v36 = vmul.f32 %v2947_v17, %v4577_v43  ;;  %v1378_v55 = vadd.f32 %v1377_v33, %v3727_v49  ;;  %v1202_v28 = vadd.f32 %v1201_v44, %v3508_v0  ;;  %v2949_v52 = vpop.eup %2948  ;;  %2962 = vtanh.f32 %v1448_v54  ;;  %v1379_v40 = vpop.f32.mrf.mxu1  ;;  %v4050_v0 = vld [vmem:[%s4540_s4] ss:$0 sm:$0xff] }
 0x17a   :  { %v2064_v24 = vadd.f32 %v2000_v51, %v3884_v35  ;;  %v1203_v17 = vpop.f32.mrf.mxu0  ;;  %v2415_v62 = vunpack.c.l.bf16 %v4026_v46  ;;  %v1770_v43 = vsub.f32 1.0, %v2287_v27  ;;  %v2951_v20 = vpop.eup %2950  ;;  %v4578_v49 = vunpack.c.h.bf16 %v3806_v47 }
 0x17b   :  { %v2020_v60 = vadd.f32 %v1956_v36, %v3895_v11  ;;  %v1493_v11 = vadd.f32 %v4050_v0, %v1378_v55  ;;  %v4053_v51 = vmul.f32 %v2500_v16, %v1813_v45  ;;  %v1449_v26 = vadd.f32 %v4050_v0, %v1202_v28  ;;  %v1382_v33 = vpop.f32.mrf.mxu1 }
 0x17c   :  { %2128 = vst [vmem:[%s4543_s7 + $0x160] sm:$0xff] %v2064_v24  ;;  %v2001_v35 = vmul.f32 %v2949_v52, %v4578_v49  ;;  %v4579_v54 = vunpack.c.h.bf16 %v3816_v30  ;;  %v4061_v47 = vmul.f32 %v2412_v57, %v1769_v18  ;;  %v4063_v44 = vmul.f32 %v2503_v29, %v1814_v19  ;;  %v1206_v24 = vpop.f32.mrf.mxu0  ;;  %v4072_v30 = vld [vmem:[%s4541_s5 + $0xd0] sm:$0xff]  }
 0x17d   :  { %2084 = vst [vmem:[%s4543_s7] sm:$0xff] %v2020_v60  ;;  %v2376_v52 = vunpack.c.h.bf16 %v3976_v41  ;;  %2964 = vtanh.f32 %v1493_v11  ;;  %v1383_v45 = vadd.f32 %v3706_v42, %v1382_v33  ;;  %v1207_v55 = vadd.f32 %v3502_v61, %v1206_v24  ;;  %v2953_v57 = vpop.eup %2952  ;;  %v1384_v29 = vpop.f32.mrf.mxu1 }
 0x17e   :  { %v1957_v36 = vmul.f32 %v2951_v20, %v4579_v54  ;;  %v2065_v16 = vadd.f32 %v2001_v35, %v3902_v48  ;;  %v4077_v20 = vld [vmem:[%s4541_s5 + $0x20] sm:$0xff]   ;;  %2966 = vtanh.f32 %v1449_v26  ;;  %v4080_v48 = vmul.f32 %v2415_v62, %v1770_v43  ;;  %v1208_v42 = vpop.f32.mrf.mxu0  ;;  %v2955_v19 = vpop.eup %2954  ;;  %v4102_v54 = vld [vmem:[%s4542_s6 + $0xd0] sm:$0xff]  }
 0x17f   :  { %v2288_v61 = vunpack.c.h.bf16 %v3995_v5  ;;  %v4580_v28 = vunpack.c.l.bf16 %v3848_v31  ;;  %v1494_v40 = vadd.f32 %v4050_v0, %v1383_v45  ;;  %v1450_v17 = vadd.f32 %v4050_v0, %v1207_v55  ;;  %v1385_v49 = vpop.f32.mrf.mxu1 }
 0x180   :  { %v2021_v18 = vadd.f32 %v1957_v36, %v3920_v53  ;;  %2129 = vst [vmem:[%s4543_s7 + $0x168] sm:$0xff] %v2065_v16  ;;  %v2504_v53 = vunpack.c.h.bf16 %v4009_v37  ;;  %v4581_v62 = vunpack.c.l.bf16 %v3880_v32  ;;  %v1815_v35 = vsub.f32 1.0, %v2376_v52  ;;  %v1209_v11 = vpop.f32.mrf.mxu0  ;;  %v4111_v16 = vld [vmem:[%s4542_s6 + $0x20] sm:$0xff]  }
 0x181   :  { %v2002_v60 = vmul.f32 %v2953_v57, %v4580_v28  ;;  %v2379_v26 = vunpack.c.l.bf16 %v4072_v30  ;;  %v2291_v37 = vunpack.c.l.bf16 %v4077_v20  ;;  %2968 = vtanh.f32 %v1494_v40  ;;  %v2957_v45 = vpop.eup %2956 }
 0x182   :  { %2085 = vst [vmem:[%s4543_s7 + $0x8] sm:$0xff] %v2021_v18  ;;  %v1958_v43 = vmul.f32 %v2955_v19, %v4581_v62  ;;  %v1386_v33 = vadd.f32 %v3718_v39, %v1385_v49  ;;  %v1210_v24 = vadd.f32 %v3506_v63, %v1209_v11  ;;  %2970 = vtanh.f32 %v1450_v17  ;;  %v1211_v29 = vpop.f32.mrf.mxu0  ;;  %v2959_v42 = vpop.eup %2958 }
 0x183   :  { %v2066_v36 = vadd.f32 %v2002_v60, %v3932_v13  ;;  %v2416_v57 = vunpack.c.h.bf16 %v4026_v46  ;;  %v1771_v18 = vsub.f32 1.0, %v2288_v61  ;;  %v1387_v13 = vpop.f32.mrf.mxu1  ;;  %v4582_v63 = vunpack.c.h.bf16 %v3848_v31 }
 0x184   :  { %v2022_v55 = vadd.f32 %v1958_v43, %v3978_v25  ;;  %v1495_v19 = vadd.f32 %v4050_v0, %v1386_v33  ;;  %v1451_v25 = vadd.f32 %v4050_v0, %v1210_v24  ;;  %v2507_v28 = vunpack.c.l.bf16 %v4102_v54  ;;  %v1214_v62 = vpop.f32.mrf.mxu0 }
 0x185   :  { %2130 = vst [vmem:[%s4543_s7 + $0x170] sm:$0xff] %v2066_v36  ;;  %v2003_v39 = vmul.f32 %v2957_v45, %v4582_v63  ;;  %v4583_v46 = vunpack.c.h.bf16 %v3880_v32  ;;  %v1390_v40 = vpop.f32.mrf.mxu1  ;;  %v1816_v17 = vsub.f32 1.0, %v2379_v26  ;;  %v2419_v31 = vunpack.c.l.bf16 %v4111_v16  ;;  %v2961_v33 = vpop.eup %2960 }
 0x186   :  { %2086 = vst [vmem:[%s4543_s7 + $0x10] sm:$0xff] %v2022_v55  ;;  %v1772_v43 = vsub.f32 1.0, %v2291_v37  ;;  %2972 = vtanh.f32 %v1495_v19  ;;  %v1391_v11 = vadd.f32 %v1390_v40, %v3740_v34  ;;  %v1215_v36 = vadd.f32 %v1214_v62, %v3512_v2  ;;  %v1216_v13 = vpop.f32.mrf.mxu0  ;;  %v2963_v29 = vpop.eup %2962  ;;  %v4172_v62 = vld [vmem:[%s4541_s5 + $0x28] sm:$0xff]  }
 0x187   :  { %v1959_v60 = vmul.f32 %v2959_v42, %v4583_v46  ;;  %v2067_v49 = vadd.f32 %v2003_v39, %v3980_v56  ;;  %v4139_v24 = vmul.f32 %v2504_v53, %v1815_v35  ;;  %v4141_v45 = vmul.f32 %v2416_v57, %v1771_v18  ;;  %v1392_v55 = vpop.f32.mrf.mxu1  ;;  %v4154_v53 = vld [vmem:[%s4541_s5 + $0xd8] sm:$0xff]  }
 0x188   :  { %2974 = vtanh.f32 %v1451_v25  ;;  %v4584_v56 = vunpack.c.l.bf16 %v3913_v22  ;;  %v1496_v2 = vadd.f32 %v4050_v0, %v1391_v11  ;;  %v1452_v42 = vadd.f32 %v4050_v0, %v1215_v36  ;;  %v1217_v19 = vpop.f32.mrf.mxu0 }
 0x189   :  { %v2023_v32 = vadd.f32 %v1959_v60, %v3990_v9  ;;  %2131 = vst [vmem:[%s4543_s7 + $0x178] sm:$0xff] %v2067_v49  ;;  %v2380_v9 = vunpack.c.h.bf16 %v4072_v30  ;;  %v4585_v35 = vunpack.c.l.bf16 %v3918_v7  ;;  %v4161_v18 = vmul.f32 %v2507_v28, %v1816_v17  ;;  %v1393_v39 = vpop.f32.mrf.mxu1 }
 0x18a   :  { %v2004_v34 = vmul.f32 %v2961_v33, %v4584_v56  ;;  %v4163_v63 = vmul.f32 %v2419_v31, %v1772_v43  ;;  %v2292_v25 = vunpack.c.h.bf16 %v4077_v20  ;;  %2976 = vtanh.f32 %v1496_v2  ;;  %v2965_v28 = vpop.eup %2964  ;;  %v1219_v49 = vpop.f32.mrf.mxu0 }
 0x18b   :  { %2087 = vst [vmem:[%s4543_s7 + $0x18] sm:$0xff] %v2023_v32  ;;  %v1960_v57 = vmul.f32 %v2963_v29, %v4585_v35  ;;  %v1394_v60 = vadd.f32 %v1393_v39, %v3755_v58  ;;  %v1218_v40 = vadd.f32 %v1217_v19, %v3516_v4  ;;  %2978 = vtanh.f32 %v1452_v42  ;;  %v1395_v43 = vpop.f32.mrf.mxu1  ;;  %v2967_v11 = vpop.eup %2966 }
 0x18c   :  { %v2068_v46 = vadd.f32 %v2004_v34, %v3997_v14  ;;  %v2508_v31 = vunpack.c.h.bf16 %v4102_v54  ;;  %v2383_v14 = vunpack.c.l.bf16 %v4154_v53  ;;  %v2005_v4 = vmul.f32 %v2965_v28, %v2372_v10  ;;  %v4189_v54 = vld [vmem:[%s4542_s6 + $0xd8] sm:$0xff]   ;;  %v1222_v13 = vpop.f32.mrf.mxu0 }
 0x18d   :  { %v2024_v17 = vadd.f32 %v1960_v57, %v3999_v23  ;;  %v1497_v58 = vadd.f32 %v4050_v0, %v1394_v60  ;;  %v1817_v23 = vsub.f32 1.0, %v2380_v9  ;;  %v1453_v36 = vadd.f32 %v4050_v0, %v1218_v40  ;;  %v1398_v55 = vpop.f32.mrf.mxu1 }
 0x18e   :  { %2132 = vst [vmem:[%s4543_s7 + $0x180] sm:$0xff] %v2068_v46  ;;  %v4586_v33 = vunpack.c.h.bf16 %v3918_v7  ;;  %v2420_v10 = vunpack.c.h.bf16 %v4111_v16  ;;  %v1773_v32 = vsub.f32 1.0, %v2292_v25  ;;  %v2295_v29 = vunpack.c.l.bf16 %v4172_v62  ;;  %v4206_v7 = vld [vmem:[%s4542_s6 + $0x28] sm:$0xff]   ;;  %v2969_v16 = vpop.eup %2968  ;;  %v1224_v39 = vpop.f32.mrf.mxu0 }
 0x18f   :  { %2088 = vst [vmem:[%s4543_s7 + $0x20] sm:$0xff] %v2024_v17  ;;  %v2069_v56 = vadd.f32 %v2005_v4, %v4053_v51  ;;  %2980 = vtanh.f32 %v1497_v58  ;;  %v1399_v34 = vadd.f32 %v3734_v59, %v1398_v55  ;;  %v1223_v2 = vadd.f32 %v3510_v1, %v1222_v13  ;;  %v1400_v51 = vpop.f32.mrf.mxu1  ;;  %v2971_v19 = vpop.eup %2970 }
 0x190   :  { %v1961_v22 = vmul.f32 %v2967_v11, %v4586_v33  ;;  %2982 = vtanh.f32 %v1453_v36  ;;  %v2511_v35 = vunpack.c.l.bf16 %v4189_v54  ;;  %v1818_v57 = vsub.f32 1.0, %v2383_v14 }
 0x191   :  { %2133 = vst [vmem:[%s4543_s7 + $0x188] sm:$0xff] %v2069_v56  ;;  %v2006_v1 = vmul.f32 %v2969_v16, %v2375_v12  ;;  %v4217_v59 = vmul.f32 %v2508_v31, %v1817_v23  ;;  %v1454_v46 = vadd.f32 %v4050_v0, %v1223_v2  ;;  %v1962_v60 = vmul.f32 %v2971_v19, %v2287_v27  ;;  %v1401_v17 = vpop.f32.mrf.mxu1  ;;  %v1225_v31 = vpop.f32.mrf.mxu0  ;;  %v4266_v16 = vld [vmem:[%s4542_s6 + $0xe0] sm:$0xff]  }
 0x192   :  { %v2025_v42 = vadd.f32 %v1961_v22, %v4061_v47  ;;  %v1498_v47 = vadd.f32 %v4050_v0, %v1399_v34  ;;  %v2423_v40 = vunpack.c.l.bf16 %v4206_v7  ;;  %v1774_v28 = vsub.f32 1.0, %v2295_v29 }
 0x193   :  { %v2384_v12 = vunpack.c.h.bf16 %v4154_v53  ;;  %v2070_v43 = vadd.f32 %v2006_v1, %v4063_v44  ;;  %v1402_v49 = vadd.f32 %v3747_v38, %v1401_v17  ;;  %v1226_v11 = vadd.f32 %v3514_v3, %v1225_v31  ;;  %v2973_v4 = vpop.eup %2972  ;;  %v1403_v36 = vpop.f32.mrf.mxu1  ;;  %v4299_v17 = vld [vmem:[%s4542_s6 + $0x30] sm:$0xff]   ;;  %v2566_v53 = vld [vmem:[%s4542_s6 + $0x38] sm:$0xff]  }
 0x194   :  { %2089 = vst [vmem:[%s4543_s7 + $0x28] sm:$0xff] %v2025_v42  ;;  %2984 = vtanh.f32 %v1498_v47  ;;  %v2026_v58 = vadd.f32 %v1962_v60, %v4080_v48  ;;  %v4234_v27 = vmul.f32 %v2420_v10, %v1773_v32  ;;  %v4236_v23 = vmul.f32 %v2511_v35, %v1818_v57  ;;  %v1227_v33 = vpop.f32.mrf.mxu0  ;;  %v4249_v10 = vld [vmem:[%s4541_s5 + $0xe0] sm:$0xff]  }
 0x195   :  { %2986 = vtanh.f32 %v1454_v46  ;;  %v2975_v22 = vpop.eup %2974  ;;  %2134 = vst [vmem:[%s4543_s7 + $0x190] sm:$0xff] %v2070_v43  ;;  %v2007_v38 = vmul.f32 %v2973_v4, %v2376_v52  ;;  %v1499_v3 = vadd.f32 %v4050_v0, %v1402_v49  ;;  %v1455_v44 = vadd.f32 %v4050_v0, %v1226_v11  ;;  %v1406_v13 = vpop.f32.mrf.mxu1 }
 0x196   :  { %v2296_v48 = vunpack.c.h.bf16 %v4172_v62  ;;  %2090 = vst [vmem:[%s4543_s7 + $0x30] sm:$0xff] %v2026_v58  ;;  %v1963_v32 = vmul.f32 %v2975_v22, %v2288_v61  ;;  %v4256_v41 = vmul.f32 %v2423_v40, %v1774_v28  ;;  %v2512_v52 = vunpack.c.h.bf16 %v4189_v54  ;;  %v1230_v56 = vpop.f32.mrf.mxu0  ;;  %v4272_v61 = vld [vmem:[%s4541_s5 + $0x30] sm:$0xff]  }
 0x197   :  { %v1819_v55 = vsub.f32 1.0, %v2384_v12  ;;  %v2071_v34 = vadd.f32 %v2007_v38, %v4139_v24  ;;  %2988 = vtanh.f32 %v1499_v3  ;;  %v1407_v2 = vadd.f32 %v1406_v13, %v3774_v50  ;;  %v2977_v54 = vpop.eup %2976  ;;  %v1408_v35 = vpop.f32.mrf.mxu1 }
 0x198   :  { %v1231_v5 = vadd.f32 %v1230_v56, %v3520_v6  ;;  %v2027_v42 = vadd.f32 %v1963_v32, %v4141_v45  ;;  %v2424_v24 = vunpack.c.h.bf16 %v4206_v7  ;;  %2990 = vtanh.f32 %v1455_v44  ;;  %v1232_v57 = vpop.f32.mrf.mxu0  ;;  %v2979_v51 = vpop.eup %2978 }
 0x199   :  { %v2387_v50 = vunpack.c.l.bf16 %v4249_v10  ;;  %2135 = vst [vmem:[%s4543_s7 + $0x198] sm:$0xff] %v2071_v34  ;;  %v2008_v6 = vmul.f32 %v2977_v54, %v2379_v26  ;;  %v1775_v39 = vsub.f32 1.0, %v2296_v48  ;;  %v1500_v45 = vadd.f32 %v4050_v0, %v1407_v2  ;;  %v1409_v60 = vpop.f32.mrf.mxu1  ;;  %v4342_v54 = vld [vmem:[%s4541_s5 + $0xe8] sm:$0xff]  }
 0x19a   :  { %v1456_v19 = vadd.f32 %v4050_v0, %v1231_v5  ;;  %2091 = vst [vmem:[%s4543_s7 + $0x38] sm:$0xff] %v2027_v42  ;;  %v1964_v1 = vmul.f32 %v2979_v51, %v2291_v37  ;;  %v4291_v47 = vmul.f32 %v2512_v52, %v1819_v55  ;;  %v2515_v46 = vunpack.c.l.bf16 %v4266_v16  ;;  %v1233_v40 = vpop.f32.mrf.mxu0  ;;  %v4587_v55 = vld [vmem:[#allocation2_spill] sm:$0xff] }
 0x19b   :  { %v2299_v26 = vunpack.c.l.bf16 %v4272_v61  ;;  %v2072_v28 = vadd.f32 %v2008_v6, %v4161_v18  ;;  %2992 = vtanh.f32 %v1500_v45  ;;  %v1410_v31 = vadd.f32 %v1409_v60, %v3795_v21  ;;  %v1411_v18 = vpop.f32.mrf.mxu1  ;;  %v4361_v60 = vld [vmem:[%s4541_s5 + $0x38] sm:$0xff]  }
 0x19c   :  { %v1234_v37 = vadd.f32 %v1233_v40, %v3524_v8  ;;  %v2981_v43 = vpop.eup %2980  ;;  %v2028_v49 = vadd.f32 %v1964_v1, %v4163_v63  ;;  %v1820_v11 = vsub.f32 1.0, %v2387_v50  ;;  %2994 = vtanh.f32 %v1456_v19  ;;  %v1235_v58 = vpop.f32.mrf.mxu0  ;;  %v4356_v1 = vld [vmem:[%s4542_s6 + $0xe8] sm:$0xff]  }
 0x19d   :  { %v2388_v4 = vunpack.c.h.bf16 %v4249_v10  ;;  %v2983_v36 = vpop.eup %2982  ;;  %2136 = vst [vmem:[%s4543_s7 + $0x1a0] sm:$0xff] %v2072_v28  ;;  %v2009_v21 = vmul.f32 %v2981_v43, %v2380_v9  ;;  %v1501_v8 = vadd.f32 %v4050_v0, %v1410_v31  ;;  %v2300_v33 = vunpack.c.h.bf16 %v4272_v61  ;;  %v1414_v9 = vpop.f32.mrf.mxu1 }
 0x19e   :  { %v1457_v63 = vadd.f32 %v4050_v0, %v1234_v37  ;;  %2092 = vst [vmem:[%s4543_s7 + $0x40] sm:$0xff] %v2028_v49  ;;  %v1965_v22 = vmul.f32 %v2983_v36, %v2292_v25  ;;  %v2427_v38 = vunpack.c.l.bf16 %v4299_v17  ;;  %v1776_v3 = vsub.f32 1.0, %v2299_v26  ;;  %v1238_v44 = vpop.f32.mrf.mxu0 }
 0x19f   :  { %v2516_v30 = vunpack.c.h.bf16 %v4266_v16  ;;  %v2073_v32 = vadd.f32 %v2009_v21, %v4217_v59  ;;  %2996 = vtanh.f32 %v1501_v8  ;;  %v1415_v52 = vadd.f32 %v3766_v15, %v1414_v9  ;;  %v1416_v2 = vpop.f32.mrf.mxu1 }
 0x1a0   :  { %v1239_v13 = vadd.f32 %v4587_v55, %v1238_v44  ;;  %v2029_v20 = vadd.f32 %v1965_v22, %v4234_v27  ;;  %v1821_v25 = vsub.f32 1.0, %v2388_v4  ;;  %v2428_v34 = vunpack.c.h.bf16 %v4299_v17  ;;  %v1240_v16 = vpop.f32.mrf.mxu0  ;;  %v4590_v22 = vld [vmem:[#allocation10_spill] sm:$0xff] }
 0x1a1   :  { %v2985_v56 = vpop.eup %2984  ;;  %2998 = vtanh.f32 %v1457_v63  ;;  %2137 = vst [vmem:[%s4543_s7 + $0x1a8] sm:$0xff] %v2073_v32  ;;  %v1777_v59 = vsub.f32 1.0, %v2300_v33  ;;  %v1502_v27 = vadd.f32 %v4050_v0, %v1415_v52  ;;  %v1884_v57 = vmul.f32 %v2515_v46, %v1820_v11  ;;  %v1417_v6 = vpop.f32.mrf.mxu1 }
 0x1a2   :  { %v2987_v5 = vpop.eup %2986  ;;  %v2010_v15 = vmul.f32 %v2985_v56, %v2383_v14  ;;  %v1458_v42 = vadd.f32 %v4050_v0, %v1239_v13  ;;  %2093 = vst [vmem:[%s4543_s7 + $0x48] sm:$0xff] %v2029_v20  ;;  %v1839_v14 = vmul.f32 %v2424_v24, %v1775_v39  ;;  %v1840_v51 = vmul.f32 %v2427_v38, %v1776_v3  ;;  %v1241_v45 = vpop.f32.mrf.mxu0  ;;  %v4589_v24 = vld [vmem:[#allocation3_spill] sm:$0xff]  ;;  %v4591_v3 = vld [vmem:[#allocation5_spill] sm:$0xff] }
 0x1a3   :  { %v1966_v35 = vmul.f32 %v2987_v5, %v2295_v29  ;;  %3000 = vtanh.f32 %v1502_v27  ;;  %v4588_v29 = vld [vmem:[#allocation8_spill] sm:$0xff]  ;;  %v1242_v39 = vadd.f32 %v4589_v24, %v1241_v45  ;;  %v4366_v28 = vmul.f32 %v2516_v30, %v1821_v25  ;;  %v1419_v17 = vpop.f32.mrf.mxu1 }
 0x1a4   :  { %v2074_v19 = vadd.f32 %v2010_v15, %v4236_v23  ;;  %v1418_v7 = vadd.f32 %v4588_v29, %v1417_v6  ;;  %v2989_v46 = vpop.eup %2988  ;;  %v2391_v23 = vunpack.c.l.bf16 %v4342_v54  ;;  %3002 = vtanh.f32 %v1458_v42  ;;  %v1243_v31 = vpop.f32.mrf.mxu0  ;;  %v4592_v27 = vld [vmem:[#allocation12_spill] sm:$0xff] }
 0x1a5   :  { %v2030_v40 = vadd.f32 %v1966_v35, %v4256_v41  ;;  %v2991_v37 = vpop.eup %2990  ;;  %v2011_v43 = vmul.f32 %v2989_v46, %v2384_v12  ;;  %v4374_v49 = vmul.f32 %v2428_v34, %v1777_v59  ;;  %v1459_v41 = vadd.f32 %v4050_v0, %v1242_v39  ;;  %v1422_v21 = vpop.f32.mrf.mxu1  ;;  %v4415_v59 = vld [vmem:[%s4541_s5 + $0xf0] sm:$0xff]  }
 0x1a6   :  { %2138 = vst [vmem:[%s4543_s7 + $0x1b0] sm:$0xff] %v2074_v19  ;;  %v1503_v11 = vadd.f32 %v4050_v0, %v1418_v7  ;;  %v1967_v18 = vmul.f32 %v2991_v37, %v2296_v48  ;;  %v2519_v58 = vunpack.c.l.bf16 %v4356_v1  ;;  %v2303_v36 = vunpack.c.l.bf16 %v4361_v60  ;;  %v1246_v8 = vpop.f32.mrf.mxu0  ;;  %v4442_v31 = vld [vmem:[%s4542_s6 + $0xf0] sm:$0xff]  }
 0x1a7   :  { %2094 = vst [vmem:[%s4543_s7 + $0x50] sm:$0xff] %v2030_v40  ;;  %v2392_v12 = vunpack.c.h.bf16 %v4342_v54  ;;  %v2075_v63 = vadd.f32 %v2011_v43, %v4291_v47  ;;  %v1423_v38 = vadd.f32 %v1422_v21, %v4590_v22  ;;  %v1247_v62 = vadd.f32 %v1246_v8, %v4591_v3  ;;  %v1424_v32 = vpop.f32.mrf.mxu1 }
 0x1a8   :  { %3004 = vtanh.f32 %v1503_v11  ;;  %v2993_v48 = vpop.eup %2992  ;;  %v2031_v30 = vadd.f32 %v1967_v18, %v1839_v14  ;;  %v1822_v9 = vsub.f32 1.0, %v2391_v23  ;;  %v2304_v44 = vunpack.c.h.bf16 %v4361_v60  ;;  %v1248_v52 = vpop.f32.mrf.mxu0 }
 0x1a9   :  { %3006 = vtanh.f32 %v1459_v41  ;;  %v2995_v55 = vpop.eup %2994  ;;  %2139 = vst [vmem:[%s4543_s7 + $0x1b8] sm:$0xff] %v2075_v63  ;;  %v2012_v47 = vmul.f32 %v2993_v48, %v2387_v50  ;;  %v2431_v13 = vunpack.c.l.bf16 %v2566_v53  ;;  %v1504_v56 = vadd.f32 %v4050_v0, %v1423_v38  ;;  %v1425_v16 = vpop.f32.mrf.mxu1  ;;  %v4594_v41 = vld [vmem:[#allocation9_spill] sm:$0xff] }
 0x1aa   :  { %v1460_v20 = vadd.f32 %v4050_v0, %v1247_v62  ;;  %2095 = vst [vmem:[%s4543_s7 + $0x58] sm:$0xff] %v2031_v30  ;;  %v1968_v25 = vmul.f32 %v2995_v55, %v2299_v26  ;;  %v1778_v34 = vsub.f32 1.0, %v2303_v36  ;;  %v2520_v2 = vunpack.c.h.bf16 %v4356_v1  ;;  %v1249_v5 = vpop.f32.mrf.mxu0  ;;  %v4593_v26 = vld [vmem:[#allocation7_spill] sm:$0xff] }
 0x1ab   :  { %v1823_v50 = vsub.f32 1.0, %v2392_v12  ;;  %v2076_v15 = vadd.f32 %v2012_v47, %v1884_v57  ;;  %3008 = vtanh.f32 %v1504_v56  ;;  %v1426_v42 = vadd.f32 %v1425_v16, %v4592_v27  ;;  %v1427_v1 = vpop.f32.mrf.mxu1 }
 0x1ac   :  { %v1250_v35 = vadd.f32 %v1249_v5, %v4593_v26  ;;  %v2997_v14 = vpop.eup %2996  ;;  %v2032_v6 = vadd.f32 %v1968_v25, %v1840_v51  ;;  %v2432_v45 = vunpack.c.h.bf16 %v2566_v53  ;;  %v1779_v19 = vsub.f32 1.0, %v2304_v44  ;;  %v1251_v29 = vpop.f32.mrf.mxu0  ;;  %v4429_v51 = vld [vmem:[%s4541_s5 + $0x40] sm:$0xff]  }
 0x1ad   :  { %3010 = vtanh.f32 %v1460_v20  ;;  %2140 = vst [vmem:[%s4543_s7 + $0x1c0] sm:$0xff] %v2076_v15  ;;  %v2013_v7 = vmul.f32 %v2997_v14, %v2388_v4  ;;  %v1886_v24 = vmul.f32 %v2519_v58, %v1822_v9  ;;  %v1505_v39 = vadd.f32 %v4050_v0, %v1426_v42  ;;  %v1430_v37 = vpop.f32.mrf.mxu1  ;;  %v4595_v58 = vld [vmem:[#allocation4_spill] sm:$0xff]  ;;  %v4597_v20 = vld [vmem:[#allocation6_spill] sm:$0xff] }
 0x1ae   :  { %v2999_v57 = vpop.eup %2998  ;;  %v1461_v46 = vadd.f32 %v4050_v0, %v1250_v35  ;;  %2096 = vst [vmem:[%s4543_s7 + $0x60] sm:$0xff] %v2032_v6  ;;  %v1842_v17 = vmul.f32 %v2431_v13, %v1778_v34  ;;  %v1887_v10 = vmul.f32 %v2520_v2, %v1823_v50  ;;  %v2395_v4 = vunpack.c.l.bf16 %v4415_v59  ;;  %v1254_v43 = vpop.f32.mrf.mxu0  ;;  %v4596_v13 = vld [vmem:[#allocation11_spill] sm:$0xff] }
 0x1af   :  { %v1969_v40 = vmul.f32 %v2999_v57, %v2300_v33  ;;  %v2077_v11 = vadd.f32 %v2013_v7, %v4366_v28  ;;  %3012 = vtanh.f32 %v1505_v39  ;;  %v1431_v18 = vadd.f32 %v4594_v41, %v1430_v37  ;;  %v1432_v63 = vpop.f32.mrf.mxu1  ;;  %v4485_v35 = vld [vmem:[%s4541_s5 + $0x48] sm:$0xff]  }
 0x1b0   :  { %v1255_v53 = vadd.f32 %v4595_v58, %v1254_v43  ;;  %v3001_v61 = vpop.eup %3000  ;;  %v1843_v21 = vmul.f32 %v2432_v45, %v1779_v19  ;;  %v2307_v8 = vunpack.c.l.bf16 %v4429_v51  ;;  %3014 = vtanh.f32 %v1461_v46  ;;  %v1256_v22 = vpop.f32.mrf.mxu0  ;;  %v2568_v46 = vld [vmem:[%s4542_s6 + $0x48] sm:$0xff]  }
 0x1b1   :  { %v2033_v33 = vadd.f32 %v1969_v40, %v4374_v49  ;;  %v3003_v38 = vpop.eup %3002  ;;  %2141 = vst [vmem:[%s4543_s7 + $0x1c8] sm:$0xff] %v2077_v11  ;;  %v2014_v28 = vmul.f32 %v3001_v61, %v2391_v23  ;;  %v2523_v3 = vunpack.c.l.bf16 %v4442_v31  ;;  %v2567_v49 = vld [vmem:[%s4542_s6 + $0x40] sm:$0xff]   ;;  %v1506_v62 = vadd.f32 %v4050_v0, %v1431_v18  ;;  %v1433_v52 = vpop.f32.mrf.mxu1 }
 0x1b2   :  { %v1462_v48 = vadd.f32 %v4050_v0, %v1255_v53  ;;  %v1970_v30 = vmul.f32 %v3003_v38, %v2303_v36  ;;  %v1824_v23 = vsub.f32 1.0, %v2395_v4  ;;  %v2396_v9 = vunpack.c.h.bf16 %v4415_v59  ;;  %v1257_v55 = vpop.f32.mrf.mxu0  ;;  %v4474_v36 = vld [vmem:[%s4541_s5 + $0xf8] sm:$0xff]  }
 0x1b3   :  { %2097 = vst [vmem:[%s4543_s7 + $0x68] sm:$0xff] %v2033_v33  ;;  %v2308_v32 = vunpack.c.h.bf16 %v4429_v51  ;;  %v2078_v47 = vadd.f32 %v2014_v28, %v1886_v24  ;;  %3016 = vtanh.f32 %v1506_v62  ;;  %v1434_v56 = vadd.f32 %v4596_v13, %v1433_v52  ;;  %v1435_v5 = vpop.f32.mrf.mxu1 }
 0x1b4   :  { %v1258_v25 = vadd.f32 %v4597_v20, %v1257_v55  ;;  %v2034_v2 = vadd.f32 %v1970_v30, %v1842_v17  ;;  %v2435_v50 = vunpack.c.l.bf16 %v2567_v49  ;;  %v1780_v16 = vsub.f32 1.0, %v2307_v8  ;;  %v1259_v15 = vpop.f32.mrf.mxu0 }
 0x1b5   :  { %v3005_v34 = vpop.eup %3004  ;;  %3018 = vtanh.f32 %v1462_v48  ;;  %2142 = vst [vmem:[%s4543_s7 + $0x1d0] sm:$0xff] %v2078_v47  ;;  %v2524_v26 = vunpack.c.h.bf16 %v4442_v31  ;;  %v1507_v14 = vadd.f32 %v4050_v0, %v1434_v56  ;;  %v1825_v54 = vsub.f32 1.0, %v2396_v9 }
 0x1b6   :  { %v3007_v27 = vpop.eup %3006  ;;  %v2015_v42 = vmul.f32 %v3005_v34, %v2392_v12  ;;  %v1463_v6 = vadd.f32 %v4050_v0, %v1258_v25  ;;  %2098 = vst [vmem:[%s4543_s7 + $0x70] sm:$0xff] %v2034_v2  ;;  %v2436_v12 = vunpack.c.h.bf16 %v2567_v49  ;;  %v1781_v19 = vsub.f32 1.0, %v2308_v32  ;;  %v2590_v0 = vld [vmem:[%s4542_s6 + $0xf8] sm:$0xff]  }
 0x1b7   :  { %v1971_v45 = vmul.f32 %v3007_v27, %v2304_v44  ;;  %v1888_v29 = vmul.f32 %v2523_v3, %v1824_v23  ;;  %v2399_v57 = vunpack.c.l.bf16 %v4474_v36  ;;  %3020 = vtanh.f32 %v1507_v14 }
 0x1b8   :  { %v2079_v1 = vadd.f32 %v2015_v42, %v1887_v10  ;;  %v3009_v7 = vpop.eup %3008  ;;  %v1844_v51 = vmul.f32 %v2435_v50, %v1780_v16  ;;  %v2311_v39 = vunpack.c.l.bf16 %v4485_v35  ;;  %3022 = vtanh.f32 %v1463_v6 }
 0x1b9   :  { %v2035_v24 = vadd.f32 %v1971_v45, %v1843_v21  ;;  %v2016_v44 = vmul.f32 %v3009_v7, %v2395_v4  ;;  %v1889_v17 = vmul.f32 %v2524_v26, %v1825_v54  ;;  %v1845_v10 = vmul.f32 %v2436_v12, %v1781_v19 }
 0x1ba   :  { %v3011_v60 = vpop.eup %3010  ;;  %2143 = vst [vmem:[%s4543_s7 + $0x1d8] sm:$0xff] %v2079_v1  ;;  %v2527_v37 = vunpack.c.l.bf16 %v2590_v0  ;;  %v1826_v43 = vsub.f32 1.0, %v2399_v57  ;;  %v2400_v11 = vunpack.c.h.bf16 %v4474_v36  ;;  %v2439_v59 = vunpack.c.l.bf16 %v2568_v46 }
 0x1bb   :  { %2099 = vst [vmem:[%s4543_s7 + $0x78] sm:$0xff] %v2035_v24  ;;  %v1972_v40 = vmul.f32 %v3011_v60, %v2307_v8  ;;  %v2080_v31 = vadd.f32 %v2016_v44, %v1888_v29  ;;  %v1782_v4 = vsub.f32 1.0, %v2311_v39  ;;  %v2312_v58 = vunpack.c.h.bf16 %v4485_v35 }
 0x1bc   :  { %v3013_v41 = vpop.eup %3012  ;;  %v1890_v8 = vmul.f32 %v2527_v37, %v1826_v43  ;;  %v2528_v63 = vunpack.c.h.bf16 %v2590_v0  ;;  %v1827_v22 = vsub.f32 1.0, %v2400_v11  ;;  %v2440_v49 = vunpack.c.h.bf16 %v2568_v46 }
 0x1bd   :  { %v2036_v18 = vadd.f32 %v1972_v40, %v1844_v51  ;;  %v3015_v53 = vpop.eup %3014  ;;  %2144 = vst [vmem:[%s4543_s7 + $0x1e0] sm:$0xff] %v2080_v31  ;;  %v2017_v61 = vmul.f32 %v3013_v41, %v2396_v9  ;;  %v1846_v3 = vmul.f32 %v2439_v59, %v1782_v4  ;;  %v1783_v62 = vsub.f32 1.0, %v2312_v58 }
 0x1be   :  { %v1973_v33 = vmul.f32 %v3015_v53, %v2308_v32  ;;  %v1891_v32 = vmul.f32 %v2528_v63, %v1827_v22 }
 0x1bf   :  { %2100 = vst [vmem:[%s4543_s7 + $0x80] sm:$0xff] %v2036_v18  ;;  %v2081_v21 = vadd.f32 %v2017_v61, %v1889_v17  ;;  %v1847_v47 = vmul.f32 %v2440_v49, %v1783_v62 }
 0x1c0   :  { %v3017_v38 = vpop.eup %3016  ;;  %v2037_v28 = vadd.f32 %v1973_v33, %v1845_v10 }
 0x1c1   :  { %2145 = vst [vmem:[%s4543_s7 + $0x1e8] sm:$0xff] %v2081_v21  ;;  %v2018_v30 = vmul.f32 %v3017_v38, %v2399_v57 }
 0x1c2   :  { %v3019_v48 = vpop.eup %3018  ;;  %2101 = vst [vmem:[%s4543_s7 + $0x88] sm:$0xff] %v2037_v28 }
 0x1c3   :  { %v1974_v23 = vmul.f32 %v3019_v48, %v2311_v39  ;;  %v2082_v9 = vadd.f32 %v2018_v30, %v1890_v8 }
 0x1c4   :  { %v3021_v52 = vpop.eup %3020 }
 0x1c5   :  { %v2038_v55 = vadd.f32 %v1974_v23, %v1846_v3  ;;  %v3023_v13 = vpop.eup %3022  ;;  %2146 = vst [vmem:[%s4543_s7 + $0x1f0] sm:$0xff] %v2082_v9  ;;  %v2019_v56 = vmul.f32 %v3021_v52, %v2400_v11 }
 0x1c6   :  { %v1975_v20 = vmul.f32 %v3023_v13, %v2312_v58 }
 0x1c7   :  { %2102 = vst [vmem:[%s4543_s7 + $0x90] sm:$0xff] %v2038_v55  ;;  %v2083_v25 = vadd.f32 %v2019_v56, %v1891_v32 }
 0x1c8   :  { %v2039_v34 = vadd.f32 %v1975_v20, %v1847_v47 }
 0x1c9   :  { %2147 = vst [vmem:[%s4543_s7 + $0x1f8] sm:$0xff] %v2083_v25 }
 0x1ca   :  { %2103 = vst [vmem:[%s4543_s7 + $0x98] sm:$0xff] %v2039_v34 }

// kernel: rnncnn_forward.8
= control target key start
LH: loop header
LB: loop body
LE: loop exit
PB: predicated region body
PF: predicated region fallthrough
CT: control target
= control target key end

     0   :  { %v1394_v0 = vmov 0.0   ;;  %vm1395_vm0 = vmmov 0   ;;  %s1719_s3 = inlined_call_operand.vmem [shape: bf16[128,128], index: 3, kind: input, shape index: {}]   ;;  %s1720_s2 = inlined_call_operand.vmem [shape: bf16[256,128], index: 2, kind: input, shape index: {}]   ;;  %s1721_s1 = inlined_call_operand.vmem [shape: bf16[208,128], index: 1, kind: input, shape index: {}]   ;;  %s1722_s0 = inlined_call_operand.vmem [shape: bf16[208,256], index: 0, kind: input, shape index: {}]   ;;  %s1723_s4 = inlined_call_operand.vmem [shape: f32[1,128], index: 4, kind: input, shape index: {}]   ;;  %s1724_s5 = inlined_call_operand.vmem [shape: bf16[208,128], index: 5, kind: output, shape index: {}]  }
   0x1   :  { %1248 = vmatprep.subr.bf16.mxu0 %v1394_v0  ;;  %v1318_v1 = vld [vmem:[%s1719_s3 + $0x38] sm:$0xff]   ;;  %1264 = vmatprep.mubr.msk.bf16.mxu0 %vm1395_vm0, %v1394_v0  ;;  %v1321_v4 = vld [vmem:[%s1719_s3 + $0x30] sm:$0xff]   ;;  %v1324_v7 = vld [vmem:[%s1719_s3 + $0x28] sm:$0xff]  }
   0x2   :  { %v1319_v2 = vld [vmem:[%s1720_s2 + $0x78] sm:$0xff]   ;;  %1249 = vmatpush3.bf16.msra.mxu0 %v1318_v1  ;;  %v1322_v5 = vld [vmem:[%s1720_s2 + $0x70] sm:$0xff]   ;;  %v1325_v8 = vld [vmem:[%s1720_s2 + $0x68] sm:$0xff]  }
   0x3   :  { %v1320_v3 = vld [vmem:[%s1720_s2 + $0x38] sm:$0xff]   ;;  %1154 = vmatprep.subr.bf16.mxu1 %v1319_v2  ;;  %1250 = vmatprep.subr.bf16.mxu0 %v1394_v0  ;;  %v1323_v6 = vld [vmem:[%s1720_s2 + $0x30] sm:$0xff]   ;;  %v1326_v9 = vld [vmem:[%s1720_s2 + $0x28] sm:$0xff]  }
   0x4   :  { %1155 = vmatpush3.bf16.msra.mxu1 %v1320_v3  ;;  %v1327_v10 = vld [vmem:[%s1719_s3 + $0x20] sm:$0xff]   ;;  %v1331_v13 = vld [vmem:[%s1720_s2 + $0x58] sm:$0xff]   ;;  %v1334_v16 = vld [vmem:[%s1720_s2 + $0x50] sm:$0xff]  }
   0x5   :  { %1156 = vmatprep.subr.bf16.mxu1 %v1322_v5  ;;  %v1328_v11 = vld [vmem:[%s1720_s2 + $0x60] sm:$0xff]   ;;  %v1330_v14 = vld [vmem:[%s1719_s3 + $0x18] sm:$0xff]   ;;  %v1333_v17 = vld [vmem:[%s1719_s3 + $0x10] sm:$0xff]  }
   0x6   :  { %1251 = vmatpush3.bf16.msra.mxu0 %v1321_v4  ;;  %v1329_v12 = vld [vmem:[%s1720_s2 + $0x20] sm:$0xff]   ;;  %v1332_v15 = vld [vmem:[%s1720_s2 + $0x18] sm:$0xff]   ;;  %v1335_v18 = vld [vmem:[%s1720_s2 + $0x10] sm:$0xff]  }
   0x7   :  { %1252 = vmatprep.subr.bf16.mxu0 %v1394_v0  ;;  %v1337_v19 = vld [vmem:[%s1720_s2 + $0x48] sm:$0xff]   ;;  %v1339_v22 = vld [vmem:[%s1719_s3] sm:$0xff]   ;;  %v1347_v28 = vld [vmem:[%s1722_s0 + $0x14] ss:$8 sps:$4 sm:$0xff]  }
   0x8   :  { %1157 = vmatpush3.bf16.msra.mxu1 %v1323_v6  ;;  %v1336_v20 = vld [vmem:[%s1719_s3 + $0x8] sm:$0xff]   ;;  %v1340_v23 = vld [vmem:[%s1720_s2 + $0x40] sm:$0xff]   ;;  %v1349_v30 = vld [vmem:[%s1722_s0 + $0x10] ss:$8 sps:$4 sm:$0xff]  }
   0x9   :  { %1158 = vmatprep.subr.bf16.mxu1 %v1325_v8  ;;  %v1338_v21 = vld [vmem:[%s1720_s2 + $0x8] sm:$0xff]   ;;  %v1341_v25 = vld [vmem:[%s1720_s2] sm:$0xff]   ;;  %v1350_v32 = vld [vmem:[%s1721_s1 + $0x10] sm:$0xff]  }
   0xa   :  { %1253 = vmatpush3.bf16.msra.mxu0 %v1324_v7  ;;  %v1345_v24 = vld [vmem:[%s1722_s0 + $0x4] ss:$8 sps:$4 sm:$0xff]   ;;  %v1343_v27 = vld [vmem:[%s1722_s0] ss:$8 sps:$4 sm:$0xff]   ;;  %v1355_v34 = vld [vmem:[%s1722_s0 + $0x34] ss:$8 sps:$4 sm:$0xff]  }
   0xb   :  { %1254 = vmatprep.subr.bf16.mxu0 %v1394_v0  ;;  %642 = vmatprep.mubr.bf16.mxu1 %v1345_v24  ;;  %v1342_v26 = vld [vmem:[%s1721_s1] sm:$0xff]   ;;  %v1346_v29 = vld [vmem:[%s1721_s1 + $0x8] sm:$0xff]   ;;  %v1354_v35 = vld [vmem:[%s1721_s1 + $0x18] sm:$0xff]  }
   0xc   :  { %1159 = vmatpush3.bf16.msra.mxu1 %v1326_v9  ;;  %v1351_v31 = vld [vmem:[%s1722_s0 + $0x24] ss:$8 sps:$4 sm:$0xff]   ;;  %v1353_v33 = vld [vmem:[%s1722_s0 + $0x20] ss:$8 sps:$4 sm:$0xff]   ;;  %v1357_v36 = vld [vmem:[%s1722_s0 + $0x30] ss:$8 sps:$4 sm:$0xff]  }
   0xd   :  { %1160 = vmatprep.subr.bf16.mxu1 %v1328_v11  ;;  %v1359_v37 = vld [vmem:[%s1722_s0 + $0x44] ss:$8 sps:$4 sm:$0xff]   ;;  %v1361_v39 = vld [vmem:[%s1722_s0 + $0x40] ss:$8 sps:$4 sm:$0xff]   ;;  %v1363_v40 = vld [vmem:[%s1722_s0 + $0x54] ss:$8 sps:$4 sm:$0xff]  }
   0xe   :  { %1255 = vmatpush3.bf16.msra.mxu0 %v1327_v10  ;;  %v1358_v38 = vld [vmem:[%s1721_s1 + $0x20] sm:$0xff]   ;;  %v1362_v41 = vld [vmem:[%s1721_s1 + $0x28] sm:$0xff]   ;;  %v1365_v42 = vld [vmem:[%s1722_s0 + $0x50] ss:$8 sps:$4 sm:$0xff]  }
   0xf   :  { %1256 = vmatprep.subr.bf16.mxu0 %v1394_v0  ;;  %v1367_v43 = vld [vmem:[%s1722_s0 + $0x64] ss:$8 sps:$4 sm:$0xff]   ;;  %v1366_v44 = vld [vmem:[%s1721_s1 + $0x30] sm:$0xff]   ;;  %v1369_v45 = vld [vmem:[%s1722_s0 + $0x60] ss:$8 sps:$4 sm:$0xff]  }
  0x10   :  { %1161 = vmatpush3.bf16.msra.mxu1 %v1329_v12  ;;  %v1371_v46 = vld [vmem:[%s1722_s0 + $0x74] ss:$8 sps:$4 sm:$0xff]   ;;  %v1373_v48 = vld [vmem:[%s1722_s0 + $0x70] ss:$8 sps:$4 sm:$0xff]   ;;  %v1375_v49 = vld [vmem:[%s1722_s0 + $0x84] ss:$8 sps:$4 sm:$0xff]  }
  0x11   :  { %1162 = vmatprep.subr.bf16.mxu1 %v1331_v13  ;;  %v1370_v47 = vld [vmem:[%s1721_s1 + $0x38] sm:$0xff]   ;;  %v1374_v50 = vld [vmem:[%s1721_s1 + $0x40] sm:$0xff]   ;;  %v1378_v53 = vld [vmem:[%s1721_s1 + $0x48] sm:$0xff]  }
  0x12   :  { %1257 = vmatpush3.bf16.msra.mxu0 %v1330_v14  ;;  %v1377_v51 = vld [vmem:[%s1722_s0 + $0x80] ss:$8 sps:$4 sm:$0xff]   ;;  %v1379_v52 = vld [vmem:[%s1722_s0 + $0x94] ss:$8 sps:$4 sm:$0xff]   ;;  %v1381_v54 = vld [vmem:[%s1722_s0 + $0x90] ss:$8 sps:$4 sm:$0xff]  }
  0x13   :  { %1258 = vmatprep.subr.bf16.mxu0 %v1394_v0  ;;  %v1383_v55 = vld [vmem:[%s1722_s0 + $0xa4] ss:$8 sps:$4 sm:$0xff]   ;;  %v1382_v56 = vld [vmem:[%s1721_s1 + $0x50] sm:$0xff]   ;;  %v1385_v57 = vld [vmem:[%s1722_s0 + $0xa0] ss:$8 sps:$4 sm:$0xff]  }
  0x14   :  { %1163 = vmatpush3.bf16.msra.mxu1 %v1332_v15  ;;  %v1387_v58 = vld [vmem:[%s1722_s0 + $0xb4] ss:$8 sps:$4 sm:$0xff]   ;;  %v1389_v60 = vld [vmem:[%s1722_s0 + $0xb0] ss:$8 sps:$4 sm:$0xff]   ;;  %v1391_v61 = vld [vmem:[%s1722_s0 + $0xc4] ss:$8 sps:$4 sm:$0xff]  }
  0x15   :  { %1164 = vmatprep.subr.bf16.mxu1 %v1334_v16  ;;  %v1386_v59 = vld [vmem:[%s1721_s1 + $0x58] sm:$0xff]   ;;  %v1390_v62 = vld [vmem:[%s1721_s1 + $0x60] sm:$0xff]  }
  0x16   :  { %1259 = vmatpush3.bf16.msra.mxu0 %v1333_v17  ;;  %v1393_v63 = vld [vmem:[%s1722_s0 + $0xc0] ss:$8 sps:$4 sm:$0xff]  }
  0x17   :  { %1260 = vmatprep.subr.bf16.mxu0 %v1394_v0  ;;  %v1652_v9 = vld [vmem:[%s1723_s4] ss:$0 sm:$0xff] }
  0x18   :  { %1165 = vmatpush3.bf16.msra.mxu1 %v1335_v18 }
  0x19   :  { %1166 = vmatprep.subr.bf16.mxu1 %v1337_v19 }
  0x1a   :  { %1261 = vmatpush3.bf16.msra.mxu0 %v1336_v20 }
  0x1b   :  { %1262 = vmatprep.subr.bf16.mxu0 %v1394_v0 }
  0x1c   :  { %1167 = vmatpush3.bf16.msra.mxu1 %v1338_v21 }
  0x1d   :  { %1168 = vmatprep.subr.bf16.mxu1 %v1340_v23 }
  0x1e   :  { %1263 = vmatpush3.bf16.msra.mxu0 %v1339_v22 }
  0x20   :  { %1169 = vmatpush3.bf16.msra.mxu1 %v1341_v25 }
  0x21   :  { %1265 = vmatmul.mubr.bf16.vlgmr.msra.gmra.mxu0 %v1342_v26 }
  0x22   :  { %1268 = vmatprep.mubr.msk.bf16.mxu0 %vm1395_vm0, %v1394_v0 }
  0x23   :  { %643 = vmatmul.mubr.bf16.vlgmr.msra.gmra.mxu1 %v1343_v27 }
  0x24   :  { %650 = vmatprep.mubr.bf16.mxu1 %v1347_v28 }
  0x29   :  { %1269 = vmatmul.mubr.bf16.gmra.mxu0 %v1346_v29 }
  0x2a   :  { %1272 = vmatprep.mubr.msk.bf16.mxu0 %vm1395_vm0, %v1394_v0 }
  0x2b   :  { %651 = vmatmul.mubr.bf16.gmra.mxu1 %v1349_v30 }
  0x2c   :  { %658 = vmatprep.mubr.bf16.mxu1 %v1351_v31 }
  0x31   :  { %1273 = vmatmul.mubr.bf16.gmra.mxu0 %v1350_v32 }
  0x32   :  { %1276 = vmatprep.mubr.msk.bf16.mxu0 %vm1395_vm0, %v1394_v0 }
  0x33   :  { %659 = vmatmul.mubr.bf16.gmra.mxu1 %v1353_v33 }
  0x34   :  { %666 = vmatprep.mubr.bf16.mxu1 %v1355_v34 }
  0x39   :  { %1277 = vmatmul.mubr.bf16.gmra.mxu0 %v1354_v35 }
  0x3a   :  { %1280 = vmatprep.mubr.msk.bf16.mxu0 %vm1395_vm0, %v1394_v0 }
  0x3b   :  { %667 = vmatmul.mubr.bf16.gmra.mxu1 %v1357_v36 }
  0x3c   :  { %674 = vmatprep.mubr.bf16.mxu1 %v1359_v37 }
  0x41   :  { %1281 = vmatmul.mubr.bf16.gmra.mxu0 %v1358_v38 }
  0x42   :  { %1284 = vmatprep.mubr.msk.bf16.mxu0 %vm1395_vm0, %v1394_v0 }
  0x43   :  { %675 = vmatmul.mubr.bf16.gmra.mxu1 %v1361_v39 }
  0x44   :  { %682 = vmatprep.mubr.bf16.mxu1 %v1363_v40 }
  0x49   :  { %1285 = vmatmul.mubr.bf16.gmra.mxu0 %v1362_v41 }
  0x4a   :  { %1288 = vmatprep.mubr.msk.bf16.mxu0 %vm1395_vm0, %v1394_v0 }
  0x4b   :  { %683 = vmatmul.mubr.bf16.gmra.mxu1 %v1365_v42 }
  0x4c   :  { %690 = vmatprep.mubr.bf16.mxu1 %v1367_v43 }
  0x51   :  { %1289 = vmatmul.mubr.bf16.gmra.mxu0 %v1366_v44 }
  0x52   :  { %1292 = vmatprep.mubr.msk.bf16.mxu0 %vm1395_vm0, %v1394_v0 }
  0x53   :  { %691 = vmatmul.mubr.bf16.gmra.mxu1 %v1369_v45 }
  0x54   :  { %698 = vmatprep.mubr.bf16.mxu1 %v1371_v46 }
  0x59   :  { %1293 = vmatmul.mubr.bf16.gmra.mxu0 %v1370_v47 }
  0x5a   :  { %1296 = vmatprep.mubr.msk.bf16.mxu0 %vm1395_vm0, %v1394_v0 }
  0x5b   :  { %699 = vmatmul.mubr.bf16.gmra.mxu1 %v1373_v48 }
  0x5c   :  { %706 = vmatprep.mubr.bf16.mxu1 %v1375_v49 }
  0x61   :  { %1297 = vmatmul.mubr.bf16.gmra.mxu0 %v1374_v50 }
  0x62   :  { %1300 = vmatprep.mubr.msk.bf16.mxu0 %vm1395_vm0, %v1394_v0 }
  0x63   :  { %707 = vmatmul.mubr.bf16.gmra.mxu1 %v1377_v51 }
  0x64   :  { %714 = vmatprep.mubr.bf16.mxu1 %v1379_v52 }
  0x69   :  { %1301 = vmatmul.mubr.bf16.gmra.mxu0 %v1378_v53 }
  0x6a   :  { %1304 = vmatprep.mubr.msk.bf16.mxu0 %vm1395_vm0, %v1394_v0 }
  0x6b   :  { %715 = vmatmul.mubr.bf16.gmra.mxu1 %v1381_v54 }
  0x6c   :  { %722 = vmatprep.mubr.bf16.mxu1 %v1383_v55 }
  0x71   :  { %1305 = vmatmul.mubr.bf16.gmra.mxu0 %v1382_v56 }
  0x72   :  { %1308 = vmatprep.mubr.msk.bf16.mxu0 %vm1395_vm0, %v1394_v0 }
  0x73   :  { %723 = vmatmul.mubr.bf16.gmra.mxu1 %v1385_v57 }
  0x74   :  { %730 = vmatprep.mubr.bf16.mxu1 %v1387_v58 }
  0x79   :  { %1309 = vmatmul.mubr.bf16.gmra.mxu0 %v1386_v59 }
  0x7a   :  { %1312 = vmatprep.mubr.msk.bf16.mxu0 %vm1395_vm0, %v1394_v0 }
  0x7b   :  { %731 = vmatmul.mubr.bf16.gmra.mxu1 %v1389_v60 }
  0x7c   :  { %738 = vmatprep.mubr.bf16.mxu1 %v1391_v61 }
  0x81   :  { %1313 = vmatmul.mubr.bf16.gmra.mxu0 %v1390_v62 }
  0x83   :  { %739 = vmatmul.mubr.bf16.gmra.mxu1 %v1393_v63 }
  0xe1   :  { %v281_v1 = vpop.f32.mrf.mxu0 }
  0xe3   :  { %v1170_v2 = vpop.f32.mrf.mxu1  ;;  %v1266_v3 = vpop.f32.mrf.mxu0 }
  0xe5   :  { %v1171_v4 = vpop.f32.mrf.mxu1  ;;  %v284_v5 = vpop.f32.mrf.mxu0 }
  0xe6   :  { %v1172_v6 = vadd.f32 %v1171_v4, %v1170_v2 }
  0xe7   :  { %v1173_v7 = vpop.f32.mrf.mxu1  ;;  %v1267_v0 = vpop.f32.mrf.mxu0 }
  0xe8   :  { %v645_v8 = vadd.f32 %v1172_v6, %v281_v1 }
  0xe9   :  { %v1174_v10 = vpop.f32.mrf.mxu1  ;;  %v289_v11 = vpop.f32.mrf.mxu0 }
  0xea   :  { %v1175_v12 = vadd.f32 %v1174_v10, %v1173_v7  ;;  %v754_v15 = vadd.f32 %v1652_v9, %v645_v8 }
  0xeb   :  { %v1176_v13 = vpop.f32.mrf.mxu1  ;;  %v1270_v14 = vpop.f32.mrf.mxu0 }
  0xec   :  { %v648_v16 = vadd.f32 %v1175_v12, %v284_v5  ;;  %v780_v23 = vmax.f32 %v754_v15, 0.0 }
  0xed   :  { %v1177_v17 = vpop.f32.mrf.mxu1  ;;  %v292_v18 = vpop.f32.mrf.mxu0 }
  0xee   :  { %v755_v19 = vadd.f32 %v1652_v9, %v648_v16  ;;  %v1178_v20 = vadd.f32 %v1177_v17, %v1176_v13 }
  0xef   :  { %v1179_v21 = vpop.f32.mrf.mxu1  ;;  %v1271_v22 = vpop.f32.mrf.mxu0 }
  0xf0   :  { %v781_v24 = vmax.f32 %v755_v19, 0.0  ;;  %v653_v25 = vadd.f32 %v1178_v20, %v289_v11 }
  0xf1   :  { %v1180_v26 = vpop.f32.mrf.mxu1  ;;  %v297_v27 = vpop.f32.mrf.mxu0 }
  0xf2   :  { %v1059_v28 = vpack.c.bf16 %v781_v24, %v780_v23  ;;  %v1181_v29 = vadd.f32 %v1180_v26, %v1179_v21  ;;  %v756_v32 = vadd.f32 %v1652_v9, %v653_v25 }
  0xf3   :  { %v1182_v30 = vpop.f32.mrf.mxu1  ;;  %v1274_v31 = vpop.f32.mrf.mxu0 }
  0xf4   :  { %1060 = vst [vmem:[%s1724_s5] sm:$0xff] %v1059_v28   ;;  %v656_v33 = vadd.f32 %v1181_v29, %v292_v18  ;;  %v782_v40 = vmax.f32 %v756_v32, 0.0 }
  0xf5   :  { %v1183_v34 = vpop.f32.mrf.mxu1  ;;  %v300_v35 = vpop.f32.mrf.mxu0 }
  0xf6   :  { %v757_v36 = vadd.f32 %v1652_v9, %v656_v33  ;;  %v1184_v37 = vadd.f32 %v1183_v34, %v1182_v30 }
  0xf7   :  { %v1185_v38 = vpop.f32.mrf.mxu1  ;;  %v1275_v39 = vpop.f32.mrf.mxu0 }
  0xf8   :  { %v783_v41 = vmax.f32 %v757_v36, 0.0  ;;  %v661_v42 = vadd.f32 %v1184_v37, %v297_v27 }
  0xf9   :  { %v1186_v43 = vpop.f32.mrf.mxu1  ;;  %v305_v44 = vpop.f32.mrf.mxu0 }
  0xfa   :  { %v1064_v45 = vpack.c.bf16 %v783_v41, %v782_v40  ;;  %v1187_v46 = vadd.f32 %v1186_v43, %v1185_v38  ;;  %v758_v49 = vadd.f32 %v1652_v9, %v661_v42 }
  0xfb   :  { %v1188_v47 = vpop.f32.mrf.mxu1  ;;  %v1278_v48 = vpop.f32.mrf.mxu0 }
  0xfc   :  { %1121 = vst [vmem:[%s1724_s5 + $0x8] sm:$0xff] %v1064_v45   ;;  %v664_v50 = vadd.f32 %v1187_v46, %v300_v35  ;;  %v784_v57 = vmax.f32 %v758_v49, 0.0 }
  0xfd   :  { %v1189_v51 = vpop.f32.mrf.mxu1  ;;  %v308_v52 = vpop.f32.mrf.mxu0 }
  0xfe   :  { %v759_v53 = vadd.f32 %v1652_v9, %v664_v50  ;;  %v1190_v54 = vadd.f32 %v1189_v51, %v1188_v47 }
  0xff   :  { %v1191_v55 = vpop.f32.mrf.mxu1  ;;  %v1279_v56 = vpop.f32.mrf.mxu0 }
 0x100   :  { %v785_v58 = vmax.f32 %v759_v53, 0.0  ;;  %v669_v59 = vadd.f32 %v1190_v54, %v305_v44 }
 0x101   :  { %v1192_v60 = vpop.f32.mrf.mxu1  ;;  %v313_v61 = vpop.f32.mrf.mxu0 }
 0x102   :  { %v1069_v62 = vpack.c.bf16 %v785_v58, %v784_v57  ;;  %v1193_v63 = vadd.f32 %v1192_v60, %v1191_v55  ;;  %v760_v3 = vadd.f32 %v1652_v9, %v669_v59 }
 0x103   :  { %v1194_v1 = vpop.f32.mrf.mxu1  ;;  %v1282_v2 = vpop.f32.mrf.mxu0 }
 0x104   :  { %1122 = vst [vmem:[%s1724_s5 + $0x10] sm:$0xff] %v1069_v62   ;;  %v672_v4 = vadd.f32 %v1193_v63, %v308_v52  ;;  %v786_v11 = vmax.f32 %v760_v3, 0.0 }
 0x105   :  { %v1195_v5 = vpop.f32.mrf.mxu1  ;;  %v316_v6 = vpop.f32.mrf.mxu0 }
 0x106   :  { %v761_v7 = vadd.f32 %v1652_v9, %v672_v4  ;;  %v1196_v0 = vadd.f32 %v1195_v5, %v1194_v1 }
 0x107   :  { %v1197_v8 = vpop.f32.mrf.mxu1  ;;  %v1283_v10 = vpop.f32.mrf.mxu0 }
 0x108   :  { %v787_v12 = vmax.f32 %v761_v7, 0.0  ;;  %v677_v13 = vadd.f32 %v1196_v0, %v313_v61 }
 0x109   :  { %v1198_v14 = vpop.f32.mrf.mxu1  ;;  %v321_v15 = vpop.f32.mrf.mxu0 }
 0x10a   :  { %v1074_v16 = vpack.c.bf16 %v787_v12, %v786_v11  ;;  %v1199_v17 = vadd.f32 %v1198_v14, %v1197_v8  ;;  %v762_v20 = vadd.f32 %v1652_v9, %v677_v13 }
 0x10b   :  { %v1200_v18 = vpop.f32.mrf.mxu1  ;;  %v1286_v19 = vpop.f32.mrf.mxu0 }
 0x10c   :  { %1123 = vst [vmem:[%s1724_s5 + $0x18] sm:$0xff] %v1074_v16   ;;  %v680_v21 = vadd.f32 %v1199_v17, %v316_v6  ;;  %v788_v28 = vmax.f32 %v762_v20, 0.0 }
 0x10d   :  { %v1201_v22 = vpop.f32.mrf.mxu1  ;;  %v324_v23 = vpop.f32.mrf.mxu0 }
 0x10e   :  { %v763_v24 = vadd.f32 %v1652_v9, %v680_v21  ;;  %v1202_v25 = vadd.f32 %v1201_v22, %v1200_v18 }
 0x10f   :  { %v1203_v26 = vpop.f32.mrf.mxu1  ;;  %v1287_v27 = vpop.f32.mrf.mxu0 }
 0x110   :  { %v789_v29 = vmax.f32 %v763_v24, 0.0  ;;  %v685_v30 = vadd.f32 %v1202_v25, %v321_v15 }
 0x111   :  { %v1204_v31 = vpop.f32.mrf.mxu1  ;;  %v329_v32 = vpop.f32.mrf.mxu0 }
 0x112   :  { %v1079_v33 = vpack.c.bf16 %v789_v29, %v788_v28  ;;  %v1205_v34 = vadd.f32 %v1204_v31, %v1203_v26  ;;  %v764_v37 = vadd.f32 %v1652_v9, %v685_v30 }
 0x113   :  { %v1206_v35 = vpop.f32.mrf.mxu1  ;;  %v1290_v36 = vpop.f32.mrf.mxu0 }
 0x114   :  { %1124 = vst [vmem:[%s1724_s5 + $0x20] sm:$0xff] %v1079_v33   ;;  %v688_v38 = vadd.f32 %v1205_v34, %v324_v23  ;;  %v790_v45 = vmax.f32 %v764_v37, 0.0 }
 0x115   :  { %v1207_v39 = vpop.f32.mrf.mxu1  ;;  %v332_v40 = vpop.f32.mrf.mxu0 }
 0x116   :  { %v765_v41 = vadd.f32 %v1652_v9, %v688_v38  ;;  %v1208_v42 = vadd.f32 %v1207_v39, %v1206_v35 }
 0x117   :  { %v1209_v43 = vpop.f32.mrf.mxu1  ;;  %v1291_v44 = vpop.f32.mrf.mxu0 }
 0x118   :  { %v791_v46 = vmax.f32 %v765_v41, 0.0  ;;  %v693_v47 = vadd.f32 %v1208_v42, %v329_v32 }
 0x119   :  { %v1210_v48 = vpop.f32.mrf.mxu1  ;;  %v337_v49 = vpop.f32.mrf.mxu0 }
 0x11a   :  { %v1084_v50 = vpack.c.bf16 %v791_v46, %v790_v45  ;;  %v1211_v51 = vadd.f32 %v1210_v48, %v1209_v43  ;;  %v766_v54 = vadd.f32 %v1652_v9, %v693_v47 }
 0x11b   :  { %v1212_v52 = vpop.f32.mrf.mxu1  ;;  %v1294_v53 = vpop.f32.mrf.mxu0 }
 0x11c   :  { %1125 = vst [vmem:[%s1724_s5 + $0x28] sm:$0xff] %v1084_v50   ;;  %v696_v55 = vadd.f32 %v1211_v51, %v332_v40  ;;  %v792_v62 = vmax.f32 %v766_v54, 0.0 }
 0x11d   :  { %v1213_v56 = vpop.f32.mrf.mxu1  ;;  %v340_v57 = vpop.f32.mrf.mxu0 }
 0x11e   :  { %v767_v58 = vadd.f32 %v1652_v9, %v696_v55  ;;  %v1214_v59 = vadd.f32 %v1213_v56, %v1212_v52 }
 0x11f   :  { %v1215_v60 = vpop.f32.mrf.mxu1  ;;  %v1295_v61 = vpop.f32.mrf.mxu0 }
 0x120   :  { %v793_v63 = vmax.f32 %v767_v58, 0.0  ;;  %v701_v1 = vadd.f32 %v1214_v59, %v337_v49 }
 0x121   :  { %v1216_v2 = vpop.f32.mrf.mxu1  ;;  %v345_v3 = vpop.f32.mrf.mxu0 }
 0x122   :  { %v1089_v4 = vpack.c.bf16 %v793_v63, %v792_v62  ;;  %v1217_v5 = vadd.f32 %v1216_v2, %v1215_v60  ;;  %v768_v0 = vadd.f32 %v1652_v9, %v701_v1 }
 0x123   :  { %v1218_v6 = vpop.f32.mrf.mxu1  ;;  %v1298_v7 = vpop.f32.mrf.mxu0 }
 0x124   :  { %1126 = vst [vmem:[%s1724_s5 + $0x30] sm:$0xff] %v1089_v4   ;;  %v704_v8 = vadd.f32 %v1217_v5, %v340_v57  ;;  %v794_v16 = vmax.f32 %v768_v0, 0.0 }
 0x125   :  { %v1219_v10 = vpop.f32.mrf.mxu1  ;;  %v348_v11 = vpop.f32.mrf.mxu0 }
 0x126   :  { %v769_v12 = vadd.f32 %v1652_v9, %v704_v8  ;;  %v1220_v13 = vadd.f32 %v1219_v10, %v1218_v6 }
 0x127   :  { %v1221_v14 = vpop.f32.mrf.mxu1  ;;  %v1299_v15 = vpop.f32.mrf.mxu0 }
 0x128   :  { %v795_v17 = vmax.f32 %v769_v12, 0.0  ;;  %v709_v18 = vadd.f32 %v1220_v13, %v345_v3 }
 0x129   :  { %v1222_v19 = vpop.f32.mrf.mxu1  ;;  %v353_v20 = vpop.f32.mrf.mxu0 }
 0x12a   :  { %v1094_v21 = vpack.c.bf16 %v795_v17, %v794_v16  ;;  %v1223_v22 = vadd.f32 %v1222_v19, %v1221_v14  ;;  %v770_v25 = vadd.f32 %v1652_v9, %v709_v18 }
 0x12b   :  { %v1224_v23 = vpop.f32.mrf.mxu1  ;;  %v1302_v24 = vpop.f32.mrf.mxu0 }
 0x12c   :  { %1127 = vst [vmem:[%s1724_s5 + $0x38] sm:$0xff] %v1094_v21   ;;  %v712_v26 = vadd.f32 %v1223_v22, %v348_v11  ;;  %v796_v33 = vmax.f32 %v770_v25, 0.0 }
 0x12d   :  { %v1225_v27 = vpop.f32.mrf.mxu1  ;;  %v356_v28 = vpop.f32.mrf.mxu0 }
 0x12e   :  { %v771_v29 = vadd.f32 %v1652_v9, %v712_v26  ;;  %v1226_v30 = vadd.f32 %v1225_v27, %v1224_v23 }
 0x12f   :  { %v1227_v31 = vpop.f32.mrf.mxu1  ;;  %v1303_v32 = vpop.f32.mrf.mxu0 }
 0x130   :  { %v797_v34 = vmax.f32 %v771_v29, 0.0  ;;  %v717_v35 = vadd.f32 %v1226_v30, %v353_v20 }
 0x131   :  { %v1228_v36 = vpop.f32.mrf.mxu1  ;;  %v361_v37 = vpop.f32.mrf.mxu0 }
 0x132   :  { %v1099_v38 = vpack.c.bf16 %v797_v34, %v796_v33  ;;  %v1229_v39 = vadd.f32 %v1228_v36, %v1227_v31  ;;  %v772_v42 = vadd.f32 %v1652_v9, %v717_v35 }
 0x133   :  { %v1230_v40 = vpop.f32.mrf.mxu1  ;;  %v1306_v41 = vpop.f32.mrf.mxu0 }
 0x134   :  { %1128 = vst [vmem:[%s1724_s5 + $0x40] sm:$0xff] %v1099_v38   ;;  %v720_v43 = vadd.f32 %v1229_v39, %v356_v28  ;;  %v798_v50 = vmax.f32 %v772_v42, 0.0 }
 0x135   :  { %v1231_v44 = vpop.f32.mrf.mxu1  ;;  %v364_v45 = vpop.f32.mrf.mxu0 }
 0x136   :  { %v773_v46 = vadd.f32 %v1652_v9, %v720_v43  ;;  %v1232_v47 = vadd.f32 %v1231_v44, %v1230_v40 }
 0x137   :  { %v1233_v48 = vpop.f32.mrf.mxu1  ;;  %v1307_v49 = vpop.f32.mrf.mxu0 }
 0x138   :  { %v799_v51 = vmax.f32 %v773_v46, 0.0  ;;  %v725_v52 = vadd.f32 %v1232_v47, %v361_v37 }
 0x139   :  { %v1234_v53 = vpop.f32.mrf.mxu1  ;;  %v369_v54 = vpop.f32.mrf.mxu0 }
 0x13a   :  { %v1104_v55 = vpack.c.bf16 %v799_v51, %v798_v50  ;;  %v1235_v56 = vadd.f32 %v1234_v53, %v1233_v48  ;;  %v774_v59 = vadd.f32 %v1652_v9, %v725_v52 }
 0x13b   :  { %v1236_v57 = vpop.f32.mrf.mxu1  ;;  %v1310_v58 = vpop.f32.mrf.mxu0 }
 0x13c   :  { %1129 = vst [vmem:[%s1724_s5 + $0x48] sm:$0xff] %v1104_v55   ;;  %v728_v60 = vadd.f32 %v1235_v56, %v364_v45  ;;  %v800_v4 = vmax.f32 %v774_v59, 0.0 }
 0x13d   :  { %v1237_v61 = vpop.f32.mrf.mxu1  ;;  %v372_v62 = vpop.f32.mrf.mxu0 }
 0x13e   :  { %v775_v63 = vadd.f32 %v1652_v9, %v728_v60  ;;  %v1238_v1 = vadd.f32 %v1237_v61, %v1236_v57 }
 0x13f   :  { %v1239_v2 = vpop.f32.mrf.mxu1  ;;  %v1311_v3 = vpop.f32.mrf.mxu0 }
 0x140   :  { %v801_v5 = vmax.f32 %v775_v63, 0.0  ;;  %v733_v6 = vadd.f32 %v1238_v1, %v369_v54 }
 0x141   :  { %v1240_v7 = vpop.f32.mrf.mxu1  ;;  %v377_v0 = vpop.f32.mrf.mxu0 }
 0x142   :  { %v1109_v8 = vpack.c.bf16 %v801_v5, %v800_v4  ;;  %v1241_v10 = vadd.f32 %v1240_v7, %v1239_v2  ;;  %v776_v13 = vadd.f32 %v1652_v9, %v733_v6 }
 0x143   :  { %v1242_v11 = vpop.f32.mrf.mxu1  ;;  %v1314_v12 = vpop.f32.mrf.mxu0 }
 0x144   :  { %1130 = vst [vmem:[%s1724_s5 + $0x50] sm:$0xff] %v1109_v8   ;;  %v736_v14 = vadd.f32 %v1241_v10, %v372_v62  ;;  %v802_v21 = vmax.f32 %v776_v13, 0.0 }
 0x145   :  { %v1243_v15 = vpop.f32.mrf.mxu1  ;;  %v380_v16 = vpop.f32.mrf.mxu0 }
 0x146   :  { %v777_v17 = vadd.f32 %v1652_v9, %v736_v14  ;;  %v1244_v18 = vadd.f32 %v1243_v15, %v1242_v11 }
 0x147   :  { %v1245_v19 = vpop.f32.mrf.mxu1  ;;  %v1315_v20 = vpop.f32.mrf.mxu0 }
 0x148   :  { %v803_v22 = vmax.f32 %v777_v17, 0.0  ;;  %v741_v23 = vadd.f32 %v1244_v18, %v377_v0 }
 0x149   :  { %v1246_v24 = vpop.f32.mrf.mxu1 }
 0x14a   :  { %v1114_v25 = vpack.c.bf16 %v803_v22, %v802_v21  ;;  %v1247_v26 = vadd.f32 %v1246_v24, %v1245_v19  ;;  %v778_v27 = vadd.f32 %v1652_v9, %v741_v23 }
 0x14c   :  { %1131 = vst [vmem:[%s1724_s5 + $0x58] sm:$0xff] %v1114_v25   ;;  %v744_v28 = vadd.f32 %v1247_v26, %v380_v16  ;;  %v804_v30 = vmax.f32 %v778_v27, 0.0 }
 0x14e   :  { %v779_v29 = vadd.f32 %v1652_v9, %v744_v28 }
 0x150   :  { %v805_v31 = vmax.f32 %v779_v29, 0.0 }
 0x152   :  { %v1119_v32 = vpack.c.bf16 %v805_v31, %v804_v30 }
 0x154   :  { %1132 = vst [vmem:[%s1724_s5 + $0x60] sm:$0xff] %v1119_v32  }

// kernel: rnncnn_forward.9
= control target key start
LH: loop header
LB: loop body
LE: loop exit
PB: predicated region body
PF: predicated region fallthrough
CT: control target
= control target key end

     0   :  { %v1776_v0 = vmov 0.0   ;;  %vm1777_vm0 = vmmov 0   ;;  %s2200_s3 = inlined_call_operand.vmem [shape: bf16[128,128], index: 3, kind: input, shape index: {}]   ;;  %s2201_s2 = inlined_call_operand.vmem [shape: bf16[256,128], index: 2, kind: input, shape index: {}]   ;;  %s2202_s1 = inlined_call_operand.vmem [shape: bf16[208,128], index: 1, kind: input, shape index: {}]   ;;  %s2203_s0 = inlined_call_operand.vmem [shape: bf16[208,256], index: 0, kind: input, shape index: {}]   ;;  %s2204_s4 = inlined_call_operand.vmem [shape: f32[1,128], index: 4, kind: input, shape index: {}]   ;;  %s2205_s5 = inlined_call_operand.vmem [shape: bf16[208,128], index: 5, kind: input, shape index: {}]   ;;  %s2206_s6 = inlined_call_operand.vmem [shape: bf16[208,128], index: 6, kind: output, shape index: {}]  }
   0x1   :  { %1526 = vmatprep.subr.bf16.mxu0 %v1776_v0  ;;  %v1596_v1 = vld [vmem:[%s2200_s3 + $0x38] sm:$0xff]   ;;  %1542 = vmatprep.mubr.msk.bf16.mxu0 %vm1777_vm0, %v1776_v0  ;;  %v1599_v4 = vld [vmem:[%s2200_s3 + $0x30] sm:$0xff]   ;;  %v1602_v7 = vld [vmem:[%s2200_s3 + $0x28] sm:$0xff]  }
   0x2   :  { %v1597_v2 = vld [vmem:[%s2201_s2 + $0x78] sm:$0xff]   ;;  %1527 = vmatpush3.bf16.msra.mxu0 %v1596_v1  ;;  %v1600_v5 = vld [vmem:[%s2201_s2 + $0x70] sm:$0xff]   ;;  %v1603_v8 = vld [vmem:[%s2201_s2 + $0x68] sm:$0xff]  }
   0x3   :  { %v1598_v3 = vld [vmem:[%s2201_s2 + $0x38] sm:$0xff]   ;;  %1432 = vmatprep.subr.bf16.mxu1 %v1597_v2  ;;  %1528 = vmatprep.subr.bf16.mxu0 %v1776_v0  ;;  %v1601_v6 = vld [vmem:[%s2201_s2 + $0x30] sm:$0xff]   ;;  %v1604_v9 = vld [vmem:[%s2201_s2 + $0x28] sm:$0xff]  }
   0x4   :  { %1433 = vmatpush3.bf16.msra.mxu1 %v1598_v3  ;;  %v1605_v10 = vld [vmem:[%s2200_s3 + $0x20] sm:$0xff]   ;;  %v1609_v13 = vld [vmem:[%s2201_s2 + $0x58] sm:$0xff]   ;;  %v1612_v16 = vld [vmem:[%s2201_s2 + $0x50] sm:$0xff]  }
   0x5   :  { %1434 = vmatprep.subr.bf16.mxu1 %v1600_v5  ;;  %v1606_v11 = vld [vmem:[%s2201_s2 + $0x60] sm:$0xff]   ;;  %v1608_v14 = vld [vmem:[%s2200_s3 + $0x18] sm:$0xff]   ;;  %v1611_v17 = vld [vmem:[%s2200_s3 + $0x10] sm:$0xff]  }
   0x6   :  { %1529 = vmatpush3.bf16.msra.mxu0 %v1599_v4  ;;  %v1607_v12 = vld [vmem:[%s2201_s2 + $0x20] sm:$0xff]   ;;  %v1610_v15 = vld [vmem:[%s2201_s2 + $0x18] sm:$0xff]   ;;  %v1613_v18 = vld [vmem:[%s2201_s2 + $0x10] sm:$0xff]  }
   0x7   :  { %1530 = vmatprep.subr.bf16.mxu0 %v1776_v0  ;;  %v1615_v19 = vld [vmem:[%s2201_s2 + $0x48] sm:$0xff]   ;;  %v1617_v22 = vld [vmem:[%s2200_s3] sm:$0xff]   ;;  %v1625_v28 = vld [vmem:[%s2203_s0 + $0x14] ss:$8 sps:$4 sm:$0xff]  }
   0x8   :  { %1435 = vmatpush3.bf16.msra.mxu1 %v1601_v6  ;;  %v1614_v20 = vld [vmem:[%s2200_s3 + $0x8] sm:$0xff]   ;;  %v1618_v23 = vld [vmem:[%s2201_s2 + $0x40] sm:$0xff]   ;;  %v1627_v30 = vld [vmem:[%s2203_s0 + $0x10] ss:$8 sps:$4 sm:$0xff]  }
   0x9   :  { %1436 = vmatprep.subr.bf16.mxu1 %v1603_v8  ;;  %v1616_v21 = vld [vmem:[%s2201_s2 + $0x8] sm:$0xff]   ;;  %v1619_v25 = vld [vmem:[%s2201_s2] sm:$0xff]   ;;  %v1628_v32 = vld [vmem:[%s2202_s1 + $0x10] sm:$0xff]  }
   0xa   :  { %1531 = vmatpush3.bf16.msra.mxu0 %v1602_v7  ;;  %v1623_v24 = vld [vmem:[%s2203_s0 + $0x4] ss:$8 sps:$4 sm:$0xff]   ;;  %v1621_v27 = vld [vmem:[%s2203_s0] ss:$8 sps:$4 sm:$0xff]   ;;  %v1633_v34 = vld [vmem:[%s2203_s0 + $0x34] ss:$8 sps:$4 sm:$0xff]  }
   0xb   :  { %1532 = vmatprep.subr.bf16.mxu0 %v1776_v0  ;;  %645 = vmatprep.mubr.bf16.mxu1 %v1623_v24  ;;  %v1620_v26 = vld [vmem:[%s2202_s1] sm:$0xff]   ;;  %v1624_v29 = vld [vmem:[%s2202_s1 + $0x8] sm:$0xff]   ;;  %v1632_v35 = vld [vmem:[%s2202_s1 + $0x18] sm:$0xff]  }
   0xc   :  { %1437 = vmatpush3.bf16.msra.mxu1 %v1604_v9  ;;  %v1629_v31 = vld [vmem:[%s2203_s0 + $0x24] ss:$8 sps:$4 sm:$0xff]   ;;  %v1631_v33 = vld [vmem:[%s2203_s0 + $0x20] ss:$8 sps:$4 sm:$0xff]   ;;  %v1635_v36 = vld [vmem:[%s2203_s0 + $0x30] ss:$8 sps:$4 sm:$0xff]  }
   0xd   :  { %1438 = vmatprep.subr.bf16.mxu1 %v1606_v11  ;;  %v1637_v37 = vld [vmem:[%s2203_s0 + $0x44] ss:$8 sps:$4 sm:$0xff]   ;;  %v1639_v39 = vld [vmem:[%s2203_s0 + $0x40] ss:$8 sps:$4 sm:$0xff]   ;;  %v1641_v40 = vld [vmem:[%s2203_s0 + $0x54] ss:$8 sps:$4 sm:$0xff]  }
   0xe   :  { %1533 = vmatpush3.bf16.msra.mxu0 %v1605_v10  ;;  %v1636_v38 = vld [vmem:[%s2202_s1 + $0x20] sm:$0xff]   ;;  %v1640_v41 = vld [vmem:[%s2202_s1 + $0x28] sm:$0xff]   ;;  %v1643_v42 = vld [vmem:[%s2203_s0 + $0x50] ss:$8 sps:$4 sm:$0xff]  }
   0xf   :  { %1534 = vmatprep.subr.bf16.mxu0 %v1776_v0  ;;  %v1645_v43 = vld [vmem:[%s2203_s0 + $0x64] ss:$8 sps:$4 sm:$0xff]   ;;  %v1644_v44 = vld [vmem:[%s2202_s1 + $0x30] sm:$0xff]   ;;  %v1647_v45 = vld [vmem:[%s2203_s0 + $0x60] ss:$8 sps:$4 sm:$0xff]  }
  0x10   :  { %1439 = vmatpush3.bf16.msra.mxu1 %v1607_v12  ;;  %v1649_v46 = vld [vmem:[%s2203_s0 + $0x74] ss:$8 sps:$4 sm:$0xff]   ;;  %v1651_v48 = vld [vmem:[%s2203_s0 + $0x70] ss:$8 sps:$4 sm:$0xff]   ;;  %v1653_v49 = vld [vmem:[%s2203_s0 + $0x84] ss:$8 sps:$4 sm:$0xff]  }
  0x11   :  { %1440 = vmatprep.subr.bf16.mxu1 %v1609_v13  ;;  %v1648_v47 = vld [vmem:[%s2202_s1 + $0x38] sm:$0xff]   ;;  %v1652_v50 = vld [vmem:[%s2202_s1 + $0x40] sm:$0xff]   ;;  %v1656_v53 = vld [vmem:[%s2202_s1 + $0x48] sm:$0xff]  }
  0x12   :  { %1535 = vmatpush3.bf16.msra.mxu0 %v1608_v14  ;;  %v1655_v51 = vld [vmem:[%s2203_s0 + $0x80] ss:$8 sps:$4 sm:$0xff]   ;;  %v1657_v52 = vld [vmem:[%s2203_s0 + $0x94] ss:$8 sps:$4 sm:$0xff]   ;;  %v1659_v54 = vld [vmem:[%s2203_s0 + $0x90] ss:$8 sps:$4 sm:$0xff]  }
  0x13   :  { %1536 = vmatprep.subr.bf16.mxu0 %v1776_v0  ;;  %v1661_v55 = vld [vmem:[%s2203_s0 + $0xa4] ss:$8 sps:$4 sm:$0xff]   ;;  %v1660_v56 = vld [vmem:[%s2202_s1 + $0x50] sm:$0xff]   ;;  %v1663_v57 = vld [vmem:[%s2203_s0 + $0xa0] ss:$8 sps:$4 sm:$0xff]  }
  0x14   :  { %1441 = vmatpush3.bf16.msra.mxu1 %v1610_v15  ;;  %v1665_v58 = vld [vmem:[%s2203_s0 + $0xb4] ss:$8 sps:$4 sm:$0xff]   ;;  %v1667_v60 = vld [vmem:[%s2203_s0 + $0xb0] ss:$8 sps:$4 sm:$0xff]   ;;  %v1669_v61 = vld [vmem:[%s2203_s0 + $0xc4] ss:$8 sps:$4 sm:$0xff]  }
  0x15   :  { %1442 = vmatprep.subr.bf16.mxu1 %v1612_v16  ;;  %v1664_v59 = vld [vmem:[%s2202_s1 + $0x58] sm:$0xff]   ;;  %v1668_v62 = vld [vmem:[%s2202_s1 + $0x60] sm:$0xff]  }
  0x16   :  { %1537 = vmatpush3.bf16.msra.mxu0 %v1611_v17  ;;  %v1671_v63 = vld [vmem:[%s2203_s0 + $0xc0] ss:$8 sps:$4 sm:$0xff]  }
  0x17   :  { %1538 = vmatprep.subr.bf16.mxu0 %v1776_v0 }
  0x18   :  { %1443 = vmatpush3.bf16.msra.mxu1 %v1613_v18 }
  0x19   :  { %1444 = vmatprep.subr.bf16.mxu1 %v1615_v19 }
  0x1a   :  { %1539 = vmatpush3.bf16.msra.mxu0 %v1614_v20 }
  0x1b   :  { %1540 = vmatprep.subr.bf16.mxu0 %v1776_v0 }
  0x1c   :  { %1445 = vmatpush3.bf16.msra.mxu1 %v1616_v21 }
  0x1d   :  { %1446 = vmatprep.subr.bf16.mxu1 %v1618_v23 }
  0x1e   :  { %1541 = vmatpush3.bf16.msra.mxu0 %v1617_v22 }
  0x20   :  { %1447 = vmatpush3.bf16.msra.mxu1 %v1619_v25 }
  0x21   :  { %1543 = vmatmul.mubr.bf16.vlgmr.msra.gmra.mxu0 %v1620_v26 }
  0x22   :  { %1546 = vmatprep.mubr.msk.bf16.mxu0 %vm1777_vm0, %v1776_v0 }
  0x23   :  { %646 = vmatmul.mubr.bf16.vlgmr.msra.gmra.mxu1 %v1621_v27 }
  0x24   :  { %653 = vmatprep.mubr.bf16.mxu1 %v1625_v28 }
  0x29   :  { %1547 = vmatmul.mubr.bf16.gmra.mxu0 %v1624_v29 }
  0x2a   :  { %1550 = vmatprep.mubr.msk.bf16.mxu0 %vm1777_vm0, %v1776_v0 }
  0x2b   :  { %654 = vmatmul.mubr.bf16.gmra.mxu1 %v1627_v30 }
  0x2c   :  { %661 = vmatprep.mubr.bf16.mxu1 %v1629_v31 }
  0x31   :  { %1551 = vmatmul.mubr.bf16.gmra.mxu0 %v1628_v32 }
  0x32   :  { %1554 = vmatprep.mubr.msk.bf16.mxu0 %vm1777_vm0, %v1776_v0 }
  0x33   :  { %662 = vmatmul.mubr.bf16.gmra.mxu1 %v1631_v33 }
  0x34   :  { %669 = vmatprep.mubr.bf16.mxu1 %v1633_v34 }
  0x39   :  { %1555 = vmatmul.mubr.bf16.gmra.mxu0 %v1632_v35 }
  0x3a   :  { %1558 = vmatprep.mubr.msk.bf16.mxu0 %vm1777_vm0, %v1776_v0 }
  0x3b   :  { %670 = vmatmul.mubr.bf16.gmra.mxu1 %v1635_v36 }
  0x3c   :  { %677 = vmatprep.mubr.bf16.mxu1 %v1637_v37 }
  0x41   :  { %1559 = vmatmul.mubr.bf16.gmra.mxu0 %v1636_v38 }
  0x42   :  { %1562 = vmatprep.mubr.msk.bf16.mxu0 %vm1777_vm0, %v1776_v0 }
  0x43   :  { %678 = vmatmul.mubr.bf16.gmra.mxu1 %v1639_v39 }
  0x44   :  { %685 = vmatprep.mubr.bf16.mxu1 %v1641_v40 }
  0x49   :  { %1563 = vmatmul.mubr.bf16.gmra.mxu0 %v1640_v41 }
  0x4a   :  { %1566 = vmatprep.mubr.msk.bf16.mxu0 %vm1777_vm0, %v1776_v0 }
  0x4b   :  { %686 = vmatmul.mubr.bf16.gmra.mxu1 %v1643_v42 }
  0x4c   :  { %693 = vmatprep.mubr.bf16.mxu1 %v1645_v43 }
  0x51   :  { %1567 = vmatmul.mubr.bf16.gmra.mxu0 %v1644_v44 }
  0x52   :  { %1570 = vmatprep.mubr.msk.bf16.mxu0 %vm1777_vm0, %v1776_v0 }
  0x53   :  { %694 = vmatmul.mubr.bf16.gmra.mxu1 %v1647_v45 }
  0x54   :  { %701 = vmatprep.mubr.bf16.mxu1 %v1649_v46 }
  0x59   :  { %1571 = vmatmul.mubr.bf16.gmra.mxu0 %v1648_v47 }
  0x5a   :  { %1574 = vmatprep.mubr.msk.bf16.mxu0 %vm1777_vm0, %v1776_v0 }
  0x5b   :  { %702 = vmatmul.mubr.bf16.gmra.mxu1 %v1651_v48 }
  0x5c   :  { %709 = vmatprep.mubr.bf16.mxu1 %v1653_v49 }
  0x61   :  { %1575 = vmatmul.mubr.bf16.gmra.mxu0 %v1652_v50 }
  0x62   :  { %1578 = vmatprep.mubr.msk.bf16.mxu0 %vm1777_vm0, %v1776_v0 }
  0x63   :  { %710 = vmatmul.mubr.bf16.gmra.mxu1 %v1655_v51 }
  0x64   :  { %717 = vmatprep.mubr.bf16.mxu1 %v1657_v52 }
  0x69   :  { %1579 = vmatmul.mubr.bf16.gmra.mxu0 %v1656_v53 }
  0x6a   :  { %1582 = vmatprep.mubr.msk.bf16.mxu0 %vm1777_vm0, %v1776_v0 }
  0x6b   :  { %718 = vmatmul.mubr.bf16.gmra.mxu1 %v1659_v54 }
  0x6c   :  { %725 = vmatprep.mubr.bf16.mxu1 %v1661_v55 }
  0x71   :  { %1583 = vmatmul.mubr.bf16.gmra.mxu0 %v1660_v56 }
  0x72   :  { %1586 = vmatprep.mubr.msk.bf16.mxu0 %vm1777_vm0, %v1776_v0 }
  0x73   :  { %726 = vmatmul.mubr.bf16.gmra.mxu1 %v1663_v57 }
  0x74   :  { %733 = vmatprep.mubr.bf16.mxu1 %v1665_v58 }
  0x79   :  { %1587 = vmatmul.mubr.bf16.gmra.mxu0 %v1664_v59 }
  0x7a   :  { %1590 = vmatprep.mubr.msk.bf16.mxu0 %vm1777_vm0, %v1776_v0  ;;  %v2039_v0 = vld [vmem:[%s2204_s4] ss:$0 sm:$0xff] }
  0x7b   :  { %734 = vmatmul.mubr.bf16.gmra.mxu1 %v1667_v60 }
  0x7c   :  { %741 = vmatprep.mubr.bf16.mxu1 %v1669_v61 }
  0x81   :  { %1591 = vmatmul.mubr.bf16.gmra.mxu0 %v1668_v62 }
  0x83   :  { %742 = vmatmul.mubr.bf16.gmra.mxu1 %v1671_v63 }
  0xe1   :  { %v284_v1 = vpop.f32.mrf.mxu0 }
  0xe3   :  { %v1448_v2 = vpop.f32.mrf.mxu1  ;;  %v1544_v3 = vpop.f32.mrf.mxu0 }
  0xe5   :  { %v1449_v4 = vpop.f32.mrf.mxu1  ;;  %v287_v5 = vpop.f32.mrf.mxu0 }
  0xe6   :  { %v1450_v6 = vadd.f32 %v1449_v4, %v1448_v2 }
  0xe7   :  { %v1451_v7 = vpop.f32.mrf.mxu1  ;;  %v1545_v8 = vpop.f32.mrf.mxu0 }
  0xe8   :  { %v648_v9 = vadd.f32 %v1450_v6, %v284_v1 }
  0xe9   :  { %v1452_v10 = vpop.f32.mrf.mxu1  ;;  %v292_v11 = vpop.f32.mrf.mxu0 }
  0xea   :  { %v757_v12 = vadd.f32 %v2039_v0, %v648_v9  ;;  %v1453_v13 = vadd.f32 %v1452_v10, %v1451_v7  ;;  %v965_v9 = vlaneseq }
  0xeb   :  { %v1454_v14 = vpop.f32.mrf.mxu1  ;;  %v1548_v15 = vpop.f32.mrf.mxu0 }
  0xec   :  { %v783_v16 = vsub.f32 0.0, %v757_v12  ;;  %v651_v17 = vadd.f32 %v1453_v13, %v287_v5 }
  0xed   :  { %v1455_v18 = vpop.f32.mrf.mxu1  ;;  %v295_v19 = vpop.f32.mrf.mxu0 }
  0xee   :  { %v809_v20 = vmul.f32 1.442695, %v783_v16  ;;  %v758_v21 = vadd.f32 %v2039_v0, %v651_v17  ;;  %v1456_v22 = vadd.f32 %v1455_v18, %v1454_v14  ;;  %v1271_v17 = vld [vmem:[%s2205_s5] sm:$0xff]  }
  0xef   :  { %v1457_v23 = vpop.f32.mrf.mxu1  ;;  %v1549_v24 = vpop.f32.mrf.mxu0 }
  0xf0   :  { %1672 = vpow2.f32 %v809_v20  ;;  %v784_v25 = vsub.f32 0.0, %v758_v21  ;;  %v656_v26 = vadd.f32 %v1456_v22, %v292_v11  ;;  %v2052_v22 = vand.u32 127, %v965_v9 }
  0xf1   :  { %v1458_v27 = vpop.f32.mrf.mxu1  ;;  %v300_v28 = vpop.f32.mrf.mxu0 }
  0xf2   :  { %v811_v29 = vmul.f32 1.442695, %v784_v25  ;;  %v759_v30 = vadd.f32 %v2039_v0, %v656_v26  ;;  %v1459_v31 = vadd.f32 %v1458_v27, %v1457_v23  ;;  %vm967_vm1 = vcmp.lt.s32.totalorder %v2052_v22, 2 }
  0xf3   :  { %v1460_v32 = vpop.f32.mrf.mxu1  ;;  %v1552_v33 = vpop.f32.mrf.mxu0 }
  0xf4   :  { %1674 = vpow2.f32 %v811_v29  ;;  %v785_v34 = vsub.f32 0.0, %v759_v30  ;;  %v659_v35 = vadd.f32 %v1459_v31, %v295_v19 }
  0xf5   :  { %v1461_v36 = vpop.f32.mrf.mxu1  ;;  %v303_v37 = vpop.f32.mrf.mxu0 }
  0xf6   :  { %v813_v38 = vmul.f32 1.442695, %v785_v34  ;;  %v760_v39 = vadd.f32 %v2039_v0, %v659_v35  ;;  %v1462_v40 = vadd.f32 %v1461_v36, %v1460_v32  ;;  %v1273_v35 = vunpack.c.h.bf16 %v1271_v17 }
  0xf7   :  { %v1463_v41 = vpop.f32.mrf.mxu1  ;;  %v1553_v42 = vpop.f32.mrf.mxu0 }
  0xf8   :  { %1676 = vpow2.f32 %v813_v38  ;;  %v786_v43 = vsub.f32 0.0, %v760_v39  ;;  %v664_v44 = vadd.f32 %v1462_v40, %v300_v28  ;;  %v1272_v28 = vunpack.c.l.bf16 %v1271_v17 }
  0xf9   :  { %v1464_v45 = vpop.f32.mrf.mxu1  ;;  %v308_v46 = vpop.f32.mrf.mxu0 }
  0xfa   :  { %v815_v47 = vmul.f32 1.442695, %v786_v43  ;;  %v761_v48 = vadd.f32 %v2039_v0, %v664_v44  ;;  %v1465_v49 = vadd.f32 %v1464_v45, %v1463_v41  ;;  %v968_v44 = vsel %vm967_vm1, 1.0, %v1272_v28  ;;  %v1387_v45 = vld [vmem:[%s2205_s5 + $0x8] sm:$0xff]  }
  0xfb   :  { %v1466_v50 = vpop.f32.mrf.mxu1  ;;  %v1556_v51 = vpop.f32.mrf.mxu0 }
  0xfc   :  { %1678 = vpow2.f32 %v815_v47  ;;  %v787_v52 = vsub.f32 0.0, %v761_v48  ;;  %v667_v53 = vadd.f32 %v1465_v49, %v303_v37  ;;  %v969_v49 = vsel %vm967_vm1, 1.0, %v1273_v35 }
  0xfd   :  { %v1673_v54 = vpop.eup %1672  ;;  %v1467_v55 = vpop.f32.mrf.mxu1 }
  0xfe   :  { %v311_v56 = vpop.f32.mrf.mxu0  ;;  %v861_v57 = vadd.f32 1.0, %v1673_v54  ;;  %v817_v58 = vmul.f32 1.442695, %v787_v52  ;;  %v762_v59 = vadd.f32 %v2039_v0, %v667_v53  ;;  %v1468_v60 = vadd.f32 %v1467_v55, %v1466_v50 }
  0xff   :  { %v1469_v61 = vpop.f32.mrf.mxu1 }
 0x100   :  { %v1557_v62 = vpop.f32.mrf.mxu0  ;;  %1680 = vrcp.f32 %v861_v57  ;;  %v788_v63 = vsub.f32 0.0, %v762_v59  ;;  %v672_v1 = vadd.f32 %v1468_v60, %v308_v46  ;;  %v1276_v57 = vunpack.c.l.bf16 %v1387_v45 }
 0x101   :  { %v1675_v2 = vpop.eup %1674  ;;  %1682 = vpow2.f32 %v817_v58  ;;  %v1470_v3 = vpop.f32.mrf.mxu1 }
 0x102   :  { %v316_v4 = vpop.f32.mrf.mxu0  ;;  %v862_v5 = vadd.f32 1.0, %v1675_v2  ;;  %v819_v6 = vmul.f32 1.442695, %v788_v63  ;;  %v763_v7 = vadd.f32 %v2039_v0, %v672_v1  ;;  %v1471_v8 = vadd.f32 %v1470_v3, %v1469_v61 }
 0x103   :  { %v1472_v10 = vpop.f32.mrf.mxu1  ;;  %v1277_v2 = vunpack.c.h.bf16 %v1387_v45 }
 0x104   :  { %v1560_v11 = vpop.f32.mrf.mxu0  ;;  %1684 = vrcp.f32 %v862_v5  ;;  %v789_v12 = vsub.f32 0.0, %v763_v7  ;;  %v675_v13 = vadd.f32 %v1471_v8, %v311_v56 }
 0x105   :  { %v1677_v14 = vpop.eup %1676  ;;  %1686 = vpow2.f32 %v819_v6  ;;  %v1473_v15 = vpop.f32.mrf.mxu1  ;;  %v971_v17 = vsel %vm967_vm1, 1.0, %v1277_v2 }
 0x106   :  { %v319_v16 = vpop.f32.mrf.mxu0  ;;  %v863_v18 = vadd.f32 1.0, %v1677_v14  ;;  %v821_v19 = vmul.f32 1.442695, %v789_v12  ;;  %v764_v20 = vadd.f32 %v2039_v0, %v675_v13  ;;  %v1474_v21 = vadd.f32 %v1473_v15, %v1472_v10 }
 0x107   :  { %v1475_v23 = vpop.f32.mrf.mxu1  ;;  %v970_v13 = vsel %vm967_vm1, 1.0, %v1276_v57 }
 0x108   :  { %v1561_v24 = vpop.f32.mrf.mxu0  ;;  %1688 = vrcp.f32 %v863_v18  ;;  %v790_v25 = vsub.f32 0.0, %v764_v20  ;;  %v680_v26 = vadd.f32 %v1474_v21, %v316_v4  ;;  %v1388_v21 = vld [vmem:[%s2205_s5 + $0x10] sm:$0xff]  }
 0x109   :  { %v1679_v27 = vpop.eup %1678  ;;  %1690 = vpow2.f32 %v821_v19  ;;  %v1476_v29 = vpop.f32.mrf.mxu1  ;;  %v1281_v35 = vunpack.c.h.bf16 %v1388_v21 }
 0x10a   :  { %v324_v30 = vpop.f32.mrf.mxu0  ;;  %v864_v31 = vadd.f32 1.0, %v1679_v27  ;;  %v823_v32 = vmul.f32 1.442695, %v790_v25  ;;  %v765_v33 = vadd.f32 %v2039_v0, %v680_v26  ;;  %v1477_v34 = vadd.f32 %v1476_v29, %v1475_v23 }
 0x10b   :  { %v1478_v36 = vpop.f32.mrf.mxu1 }
 0x10c   :  { %v1564_v37 = vpop.f32.mrf.mxu0  ;;  %1692 = vrcp.f32 %v864_v31  ;;  %v791_v38 = vsub.f32 0.0, %v765_v33  ;;  %v683_v39 = vadd.f32 %v1477_v34, %v319_v16  ;;  %v1280_v34 = vunpack.c.l.bf16 %v1388_v21 }
 0x10d   :  { %v1681_v40 = vpop.eup %1680  ;;  %1694 = vpow2.f32 %v823_v32  ;;  %v1479_v41 = vpop.f32.mrf.mxu1 }
 0x10e   :  { %v327_v42 = vpop.f32.mrf.mxu0  ;;  %v1683_v43 = vpop.eup %1682  ;;  %v825_v46 = vmul.f32 1.442695, %v791_v38  ;;  %v766_v47 = vadd.f32 %v2039_v0, %v683_v39  ;;  %v1480_v48 = vadd.f32 %v1479_v41, %v1478_v36  ;;  %v994_v56 = vmul.f32 %v1681_v40, %v968_v44 }
 0x10f   :  { %v865_v50 = vadd.f32 1.0, %v1683_v43  ;;  %v1481_v51 = vpop.f32.mrf.mxu1 }
 0x110   :  { %v1565_v52 = vpop.f32.mrf.mxu0  ;;  %1696 = vpow2.f32 %v825_v46  ;;  %v792_v53 = vsub.f32 0.0, %v766_v47  ;;  %v688_v54 = vadd.f32 %v1480_v48, %v324_v30 }
 0x111   :  { %v1685_v55 = vpop.eup %1684  ;;  %v1482_v58 = vpop.f32.mrf.mxu1  ;;  %1698 = vrcp.f32 %v865_v50 }
 0x112   :  { %v332_v59 = vpop.f32.mrf.mxu0  ;;  %v1687_v60 = vpop.eup %1686  ;;  %v995_v61 = vmul.f32 %v1685_v55, %v969_v49  ;;  %v827_v62 = vmul.f32 1.442695, %v792_v53  ;;  %v767_v63 = vadd.f32 %v2039_v0, %v688_v54  ;;  %v1483_v1 = vadd.f32 %v1482_v58, %v1481_v51  ;;  %v1389_v54 = vld [vmem:[%s2205_s5 + $0x18] sm:$0xff]  }
 0x113   :  { %v866_v3 = vadd.f32 1.0, %v1687_v60  ;;  %v1484_v4 = vpop.f32.mrf.mxu1  ;;  %v972_v49 = vsel %vm967_vm1, 1.0, %v1280_v34  ;;  %v973_v53 = vsel %vm967_vm1, 1.0, %v1281_v35 }
 0x114   :  { %v1568_v5 = vpop.f32.mrf.mxu0  ;;  %v1325_v6 = vpack.c.bf16 %v995_v61, %v994_v56  ;;  %1700 = vpow2.f32 %v827_v62  ;;  %v793_v7 = vsub.f32 0.0, %v767_v63  ;;  %v691_v8 = vadd.f32 %v1483_v1, %v327_v42 }
 0x115   :  { %v1689_v9 = vpop.eup %1688  ;;  %1702 = vrcp.f32 %v866_v3  ;;  %v1485_v10 = vpop.f32.mrf.mxu1 }
 0x116   :  { %v335_v11 = vpop.f32.mrf.mxu0  ;;  %v1691_v12 = vpop.eup %1690  ;;  %1326 = vst [vmem:[%s2206_s6] sm:$0xff] %v1325_v6   ;;  %v829_v14 = vmul.f32 1.442695, %v793_v7  ;;  %v768_v15 = vadd.f32 %v2039_v0, %v691_v8  ;;  %v1486_v16 = vadd.f32 %v1485_v10, %v1484_v4  ;;  %v996_v26 = vmul.f32 %v1689_v9, %v970_v13 }
 0x117   :  { %v867_v18 = vadd.f32 1.0, %v1691_v12  ;;  %v1487_v19 = vpop.f32.mrf.mxu1  ;;  %v1284_v4 = vunpack.c.l.bf16 %v1389_v54  ;;  %v1285_v7 = vunpack.c.h.bf16 %v1389_v54 }
 0x118   :  { %v1569_v20 = vpop.f32.mrf.mxu0  ;;  %1704 = vpow2.f32 %v829_v14  ;;  %v794_v23 = vsub.f32 0.0, %v768_v15  ;;  %v696_v24 = vadd.f32 %v1486_v16, %v332_v59  ;;  %v1390_v14 = vld [vmem:[%s2205_s5 + $0x20] sm:$0xff]  }
 0x119   :  { %v1693_v25 = vpop.eup %1692  ;;  %v1488_v27 = vpop.f32.mrf.mxu1  ;;  %1706 = vrcp.f32 %v867_v18 }
 0x11a   :  { %v340_v28 = vpop.f32.mrf.mxu0  ;;  %v1695_v29 = vpop.eup %1694  ;;  %v997_v30 = vmul.f32 %v1693_v25, %v971_v17  ;;  %v831_v31 = vmul.f32 1.442695, %v794_v23  ;;  %v769_v32 = vadd.f32 %v2039_v0, %v696_v24  ;;  %v1489_v33 = vadd.f32 %v1488_v27, %v1487_v19 }
 0x11b   :  { %v868_v36 = vadd.f32 1.0, %v1695_v29  ;;  %v1490_v37 = vpop.f32.mrf.mxu1  ;;  %v974_v19 = vsel %vm967_vm1, 1.0, %v1284_v4  ;;  %v975_v24 = vsel %vm967_vm1, 1.0, %v1285_v7 }
 0x11c   :  { %v1572_v38 = vpop.f32.mrf.mxu0  ;;  %v1330_v39 = vpack.c.bf16 %v997_v30, %v996_v26  ;;  %1708 = vpow2.f32 %v831_v31  ;;  %v795_v40 = vsub.f32 0.0, %v769_v32  ;;  %v699_v41 = vadd.f32 %v1489_v33, %v335_v11 }
 0x11d   :  { %v1697_v42 = vpop.eup %1696  ;;  %1710 = vrcp.f32 %v868_v36  ;;  %v1491_v43 = vpop.f32.mrf.mxu1  ;;  %v1289_v38 = vunpack.c.h.bf16 %v1390_v14 }
 0x11e   :  { %v343_v44 = vpop.f32.mrf.mxu0  ;;  %1399 = vst [vmem:[%s2206_s6 + $0x8] sm:$0xff] %v1330_v39   ;;  %v869_v45 = vadd.f32 1.0, %v1697_v42  ;;  %v833_v46 = vmul.f32 1.442695, %v795_v40  ;;  %v770_v47 = vadd.f32 %v2039_v0, %v699_v41  ;;  %v1492_v48 = vadd.f32 %v1491_v43, %v1490_v37  ;;  %v1699_v52 = vpop.eup %1698 }
 0x11f   :  { %v1493_v50 = vpop.f32.mrf.mxu1  ;;  %v998_v2 = vmul.f32 %v1699_v52, %v972_v49  ;;  %v1391_v49 = vld [vmem:[%s2205_s5 + $0x28] sm:$0xff]  }
 0x120   :  { %v1573_v51 = vpop.f32.mrf.mxu0  ;;  %1712 = vrcp.f32 %v869_v45  ;;  %v796_v55 = vsub.f32 0.0, %v770_v47  ;;  %v704_v56 = vadd.f32 %v1492_v48, %v340_v28  ;;  %v1288_v28 = vunpack.c.l.bf16 %v1390_v14 }
 0x121   :  { %v1701_v57 = vpop.eup %1700  ;;  %1714 = vpow2.f32 %v833_v46  ;;  %v1494_v58 = vpop.f32.mrf.mxu1 }
 0x122   :  { %v348_v59 = vpop.f32.mrf.mxu0  ;;  %v1703_v60 = vpop.eup %1702  ;;  %v870_v61 = vadd.f32 1.0, %v1701_v57  ;;  %v835_v62 = vmul.f32 1.442695, %v796_v55  ;;  %v771_v63 = vadd.f32 %v2039_v0, %v704_v56  ;;  %v1495_v1 = vadd.f32 %v1494_v58, %v1493_v50 }
 0x123   :  { %v999_v3 = vmul.f32 %v1703_v60, %v973_v53  ;;  %v1496_v5 = vpop.f32.mrf.mxu1  ;;  %v976_v48 = vsel %vm967_vm1, 1.0, %v1288_v28  ;;  %v977_v53 = vsel %vm967_vm1, 1.0, %v1289_v38 }
 0x124   :  { %v1576_v6 = vpop.f32.mrf.mxu0  ;;  %1716 = vrcp.f32 %v870_v61  ;;  %v797_v8 = vsub.f32 0.0, %v771_v63  ;;  %v707_v9 = vadd.f32 %v1495_v1, %v343_v44  ;;  %v1292_v61 = vunpack.c.l.bf16 %v1391_v49 }
 0x125   :  { %v1705_v10 = vpop.eup %1704  ;;  %v1335_v11 = vpack.c.bf16 %v999_v3, %v998_v2  ;;  %1718 = vpow2.f32 %v835_v62  ;;  %v1497_v12 = vpop.f32.mrf.mxu1  ;;  %v1293_v6 = vunpack.c.h.bf16 %v1391_v49 }
 0x126   :  { %v351_v13 = vpop.f32.mrf.mxu0  ;;  %v871_v15 = vadd.f32 1.0, %v1705_v10  ;;  %v837_v16 = vmul.f32 1.442695, %v797_v8  ;;  %v772_v17 = vadd.f32 %v2039_v0, %v707_v9  ;;  %v1498_v18 = vadd.f32 %v1497_v12, %v1496_v5  ;;  %v1707_v23 = vpop.eup %1706 }
 0x127   :  { %1400 = vst [vmem:[%s2206_s6 + $0x10] sm:$0xff] %v1335_v11   ;;  %v1499_v20 = vpop.f32.mrf.mxu1  ;;  %v1000_v36 = vmul.f32 %v1707_v23, %v974_v19 }
 0x128   :  { %v1577_v21 = vpop.f32.mrf.mxu0  ;;  %1720 = vrcp.f32 %v871_v15  ;;  %v798_v25 = vsub.f32 0.0, %v772_v17  ;;  %v712_v26 = vadd.f32 %v1498_v18, %v348_v59  ;;  %v978_v17 = vsel %vm967_vm1, 1.0, %v1292_v61 }
 0x129   :  { %v1709_v27 = vpop.eup %1708  ;;  %1722 = vpow2.f32 %v837_v16  ;;  %v1500_v29 = vpop.f32.mrf.mxu1  ;;  %v979_v21 = vsel %vm967_vm1, 1.0, %v1293_v6 }
 0x12a   :  { %v356_v30 = vpop.f32.mrf.mxu0  ;;  %v1711_v31 = vpop.eup %1710  ;;  %v872_v32 = vadd.f32 1.0, %v1709_v27  ;;  %v839_v33 = vmul.f32 1.442695, %v798_v25  ;;  %v773_v34 = vadd.f32 %v2039_v0, %v712_v26  ;;  %v1501_v35 = vadd.f32 %v1500_v29, %v1499_v20  ;;  %v1392_v26 = vld [vmem:[%s2205_s5 + $0x30] sm:$0xff]  }
 0x12b   :  { %v1001_v37 = vmul.f32 %v1711_v31, %v975_v24  ;;  %v1502_v39 = vpop.f32.mrf.mxu1  ;;  %v1296_v38 = vunpack.c.l.bf16 %v1392_v26 }
 0x12c   :  { %v1580_v40 = vpop.f32.mrf.mxu0  ;;  %1724 = vrcp.f32 %v872_v32  ;;  %v799_v41 = vsub.f32 0.0, %v773_v34  ;;  %v715_v42 = vadd.f32 %v1501_v35, %v351_v13 }
 0x12d   :  { %v1713_v43 = vpop.eup %1712  ;;  %v1340_v44 = vpack.c.bf16 %v1001_v37, %v1000_v36  ;;  %1726 = vpow2.f32 %v839_v33  ;;  %v1503_v45 = vpop.f32.mrf.mxu1 }
 0x12e   :  { %v359_v46 = vpop.f32.mrf.mxu0  ;;  %v1715_v47 = vpop.eup %1714  ;;  %v841_v50 = vmul.f32 1.442695, %v799_v41  ;;  %v774_v51 = vadd.f32 %v2039_v0, %v715_v42  ;;  %v1504_v52 = vadd.f32 %v1503_v45, %v1502_v39  ;;  %v1002_v60 = vmul.f32 %v1713_v43, %v976_v48 }
 0x12f   :  { %1401 = vst [vmem:[%s2206_s6 + $0x18] sm:$0xff] %v1340_v44   ;;  %v873_v54 = vadd.f32 1.0, %v1715_v47  ;;  %v1505_v55 = vpop.f32.mrf.mxu1  ;;  %v1297_v39 = vunpack.c.h.bf16 %v1392_v26 }
 0x130   :  { %v1581_v56 = vpop.f32.mrf.mxu0  ;;  %1728 = vpow2.f32 %v841_v50  ;;  %v800_v57 = vsub.f32 0.0, %v774_v51  ;;  %v720_v58 = vadd.f32 %v1504_v52, %v356_v30 }
 0x131   :  { %v1717_v59 = vpop.eup %1716  ;;  %v1506_v62 = vpop.f32.mrf.mxu1  ;;  %1730 = vrcp.f32 %v873_v54 }
 0x132   :  { %v364_v63 = vpop.f32.mrf.mxu0  ;;  %v1719_v1 = vpop.eup %1718  ;;  %v1003_v2 = vmul.f32 %v1717_v59, %v977_v53  ;;  %v843_v3 = vmul.f32 1.442695, %v800_v57  ;;  %v775_v4 = vadd.f32 %v2039_v0, %v720_v58  ;;  %v1507_v5 = vadd.f32 %v1506_v62, %v1505_v55  ;;  %v1393_v58 = vld [vmem:[%s2205_s5 + $0x38] sm:$0xff]  }
 0x133   :  { %v874_v7 = vadd.f32 1.0, %v1719_v1  ;;  %v1508_v8 = vpop.f32.mrf.mxu1  ;;  %v980_v53 = vsel %vm967_vm1, 1.0, %v1296_v38  ;;  %v981_v57 = vsel %vm967_vm1, 1.0, %v1297_v39 }
 0x134   :  { %v1584_v9 = vpop.f32.mrf.mxu0  ;;  %v1345_v10 = vpack.c.bf16 %v1003_v2, %v1002_v60  ;;  %1732 = vpow2.f32 %v843_v3  ;;  %v801_v11 = vsub.f32 0.0, %v775_v4  ;;  %v723_v12 = vadd.f32 %v1507_v5, %v359_v46 }
 0x135   :  { %v1721_v13 = vpop.eup %1720  ;;  %1734 = vrcp.f32 %v874_v7  ;;  %v1509_v14 = vpop.f32.mrf.mxu1 }
 0x136   :  { %v367_v15 = vpop.f32.mrf.mxu0  ;;  %v1723_v16 = vpop.eup %1722  ;;  %1402 = vst [vmem:[%s2206_s6 + $0x20] sm:$0xff] %v1345_v10   ;;  %v845_v18 = vmul.f32 1.442695, %v801_v11  ;;  %v776_v19 = vadd.f32 %v2039_v0, %v723_v12  ;;  %v1510_v20 = vadd.f32 %v1509_v14, %v1508_v8  ;;  %v1004_v30 = vmul.f32 %v1721_v13, %v978_v17 }
 0x137   :  { %v875_v23 = vadd.f32 1.0, %v1723_v16  ;;  %v1511_v24 = vpop.f32.mrf.mxu1  ;;  %v1300_v8 = vunpack.c.l.bf16 %v1393_v58  ;;  %v1301_v11 = vunpack.c.h.bf16 %v1393_v58 }
 0x138   :  { %v1585_v25 = vpop.f32.mrf.mxu0  ;;  %1736 = vpow2.f32 %v845_v18  ;;  %v802_v27 = vsub.f32 0.0, %v776_v19  ;;  %v728_v28 = vadd.f32 %v1510_v20, %v364_v63 }
 0x139   :  { %v1725_v29 = vpop.eup %1724  ;;  %v1512_v31 = vpop.f32.mrf.mxu1  ;;  %1738 = vrcp.f32 %v875_v23  ;;  %v982_v23 = vsel %vm967_vm1, 1.0, %v1300_v8 }
 0x13a   :  { %v372_v32 = vpop.f32.mrf.mxu0  ;;  %v1727_v33 = vpop.eup %1726  ;;  %v1005_v34 = vmul.f32 %v1725_v29, %v979_v21  ;;  %v847_v35 = vmul.f32 1.442695, %v802_v27  ;;  %v777_v36 = vadd.f32 %v2039_v0, %v728_v28  ;;  %v1513_v37 = vadd.f32 %v1512_v31, %v1511_v24  ;;  %v1394_v28 = vld [vmem:[%s2205_s5 + $0x40] sm:$0xff]  }
 0x13b   :  { %v876_v40 = vadd.f32 1.0, %v1727_v33  ;;  %v1514_v41 = vpop.f32.mrf.mxu1  ;;  %v983_v27 = vsel %vm967_vm1, 1.0, %v1301_v11 }
 0x13c   :  { %v1588_v42 = vpop.f32.mrf.mxu0  ;;  %v1350_v43 = vpack.c.bf16 %v1005_v34, %v1004_v30  ;;  %1740 = vpow2.f32 %v847_v35  ;;  %v803_v44 = vsub.f32 0.0, %v777_v36  ;;  %v731_v45 = vadd.f32 %v1513_v37, %v367_v15 }
 0x13d   :  { %v1729_v46 = vpop.eup %1728  ;;  %1742 = vrcp.f32 %v876_v40  ;;  %v1515_v47 = vpop.f32.mrf.mxu1  ;;  %v1304_v40 = vunpack.c.l.bf16 %v1394_v28 }
 0x13e   :  { %v375_v48 = vpop.f32.mrf.mxu0  ;;  %1403 = vst [vmem:[%s2206_s6 + $0x28] sm:$0xff] %v1350_v43   ;;  %v877_v49 = vadd.f32 1.0, %v1729_v46  ;;  %v849_v50 = vmul.f32 1.442695, %v803_v44  ;;  %v778_v51 = vadd.f32 %v2039_v0, %v731_v45  ;;  %v1516_v52 = vadd.f32 %v1515_v47, %v1514_v41  ;;  %v1731_v56 = vpop.eup %1730 }
 0x13f   :  { %v1517_v54 = vpop.f32.mrf.mxu1  ;;  %v1006_v6 = vmul.f32 %v1731_v56, %v980_v53  ;;  %v1305_v41 = vunpack.c.h.bf16 %v1394_v28 }
 0x140   :  { %v1589_v55 = vpop.f32.mrf.mxu0  ;;  %1744 = vrcp.f32 %v877_v49  ;;  %v804_v59 = vsub.f32 0.0, %v778_v51  ;;  %v736_v60 = vadd.f32 %v1516_v52, %v372_v32  ;;  %v984_v49 = vsel %vm967_vm1, 1.0, %v1304_v40  ;;  %v1395_v52 = vld [vmem:[%s2205_s5 + $0x48] sm:$0xff]  }
 0x141   :  { %v1733_v61 = vpop.eup %1732  ;;  %1746 = vpow2.f32 %v849_v50  ;;  %v1518_v62 = vpop.f32.mrf.mxu1  ;;  %v985_v50 = vsel %vm967_vm1, 1.0, %v1305_v41  ;;  %v1308_v58 = vunpack.c.l.bf16 %v1395_v52 }
 0x142   :  { %v380_v63 = vpop.f32.mrf.mxu0  ;;  %v1735_v1 = vpop.eup %1734  ;;  %v878_v2 = vadd.f32 1.0, %v1733_v61  ;;  %v851_v3 = vmul.f32 1.442695, %v804_v59  ;;  %v779_v4 = vadd.f32 %v2039_v0, %v736_v60  ;;  %v1519_v5 = vadd.f32 %v1518_v62, %v1517_v54 }
 0x143   :  { %v1007_v7 = vmul.f32 %v1735_v1, %v981_v57  ;;  %v1520_v9 = vpop.f32.mrf.mxu1  ;;  %v1309_v59 = vunpack.c.h.bf16 %v1395_v52  ;;  %v986_v1 = vsel %vm967_vm1, 1.0, %v1308_v58 }
 0x144   :  { %v1592_v10 = vpop.f32.mrf.mxu0  ;;  %1748 = vrcp.f32 %v878_v2  ;;  %v805_v12 = vsub.f32 0.0, %v779_v4  ;;  %v739_v13 = vadd.f32 %v1519_v5, %v375_v48  ;;  %v1396_v5 = vld [vmem:[%s2205_s5 + $0x50] sm:$0xff]  }
 0x145   :  { %v1737_v14 = vpop.eup %1736  ;;  %v1355_v15 = vpack.c.bf16 %v1007_v7, %v1006_v6  ;;  %1750 = vpow2.f32 %v851_v3  ;;  %v1521_v16 = vpop.f32.mrf.mxu1  ;;  %v987_v2 = vsel %vm967_vm1, 1.0, %v1309_v59  ;;  %v1312_v11 = vunpack.c.l.bf16 %v1396_v5 }
 0x146   :  { %v383_v17 = vpop.f32.mrf.mxu0  ;;  %v879_v18 = vadd.f32 1.0, %v1737_v14  ;;  %v853_v19 = vmul.f32 1.442695, %v805_v12  ;;  %v780_v20 = vadd.f32 %v2039_v0, %v739_v13  ;;  %v1522_v21 = vadd.f32 %v1521_v16, %v1520_v9  ;;  %v1739_v26 = vpop.eup %1738 }
 0x147   :  { %1404 = vst [vmem:[%s2206_s6 + $0x30] sm:$0xff] %v1355_v15   ;;  %v1523_v24 = vpop.f32.mrf.mxu1  ;;  %v1008_v38 = vmul.f32 %v1739_v26, %v982_v23  ;;  %v1313_v12 = vunpack.c.h.bf16 %v1396_v5  ;;  %v988_v16 = vsel %vm967_vm1, 1.0, %v1312_v11 }
 0x148   :  { %v1593_v25 = vpop.f32.mrf.mxu0  ;;  %1752 = vrcp.f32 %v879_v18  ;;  %v806_v29 = vsub.f32 0.0, %v780_v20  ;;  %v744_v30 = vadd.f32 %v1522_v21, %v380_v63 }
 0x149   :  { %v1741_v31 = vpop.eup %1740  ;;  %1754 = vpow2.f32 %v853_v19  ;;  %v1524_v32 = vpop.f32.mrf.mxu1  ;;  %v1397_v19 = vld [vmem:[%s2205_s5 + $0x58] sm:$0xff]  }
 0x14a   :  { %v1743_v33 = vpop.eup %1742  ;;  %v880_v34 = vadd.f32 1.0, %v1741_v31  ;;  %v855_v35 = vmul.f32 1.442695, %v806_v29  ;;  %v781_v36 = vadd.f32 %v2039_v0, %v744_v30  ;;  %v1525_v37 = vadd.f32 %v1524_v32, %v1523_v24  ;;  %v1398_v31 = vld [vmem:[%s2205_s5 + $0x60] sm:$0xff]  }
 0x14b   :  { %v1009_v39 = vmul.f32 %v1743_v33, %v983_v27  ;;  %v1316_v25 = vunpack.c.l.bf16 %v1397_v19  ;;  %v1317_v26 = vunpack.c.h.bf16 %v1397_v19 }
 0x14c   :  { %1756 = vrcp.f32 %v880_v34  ;;  %v807_v42 = vsub.f32 0.0, %v781_v36  ;;  %v747_v43 = vadd.f32 %v1525_v37, %v383_v17  ;;  %v989_v17 = vsel %vm967_vm1, 1.0, %v1313_v12 }
 0x14d   :  { %v1745_v44 = vpop.eup %1744  ;;  %v1360_v45 = vpack.c.bf16 %v1009_v39, %v1008_v38  ;;  %1758 = vpow2.f32 %v855_v35  ;;  %v990_v29 = vsel %vm967_vm1, 1.0, %v1316_v25  ;;  %v991_v30 = vsel %vm967_vm1, 1.0, %v1317_v26 }
 0x14e   :  { %v1747_v46 = vpop.eup %1746  ;;  %v857_v47 = vmul.f32 1.442695, %v807_v42  ;;  %v782_v48 = vadd.f32 %v2039_v0, %v747_v43  ;;  %v1010_v0 = vmul.f32 %v1745_v44, %v984_v49  ;;  %v1320_v35 = vunpack.c.l.bf16 %v1398_v31 }
 0x14f   :  { %1405 = vst [vmem:[%s2206_s6 + $0x38] sm:$0xff] %v1360_v45   ;;  %v881_v51 = vadd.f32 1.0, %v1747_v46  ;;  %v1321_v36 = vunpack.c.h.bf16 %v1398_v31 }
 0x150   :  { %1760 = vpow2.f32 %v857_v47  ;;  %v808_v53 = vsub.f32 0.0, %v782_v48  ;;  %v992_v39 = vsel %vm967_vm1, 1.0, %v1320_v35 }
 0x151   :  { %v1749_v54 = vpop.eup %1748  ;;  %1762 = vrcp.f32 %v881_v51  ;;  %v993_v40 = vsel %vm967_vm1, 1.0, %v1321_v36 }
 0x152   :  { %v1751_v55 = vpop.eup %1750  ;;  %v1011_v56 = vmul.f32 %v1749_v54, %v985_v50  ;;  %v859_v57 = vmul.f32 1.442695, %v808_v53 }
 0x153   :  { %v882_v60 = vadd.f32 1.0, %v1751_v55 }
 0x154   :  { %v1365_v61 = vpack.c.bf16 %v1011_v56, %v1010_v0  ;;  %1764 = vpow2.f32 %v859_v57 }
 0x155   :  { %v1753_v62 = vpop.eup %1752  ;;  %1766 = vrcp.f32 %v882_v60 }
 0x156   :  { %v1755_v63 = vpop.eup %1754  ;;  %1406 = vst [vmem:[%s2206_s6 + $0x40] sm:$0xff] %v1365_v61   ;;  %v1012_v7 = vmul.f32 %v1753_v62, %v986_v1 }
 0x157   :  { %v883_v3 = vadd.f32 1.0, %v1755_v63 }
 0x159   :  { %v1757_v4 = vpop.eup %1756  ;;  %1768 = vrcp.f32 %v883_v3 }
 0x15a   :  { %v1759_v6 = vpop.eup %1758  ;;  %v1013_v8 = vmul.f32 %v1757_v4, %v987_v2 }
 0x15b   :  { %v884_v9 = vadd.f32 1.0, %v1759_v6 }
 0x15c   :  { %v1370_v10 = vpack.c.bf16 %v1013_v8, %v1012_v7 }
 0x15d   :  { %v1761_v13 = vpop.eup %1760  ;;  %1770 = vrcp.f32 %v884_v9 }
 0x15e   :  { %1407 = vst [vmem:[%s2206_s6 + $0x48] sm:$0xff] %v1370_v10   ;;  %v885_v14 = vadd.f32 1.0, %v1761_v13  ;;  %v1763_v15 = vpop.eup %1762 }
 0x15f   :  { %v1014_v23 = vmul.f32 %v1763_v15, %v988_v16 }
 0x160   :  { %1772 = vrcp.f32 %v885_v14 }
 0x161   :  { %v1765_v18 = vpop.eup %1764 }
 0x162   :  { %v1767_v20 = vpop.eup %1766  ;;  %v886_v21 = vadd.f32 1.0, %v1765_v18 }
 0x163   :  { %v1015_v24 = vmul.f32 %v1767_v20, %v989_v17 }
 0x164   :  { %1774 = vrcp.f32 %v886_v21 }
 0x165   :  { %v1375_v27 = vpack.c.bf16 %v1015_v24, %v1014_v23 }
 0x166   :  { %v1769_v28 = vpop.eup %1768 }
 0x167   :  { %1408 = vst [vmem:[%s2206_s6 + $0x50] sm:$0xff] %v1375_v27   ;;  %v1016_v33 = vmul.f32 %v1769_v28, %v990_v29 }
 0x16a   :  { %v1771_v32 = vpop.eup %1770 }
 0x16b   :  { %v1017_v34 = vmul.f32 %v1771_v32, %v991_v30 }
 0x16d   :  { %v1380_v37 = vpack.c.bf16 %v1017_v34, %v1016_v33  ;;  %v1773_v38 = vpop.eup %1772 }
 0x16e   :  { %v1018_v42 = vmul.f32 %v1773_v38, %v992_v39 }
 0x16f   :  { %1409 = vst [vmem:[%s2206_s6 + $0x58] sm:$0xff] %v1380_v37  }
 0x171   :  { %v1775_v41 = vpop.eup %1774 }
 0x172   :  { %v1019_v43 = vmul.f32 %v1775_v41, %v993_v40 }
 0x174   :  { %v1385_v44 = vpack.c.bf16 %v1019_v43, %v1018_v42 }
 0x176   :  { %1410 = vst [vmem:[%s2206_s6 + $0x60] sm:$0xff] %v1385_v44  }

// kernel: rnncnn_forward.10
= control target key start
LH: loop header
LB: loop body
LE: loop exit
PB: predicated region body
PF: predicated region fallthrough
CT: control target
= control target key end

     0   :  { %v1555_v0 = vmov 0.0   ;;  %vm1556_vm0 = vmmov 0   ;;  %s2047_s3 = inlined_call_operand.vmem [shape: bf16[128,128], index: 3, kind: input, shape index: {}]   ;;  %s2048_s2 = inlined_call_operand.vmem [shape: bf16[256,128], index: 2, kind: input, shape index: {}]   ;;  %s2049_s1 = inlined_call_operand.vmem [shape: bf16[208,128], index: 1, kind: input, shape index: {}]   ;;  %s2050_s0 = inlined_call_operand.vmem [shape: bf16[208,256], index: 0, kind: input, shape index: {}]   ;;  %s2051_s4 = inlined_call_operand.vmem [shape: f32[1,128], index: 4, kind: input, shape index: {}]   ;;  %s2052_s5 = inlined_call_operand.vmem [shape: bf16[208,128], index: 5, kind: input, shape index: {}]   ;;  %s2053_s6 = inlined_call_operand.vmem [shape: bf16[208,128], index: 6, kind: input, shape index: {}]   ;;  %s2054_s7 = inlined_call_operand.vmem [shape: f32[208,128], index: 7, kind: output, shape index: {}]  }
   0x1   :  { %1357 = vmatprep.subr.bf16.mxu0 %v1555_v0  ;;  %v1427_v1 = vld [vmem:[%s2047_s3 + $0x38] sm:$0xff]   ;;  %1373 = vmatprep.mubr.msk.bf16.mxu0 %vm1556_vm0, %v1555_v0  ;;  %v1430_v4 = vld [vmem:[%s2047_s3 + $0x30] sm:$0xff]   ;;  %v1433_v7 = vld [vmem:[%s2047_s3 + $0x28] sm:$0xff]  }
   0x2   :  { %v1428_v2 = vld [vmem:[%s2048_s2 + $0x78] sm:$0xff]   ;;  %1358 = vmatpush3.bf16.msra.mxu0 %v1427_v1  ;;  %v1431_v5 = vld [vmem:[%s2048_s2 + $0x70] sm:$0xff]   ;;  %v1434_v8 = vld [vmem:[%s2048_s2 + $0x68] sm:$0xff]  }
   0x3   :  { %v1429_v3 = vld [vmem:[%s2048_s2 + $0x38] sm:$0xff]   ;;  %1263 = vmatprep.subr.bf16.mxu1 %v1428_v2  ;;  %1359 = vmatprep.subr.bf16.mxu0 %v1555_v0  ;;  %v1432_v6 = vld [vmem:[%s2048_s2 + $0x30] sm:$0xff]   ;;  %v1435_v9 = vld [vmem:[%s2048_s2 + $0x28] sm:$0xff]  }
   0x4   :  { %1264 = vmatpush3.bf16.msra.mxu1 %v1429_v3  ;;  %v1436_v10 = vld [vmem:[%s2047_s3 + $0x20] sm:$0xff]   ;;  %v1440_v13 = vld [vmem:[%s2048_s2 + $0x58] sm:$0xff]   ;;  %v1443_v16 = vld [vmem:[%s2048_s2 + $0x50] sm:$0xff]  }
   0x5   :  { %1265 = vmatprep.subr.bf16.mxu1 %v1431_v5  ;;  %v1437_v11 = vld [vmem:[%s2048_s2 + $0x60] sm:$0xff]   ;;  %v1439_v14 = vld [vmem:[%s2047_s3 + $0x18] sm:$0xff]   ;;  %v1442_v17 = vld [vmem:[%s2047_s3 + $0x10] sm:$0xff]  }
   0x6   :  { %1360 = vmatpush3.bf16.msra.mxu0 %v1430_v4  ;;  %v1438_v12 = vld [vmem:[%s2048_s2 + $0x20] sm:$0xff]   ;;  %v1441_v15 = vld [vmem:[%s2048_s2 + $0x18] sm:$0xff]   ;;  %v1444_v18 = vld [vmem:[%s2048_s2 + $0x10] sm:$0xff]  }
   0x7   :  { %1361 = vmatprep.subr.bf16.mxu0 %v1555_v0  ;;  %v1446_v19 = vld [vmem:[%s2048_s2 + $0x48] sm:$0xff]   ;;  %v1448_v22 = vld [vmem:[%s2047_s3] sm:$0xff]   ;;  %v1456_v28 = vld [vmem:[%s2050_s0 + $0x14] ss:$8 sps:$4 sm:$0xff]  }
   0x8   :  { %1266 = vmatpush3.bf16.msra.mxu1 %v1432_v6  ;;  %v1445_v20 = vld [vmem:[%s2047_s3 + $0x8] sm:$0xff]   ;;  %v1449_v23 = vld [vmem:[%s2048_s2 + $0x40] sm:$0xff]   ;;  %v1458_v30 = vld [vmem:[%s2050_s0 + $0x10] ss:$8 sps:$4 sm:$0xff]  }
   0x9   :  { %1267 = vmatprep.subr.bf16.mxu1 %v1434_v8  ;;  %v1447_v21 = vld [vmem:[%s2048_s2 + $0x8] sm:$0xff]   ;;  %v1450_v25 = vld [vmem:[%s2048_s2] sm:$0xff]   ;;  %v1459_v32 = vld [vmem:[%s2049_s1 + $0x10] sm:$0xff]  }
   0xa   :  { %1362 = vmatpush3.bf16.msra.mxu0 %v1433_v7  ;;  %v1454_v24 = vld [vmem:[%s2050_s0 + $0x4] ss:$8 sps:$4 sm:$0xff]   ;;  %v1452_v27 = vld [vmem:[%s2050_s0] ss:$8 sps:$4 sm:$0xff]   ;;  %v1464_v34 = vld [vmem:[%s2050_s0 + $0x34] ss:$8 sps:$4 sm:$0xff]  }
   0xb   :  { %1363 = vmatprep.subr.bf16.mxu0 %v1555_v0  ;;  %648 = vmatprep.mubr.bf16.mxu1 %v1454_v24  ;;  %v1451_v26 = vld [vmem:[%s2049_s1] sm:$0xff]   ;;  %v1455_v29 = vld [vmem:[%s2049_s1 + $0x8] sm:$0xff]   ;;  %v1463_v35 = vld [vmem:[%s2049_s1 + $0x18] sm:$0xff]  }
   0xc   :  { %1268 = vmatpush3.bf16.msra.mxu1 %v1435_v9  ;;  %v1460_v31 = vld [vmem:[%s2050_s0 + $0x24] ss:$8 sps:$4 sm:$0xff]   ;;  %v1462_v33 = vld [vmem:[%s2050_s0 + $0x20] ss:$8 sps:$4 sm:$0xff]   ;;  %v1466_v36 = vld [vmem:[%s2050_s0 + $0x30] ss:$8 sps:$4 sm:$0xff]  }
   0xd   :  { %1269 = vmatprep.subr.bf16.mxu1 %v1437_v11  ;;  %v1468_v37 = vld [vmem:[%s2050_s0 + $0x44] ss:$8 sps:$4 sm:$0xff]   ;;  %v1470_v39 = vld [vmem:[%s2050_s0 + $0x40] ss:$8 sps:$4 sm:$0xff]   ;;  %v1472_v40 = vld [vmem:[%s2050_s0 + $0x54] ss:$8 sps:$4 sm:$0xff]  }
   0xe   :  { %1364 = vmatpush3.bf16.msra.mxu0 %v1436_v10  ;;  %v1467_v38 = vld [vmem:[%s2049_s1 + $0x20] sm:$0xff]   ;;  %v1471_v41 = vld [vmem:[%s2049_s1 + $0x28] sm:$0xff]   ;;  %v1474_v42 = vld [vmem:[%s2050_s0 + $0x50] ss:$8 sps:$4 sm:$0xff]  }
   0xf   :  { %1365 = vmatprep.subr.bf16.mxu0 %v1555_v0  ;;  %v1476_v43 = vld [vmem:[%s2050_s0 + $0x64] ss:$8 sps:$4 sm:$0xff]   ;;  %v1475_v44 = vld [vmem:[%s2049_s1 + $0x30] sm:$0xff]   ;;  %v1478_v45 = vld [vmem:[%s2050_s0 + $0x60] ss:$8 sps:$4 sm:$0xff]  }
  0x10   :  { %1270 = vmatpush3.bf16.msra.mxu1 %v1438_v12  ;;  %v1480_v46 = vld [vmem:[%s2050_s0 + $0x74] ss:$8 sps:$4 sm:$0xff]   ;;  %v1482_v48 = vld [vmem:[%s2050_s0 + $0x70] ss:$8 sps:$4 sm:$0xff]   ;;  %v1484_v49 = vld [vmem:[%s2050_s0 + $0x84] ss:$8 sps:$4 sm:$0xff]  }
  0x11   :  { %1271 = vmatprep.subr.bf16.mxu1 %v1440_v13  ;;  %v1479_v47 = vld [vmem:[%s2049_s1 + $0x38] sm:$0xff]   ;;  %v1483_v50 = vld [vmem:[%s2049_s1 + $0x40] sm:$0xff]   ;;  %v1487_v53 = vld [vmem:[%s2049_s1 + $0x48] sm:$0xff]  }
  0x12   :  { %1366 = vmatpush3.bf16.msra.mxu0 %v1439_v14  ;;  %v1486_v51 = vld [vmem:[%s2050_s0 + $0x80] ss:$8 sps:$4 sm:$0xff]   ;;  %v1488_v52 = vld [vmem:[%s2050_s0 + $0x94] ss:$8 sps:$4 sm:$0xff]   ;;  %v1490_v54 = vld [vmem:[%s2050_s0 + $0x90] ss:$8 sps:$4 sm:$0xff]  }
  0x13   :  { %1367 = vmatprep.subr.bf16.mxu0 %v1555_v0  ;;  %v1492_v55 = vld [vmem:[%s2050_s0 + $0xa4] ss:$8 sps:$4 sm:$0xff]   ;;  %v1491_v56 = vld [vmem:[%s2049_s1 + $0x50] sm:$0xff]   ;;  %v1494_v57 = vld [vmem:[%s2050_s0 + $0xa0] ss:$8 sps:$4 sm:$0xff]  }
  0x14   :  { %1272 = vmatpush3.bf16.msra.mxu1 %v1441_v15  ;;  %v1496_v58 = vld [vmem:[%s2050_s0 + $0xb4] ss:$8 sps:$4 sm:$0xff]   ;;  %v1498_v60 = vld [vmem:[%s2050_s0 + $0xb0] ss:$8 sps:$4 sm:$0xff]   ;;  %v1500_v61 = vld [vmem:[%s2050_s0 + $0xc4] ss:$8 sps:$4 sm:$0xff]  }
  0x15   :  { %1273 = vmatprep.subr.bf16.mxu1 %v1443_v16  ;;  %v1495_v59 = vld [vmem:[%s2049_s1 + $0x58] sm:$0xff]   ;;  %v1499_v62 = vld [vmem:[%s2049_s1 + $0x60] sm:$0xff]  }
  0x16   :  { %1368 = vmatpush3.bf16.msra.mxu0 %v1442_v17  ;;  %v1502_v63 = vld [vmem:[%s2050_s0 + $0xc0] ss:$8 sps:$4 sm:$0xff]  }
  0x17   :  { %1369 = vmatprep.subr.bf16.mxu0 %v1555_v0  ;;  %v1115_v16 = vld [vmem:[%s2052_s5] sm:$0xff]  }
  0x18   :  { %1274 = vmatpush3.bf16.msra.mxu1 %v1444_v18 }
  0x19   :  { %1275 = vmatprep.subr.bf16.mxu1 %v1446_v19 }
  0x1a   :  { %1370 = vmatpush3.bf16.msra.mxu0 %v1445_v20 }
  0x1b   :  { %1371 = vmatprep.subr.bf16.mxu0 %v1555_v0 }
  0x1c   :  { %1276 = vmatpush3.bf16.msra.mxu1 %v1447_v21 }
  0x1d   :  { %1277 = vmatprep.subr.bf16.mxu1 %v1449_v23 }
  0x1e   :  { %1372 = vmatpush3.bf16.msra.mxu0 %v1448_v22  ;;  %v1116_v22 = vunpack.c.l.bf16 %v1115_v16 }
  0x20   :  { %1278 = vmatpush3.bf16.msra.mxu1 %v1450_v25  ;;  %v1167_v25 = vld [vmem:[%s2053_s6] sm:$0xff]  }
  0x21   :  { %1374 = vmatmul.mubr.bf16.vlgmr.msra.gmra.mxu0 %v1451_v26 }
  0x22   :  { %1377 = vmatprep.mubr.msk.bf16.mxu0 %vm1556_vm0, %v1555_v0 }
  0x23   :  { %649 = vmatmul.mubr.bf16.vlgmr.msra.gmra.mxu1 %v1452_v27 }
  0x24   :  { %656 = vmatprep.mubr.bf16.mxu1 %v1456_v28 }
  0x29   :  { %1378 = vmatmul.mubr.bf16.gmra.mxu0 %v1455_v29 }
  0x2a   :  { %1381 = vmatprep.mubr.msk.bf16.mxu0 %vm1556_vm0, %v1555_v0 }
  0x2b   :  { %657 = vmatmul.mubr.bf16.gmra.mxu1 %v1458_v30 }
  0x2c   :  { %664 = vmatprep.mubr.bf16.mxu1 %v1460_v31  ;;  %v1168_v31 = vunpack.c.l.bf16 %v1167_v25 }
  0x31   :  { %1382 = vmatmul.mubr.bf16.gmra.mxu0 %v1459_v32  ;;  %v890_v32 = vsub.f32 1.0, %v1116_v22 }
  0x32   :  { %1385 = vmatprep.mubr.msk.bf16.mxu0 %vm1556_vm0, %v1555_v0 }
  0x33   :  { %665 = vmatmul.mubr.bf16.gmra.mxu1 %v1462_v33 }
  0x34   :  { %672 = vmatprep.mubr.bf16.mxu1 %v1464_v34 }
  0x39   :  { %1386 = vmatmul.mubr.bf16.gmra.mxu0 %v1463_v35  ;;  %v1117_v35 = vunpack.c.h.bf16 %v1115_v16 }
  0x3a   :  { %1389 = vmatprep.mubr.msk.bf16.mxu0 %vm1556_vm0, %v1555_v0 }
  0x3b   :  { %673 = vmatmul.mubr.bf16.gmra.mxu1 %v1466_v36  ;;  %v1837_v36 = vld [vmem:[%s2052_s5 + $0x8] sm:$0xff]  }
  0x3c   :  { %680 = vmatprep.mubr.bf16.mxu1 %v1468_v37 }
  0x41   :  { %1390 = vmatmul.mubr.bf16.gmra.mxu0 %v1467_v38 }
  0x42   :  { %1393 = vmatprep.mubr.msk.bf16.mxu0 %vm1556_vm0, %v1555_v0 }
  0x43   :  { %681 = vmatmul.mubr.bf16.gmra.mxu1 %v1470_v39 }
  0x44   :  { %688 = vmatprep.mubr.bf16.mxu1 %v1472_v40 }
  0x49   :  { %1394 = vmatmul.mubr.bf16.gmra.mxu0 %v1471_v41 }
  0x4a   :  { %1397 = vmatprep.mubr.msk.bf16.mxu0 %vm1556_vm0, %v1555_v0 }
  0x4b   :  { %689 = vmatmul.mubr.bf16.gmra.mxu1 %v1474_v42  ;;  %v916_v42 = vmul.f32 %v1168_v31, %v890_v32 }
  0x4c   :  { %696 = vmatprep.mubr.bf16.mxu1 %v1476_v43  ;;  %v1120_v43 = vunpack.c.l.bf16 %v1837_v36 }
  0x51   :  { %1398 = vmatmul.mubr.bf16.gmra.mxu0 %v1475_v44 }
  0x52   :  { %1401 = vmatprep.mubr.msk.bf16.mxu0 %vm1556_vm0, %v1555_v0 }
  0x53   :  { %697 = vmatmul.mubr.bf16.gmra.mxu1 %v1478_v45 }
  0x54   :  { %704 = vmatprep.mubr.bf16.mxu1 %v1480_v46  ;;  %v1169_v46 = vunpack.c.h.bf16 %v1167_v25 }
  0x59   :  { %1402 = vmatmul.mubr.bf16.gmra.mxu0 %v1479_v47  ;;  %v891_v47 = vsub.f32 1.0, %v1117_v35 }
  0x5a   :  { %1405 = vmatprep.mubr.msk.bf16.mxu0 %vm1556_vm0, %v1555_v0 }
  0x5b   :  { %705 = vmatmul.mubr.bf16.gmra.mxu1 %v1482_v48  ;;  %v1230_v48 = vld [vmem:[%s2053_s6 + $0x8] sm:$0xff]  }
  0x5c   :  { %712 = vmatprep.mubr.bf16.mxu1 %v1484_v49 }
  0x61   :  { %1406 = vmatmul.mubr.bf16.gmra.mxu0 %v1483_v50 }
  0x62   :  { %1409 = vmatprep.mubr.msk.bf16.mxu0 %vm1556_vm0, %v1555_v0 }
  0x63   :  { %713 = vmatmul.mubr.bf16.gmra.mxu1 %v1486_v51 }
  0x64   :  { %720 = vmatprep.mubr.bf16.mxu1 %v1488_v52 }
  0x69   :  { %1410 = vmatmul.mubr.bf16.gmra.mxu0 %v1487_v53 }
  0x6a   :  { %1413 = vmatprep.mubr.msk.bf16.mxu0 %vm1556_vm0, %v1555_v0 }
  0x6b   :  { %721 = vmatmul.mubr.bf16.gmra.mxu1 %v1490_v54 }
  0x6c   :  { %728 = vmatprep.mubr.bf16.mxu1 %v1492_v55 }
  0x71   :  { %1414 = vmatmul.mubr.bf16.gmra.mxu0 %v1491_v56  ;;  %v1172_v56 = vunpack.c.l.bf16 %v1230_v48 }
  0x72   :  { %1417 = vmatprep.mubr.msk.bf16.mxu0 %vm1556_vm0, %v1555_v0 }
  0x73   :  { %729 = vmatmul.mubr.bf16.gmra.mxu1 %v1494_v57  ;;  %v892_v57 = vsub.f32 1.0, %v1120_v43 }
  0x74   :  { %736 = vmatprep.mubr.bf16.mxu1 %v1496_v58  ;;  %v1121_v58 = vunpack.c.h.bf16 %v1837_v36 }
  0x79   :  { %1418 = vmatmul.mubr.bf16.gmra.mxu0 %v1495_v59 }
  0x7a   :  { %1421 = vmatprep.mubr.msk.bf16.mxu0 %vm1556_vm0, %v1555_v0  ;;  %v1823_v0 = vld [vmem:[%s2051_s4] ss:$0 sm:$0xff] }
  0x7b   :  { %737 = vmatmul.mubr.bf16.gmra.mxu1 %v1498_v60 }
  0x7c   :  { %744 = vmatprep.mubr.bf16.mxu1 %v1500_v61 }
  0x81   :  { %1422 = vmatmul.mubr.bf16.gmra.mxu0 %v1499_v62  ;;  %v917_v62 = vmul.f32 %v1169_v46, %v891_v47 }
  0x83   :  { %745 = vmatmul.mubr.bf16.gmra.mxu1 %v1502_v63 }
  0xe1   :  { %v287_v1 = vpop.f32.mrf.mxu0 }
  0xe3   :  { %v1279_v2 = vpop.f32.mrf.mxu1  ;;  %v1375_v3 = vpop.f32.mrf.mxu0 }
  0xe5   :  { %v1280_v4 = vpop.f32.mrf.mxu1  ;;  %v290_v5 = vpop.f32.mrf.mxu0 }
  0xe6   :  { %v1281_v6 = vadd.f32 %v1280_v4, %v1279_v2  ;;  %v1849_v2 = vld [vmem:[%s2052_s5 + $0x10] sm:$0xff]  }
  0xe7   :  { %v1282_v7 = vpop.f32.mrf.mxu1  ;;  %v1376_v8 = vpop.f32.mrf.mxu0  ;;  %v1125_v25 = vunpack.c.h.bf16 %v1849_v2 }
  0xe8   :  { %v651_v9 = vadd.f32 %v1281_v6, %v287_v1  ;;  %v918_v8 = vmul.f32 %v1172_v56, %v892_v57 }
  0xe9   :  { %v1283_v10 = vpop.f32.mrf.mxu1  ;;  %v295_v11 = vpop.f32.mrf.mxu0 }
  0xea   :  { %v760_v12 = vadd.f32 %v1823_v0, %v651_v9  ;;  %v1284_v13 = vadd.f32 %v1283_v10, %v1282_v7  ;;  %v1173_v9 = vunpack.c.h.bf16 %v1230_v48  ;;  %v893_v10 = vsub.f32 1.0, %v1121_v58 }
  0xeb   :  { %v1285_v14 = vpop.f32.mrf.mxu1  ;;  %v1379_v15 = vpop.f32.mrf.mxu0 }
  0xec   :  { %1503 = vtanh.f32 %v760_v12  ;;  %v654_v17 = vadd.f32 %v1284_v13, %v290_v5  ;;  %v1231_v15 = vld [vmem:[%s2053_s6 + $0x10] sm:$0xff]  }
  0xed   :  { %v1286_v18 = vpop.f32.mrf.mxu1  ;;  %v298_v19 = vpop.f32.mrf.mxu0 }
  0xee   :  { %v761_v20 = vadd.f32 %v1823_v0, %v654_v17  ;;  %v1287_v21 = vadd.f32 %v1286_v18, %v1285_v14  ;;  %v1124_v14 = vunpack.c.l.bf16 %v1849_v2 }
  0xef   :  { %v1288_v23 = vpop.f32.mrf.mxu1  ;;  %v1380_v24 = vpop.f32.mrf.mxu0 }
  0xf0   :  { %1505 = vtanh.f32 %v761_v20  ;;  %v659_v26 = vadd.f32 %v1287_v21, %v295_v11  ;;  %v1176_v24 = vunpack.c.l.bf16 %v1231_v15 }
  0xf1   :  { %v1289_v27 = vpop.f32.mrf.mxu1  ;;  %v303_v28 = vpop.f32.mrf.mxu0 }
  0xf2   :  { %v762_v29 = vadd.f32 %v1823_v0, %v659_v26  ;;  %v1290_v30 = vadd.f32 %v1289_v27, %v1288_v23  ;;  %v919_v23 = vmul.f32 %v1173_v9, %v893_v10 }
  0xf3   :  { %v1291_v33 = vpop.f32.mrf.mxu1  ;;  %v1383_v34 = vpop.f32.mrf.mxu0 }
  0xf4   :  { %1507 = vtanh.f32 %v762_v29  ;;  %v662_v37 = vadd.f32 %v1290_v30, %v298_v19  ;;  %v894_v29 = vsub.f32 1.0, %v1124_v14  ;;  %v1867_v30 = vld [vmem:[%s2052_s5 + $0x18] sm:$0xff]  }
  0xf5   :  { %v1292_v38 = vpop.f32.mrf.mxu1  ;;  %v306_v39 = vpop.f32.mrf.mxu0 }
  0xf6   :  { %v763_v40 = vadd.f32 %v1823_v0, %v662_v37  ;;  %v1293_v41 = vadd.f32 %v1292_v38, %v1291_v33  ;;  %v1177_v38 = vunpack.c.h.bf16 %v1231_v15 }
  0xf7   :  { %v1294_v44 = vpop.f32.mrf.mxu1  ;;  %v1384_v45 = vpop.f32.mrf.mxu0 }
  0xf8   :  { %1509 = vtanh.f32 %v763_v40  ;;  %v667_v49 = vadd.f32 %v1293_v41, %v303_v28  ;;  %v1128_v40 = vunpack.c.l.bf16 %v1867_v30  ;;  %v1232_v45 = vld [vmem:[%s2053_s6 + $0x18] sm:$0xff]  }
  0xf9   :  { %v1504_v50 = vpop.eup %1503  ;;  %v1295_v51 = vpop.f32.mrf.mxu1 }
  0xfa   :  { %v311_v52 = vpop.f32.mrf.mxu0  ;;  %v968_v53 = vmul.f32 %v1504_v50, %v1116_v22  ;;  %v764_v54 = vadd.f32 %v1823_v0, %v667_v49  ;;  %v1296_v55 = vadd.f32 %v1295_v51, %v1294_v44  ;;  %v920_v44 = vmul.f32 %v1176_v24, %v894_v29  ;;  %v1903_v29 = vld [vmem:[%s2052_s5 + $0x28] sm:$0xff]  }
  0xfb   :  { %v1297_v59 = vpop.f32.mrf.mxu1 }
  0xfc   :  { %v1387_v60 = vpop.f32.mrf.mxu0  ;;  %v994_v61 = vadd.f32 %v968_v53, %v916_v42  ;;  %1511 = vtanh.f32 %v764_v54  ;;  %v670_v63 = vadd.f32 %v1296_v55, %v306_v39  ;;  %v895_v39 = vsub.f32 1.0, %v1125_v25 }
  0xfd   :  { %v1506_v1 = vpop.eup %1505  ;;  %v1298_v3 = vpop.f32.mrf.mxu1  ;;  %v1180_v54 = vunpack.c.l.bf16 %v1232_v45  ;;  %v896_v55 = vsub.f32 1.0, %v1128_v40  ;;  %v1885_v60 = vld [vmem:[%s2052_s5 + $0x20] sm:$0xff]  }
  0xfe   :  { %v314_v4 = vpop.f32.mrf.mxu0  ;;  %1020 = vst [vmem:[%s2054_s7] sm:$0xff] %v994_v61  ;;  %v969_v5 = vmul.f32 %v1506_v1, %v1117_v35  ;;  %v765_v6 = vadd.f32 %v1823_v0, %v670_v63  ;;  %v1299_v7 = vadd.f32 %v1298_v3, %v1297_v59  ;;  %v921_v53 = vmul.f32 %v1177_v38, %v895_v39 }
  0xff   :  { %v1300_v11 = vpop.f32.mrf.mxu1  ;;  %v1129_v59 = vunpack.c.h.bf16 %v1867_v30 }
 0x100   :  { %v1388_v12 = vpop.f32.mrf.mxu0  ;;  %v995_v13 = vadd.f32 %v969_v5, %v917_v62  ;;  %1513 = vtanh.f32 %v765_v6  ;;  %v675_v16 = vadd.f32 %v1299_v7, %v311_v52  ;;  %v922_v5 = vmul.f32 %v1180_v54, %v896_v55 }
 0x101   :  { %v1508_v17 = vpop.eup %1507  ;;  %v1301_v18 = vpop.f32.mrf.mxu1  ;;  %v1181_v6 = vunpack.c.h.bf16 %v1232_v45  ;;  %v1132_v7 = vunpack.c.l.bf16 %v1885_v60  ;;  %v1233_v12 = vld [vmem:[%s2053_s6 + $0x20] sm:$0xff]  }
 0x102   :  { %v319_v19 = vpop.f32.mrf.mxu0  ;;  %1021 = vst [vmem:[%s2054_s7 + $0x8] sm:$0xff] %v995_v13  ;;  %v970_v20 = vmul.f32 %v1508_v17, %v1120_v43  ;;  %v766_v21 = vadd.f32 %v1823_v0, %v675_v16  ;;  %v1302_v22 = vadd.f32 %v1301_v18, %v1300_v11  ;;  %v897_v11 = vsub.f32 1.0, %v1129_v59 }
 0x103   :  { %v1303_v26 = vpop.f32.mrf.mxu1 }
 0x104   :  { %v1391_v27 = vpop.f32.mrf.mxu0  ;;  %v996_v28 = vadd.f32 %v970_v20, %v918_v8  ;;  %1515 = vtanh.f32 %v766_v21  ;;  %v678_v31 = vadd.f32 %v1302_v22, %v314_v4  ;;  %v1184_v20 = vunpack.c.l.bf16 %v1233_v12 }
 0x105   :  { %v1510_v32 = vpop.eup %1509  ;;  %v1304_v33 = vpop.f32.mrf.mxu1  ;;  %v898_v21 = vsub.f32 1.0, %v1132_v7  ;;  %v1133_v22 = vunpack.c.h.bf16 %v1885_v60 }
 0x106   :  { %v322_v34 = vpop.f32.mrf.mxu0  ;;  %1022 = vst [vmem:[%s2054_s7 + $0x10] sm:$0xff] %v996_v28  ;;  %v971_v35 = vmul.f32 %v1510_v32, %v1121_v58  ;;  %v767_v36 = vadd.f32 %v1823_v0, %v678_v31  ;;  %v1305_v37 = vadd.f32 %v1304_v33, %v1303_v26  ;;  %v923_v26 = vmul.f32 %v1181_v6, %v897_v11 }
 0x107   :  { %v1306_v41 = vpop.f32.mrf.mxu1 }
 0x108   :  { %v1392_v42 = vpop.f32.mrf.mxu0  ;;  %v997_v43 = vadd.f32 %v971_v35, %v919_v23  ;;  %1517 = vtanh.f32 %v767_v36  ;;  %v683_v46 = vadd.f32 %v1305_v37, %v319_v19  ;;  %v924_v35 = vmul.f32 %v1184_v20, %v898_v21 }
 0x109   :  { %v1512_v47 = vpop.eup %1511  ;;  %v1307_v48 = vpop.f32.mrf.mxu1  ;;  %v1185_v36 = vunpack.c.h.bf16 %v1233_v12  ;;  %v899_v37 = vsub.f32 1.0, %v1133_v22  ;;  %v1234_v42 = vld [vmem:[%s2053_s6 + $0x28] sm:$0xff]  }
 0x10a   :  { %v327_v49 = vpop.f32.mrf.mxu0  ;;  %1023 = vst [vmem:[%s2054_s7 + $0x18] sm:$0xff] %v997_v43  ;;  %v972_v50 = vmul.f32 %v1512_v47, %v1124_v14  ;;  %v768_v51 = vadd.f32 %v1823_v0, %v683_v46  ;;  %v1308_v52 = vadd.f32 %v1307_v48, %v1306_v41  ;;  %v1136_v41 = vunpack.c.l.bf16 %v1903_v29 }
 0x10b   :  { %v1309_v56 = vpop.f32.mrf.mxu1 }
 0x10c   :  { %v1395_v57 = vpop.f32.mrf.mxu0  ;;  %v998_v58 = vadd.f32 %v972_v50, %v920_v44  ;;  %1519 = vtanh.f32 %v768_v51  ;;  %v686_v61 = vadd.f32 %v1308_v52, %v322_v34  ;;  %v925_v50 = vmul.f32 %v1185_v36, %v899_v37 }
 0x10d   :  { %v1514_v62 = vpop.eup %1513  ;;  %v1310_v63 = vpop.f32.mrf.mxu1  ;;  %v1188_v51 = vunpack.c.l.bf16 %v1234_v42  ;;  %v1137_v52 = vunpack.c.h.bf16 %v1903_v29  ;;  %v1921_v57 = vld [vmem:[%s2052_s5 + $0x30] sm:$0xff]  }
 0x10e   :  { %v330_v1 = vpop.f32.mrf.mxu0  ;;  %1024 = vst [vmem:[%s2054_s7 + $0x20] sm:$0xff] %v998_v58  ;;  %v973_v2 = vmul.f32 %v1514_v62, %v1125_v25  ;;  %v769_v3 = vadd.f32 %v1823_v0, %v686_v61  ;;  %v1311_v4 = vadd.f32 %v1310_v63, %v1309_v56  ;;  %v900_v56 = vsub.f32 1.0, %v1136_v41 }
 0x10f   :  { %v1312_v8 = vpop.f32.mrf.mxu1 }
 0x110   :  { %v1396_v9 = vpop.f32.mrf.mxu0  ;;  %v999_v10 = vadd.f32 %v973_v2, %v921_v53  ;;  %1521 = vtanh.f32 %v769_v3  ;;  %v691_v13 = vadd.f32 %v1311_v4, %v327_v49  ;;  %v1189_v2 = vunpack.c.h.bf16 %v1234_v42 }
 0x111   :  { %v1516_v14 = vpop.eup %1515  ;;  %v1313_v15 = vpop.f32.mrf.mxu1  ;;  %v901_v3 = vsub.f32 1.0, %v1137_v52  ;;  %v1140_v4 = vunpack.c.l.bf16 %v1921_v57  ;;  %v1235_v9 = vld [vmem:[%s2053_s6 + $0x30] sm:$0xff]  }
 0x112   :  { %v335_v16 = vpop.f32.mrf.mxu0  ;;  %1025 = vst [vmem:[%s2054_s7 + $0x28] sm:$0xff] %v999_v10  ;;  %v974_v17 = vmul.f32 %v1516_v14, %v1128_v40  ;;  %v770_v18 = vadd.f32 %v1823_v0, %v691_v13  ;;  %v1314_v19 = vadd.f32 %v1313_v15, %v1312_v8  ;;  %v926_v8 = vmul.f32 %v1188_v51, %v900_v56  ;;  %v1957_v56 = vld [vmem:[%s2052_s5 + $0x40] sm:$0xff]  }
 0x113   :  { %v1315_v23 = vpop.f32.mrf.mxu1 }
 0x114   :  { %v1399_v24 = vpop.f32.mrf.mxu0  ;;  %v1000_v25 = vadd.f32 %v974_v17, %v922_v5  ;;  %1523 = vtanh.f32 %v770_v18  ;;  %v694_v27 = vadd.f32 %v1314_v19, %v330_v1  ;;  %v927_v17 = vmul.f32 %v1189_v2, %v901_v3 }
 0x115   :  { %v1518_v28 = vpop.eup %1517  ;;  %v1316_v30 = vpop.f32.mrf.mxu1  ;;  %v1192_v18 = vunpack.c.l.bf16 %v1235_v9  ;;  %v902_v19 = vsub.f32 1.0, %v1140_v4  ;;  %v1939_v24 = vld [vmem:[%s2052_s5 + $0x38] sm:$0xff]  }
 0x116   :  { %v338_v31 = vpop.f32.mrf.mxu0  ;;  %1026 = vst [vmem:[%s2054_s7 + $0x30] sm:$0xff] %v1000_v25  ;;  %v975_v32 = vmul.f32 %v1518_v28, %v1129_v59  ;;  %v771_v33 = vadd.f32 %v1823_v0, %v694_v27  ;;  %v1317_v34 = vadd.f32 %v1316_v30, %v1315_v23  ;;  %v1141_v23 = vunpack.c.h.bf16 %v1921_v57 }
 0x117   :  { %v1318_v38 = vpop.f32.mrf.mxu1 }
 0x118   :  { %v1400_v39 = vpop.f32.mrf.mxu0  ;;  %v1001_v40 = vadd.f32 %v975_v32, %v923_v26  ;;  %1525 = vtanh.f32 %v771_v33  ;;  %v699_v43 = vadd.f32 %v1317_v34, %v335_v16  ;;  %v928_v32 = vmul.f32 %v1192_v18, %v902_v19 }
 0x119   :  { %v1520_v44 = vpop.eup %1519  ;;  %v1319_v45 = vpop.f32.mrf.mxu1  ;;  %v1193_v33 = vunpack.c.h.bf16 %v1235_v9  ;;  %v1144_v34 = vunpack.c.l.bf16 %v1939_v24  ;;  %v1236_v39 = vld [vmem:[%s2053_s6 + $0x38] sm:$0xff]  }
 0x11a   :  { %v343_v46 = vpop.f32.mrf.mxu0  ;;  %1027 = vst [vmem:[%s2054_s7 + $0x38] sm:$0xff] %v1001_v40  ;;  %v976_v47 = vmul.f32 %v1520_v44, %v1132_v7  ;;  %v772_v48 = vadd.f32 %v1823_v0, %v699_v43  ;;  %v1320_v49 = vadd.f32 %v1319_v45, %v1318_v38  ;;  %v903_v38 = vsub.f32 1.0, %v1141_v23 }
 0x11b   :  { %v1321_v53 = vpop.f32.mrf.mxu1 }
 0x11c   :  { %v1403_v54 = vpop.f32.mrf.mxu0  ;;  %v1002_v55 = vadd.f32 %v976_v47, %v924_v35  ;;  %1527 = vtanh.f32 %v772_v48  ;;  %v702_v58 = vadd.f32 %v1320_v49, %v338_v31  ;;  %v1196_v47 = vunpack.c.l.bf16 %v1236_v39 }
 0x11d   :  { %v1522_v59 = vpop.eup %1521  ;;  %v1322_v60 = vpop.f32.mrf.mxu1  ;;  %v904_v48 = vsub.f32 1.0, %v1144_v34  ;;  %v1145_v49 = vunpack.c.h.bf16 %v1939_v24 }
 0x11e   :  { %v346_v61 = vpop.f32.mrf.mxu0  ;;  %1028 = vst [vmem:[%s2054_s7 + $0x40] sm:$0xff] %v1002_v55  ;;  %v977_v62 = vmul.f32 %v1522_v59, %v1133_v22  ;;  %v773_v63 = vadd.f32 %v1823_v0, %v702_v58  ;;  %v1323_v1 = vadd.f32 %v1322_v60, %v1321_v53  ;;  %v929_v53 = vmul.f32 %v1193_v33, %v903_v38 }
 0x11f   :  { %v1324_v5 = vpop.f32.mrf.mxu1 }
 0x120   :  { %v1404_v6 = vpop.f32.mrf.mxu0  ;;  %v1003_v7 = vadd.f32 %v977_v62, %v925_v50  ;;  %1529 = vtanh.f32 %v773_v63  ;;  %v707_v10 = vadd.f32 %v1323_v1, %v343_v46  ;;  %v930_v62 = vmul.f32 %v1196_v47, %v904_v48 }
 0x121   :  { %v1524_v11 = vpop.eup %1523  ;;  %v1325_v12 = vpop.f32.mrf.mxu1  ;;  %v1197_v63 = vunpack.c.h.bf16 %v1236_v39  ;;  %v905_v1 = vsub.f32 1.0, %v1145_v49  ;;  %v1237_v6 = vld [vmem:[%s2053_s6 + $0x40] sm:$0xff]  }
 0x122   :  { %v351_v13 = vpop.f32.mrf.mxu0  ;;  %1029 = vst [vmem:[%s2054_s7 + $0x48] sm:$0xff] %v1003_v7  ;;  %v978_v14 = vmul.f32 %v1524_v11, %v1136_v41  ;;  %v774_v15 = vadd.f32 %v1823_v0, %v707_v10  ;;  %v1326_v16 = vadd.f32 %v1325_v12, %v1324_v5  ;;  %v1148_v5 = vunpack.c.l.bf16 %v1957_v56 }
 0x123   :  { %v1327_v20 = vpop.f32.mrf.mxu1 }
 0x124   :  { %v1407_v21 = vpop.f32.mrf.mxu0  ;;  %v1004_v22 = vadd.f32 %v978_v14, %v926_v8  ;;  %1531 = vtanh.f32 %v774_v15  ;;  %v710_v25 = vadd.f32 %v1326_v16, %v346_v61  ;;  %v931_v14 = vmul.f32 %v1197_v63, %v905_v1 }
 0x125   :  { %v1526_v26 = vpop.eup %1525  ;;  %v1328_v27 = vpop.f32.mrf.mxu1  ;;  %v1200_v15 = vunpack.c.l.bf16 %v1237_v6  ;;  %v1149_v16 = vunpack.c.h.bf16 %v1957_v56  ;;  %v1975_v21 = vld [vmem:[%s2052_s5 + $0x48] sm:$0xff]  }
 0x126   :  { %v354_v28 = vpop.f32.mrf.mxu0  ;;  %1030 = vst [vmem:[%s2054_s7 + $0x50] sm:$0xff] %v1004_v22  ;;  %v979_v29 = vmul.f32 %v1526_v26, %v1137_v52  ;;  %v775_v30 = vadd.f32 %v1823_v0, %v710_v25  ;;  %v1329_v31 = vadd.f32 %v1328_v27, %v1327_v20  ;;  %v906_v20 = vsub.f32 1.0, %v1148_v5 }
 0x127   :  { %v1330_v35 = vpop.f32.mrf.mxu1 }
 0x128   :  { %v1408_v36 = vpop.f32.mrf.mxu0  ;;  %v1005_v37 = vadd.f32 %v979_v29, %v927_v17  ;;  %1533 = vtanh.f32 %v775_v30  ;;  %v715_v40 = vadd.f32 %v1329_v31, %v351_v13  ;;  %v1201_v29 = vunpack.c.h.bf16 %v1237_v6 }
 0x129   :  { %v1528_v41 = vpop.eup %1527  ;;  %v1331_v42 = vpop.f32.mrf.mxu1  ;;  %v907_v30 = vsub.f32 1.0, %v1149_v16  ;;  %v1152_v31 = vunpack.c.l.bf16 %v1975_v21  ;;  %v1238_v36 = vld [vmem:[%s2053_s6 + $0x48] sm:$0xff]  }
 0x12a   :  { %v359_v43 = vpop.f32.mrf.mxu0  ;;  %1031 = vst [vmem:[%s2054_s7 + $0x58] sm:$0xff] %v1005_v37  ;;  %v980_v44 = vmul.f32 %v1528_v41, %v1140_v4  ;;  %v776_v45 = vadd.f32 %v1823_v0, %v715_v40  ;;  %v1332_v46 = vadd.f32 %v1331_v42, %v1330_v35  ;;  %v932_v35 = vmul.f32 %v1200_v15, %v906_v20  ;;  %v1228_v20 = vld [vmem:[%s2052_s5 + $0x58] sm:$0xff]  }
 0x12b   :  { %v1333_v50 = vpop.f32.mrf.mxu1 }
 0x12c   :  { %v1411_v51 = vpop.f32.mrf.mxu0  ;;  %v1006_v52 = vadd.f32 %v980_v44, %v928_v32  ;;  %1535 = vtanh.f32 %v776_v45  ;;  %v718_v54 = vadd.f32 %v1332_v46, %v354_v28  ;;  %v933_v44 = vmul.f32 %v1201_v29, %v907_v30 }
 0x12d   :  { %v1530_v55 = vpop.eup %1529  ;;  %v1334_v57 = vpop.f32.mrf.mxu1  ;;  %v1204_v45 = vunpack.c.l.bf16 %v1238_v36  ;;  %v908_v46 = vsub.f32 1.0, %v1152_v31  ;;  %v1993_v51 = vld [vmem:[%s2052_s5 + $0x50] sm:$0xff]  }
 0x12e   :  { %v362_v58 = vpop.f32.mrf.mxu0  ;;  %1032 = vst [vmem:[%s2054_s7 + $0x60] sm:$0xff] %v1006_v52  ;;  %v981_v59 = vmul.f32 %v1530_v55, %v1141_v23  ;;  %v777_v60 = vadd.f32 %v1823_v0, %v718_v54  ;;  %v1335_v61 = vadd.f32 %v1334_v57, %v1333_v50  ;;  %v1153_v50 = vunpack.c.h.bf16 %v1975_v21 }
 0x12f   :  { %v1336_v2 = vpop.f32.mrf.mxu1 }
 0x130   :  { %v1412_v3 = vpop.f32.mrf.mxu0  ;;  %v1007_v4 = vadd.f32 %v981_v59, %v929_v53  ;;  %1537 = vtanh.f32 %v777_v60  ;;  %v723_v7 = vadd.f32 %v1335_v61, %v359_v43  ;;  %v934_v59 = vmul.f32 %v1204_v45, %v908_v46 }
 0x131   :  { %v1532_v8 = vpop.eup %1531  ;;  %v1337_v9 = vpop.f32.mrf.mxu1  ;;  %v1205_v60 = vunpack.c.h.bf16 %v1238_v36  ;;  %v1156_v61 = vunpack.c.l.bf16 %v1993_v51  ;;  %v1239_v3 = vld [vmem:[%s2053_s6 + $0x50] sm:$0xff]  }
 0x132   :  { %v367_v10 = vpop.f32.mrf.mxu0  ;;  %1033 = vst [vmem:[%s2054_s7 + $0x68] sm:$0xff] %v1007_v4  ;;  %v982_v11 = vmul.f32 %v1532_v8, %v1144_v34  ;;  %v778_v12 = vadd.f32 %v1823_v0, %v723_v7  ;;  %v1338_v13 = vadd.f32 %v1337_v9, %v1336_v2  ;;  %v909_v2 = vsub.f32 1.0, %v1153_v50 }
 0x133   :  { %v1339_v17 = vpop.f32.mrf.mxu1 }
 0x134   :  { %v1415_v18 = vpop.f32.mrf.mxu0  ;;  %v1008_v19 = vadd.f32 %v982_v11, %v930_v62  ;;  %1539 = vtanh.f32 %v778_v12  ;;  %v726_v22 = vadd.f32 %v1338_v13, %v362_v58  ;;  %v1208_v11 = vunpack.c.l.bf16 %v1239_v3 }
 0x135   :  { %v1534_v23 = vpop.eup %1533  ;;  %v1340_v24 = vpop.f32.mrf.mxu1  ;;  %v910_v12 = vsub.f32 1.0, %v1156_v61  ;;  %v1157_v13 = vunpack.c.h.bf16 %v1993_v51 }
 0x136   :  { %v370_v25 = vpop.f32.mrf.mxu0  ;;  %1034 = vst [vmem:[%s2054_s7 + $0x70] sm:$0xff] %v1008_v19  ;;  %v983_v26 = vmul.f32 %v1534_v23, %v1145_v49  ;;  %v779_v27 = vadd.f32 %v1823_v0, %v726_v22  ;;  %v1341_v28 = vadd.f32 %v1340_v24, %v1339_v17  ;;  %v935_v17 = vmul.f32 %v1205_v60, %v909_v2 }
 0x137   :  { %v1342_v32 = vpop.f32.mrf.mxu1 }
 0x138   :  { %v1416_v33 = vpop.f32.mrf.mxu0  ;;  %v1009_v34 = vadd.f32 %v983_v26, %v931_v14  ;;  %1541 = vtanh.f32 %v779_v27  ;;  %v731_v37 = vadd.f32 %v1341_v28, %v367_v10  ;;  %v936_v26 = vmul.f32 %v1208_v11, %v910_v12 }
 0x139   :  { %v1536_v38 = vpop.eup %1535  ;;  %v1343_v39 = vpop.f32.mrf.mxu1  ;;  %v1209_v27 = vunpack.c.h.bf16 %v1239_v3  ;;  %v911_v28 = vsub.f32 1.0, %v1157_v13  ;;  %v1240_v33 = vld [vmem:[%s2053_s6 + $0x58] sm:$0xff]  }
 0x13a   :  { %v375_v40 = vpop.f32.mrf.mxu0  ;;  %1035 = vst [vmem:[%s2054_s7 + $0x78] sm:$0xff] %v1009_v34  ;;  %v984_v41 = vmul.f32 %v1536_v38, %v1148_v5  ;;  %v780_v42 = vadd.f32 %v1823_v0, %v731_v37  ;;  %v1344_v43 = vadd.f32 %v1343_v39, %v1342_v32  ;;  %v1160_v32 = vunpack.c.l.bf16 %v1228_v20 }
 0x13b   :  { %v1345_v47 = vpop.f32.mrf.mxu1 }
 0x13c   :  { %v1419_v48 = vpop.f32.mrf.mxu0  ;;  %v1010_v49 = vadd.f32 %v984_v41, %v932_v35  ;;  %1543 = vtanh.f32 %v780_v42  ;;  %v734_v52 = vadd.f32 %v1344_v43, %v370_v25  ;;  %v1212_v41 = vunpack.c.l.bf16 %v1240_v33 }
 0x13d   :  { %v1538_v53 = vpop.eup %1537  ;;  %v1346_v54 = vpop.f32.mrf.mxu1  ;;  %v1161_v42 = vunpack.c.h.bf16 %v1228_v20 }
 0x13e   :  { %v378_v55 = vpop.f32.mrf.mxu0  ;;  %1036 = vst [vmem:[%s2054_s7 + $0x80] sm:$0xff] %v1010_v49  ;;  %v985_v56 = vmul.f32 %v1538_v53, %v1149_v16  ;;  %v781_v57 = vadd.f32 %v1823_v0, %v734_v52  ;;  %v1347_v58 = vadd.f32 %v1346_v54, %v1345_v47  ;;  %v1229_v47 = vld [vmem:[%s2052_s5 + $0x60] sm:$0xff]  }
 0x13f   :  { %v1348_v62 = vpop.f32.mrf.mxu1  ;;  %v913_v51 = vsub.f32 1.0, %v1161_v42  ;;  %v1164_v54 = vunpack.c.l.bf16 %v1229_v47 }
 0x140   :  { %v1420_v63 = vpop.f32.mrf.mxu0  ;;  %v1011_v1 = vadd.f32 %v985_v56, %v933_v44  ;;  %1545 = vtanh.f32 %v781_v57  ;;  %v739_v4 = vadd.f32 %v1347_v58, %v375_v40  ;;  %v937_v40 = vmul.f32 %v1209_v27, %v911_v28  ;;  %v1241_v56 = vld [vmem:[%s2053_s6 + $0x60] sm:$0xff]  }
 0x141   :  { %v1540_v5 = vpop.eup %1539  ;;  %v1349_v6 = vpop.f32.mrf.mxu1  ;;  %v912_v44 = vsub.f32 1.0, %v1160_v32  ;;  %v1216_v60 = vunpack.c.l.bf16 %v1241_v56  ;;  %v1217_v3 = vunpack.c.h.bf16 %v1241_v56 }
 0x142   :  { %v383_v7 = vpop.f32.mrf.mxu0  ;;  %1037 = vst [vmem:[%s2054_s7 + $0x88] sm:$0xff] %v1011_v1  ;;  %v986_v8 = vmul.f32 %v1540_v5, %v1152_v31  ;;  %v782_v9 = vadd.f32 %v1823_v0, %v739_v4  ;;  %v1350_v10 = vadd.f32 %v1349_v6, %v1348_v62 }
 0x143   :  { %v1351_v14 = vpop.f32.mrf.mxu1  ;;  %v938_v53 = vmul.f32 %v1212_v41, %v912_v44 }
 0x144   :  { %v1423_v15 = vpop.f32.mrf.mxu0  ;;  %v1012_v16 = vadd.f32 %v986_v8, %v934_v59  ;;  %1547 = vtanh.f32 %v782_v9  ;;  %v742_v18 = vadd.f32 %v1350_v10, %v378_v55 }
 0x145   :  { %v1542_v19 = vpop.eup %1541  ;;  %v1352_v21 = vpop.f32.mrf.mxu1 }
 0x146   :  { %v386_v22 = vpop.f32.mrf.mxu0  ;;  %1038 = vst [vmem:[%s2054_s7 + $0x90] sm:$0xff] %v1012_v16  ;;  %v987_v23 = vmul.f32 %v1542_v19, %v1153_v50  ;;  %v783_v24 = vadd.f32 %v1823_v0, %v742_v18  ;;  %v1353_v25 = vadd.f32 %v1352_v21, %v1351_v14  ;;  %v1213_v50 = vunpack.c.h.bf16 %v1240_v33 }
 0x147   :  { %v1354_v29 = vpop.f32.mrf.mxu1 }
 0x148   :  { %v1424_v30 = vpop.f32.mrf.mxu0  ;;  %v1013_v31 = vadd.f32 %v987_v23, %v935_v17  ;;  %1549 = vtanh.f32 %v783_v24  ;;  %v747_v34 = vadd.f32 %v1353_v25, %v383_v7  ;;  %v939_v58 = vmul.f32 %v1213_v50, %v913_v51 }
 0x149   :  { %v1544_v35 = vpop.eup %1543  ;;  %v1355_v36 = vpop.f32.mrf.mxu1 }
 0x14a   :  { %1039 = vst [vmem:[%s2054_s7 + $0x98] sm:$0xff] %v1013_v31  ;;  %v988_v37 = vmul.f32 %v1544_v35, %v1156_v61  ;;  %v784_v38 = vadd.f32 %v1823_v0, %v747_v34  ;;  %v1356_v39 = vadd.f32 %v1355_v36, %v1354_v29  ;;  %v1165_v61 = vunpack.c.h.bf16 %v1229_v47 }
 0x14c   :  { %v1014_v43 = vadd.f32 %v988_v37, %v936_v26  ;;  %1551 = vtanh.f32 %v784_v38  ;;  %v750_v45 = vadd.f32 %v1356_v39, %v386_v22  ;;  %v915_v4 = vsub.f32 1.0, %v1165_v61 }
 0x14d   :  { %v1546_v46 = vpop.eup %1545 }
 0x14e   :  { %1040 = vst [vmem:[%s2054_s7 + $0xa0] sm:$0xff] %v1014_v43  ;;  %v989_v48 = vmul.f32 %v1546_v46, %v1157_v13  ;;  %v785_v49 = vadd.f32 %v1823_v0, %v750_v45  ;;  %v914_v0 = vsub.f32 1.0, %v1164_v54  ;;  %v941_v8 = vmul.f32 %v1217_v3, %v915_v4 }
 0x150   :  { %v1015_v52 = vadd.f32 %v989_v48, %v937_v40  ;;  %1553 = vtanh.f32 %v785_v49  ;;  %v940_v2 = vmul.f32 %v1216_v60, %v914_v0 }
 0x151   :  { %v1548_v55 = vpop.eup %1547 }
 0x152   :  { %1041 = vst [vmem:[%s2054_s7 + $0xa8] sm:$0xff] %v1015_v52  ;;  %v990_v57 = vmul.f32 %v1548_v55, %v1160_v32 }
 0x154   :  { %v1016_v59 = vadd.f32 %v990_v57, %v938_v53 }
 0x155   :  { %v1550_v62 = vpop.eup %1549 }
 0x156   :  { %1042 = vst [vmem:[%s2054_s7 + $0xb0] sm:$0xff] %v1016_v59  ;;  %v991_v63 = vmul.f32 %v1550_v62, %v1161_v42 }
 0x158   :  { %v1017_v1 = vadd.f32 %v991_v63, %v939_v58 }
 0x159   :  { %v1552_v5 = vpop.eup %1551 }
 0x15a   :  { %1043 = vst [vmem:[%s2054_s7 + $0xb8] sm:$0xff] %v1017_v1  ;;  %v992_v6 = vmul.f32 %v1552_v5, %v1164_v54 }
 0x15c   :  { %v1018_v7 = vadd.f32 %v992_v6, %v940_v2 }
 0x15d   :  { %v1554_v9 = vpop.eup %1553 }
 0x15e   :  { %1044 = vst [vmem:[%s2054_s7 + $0xc0] sm:$0xff] %v1018_v7  ;;  %v993_v10 = vmul.f32 %v1554_v9, %v1165_v61 }
 0x160   :  { %v1019_v11 = vadd.f32 %v993_v10, %v941_v8 }
 0x162   :  { %1045 = vst [vmem:[%s2054_s7 + $0xc8] sm:$0xff] %v1019_v11 }

// kernel: rnncnn_forward.11
= control target key start
LH: loop header
LB: loop body
LE: loop exit
PB: predicated region body
PF: predicated region fallthrough
CT: control target
= control target key end

     0   :  { %v770_v0 = vmov 0.0   ;;  %vm771_vm0 = vmmov 0   ;;  %s967_s3 = inlined_call_operand.vmem [shape: bf16[128,128], index: 3, kind: input, shape index: {}]   ;;  %s968_s2 = inlined_call_operand.vmem [shape: bf16[256,128], index: 2, kind: input, shape index: {}]   ;;  %s969_s1 = inlined_call_operand.vmem [shape: bf16[80,128], index: 1, kind: input, shape index: {}]   ;;  %s970_s0 = inlined_call_operand.vmem [shape: bf16[80,256], index: 0, kind: input, shape index: {}]   ;;  %s971_s4 = inlined_call_operand.vmem [shape: f32[1,128], index: 4, kind: input, shape index: {}]   ;;  %s972_s5 = inlined_call_operand.vmem [shape: bf16[80,128], index: 5, kind: output, shape index: {}]  }
   0x1   :  { %688 = vmatprep.subr.bf16.mxu0 %v770_v0  ;;  %v726_v1 = vld [vmem:[%s967_s3 + $0x38] sm:$0xff]   ;;  %704 = vmatprep.mubr.msk.bf16.mxu0 %vm771_vm0, %v770_v0  ;;  %v729_v4 = vld [vmem:[%s967_s3 + $0x30] sm:$0xff]   ;;  %v732_v7 = vld [vmem:[%s967_s3 + $0x28] sm:$0xff]  }
   0x2   :  { %v727_v2 = vld [vmem:[%s968_s2 + $0x78] sm:$0xff]   ;;  %689 = vmatpush3.bf16.msra.mxu0 %v726_v1  ;;  %v730_v5 = vld [vmem:[%s968_s2 + $0x70] sm:$0xff]   ;;  %v733_v8 = vld [vmem:[%s968_s2 + $0x68] sm:$0xff]  }
   0x3   :  { %v728_v3 = vld [vmem:[%s968_s2 + $0x38] sm:$0xff]   ;;  %642 = vmatprep.subr.bf16.mxu1 %v727_v2  ;;  %690 = vmatprep.subr.bf16.mxu0 %v770_v0  ;;  %v731_v6 = vld [vmem:[%s968_s2 + $0x30] sm:$0xff]   ;;  %v734_v9 = vld [vmem:[%s968_s2 + $0x28] sm:$0xff]  }
   0x4   :  { %643 = vmatpush3.bf16.msra.mxu1 %v728_v3  ;;  %v735_v10 = vld [vmem:[%s967_s3 + $0x20] sm:$0xff]   ;;  %v739_v13 = vld [vmem:[%s968_s2 + $0x58] sm:$0xff]   ;;  %v742_v16 = vld [vmem:[%s968_s2 + $0x50] sm:$0xff]  }
   0x5   :  { %644 = vmatprep.subr.bf16.mxu1 %v730_v5  ;;  %v736_v11 = vld [vmem:[%s968_s2 + $0x60] sm:$0xff]   ;;  %v738_v14 = vld [vmem:[%s967_s3 + $0x18] sm:$0xff]   ;;  %v741_v17 = vld [vmem:[%s967_s3 + $0x10] sm:$0xff]  }
   0x6   :  { %691 = vmatpush3.bf16.msra.mxu0 %v729_v4  ;;  %v737_v12 = vld [vmem:[%s968_s2 + $0x20] sm:$0xff]   ;;  %v740_v15 = vld [vmem:[%s968_s2 + $0x18] sm:$0xff]   ;;  %v743_v18 = vld [vmem:[%s968_s2 + $0x10] sm:$0xff]  }
   0x7   :  { %692 = vmatprep.subr.bf16.mxu0 %v770_v0  ;;  %v745_v19 = vld [vmem:[%s968_s2 + $0x48] sm:$0xff]   ;;  %v747_v22 = vld [vmem:[%s967_s3] sm:$0xff]   ;;  %v755_v28 = vld [vmem:[%s970_s0 + $0x14] ss:$8 sps:$4 sm:$0xff]  }
   0x8   :  { %645 = vmatpush3.bf16.msra.mxu1 %v731_v6  ;;  %v744_v20 = vld [vmem:[%s967_s3 + $0x8] sm:$0xff]   ;;  %v748_v23 = vld [vmem:[%s968_s2 + $0x40] sm:$0xff]   ;;  %v757_v30 = vld [vmem:[%s970_s0 + $0x10] ss:$8 sps:$4 sm:$0xff]  }
   0x9   :  { %646 = vmatprep.subr.bf16.mxu1 %v733_v8  ;;  %v746_v21 = vld [vmem:[%s968_s2 + $0x8] sm:$0xff]   ;;  %v749_v25 = vld [vmem:[%s968_s2] sm:$0xff]   ;;  %v758_v32 = vld [vmem:[%s969_s1 + $0x10] sm:$0xff]  }
   0xa   :  { %693 = vmatpush3.bf16.msra.mxu0 %v732_v7  ;;  %v753_v24 = vld [vmem:[%s970_s0 + $0x4] ss:$8 sps:$4 sm:$0xff]   ;;  %v751_v27 = vld [vmem:[%s970_s0] ss:$8 sps:$4 sm:$0xff]   ;;  %v763_v34 = vld [vmem:[%s970_s0 + $0x34] ss:$8 sps:$4 sm:$0xff]  }
   0xb   :  { %694 = vmatprep.subr.bf16.mxu0 %v770_v0  ;;  %418 = vmatprep.mubr.bf16.mxu1 %v753_v24  ;;  %v750_v26 = vld [vmem:[%s969_s1] sm:$0xff]   ;;  %v754_v29 = vld [vmem:[%s969_s1 + $0x8] sm:$0xff]   ;;  %v762_v35 = vld [vmem:[%s969_s1 + $0x18] sm:$0xff]  }
   0xc   :  { %647 = vmatpush3.bf16.msra.mxu1 %v734_v9  ;;  %v759_v31 = vld [vmem:[%s970_s0 + $0x24] ss:$8 sps:$4 sm:$0xff]   ;;  %v761_v33 = vld [vmem:[%s970_s0 + $0x20] ss:$8 sps:$4 sm:$0xff]   ;;  %v765_v36 = vld [vmem:[%s970_s0 + $0x30] ss:$8 sps:$4 sm:$0xff]  }
   0xd   :  { %648 = vmatprep.subr.bf16.mxu1 %v736_v11  ;;  %v767_v37 = vld [vmem:[%s970_s0 + $0x44] ss:$8 sps:$4 sm:$0xff]   ;;  %v769_v39 = vld [vmem:[%s970_s0 + $0x40] ss:$8 sps:$4 sm:$0xff]  }
   0xe   :  { %695 = vmatpush3.bf16.msra.mxu0 %v735_v10  ;;  %v766_v38 = vld [vmem:[%s969_s1 + $0x20] sm:$0xff]  }
   0xf   :  { %696 = vmatprep.subr.bf16.mxu0 %v770_v0  ;;  %v940_v49 = vld [vmem:[%s971_s4] ss:$0 sm:$0xff] }
  0x10   :  { %649 = vmatpush3.bf16.msra.mxu1 %v737_v12 }
  0x11   :  { %650 = vmatprep.subr.bf16.mxu1 %v739_v13 }
  0x12   :  { %697 = vmatpush3.bf16.msra.mxu0 %v738_v14 }
  0x13   :  { %698 = vmatprep.subr.bf16.mxu0 %v770_v0 }
  0x14   :  { %651 = vmatpush3.bf16.msra.mxu1 %v740_v15 }
  0x15   :  { %652 = vmatprep.subr.bf16.mxu1 %v742_v16 }
  0x16   :  { %699 = vmatpush3.bf16.msra.mxu0 %v741_v17 }
  0x17   :  { %700 = vmatprep.subr.bf16.mxu0 %v770_v0 }
  0x18   :  { %653 = vmatpush3.bf16.msra.mxu1 %v743_v18 }
  0x19   :  { %654 = vmatprep.subr.bf16.mxu1 %v745_v19 }
  0x1a   :  { %701 = vmatpush3.bf16.msra.mxu0 %v744_v20 }
  0x1b   :  { %702 = vmatprep.subr.bf16.mxu0 %v770_v0 }
  0x1c   :  { %655 = vmatpush3.bf16.msra.mxu1 %v746_v21 }
  0x1d   :  { %656 = vmatprep.subr.bf16.mxu1 %v748_v23 }
  0x1e   :  { %703 = vmatpush3.bf16.msra.mxu0 %v747_v22 }
  0x20   :  { %657 = vmatpush3.bf16.msra.mxu1 %v749_v25 }
  0x21   :  { %705 = vmatmul.mubr.bf16.vlgmr.msra.gmra.mxu0 %v750_v26 }
  0x22   :  { %708 = vmatprep.mubr.msk.bf16.mxu0 %vm771_vm0, %v770_v0 }
  0x23   :  { %419 = vmatmul.mubr.bf16.vlgmr.msra.gmra.mxu1 %v751_v27 }
  0x24   :  { %426 = vmatprep.mubr.bf16.mxu1 %v755_v28 }
  0x29   :  { %709 = vmatmul.mubr.bf16.gmra.mxu0 %v754_v29 }
  0x2a   :  { %712 = vmatprep.mubr.msk.bf16.mxu0 %vm771_vm0, %v770_v0 }
  0x2b   :  { %427 = vmatmul.mubr.bf16.gmra.mxu1 %v757_v30 }
  0x2c   :  { %434 = vmatprep.mubr.bf16.mxu1 %v759_v31 }
  0x31   :  { %713 = vmatmul.mubr.bf16.gmra.mxu0 %v758_v32 }
  0x32   :  { %716 = vmatprep.mubr.msk.bf16.mxu0 %vm771_vm0, %v770_v0 }
  0x33   :  { %435 = vmatmul.mubr.bf16.gmra.mxu1 %v761_v33 }
  0x34   :  { %442 = vmatprep.mubr.bf16.mxu1 %v763_v34 }
  0x39   :  { %717 = vmatmul.mubr.bf16.gmra.mxu0 %v762_v35 }
  0x3a   :  { %720 = vmatprep.mubr.msk.bf16.mxu0 %vm771_vm0, %v770_v0 }
  0x3b   :  { %443 = vmatmul.mubr.bf16.gmra.mxu1 %v765_v36 }
  0x3c   :  { %450 = vmatprep.mubr.bf16.mxu1 %v767_v37 }
  0x41   :  { %721 = vmatmul.mubr.bf16.gmra.mxu0 %v766_v38 }
  0x43   :  { %451 = vmatmul.mubr.bf16.gmra.mxu1 %v769_v39 }
  0xe1   :  { %v201_v40 = vpop.f32.mrf.mxu0 }
  0xe3   :  { %v658_v41 = vpop.f32.mrf.mxu1  ;;  %v706_v42 = vpop.f32.mrf.mxu0 }
  0xe5   :  { %v659_v43 = vpop.f32.mrf.mxu1  ;;  %v204_v44 = vpop.f32.mrf.mxu0 }
  0xe6   :  { %v660_v45 = vadd.f32 %v659_v43, %v658_v41 }
  0xe7   :  { %v661_v46 = vpop.f32.mrf.mxu1  ;;  %v707_v47 = vpop.f32.mrf.mxu0 }
  0xe8   :  { %v421_v48 = vadd.f32 %v660_v45, %v201_v40 }
  0xe9   :  { %v662_v50 = vpop.f32.mrf.mxu1  ;;  %v209_v51 = vpop.f32.mrf.mxu0 }
  0xea   :  { %v663_v52 = vadd.f32 %v662_v50, %v661_v46  ;;  %v466_v55 = vadd.f32 %v940_v49, %v421_v48 }
  0xeb   :  { %v664_v53 = vpop.f32.mrf.mxu1  ;;  %v710_v54 = vpop.f32.mrf.mxu0 }
  0xec   :  { %v424_v56 = vadd.f32 %v663_v52, %v204_v44  ;;  %v476_v63 = vmax.f32 %v466_v55, 0.0 }
  0xed   :  { %v665_v57 = vpop.f32.mrf.mxu1  ;;  %v212_v58 = vpop.f32.mrf.mxu0 }
  0xee   :  { %v467_v59 = vadd.f32 %v940_v49, %v424_v56  ;;  %v666_v60 = vadd.f32 %v665_v57, %v664_v53 }
  0xef   :  { %v667_v61 = vpop.f32.mrf.mxu1  ;;  %v711_v62 = vpop.f32.mrf.mxu0 }
  0xf0   :  { %v477_v0 = vmax.f32 %v467_v59, 0.0  ;;  %v429_v1 = vadd.f32 %v666_v60, %v209_v51 }
  0xf1   :  { %v668_v2 = vpop.f32.mrf.mxu1  ;;  %v217_v3 = vpop.f32.mrf.mxu0 }
  0xf2   :  { %v603_v4 = vpack.c.bf16 %v477_v0, %v476_v63  ;;  %v669_v5 = vadd.f32 %v668_v2, %v667_v61  ;;  %v468_v8 = vadd.f32 %v940_v49, %v429_v1 }
  0xf3   :  { %v670_v6 = vpop.f32.mrf.mxu1  ;;  %v714_v7 = vpop.f32.mrf.mxu0 }
  0xf4   :  { %604 = vst [vmem:[%s972_s5] sm:$0xff] %v603_v4   ;;  %v432_v9 = vadd.f32 %v669_v5, %v212_v58  ;;  %v478_v16 = vmax.f32 %v468_v8, 0.0 }
  0xf5   :  { %v671_v10 = vpop.f32.mrf.mxu1  ;;  %v220_v11 = vpop.f32.mrf.mxu0 }
  0xf6   :  { %v469_v12 = vadd.f32 %v940_v49, %v432_v9  ;;  %v672_v13 = vadd.f32 %v671_v10, %v670_v6 }
  0xf7   :  { %v673_v14 = vpop.f32.mrf.mxu1  ;;  %v715_v15 = vpop.f32.mrf.mxu0 }
  0xf8   :  { %v479_v17 = vmax.f32 %v469_v12, 0.0  ;;  %v437_v18 = vadd.f32 %v672_v13, %v217_v3 }
  0xf9   :  { %v674_v19 = vpop.f32.mrf.mxu1  ;;  %v225_v20 = vpop.f32.mrf.mxu0 }
  0xfa   :  { %v608_v21 = vpack.c.bf16 %v479_v17, %v478_v16  ;;  %v675_v22 = vadd.f32 %v674_v19, %v673_v14  ;;  %v470_v25 = vadd.f32 %v940_v49, %v437_v18 }
  0xfb   :  { %v676_v23 = vpop.f32.mrf.mxu1  ;;  %v718_v24 = vpop.f32.mrf.mxu0 }
  0xfc   :  { %625 = vst [vmem:[%s972_s5 + $0x8] sm:$0xff] %v608_v21   ;;  %v440_v26 = vadd.f32 %v675_v22, %v220_v11  ;;  %v480_v33 = vmax.f32 %v470_v25, 0.0 }
  0xfd   :  { %v677_v27 = vpop.f32.mrf.mxu1  ;;  %v228_v28 = vpop.f32.mrf.mxu0 }
  0xfe   :  { %v471_v29 = vadd.f32 %v940_v49, %v440_v26  ;;  %v678_v30 = vadd.f32 %v677_v27, %v676_v23 }
  0xff   :  { %v679_v31 = vpop.f32.mrf.mxu1  ;;  %v719_v32 = vpop.f32.mrf.mxu0 }
 0x100   :  { %v481_v34 = vmax.f32 %v471_v29, 0.0  ;;  %v445_v35 = vadd.f32 %v678_v30, %v225_v20 }
 0x101   :  { %v680_v36 = vpop.f32.mrf.mxu1  ;;  %v233_v37 = vpop.f32.mrf.mxu0 }
 0x102   :  { %v613_v38 = vpack.c.bf16 %v481_v34, %v480_v33  ;;  %v681_v39 = vadd.f32 %v680_v36, %v679_v31  ;;  %v472_v42 = vadd.f32 %v940_v49, %v445_v35 }
 0x103   :  { %v682_v40 = vpop.f32.mrf.mxu1  ;;  %v722_v41 = vpop.f32.mrf.mxu0 }
 0x104   :  { %626 = vst [vmem:[%s972_s5 + $0x10] sm:$0xff] %v613_v38   ;;  %v448_v43 = vadd.f32 %v681_v39, %v228_v28  ;;  %v482_v51 = vmax.f32 %v472_v42, 0.0 }
 0x105   :  { %v683_v44 = vpop.f32.mrf.mxu1  ;;  %v236_v45 = vpop.f32.mrf.mxu0 }
 0x106   :  { %v473_v46 = vadd.f32 %v940_v49, %v448_v43  ;;  %v684_v47 = vadd.f32 %v683_v44, %v682_v40 }
 0x107   :  { %v685_v48 = vpop.f32.mrf.mxu1  ;;  %v723_v50 = vpop.f32.mrf.mxu0 }
 0x108   :  { %v483_v52 = vmax.f32 %v473_v46, 0.0  ;;  %v453_v53 = vadd.f32 %v684_v47, %v233_v37 }
 0x109   :  { %v686_v54 = vpop.f32.mrf.mxu1 }
 0x10a   :  { %v618_v55 = vpack.c.bf16 %v483_v52, %v482_v51  ;;  %v687_v56 = vadd.f32 %v686_v54, %v685_v48  ;;  %v474_v57 = vadd.f32 %v940_v49, %v453_v53 }
 0x10c   :  { %627 = vst [vmem:[%s972_s5 + $0x18] sm:$0xff] %v618_v55   ;;  %v456_v58 = vadd.f32 %v687_v56, %v236_v45  ;;  %v484_v60 = vmax.f32 %v474_v57, 0.0 }
 0x10e   :  { %v475_v59 = vadd.f32 %v940_v49, %v456_v58 }
 0x110   :  { %v485_v61 = vmax.f32 %v475_v59, 0.0 }
 0x112   :  { %v623_v62 = vpack.c.bf16 %v485_v61, %v484_v60 }
 0x114   :  { %628 = vst [vmem:[%s972_s5 + $0x20] sm:$0xff] %v623_v62  }

</bundles_post_ra>
